<compile_context>
chip_gen: v6e
topology: v6e:2x2x1
jax: 0.10.0
libtpu: 0.0.40
codegen_flags: <defaults>
</compile_context>

<pallas_src>
import math

import jax
import jax.numpy as jnp
from jax.experimental import pallas as pl
from jax.experimental.pallas import tpu as pltpu

# ----------------------------- config ---------------------------------------
N_VOCAB     = 50
N_VOCAB_PAD = 128          # lane-dense generator output width
DIM_IMG     = 16
DIM_MODEL   = 32
DIM_FF      = 64
H           = 4
DH          = DIM_MODEL // H
N_ENC       = 2
N_DEC       = 2
N_STRAIN    = 3

B   = 2     # batch
L_S = 8     # source (encoder) sequence length
L_T = 8     # target text sequence length
L_I = 1     # image tokens
L_F = L_I + L_T  # fused decoder sequence length

_VMEM  = pl.BlockSpec(memory_space=pltpu.MemorySpace.VMEM)
_SCALE = 1.0 / math.sqrt(DH)


# ----------------------------- in-kernel helpers -----------------------------
def _layernorm(x, g, b):
    mu = jnp.mean(x, axis=-1, keepdims=True)
    var = jnp.mean((x - mu) ** 2, axis=-1, keepdims=True)
    return (x - mu) * jax.lax.rsqrt(var + 1e-5) * g + b


def _attend(q, k, v, wo, bo, mask):
    """All-head attention on 2-D slabs.

    q: (Rq, D), k/v: (Rk, D), wo: (D, D), bo: (1, D), mask: (Rq, Rk) additive.
    Batch separation / causality is encoded in `mask` (block-diagonal), so every
    head of every batch element is handled in this single unrolled loop.
    The output projection is folded per-head: out = sum_h (softmax(q_h k_h^T) v_h) Wo[h].
    """
    o_sum = None
    for h in range(H):
        sl = slice(h * DH, (h + 1) * DH)
        qh, kh, vh = q[:, sl], k[:, sl], v[:, sl]
        s = jax.lax.dot_general(
            qh, kh, (((1,), (1,)), ((), ())),
            preferred_element_type=jnp.float32) * _SCALE + mask
        s = s - jnp.max(s, axis=-1, keepdims=True)
        p = jnp.exp(s)
        p = p * pl.reciprocal(jnp.sum(p, axis=-1, keepdims=True), approx=True)
        oh = jnp.dot(p, vh, preferred_element_type=jnp.float32)
        contrib = jnp.dot(oh, wo[sl, :], preferred_element_type=jnp.float32)
        o_sum = contrib if o_sum is None else o_sum + contrib
    return o_sum + bo


def _ffn(x, w1, b1, w2, b2):
    h1 = jnp.maximum(jnp.dot(x, w1, preferred_element_type=jnp.float32) + b1, 0.0)
    return jnp.dot(h1, w2, preferred_element_type=jnp.float32) + b2


# ----------------------------- fused forward kernel --------------------------
def _poem_fwd_kernel(
    # activations / inputs
    src_ref, txt_ref, img_ref, img_sel_ref,
    enc_mask_ref, dec_mask_ref, cross_mask_ref,
    img_w_ref, img_b_ref,
    # encoder (stacked over N_ENC on leading axis)
    e_wqkv, e_bqkv, e_wo, e_bo, e_w1, e_b1, e_w2, e_b2,
    e_ln1g, e_ln1b, e_ln2g, e_ln2b,
    # decoder (stacked over N_DEC on leading axis)
    d_wqkv, d_bqkv, d_wo, d_bo,
    d_cqw, d_cqb, d_ckvw, d_ckvb, d_cow, d_cob,
    d_w1, d_b1, d_w2, d_b2,
    d_ln1g, d_ln1b, d_ln2g, d_ln2b, d_ln3g, d_ln3b,
    # generator (vocab padded to N_VOCAB_PAD)
    gen_w_ref, gen_b_ref,
    # output
    out_ref,
):
    f32 = jnp.float32
    D = DIM_MODEL

    # ---- encoder (PretrainModel) ----
    mem = src_ref[...]
    enc_mask = enc_mask_ref[...]
    for li in range(N_ENC):
        qkv = jnp.dot(mem, e_wqkv[li], preferred_element_type=f32) + e_bqkv[li]
        a = _attend(qkv[:, :D], qkv[:, D:2 * D], qkv[:, 2 * D:],
                    e_wo[li], e_bo[li], enc_mask)
        mem = _layernorm(mem + a, e_ln1g[li], e_ln1b[li])
        f = _ffn(mem, e_w1[li], e_b1[li], e_w2[li], e_b2[li])
        mem = _layernorm(mem + f, e_ln2g[li], e_ln2b[li])

    # ---- image embedding + fusion (image token scattered to row b*L_F) ----
    img_tok = (jnp.dot(img_ref[...], img_w_ref[...], preferred_element_type=f32)
               + img_b_ref[...])                                   # (B, D), bias already has PE[0]
    x = txt_ref[...] + jnp.dot(img_sel_ref[...], img_tok,
                               preferred_element_type=f32)         # (B*L_F, D)

    # ---- decoder ----
    dec_mask = dec_mask_ref[...]
    cross_mask = cross_mask_ref[...]
    for li in range(N_DEC):
        # causal self-attention (fused QKV)
        qkv = jnp.dot(x, d_wqkv[li], preferred_element_type=f32) + d_bqkv[li]
        a = _attend(qkv[:, :D], qkv[:, D:2 * D], qkv[:, 2 * D:],
                    d_wo[li], d_bo[li], dec_mask)
        x = _layernorm(x + a, d_ln1g[li], d_ln1b[li])

        # cross-attention over encoder memory (fused KV)
        q = jnp.dot(x, d_cqw[li], preferred_element_type=f32) + d_cqb[li]
        kv = jnp.dot(mem, d_ckvw[li], preferred_element_type=f32) + d_ckvb[li]
        a = _attend(q, kv[:, :D], kv[:, D:], d_cow[li], d_cob[li], cross_mask)
        x = _layernorm(x + a, d_ln2g[li], d_ln2b[li])

        # feed-forward
        f = _ffn(x, d_w1[li], d_b1[li], d_w2[li], d_b2[li])
        x = _layernorm(x + f, d_ln3g[li], d_ln3b[li])

    # ---- generator: log_softmax over lane-dense padded vocab ----
    logits = jnp.dot(x, gen_w_ref[...], preferred_element_type=f32) + gen_b_ref[...]
    m = jnp.max(logits, axis=-1, keepdims=True)
    lse = jnp.log(jnp.sum(jnp.exp(logits - m), axis=-1, keepdims=True)) + m
    out_ref[...] = logits - lse


# ----------------------------- wrapper ---------------------------------------
@jax.jit
def poem_write_forward(params, source, target):
    (text_target, strains_target), img_target = target
    pe = params["pe"]
    scale = math.sqrt(DIM_MODEL)

    # embeddings + positional encodings (cheap XLA gathers; everything else is one kernel)
    src = (jnp.take(params["enc_tok_emb"], source, axis=0) * scale
           + pe[:L_S]).reshape(B * L_S, DIM_MODEL)

    out_text = ((jnp.take(params["dec_tok_emb"], text_target, axis=0)
                 + jnp.take(params["strain_emb"], strains_target, axis=0)) * scale
                + pe[:L_T])
    # fused layout: row 0 of each batch reserved for the image token
    txt_full = jnp.pad(out_text, ((0, 0), (L_I, 0), (0, 0))).reshape(B * L_F, DIM_MODEL)

    img2d = img_target.reshape(B, DIM_IMG)
    img_b_eff = params["img_b"] + pe[0:1]          # fold image-token PE into the bias

    # selection matrix scattering the image token into row b*L_F of the fused slab
    rows = jnp.arange(B * L_F)
    img_sel = (rows[:, None] == (jnp.arange(B) * L_F)[None, :]).astype(jnp.float32)

    # additive attention masks: block-diagonal across batch (+ causal for decoder self-attn)
    neg = jnp.float32(-1e9)
    sb = jnp.repeat(jnp.arange(B), L_S)
    fb = jnp.repeat(jnp.arange(B), L_F)
    fp = jnp.tile(jnp.arange(L_F), B)
    enc_mask = jnp.where(sb[:, None] == sb[None, :], 0.0, neg)
    dec_mask = jnp.where((fb[:, None] == fb[None, :]) & (fp[:, None] >= fp[None, :]), 0.0, neg)
    cross_mask = jnp.where(fb[:, None] == sb[None, :], 0.0, neg)

    operands = [
        src, txt_full, img2d, img_sel,
        enc_mask, dec_mask, cross_mask,
        params["img_w"], img_b_eff,
        params["e_wqkv"], params["e_bqkv"], params["e_wo"], params["e_bo"],
        params["e_w1"], params["e_b1"], params["e_w2"], params["e_b2"],
        params["e_ln1g"], params["e_ln1b"], params["e_ln2g"], params["e_ln2b"],
        params["d_wqkv"], params["d_bqkv"], params["d_wo"], params["d_bo"],
        params["d_cqw"], params["d_cqb"], params["d_ckvw"], params["d_ckvb"],
        params["d_cow"], params["d_cob"],
        params["d_w1"], params["d_b1"], params["d_w2"], params["d_b2"],
        params["d_ln1g"], params["d_ln1b"], params["d_ln2g"], params["d_ln2b"],
        params["d_ln3g"], params["d_ln3b"],
        params["gen_w"], params["gen_b"],
    ]

    logp = pl.pallas_call(
        _poem_fwd_kernel,
        out_shape=jax.ShapeDtypeStruct((B * L_F, N_VOCAB_PAD), jnp.float32),
        in_specs=[_VMEM] * len(operands),
        out_specs=_VMEM,
    )(*operands)

    return logp[:, :N_VOCAB].reshape(B, L_F, N_VOCAB)


# ----------------------------- parameter init --------------------------------
def sinusoid_pe(max_len, d):
    pos = jnp.arange(max_len, dtype=jnp.float32)[:, None]
    i = jnp.arange(0, d, 2, dtype=jnp.float32)
    div = jnp.exp(-jnp.log(10000.0) * i / d)
    pe = jnp.zeros((max_len, d), jnp.float32)
    pe = pe.at[:, 0::2].set(jnp.sin(pos * div))
    pe = pe.at[:, 1::2].set(jnp.cos(pos * div))
    return pe


def init_params(key):
    keys = iter(jax.random.split(key, 64))

    def w(shape):
        return 0.02 * jax.random.normal(next(keys), shape, jnp.float32)

    def zeros(shape):
        return jnp.zeros(shape, jnp.float32)

    def ones(shape):
        return jnp.ones(shape, jnp.float32)

    p = dict(
        pe=sinusoid_pe(64, DIM_MODEL),
        enc_tok_emb=w((N_VOCAB, DIM_MODEL)),
        dec_tok_emb=w((N_VOCAB, DIM_MODEL)),
        strain_emb=w((N_STRAIN, DIM_MODEL)),
        img_w=w((DIM_IMG, DIM_MODEL)),
        img_b=zeros((1, DIM_MODEL)),
        # encoder layers, stacked on a leading axis (fused QKV weights)
        e_wqkv=w((N_ENC, DIM_MODEL, 3 * DIM_MODEL)),
        e_bqkv=zeros((N_ENC, 1, 3 * DIM_MODEL)),
        e_wo=w((N_ENC, DIM_MODEL, DIM_MODEL)),
        e_bo=zeros((N_ENC, 1, DIM_MODEL)),
        e_w1=w((N_ENC, DIM_MODEL, DIM_FF)),
        e_b1=zeros((N_ENC, 1, DIM_FF)),
        e_w2=w((N_ENC, DIM_FF, DIM_MODEL)),
        e_b2=zeros((N_ENC, 1, DIM_MODEL)),
        e_ln1g=ones((N_ENC, 1, DIM_MODEL)),
        e_ln1b=zeros((N_ENC, 1, DIM_MODEL)),
        e_ln2g=ones((N_ENC, 1, DIM_MODEL)),
        e_ln2b=zeros((N_ENC, 1, DIM_MODEL)),
        # decoder layers, stacked on a leading axis
        d_wqkv=w((N_DEC, DIM_MODEL, 3 * DIM_MODEL)),
        d_bqkv=zeros((N_DEC, 1, 3 * DIM_MODEL)),
        d_wo=w((N_DEC, DIM_MODEL, DIM_MODEL)),
        d_bo=zeros((N_DEC, 1, DIM_MODEL)),
        d_cqw=w((N_DEC, DIM_MODEL, DIM_MODEL)),
        d_cqb=zeros((N_DEC, 1, DIM_MODEL)),
        d_ckvw=w((N_DEC, DIM_MODEL, 2 * DIM_MODEL)),
        d_ckvb=zeros((N_DEC, 1, 2 * DIM_MODEL)),
        d_cow=w((N_DEC, DIM_MODEL, DIM_MODEL)),
        d_cob=zeros((N_DEC, 1, DIM_MODEL)),
        d_w1=w((N_DEC, DIM_MODEL, DIM_FF)),
        d_b1=zeros((N_DEC, 1, DIM_FF)),
        d_w2=w((N_DEC, DIM_FF, DIM_MODEL)),
        d_b2=zeros((N_DEC, 1, DIM_MODEL)),
        d_ln1g=ones((N_DEC, 1, DIM_MODEL)),
        d_ln1b=zeros((N_DEC, 1, DIM_MODEL)),
        d_ln2g=ones((N_DEC, 1, DIM_MODEL)),
        d_ln2b=zeros((N_DEC, 1, DIM_MODEL)),
        d_ln3g=ones((N_DEC, 1, DIM_MODEL)),
        d_ln3b=zeros((N_DEC, 1, DIM_MODEL)),
    )

    # generator weights, lane-padded to N_VOCAB_PAD output columns; padded logits get a
    # very negative bias so they vanish in the log-softmax and get sliced off outside.
    gen_w = w((DIM_MODEL, N_VOCAB))
    gen_b = zeros((1, N_VOCAB))
    p["gen_w"] = jnp.pad(gen_w, ((0, 0), (0, N_VOCAB_PAD - N_VOCAB)))
    p["gen_b"] = jnp.pad(gen_b, ((0, 0), (0, N_VOCAB_PAD - N_VOCAB)),
                         constant_values=-1e30)
    return p


# ----------------------------- main -------------------------------------------
if __name__ == "__main__":
    key = jax.random.PRNGKey(0)
    k_src, k_txt, k_str, k_img, k_par = jax.random.split(key, 5)

    source = jax.random.randint(k_src, (B, L_S), 0, N_VOCAB, dtype=jnp.int32)
    text_target = jax.random.randint(k_txt, (B, L_T), 0, N_VOCAB, dtype=jnp.int32)
    strains_target = jax.random.randint(k_str, (B, L_T), 0, N_STRAIN, dtype=jnp.int32)
    img_target = jax.random.normal(k_img, (B, DIM_IMG), jnp.float32)

    params = init_params(k_par)
    target = ((text_target, strains_target), img_target)

    out = poem_write_forward(params, source, target)
    out = jax.block_until_ready(out)

    assert out.shape == (B, L_F, N_VOCAB)
    assert bool(jnp.all(jnp.isfinite(out)))
    # rows of the generator output must be valid log-softmax distributions
    assert bool(jnp.allclose(jnp.sum(jnp.exp(out), axis=-1), 1.0, atol=1e-4))
    print("KERNEL_OK")
</pallas_src>

<mosaic_0001>
module attributes {stable_mosaic.version = 11 : i64} {
  func.func @_poem_fwd_kernel(%arg0: memref<16x32xf32, #tpu.memory_space<vmem>>, %arg1: memref<18x32xf32, #tpu.memory_space<vmem>>, %arg2: memref<2x16xf32, #tpu.memory_space<vmem>>, %arg3: memref<18x2xf32, #tpu.memory_space<vmem>>, %arg4: memref<16x16xf32, #tpu.memory_space<vmem>>, %arg5: memref<18x18xf32, #tpu.memory_space<vmem>>, %arg6: memref<18x16xf32, #tpu.memory_space<vmem>>, %arg7: memref<16x32xf32, #tpu.memory_space<vmem>>, %arg8: memref<1x32xf32, #tpu.memory_space<vmem>>, %arg9: memref<2x32x96xf32, #tpu.memory_space<vmem>>, %arg10: memref<2x1x96xf32, #tpu.memory_space<vmem>>, %arg11: memref<2x32x32xf32, #tpu.memory_space<vmem>>, %arg12: memref<2x1x32xf32, #tpu.memory_space<vmem>>, %arg13: memref<2x32x64xf32, #tpu.memory_space<vmem>>, %arg14: memref<2x1x64xf32, #tpu.memory_space<vmem>>, %arg15: memref<2x64x32xf32, #tpu.memory_space<vmem>>, %arg16: memref<2x1x32xf32, #tpu.memory_space<vmem>>, %arg17: memref<2x1x32xf32, #tpu.memory_space<vmem>>, %arg18: memref<2x1x32xf32, #tpu.memory_space<vmem>>, %arg19: memref<2x1x32xf32, #tpu.memory_space<vmem>>, %arg20: memref<2x1x32xf32, #tpu.memory_space<vmem>>, %arg21: memref<2x32x96xf32, #tpu.memory_space<vmem>>, %arg22: memref<2x1x96xf32, #tpu.memory_space<vmem>>, %arg23: memref<2x32x32xf32, #tpu.memory_space<vmem>>, %arg24: memref<2x1x32xf32, #tpu.memory_space<vmem>>, %arg25: memref<2x32x32xf32, #tpu.memory_space<vmem>>, %arg26: memref<2x1x32xf32, #tpu.memory_space<vmem>>, %arg27: memref<2x32x64xf32, #tpu.memory_space<vmem>>, %arg28: memref<2x1x64xf32, #tpu.memory_space<vmem>>, %arg29: memref<2x32x32xf32, #tpu.memory_space<vmem>>, %arg30: memref<2x1x32xf32, #tpu.memory_space<vmem>>, %arg31: memref<2x32x64xf32, #tpu.memory_space<vmem>>, %arg32: memref<2x1x64xf32, #tpu.memory_space<vmem>>, %arg33: memref<2x64x32xf32, #tpu.memory_space<vmem>>, %arg34: memref<2x1x32xf32, #tpu.memory_space<vmem>>, %arg35: memref<2x1x32xf32, #tpu.memory_space<vmem>>, %arg36: memref<2x1x32xf32, #tpu.memory_space<vmem>>, %arg37: memref<2x1x32xf32, #tpu.memory_space<vmem>>, %arg38: memref<2x1x32xf32, #tpu.memory_space<vmem>>, %arg39: memref<2x1x32xf32, #tpu.memory_space<vmem>>, %arg40: memref<2x1x32xf32, #tpu.memory_space<vmem>>, %arg41: memref<32x128xf32, #tpu.memory_space<vmem>>, %arg42: memref<1x128xf32, #tpu.memory_space<vmem>>, %arg43: memref<18x128xf32, #tpu.memory_space<vmem>>) attributes {dimension_semantics = [], scalar_prefetch = 0 : i64, scratch_operands = 0 : i64, tpu.core_type = #tpu.core_type<tc>} {
    %c0 = arith.constant 0 : index
    %c0_0 = arith.constant 0 : index
    %0 = vector.load %arg0[%c0, %c0_0] : memref<16x32xf32, #tpu.memory_space<vmem>>, vector<16x32xf32>
    %c0_1 = arith.constant 0 : index
    %c0_2 = arith.constant 0 : index
    %1 = vector.load %arg4[%c0_1, %c0_2] : memref<16x16xf32, #tpu.memory_space<vmem>>, vector<16x16xf32>
    %c0_3 = arith.constant 0 : index
    %c0_4 = arith.constant 0 : index
    %c0_5 = arith.constant 0 : index
    %2 = vector.load %arg9[%c0_3, %c0_4, %c0_5] : memref<2x32x96xf32, #tpu.memory_space<vmem>>, vector<1x32x96xf32>
    %3 = vector.shape_cast %2 : vector<1x32x96xf32> to vector<32x96xf32>
    %cst = arith.constant dense<0.000000e+00> : vector<16x96xf32>
    %4 = tpu.matmul %0, %3, %cst {dimension_numbers = #tpu.dot_dimension_numbers<[1], [0], [0], [1], [0, 0, 1, 1], [], []>} : vector<16x32xf32>, vector<32x96xf32>, vector<16x96xf32> -> vector<16x96xf32>
    %c0_6 = arith.constant 0 : index
    %c0_7 = arith.constant 0 : index
    %c0_8 = arith.constant 0 : index
    %5 = vector.load %arg10[%c0_6, %c0_7, %c0_8] : memref<2x1x96xf32, #tpu.memory_space<vmem>>, vector<1x1x96xf32>
    %6 = vector.shape_cast %5 : vector<1x1x96xf32> to vector<1x96xf32>
    %7 = vector.broadcast %6 : vector<1x96xf32> to vector<16x96xf32>
    %8 = arith.addf %4, %7 : vector<16x96xf32>
    %9 = vector.extract_strided_slice %8 {offsets = [0, 0], sizes = [16, 32], strides = [1, 1]} : vector<16x96xf32> to vector<16x32xf32>
    %10 = vector.extract_strided_slice %8 {offsets = [0, 32], sizes = [16, 32], strides = [1, 1]} : vector<16x96xf32> to vector<16x32xf32>
    %11 = vector.extract_strided_slice %8 {offsets = [0, 64], sizes = [16, 32], strides = [1, 1]} : vector<16x96xf32> to vector<16x32xf32>
    %c0_9 = arith.constant 0 : index
    %c0_10 = arith.constant 0 : index
    %c0_11 = arith.constant 0 : index
    %12 = vector.load %arg11[%c0_9, %c0_10, %c0_11] : memref<2x32x32xf32, #tpu.memory_space<vmem>>, vector<1x32x32xf32>
    %13 = vector.shape_cast %12 : vector<1x32x32xf32> to vector<32x32xf32>
    %c0_12 = arith.constant 0 : index
    %c0_13 = arith.constant 0 : index
    %c0_14 = arith.constant 0 : index
    %14 = vector.load %arg12[%c0_12, %c0_13, %c0_14] : memref<2x1x32xf32, #tpu.memory_space<vmem>>, vector<1x1x32xf32>
    %15 = vector.shape_cast %14 : vector<1x1x32xf32> to vector<1x32xf32>
    %16 = vector.extract_strided_slice %9 {offsets = [0, 0], sizes = [16, 8], strides = [1, 1]} : vector<16x32xf32> to vector<16x8xf32>
    %17 = vector.extract_strided_slice %10 {offsets = [0, 0], sizes = [16, 8], strides = [1, 1]} : vector<16x32xf32> to vector<16x8xf32>
    %18 = vector.extract_strided_slice %11 {offsets = [0, 0], sizes = [16, 8], strides = [1, 1]} : vector<16x32xf32> to vector<16x8xf32>
    %cst_15 = arith.constant dense<0.000000e+00> : vector<16x16xf32>
    %19 = tpu.matmul %16, %17, %cst_15 {dimension_numbers = #tpu.dot_dimension_numbers<[1], [1], [0], [0], [0, 0, 1, 0], [], []>} : vector<16x8xf32>, vector<16x8xf32>, vector<16x16xf32> -> vector<16x16xf32>
    %cst_16 = arith.constant 0.353553385 : f32
    %20 = vector.broadcast %cst_16 : f32 to vector<16x16xf32>
    %21 = arith.mulf %19, %20 : vector<16x16xf32>
    %22 = arith.addf %21, %1 : vector<16x16xf32>
    %cst_17 = arith.constant dense<0xFF800000> : vector<16xf32>
    %23 = vector.multi_reduction <maximumf>, %22, %cst_17 [1] : vector<16x16xf32> to vector<16xf32>
    %24 = vector.shape_cast %23 : vector<16xf32> to vector<16x1xf32>
    %25 = vector.broadcast %24 : vector<16x1xf32> to vector<16x16xf32>
    %26 = arith.subf %22, %25 : vector<16x16xf32>
    %27 = math.exp %26 : vector<16x16xf32>
    %cst_18 = arith.constant dense<0.000000e+00> : vector<16xf32>
    %28 = vector.multi_reduction <add>, %27, %cst_18 [1] : vector<16x16xf32> to vector<16xf32>
    %29 = vector.shape_cast %28 : vector<16xf32> to vector<16x1xf32>
    %30 = tpu.reciprocal %29 {approx = true} : vector<16x1xf32> -> vector<16x1xf32>
    %31 = vector.broadcast %30 : vector<16x1xf32> to vector<16x16xf32>
    %32 = arith.mulf %27, %31 : vector<16x16xf32>
    %cst_19 = arith.constant dense<0.000000e+00> : vector<16x8xf32>
    %33 = tpu.matmul %32, %18, %cst_19 {dimension_numbers = #tpu.dot_dimension_numbers<[1], [0], [0], [1], [0, 0, 1, 1], [], []>} : vector<16x16xf32>, vector<16x8xf32>, vector<16x8xf32> -> vector<16x8xf32>
    %34 = vector.extract_strided_slice %13 {offsets = [0, 0], sizes = [8, 32], strides = [1, 1]} : vector<32x32xf32> to vector<8x32xf32>
    %cst_20 = arith.constant dense<0.000000e+00> : vector<16x32xf32>
    %35 = tpu.matmul %33, %34, %cst_20 {dimension_numbers = #tpu.dot_dimension_numbers<[1], [0], [0], [1], [0, 0, 1, 1], [], []>} : vector<16x8xf32>, vector<8x32xf32>, vector<16x32xf32> -> vector<16x32xf32>
    %36 = vector.extract_strided_slice %9 {offsets = [0, 8], sizes = [16, 8], strides = [1, 1]} : vector<16x32xf32> to vector<16x8xf32>
    %37 = vector.extract_strided_slice %10 {offsets = [0, 8], sizes = [16, 8], strides = [1, 1]} : vector<16x32xf32> to vector<16x8xf32>
    %38 = vector.extract_strided_slice %11 {offsets = [0, 8], sizes = [16, 8], strides = [1, 1]} : vector<16x32xf32> to vector<16x8xf32>
    %cst_21 = arith.constant dense<0.000000e+00> : vector<16x16xf32>
    %39 = tpu.matmul %36, %37, %cst_21 {dimension_numbers = #tpu.dot_dimension_numbers<[1], [1], [0], [0], [0, 0, 1, 0], [], []>} : vector<16x8xf32>, vector<16x8xf32>, vector<16x16xf32> -> vector<16x16xf32>
    %cst_22 = arith.constant 0.353553385 : f32
    %40 = vector.broadcast %cst_22 : f32 to vector<16x16xf32>
    %41 = arith.mulf %39, %40 : vector<16x16xf32>
    %42 = arith.addf %41, %1 : vector<16x16xf32>
    %cst_23 = arith.constant dense<0xFF800000> : vector<16xf32>
    %43 = vector.multi_reduction <maximumf>, %42, %cst_23 [1] : vector<16x16xf32> to vector<16xf32>
    %44 = vector.shape_cast %43 : vector<16xf32> to vector<16x1xf32>
    %45 = vector.broadcast %44 : vector<16x1xf32> to vector<16x16xf32>
    %46 = arith.subf %42, %45 : vector<16x16xf32>
    %47 = math.exp %46 : vector<16x16xf32>
    %cst_24 = arith.constant dense<0.000000e+00> : vector<16xf32>
    %48 = vector.multi_reduction <add>, %47, %cst_24 [1] : vector<16x16xf32> to vector<16xf32>
    %49 = vector.shape_cast %48 : vector<16xf32> to vector<16x1xf32>
    %50 = tpu.reciprocal %49 {approx = true} : vector<16x1xf32> -> vector<16x1xf32>
    %51 = vector.broadcast %50 : vector<16x1xf32> to vector<16x16xf32>
    %52 = arith.mulf %47, %51 : vector<16x16xf32>
    %cst_25 = arith.constant dense<0.000000e+00> : vector<16x8xf32>
    %53 = tpu.matmul %52, %38, %cst_25 {dimension_numbers = #tpu.dot_dimension_numbers<[1], [0], [0], [1], [0, 0, 1, 1], [], []>} : vector<16x16xf32>, vector<16x8xf32>, vector<16x8xf32> -> vector<16x8xf32>
    %54 = vector.extract_strided_slice %13 {offsets = [8, 0], sizes = [8, 32], strides = [1, 1]} : vector<32x32xf32> to vector<8x32xf32>
    %cst_26 = arith.constant dense<0.000000e+00> : vector<16x32xf32>
    %55 = tpu.matmul %53, %54, %cst_26 {dimension_numbers = #tpu.dot_dimension_numbers<[1], [0], [0], [1], [0, 0, 1, 1], [], []>} : vector<16x8xf32>, vector<8x32xf32>, vector<16x32xf32> -> vector<16x32xf32>
    %56 = arith.addf %35, %55 : vector<16x32xf32>
    %57 = vector.extract_strided_slice %9 {offsets = [0, 16], sizes = [16, 8], strides = [1, 1]} : vector<16x32xf32> to vector<16x8xf32>
    %58 = vector.extract_strided_slice %10 {offsets = [0, 16], sizes = [16, 8], strides = [1, 1]} : vector<16x32xf32> to vector<16x8xf32>
    %59 = vector.extract_strided_slice %11 {offsets = [0, 16], sizes = [16, 8], strides = [1, 1]} : vector<16x32xf32> to vector<16x8xf32>
    %cst_27 = arith.constant dense<0.000000e+00> : vector<16x16xf32>
    %60 = tpu.matmul %57, %58, %cst_27 {dimension_numbers = #tpu.dot_dimension_numbers<[1], [1], [0], [0], [0, 0, 1, 0], [], []>} : vector<16x8xf32>, vector<16x8xf32>, vector<16x16xf32> -> vector<16x16xf32>
    %cst_28 = arith.constant 0.353553385 : f32
    %61 = vector.broadcast %cst_28 : f32 to vector<16x16xf32>
    %62 = arith.mulf %60, %61 : vector<16x16xf32>
    %63 = arith.addf %62, %1 : vector<16x16xf32>
    %cst_29 = arith.constant dense<0xFF800000> : vector<16xf32>
    %64 = vector.multi_reduction <maximumf>, %63, %cst_29 [1] : vector<16x16xf32> to vector<16xf32>
    %65 = vector.shape_cast %64 : vector<16xf32> to vector<16x1xf32>
    %66 = vector.broadcast %65 : vector<16x1xf32> to vector<16x16xf32>
    %67 = arith.subf %63, %66 : vector<16x16xf32>
    %68 = math.exp %67 : vector<16x16xf32>
    %cst_30 = arith.constant dense<0.000000e+00> : vector<16xf32>
    %69 = vector.multi_reduction <add>, %68, %cst_30 [1] : vector<16x16xf32> to vector<16xf32>
    %70 = vector.shape_cast %69 : vector<16xf32> to vector<16x1xf32>
    %71 = tpu.reciprocal %70 {approx = true} : vector<16x1xf32> -> vector<16x1xf32>
    %72 = vector.broadcast %71 : vector<16x1xf32> to vector<16x16xf32>
    %73 = arith.mulf %68, %72 : vector<16x16xf32>
    %cst_31 = arith.constant dense<0.000000e+00> : vector<16x8xf32>
    %74 = tpu.matmul %73, %59, %cst_31 {dimension_numbers = #tpu.dot_dimension_numbers<[1], [0], [0], [1], [0, 0, 1, 1], [], []>} : vector<16x16xf32>, vector<16x8xf32>, vector<16x8xf32> -> vector<16x8xf32>
    %75 = vector.extract_strided_slice %13 {offsets = [16, 0], sizes = [8, 32], strides = [1, 1]} : vector<32x32xf32> to vector<8x32xf32>
    %cst_32 = arith.constant dense<0.000000e+00> : vector<16x32xf32>
    %76 = tpu.matmul %74, %75, %cst_32 {dimension_numbers = #tpu.dot_dimension_numbers<[1], [0], [0], [1], [0, 0, 1, 1], [], []>} : vector<16x8xf32>, vector<8x32xf32>, vector<16x32xf32> -> vector<16x32xf32>
    %77 = arith.addf %56, %76 : vector<16x32xf32>
    %78 = vector.extract_strided_slice %9 {offsets = [0, 24], sizes = [16, 8], strides = [1, 1]} : vector<16x32xf32> to vector<16x8xf32>
    %79 = vector.extract_strided_slice %10 {offsets = [0, 24], sizes = [16, 8], strides = [1, 1]} : vector<16x32xf32> to vector<16x8xf32>
    %80 = vector.extract_strided_slice %11 {offsets = [0, 24], sizes = [16, 8], strides = [1, 1]} : vector<16x32xf32> to vector<16x8xf32>
    %cst_33 = arith.constant dense<0.000000e+00> : vector<16x16xf32>
    %81 = tpu.matmul %78, %79, %cst_33 {dimension_numbers = #tpu.dot_dimension_numbers<[1], [1], [0], [0], [0, 0, 1, 0], [], []>} : vector<16x8xf32>, vector<16x8xf32>, vector<16x16xf32> -> vector<16x16xf32>
    %cst_34 = arith.constant 0.353553385 : f32
    %82 = vector.broadcast %cst_34 : f32 to vector<16x16xf32>
    %83 = arith.mulf %81, %82 : vector<16x16xf32>
    %84 = arith.addf %83, %1 : vector<16x16xf32>
    %cst_35 = arith.constant dense<0xFF800000> : vector<16xf32>
    %85 = vector.multi_reduction <maximumf>, %84, %cst_35 [1] : vector<16x16xf32> to vector<16xf32>
    %86 = vector.shape_cast %85 : vector<16xf32> to vector<16x1xf32>
    %87 = vector.broadcast %86 : vector<16x1xf32> to vector<16x16xf32>
    %88 = arith.subf %84, %87 : vector<16x16xf32>
    %89 = math.exp %88 : vector<16x16xf32>
    %cst_36 = arith.constant dense<0.000000e+00> : vector<16xf32>
    %90 = vector.multi_reduction <add>, %89, %cst_36 [1] : vector<16x16xf32> to vector<16xf32>
    %91 = vector.shape_cast %90 : vector<16xf32> to vector<16x1xf32>
    %92 = tpu.reciprocal %91 {approx = true} : vector<16x1xf32> -> vector<16x1xf32>
    %93 = vector.broadcast %92 : vector<16x1xf32> to vector<16x16xf32>
    %94 = arith.mulf %89, %93 : vector<16x16xf32>
    %cst_37 = arith.constant dense<0.000000e+00> : vector<16x8xf32>
    %95 = tpu.matmul %94, %80, %cst_37 {dimension_numbers = #tpu.dot_dimension_numbers<[1], [0], [0], [1], [0, 0, 1, 1], [], []>} : vector<16x16xf32>, vector<16x8xf32>, vector<16x8xf32> -> vector<16x8xf32>
    %96 = vector.extract_strided_slice %13 {offsets = [24, 0], sizes = [8, 32], strides = [1, 1]} : vector<32x32xf32> to vector<8x32xf32>
    %cst_38 = arith.constant dense<0.000000e+00> : vector<16x32xf32>
    %97 = tpu.matmul %95, %96, %cst_38 {dimension_numbers = #tpu.dot_dimension_numbers<[1], [0], [0], [1], [0, 0, 1, 1], [], []>} : vector<16x8xf32>, vector<8x32xf32>, vector<16x32xf32> -> vector<16x32xf32>
    %98 = arith.addf %77, %97 : vector<16x32xf32>
    %99 = vector.broadcast %15 : vector<1x32xf32> to vector<16x32xf32>
    %100 = arith.addf %98, %99 : vector<16x32xf32>
    %101 = arith.addf %0, %100 : vector<16x32xf32>
    %c0_39 = arith.constant 0 : index
    %c0_40 = arith.constant 0 : index
    %c0_41 = arith.constant 0 : index
    %102 = vector.load %arg17[%c0_39, %c0_40, %c0_41] : memref<2x1x32xf32, #tpu.memory_space<vmem>>, vector<1x1x32xf32>
    %103 = vector.shape_cast %102 : vector<1x1x32xf32> to vector<1x32xf32>
    %c0_42 = arith.constant 0 : index
    %c0_43 = arith.constant 0 : index
    %c0_44 = arith.constant 0 : index
    %104 = vector.load %arg18[%c0_42, %c0_43, %c0_44] : memref<2x1x32xf32, #tpu.memory_space<vmem>>, vector<1x1x32xf32>
    %105 = vector.shape_cast %104 : vector<1x1x32xf32> to vector<1x32xf32>
    %cst_45 = arith.constant dense<0.000000e+00> : vector<16xf32>
    %106 = vector.multi_reduction <add>, %101, %cst_45 [1] : vector<16x32xf32> to vector<16xf32>
    %107 = vector.shape_cast %106 : vector<16xf32> to vector<16x1xf32>
    %cst_46 = arith.constant 3.200000e+01 : f32
    %108 = vector.broadcast %cst_46 : f32 to vector<16x1xf32>
    %109 = arith.divf %107, %108 : vector<16x1xf32>
    %110 = vector.broadcast %109 : vector<16x1xf32> to vector<16x32xf32>
    %111 = arith.subf %101, %110 : vector<16x32xf32>
    %112 = arith.mulf %111, %111 : vector<16x32xf32>
    %cst_47 = arith.constant dense<0.000000e+00> : vector<16xf32>
    %113 = vector.multi_reduction <add>, %112, %cst_47 [1] : vector<16x32xf32> to vector<16xf32>
    %114 = vector.shape_cast %113 : vector<16xf32> to vector<16x1xf32>
    %cst_48 = arith.constant 3.200000e+01 : f32
    %115 = vector.broadcast %cst_48 : f32 to vector<16x1xf32>
    %116 = arith.divf %114, %115 : vector<16x1xf32>
    %117 = vector.broadcast %109 : vector<16x1xf32> to vector<16x32xf32>
    %118 = arith.subf %101, %117 : vector<16x32xf32>
    %cst_49 = arith.constant 9.99999974E-6 : f32
    %119 = vector.broadcast %cst_49 : f32 to vector<16x1xf32>
    %120 = arith.addf %116, %119 : vector<16x1xf32>
    %121 = math.rsqrt %120 : vector<16x1xf32>
    %122 = vector.broadcast %121 : vector<16x1xf32> to vector<16x32xf32>
    %123 = arith.mulf %118, %122 : vector<16x32xf32>
    %124 = vector.broadcast %103 : vector<1x32xf32> to vector<16x32xf32>
    %125 = arith.mulf %123, %124 : vector<16x32xf32>
    %126 = vector.broadcast %105 : vector<1x32xf32> to vector<16x32xf32>
    %127 = arith.addf %125, %126 : vector<16x32xf32>
    %c0_50 = arith.constant 0 : index
    %c0_51 = arith.constant 0 : index
    %c0_52 = arith.constant 0 : index
    %128 = vector.load %arg13[%c0_50, %c0_51, %c0_52] : memref<2x32x64xf32, #tpu.memory_space<vmem>>, vector<1x32x64xf32>
    %129 = vector.shape_cast %128 : vector<1x32x64xf32> to vector<32x64xf32>
    %c0_53 = arith.constant 0 : index
    %c0_54 = arith.constant 0 : index
    %c0_55 = arith.constant 0 : index
    %130 = vector.load %arg14[%c0_53, %c0_54, %c0_55] : memref<2x1x64xf32, #tpu.memory_space<vmem>>, vector<1x1x64xf32>
    %131 = vector.shape_cast %130 : vector<1x1x64xf32> to vector<1x64xf32>
    %c0_56 = arith.constant 0 : index
    %c0_57 = arith.constant 0 : index
    %c0_58 = arith.constant 0 : index
    %132 = vector.load %arg15[%c0_56, %c0_57, %c0_58] : memref<2x64x32xf32, #tpu.memory_space<vmem>>, vector<1x64x32xf32>
    %133 = vector.shape_cast %132 : vector<1x64x32xf32> to vector<64x32xf32>
    %c0_59 = arith.constant 0 : index
    %c0_60 = arith.constant 0 : index
    %c0_61 = arith.constant 0 : index
    %134 = vector.load %arg16[%c0_59, %c0_60, %c0_61] : memref<2x1x32xf32, #tpu.memory_space<vmem>>, vector<1x1x32xf32>
    %135 = vector.shape_cast %134 : vector<1x1x32xf32> to vector<1x32xf32>
    %cst_62 = arith.constant dense<0.000000e+00> : vector<16x64xf32>
    %136 = tpu.matmul %127, %129, %cst_62 {dimension_numbers = #tpu.dot_dimension_numbers<[1], [0], [0], [1], [0, 0, 1, 1], [], []>} : vector<16x32xf32>, vector<32x64xf32>, vector<16x64xf32> -> vector<16x64xf32>
    %137 = vector.broadcast %131 : vector<1x64xf32> to vector<16x64xf32>
    %138 = arith.addf %136, %137 : vector<16x64xf32>
    %cst_63 = arith.constant 0.000000e+00 : f32
    %139 = vector.broadcast %cst_63 : f32 to vector<16x64xf32>
    %140 = arith.maximumf %138, %139 : vector<16x64xf32>
    %cst_64 = arith.constant dense<0.000000e+00> : vector<16x32xf32>
    %141 = tpu.matmul %140, %133, %cst_64 {dimension_numbers = #tpu.dot_dimension_numbers<[1], [0], [0], [1], [0, 0, 1, 1], [], []>} : vector<16x64xf32>, vector<64x32xf32>, vector<16x32xf32> -> vector<16x32xf32>
    %142 = vector.broadcast %135 : vector<1x32xf32> to vector<16x32xf32>
    %143 = arith.addf %141, %142 : vector<16x32xf32>
    %144 = arith.addf %127, %143 : vector<16x32xf32>
    %c0_65 = arith.constant 0 : index
    %c0_66 = arith.constant 0 : index
    %c0_67 = arith.constant 0 : index
    %145 = vector.load %arg19[%c0_65, %c0_66, %c0_67] : memref<2x1x32xf32, #tpu.memory_space<vmem>>, vector<1x1x32xf32>
    %146 = vector.shape_cast %145 : vector<1x1x32xf32> to vector<1x32xf32>
    %c0_68 = arith.constant 0 : index
    %c0_69 = arith.constant 0 : index
    %c0_70 = arith.constant 0 : index
    %147 = vector.load %arg20[%c0_68, %c0_69, %c0_70] : memref<2x1x32xf32, #tpu.memory_space<vmem>>, vector<1x1x32xf32>
    %148 = vector.shape_cast %147 : vector<1x1x32xf32> to vector<1x32xf32>
    %cst_71 = arith.constant dense<0.000000e+00> : vector<16xf32>
    %149 = vector.multi_reduction <add>, %144, %cst_71 [1] : vector<16x32xf32> to vector<16xf32>
    %150 = vector.shape_cast %149 : vector<16xf32> to vector<16x1xf32>
    %cst_72 = arith.constant 3.200000e+01 : f32
    %151 = vector.broadcast %cst_72 : f32 to vector<16x1xf32>
    %152 = arith.divf %150, %151 : vector<16x1xf32>
    %153 = vector.broadcast %152 : vector<16x1xf32> to vector<16x32xf32>
    %154 = arith.subf %144, %153 : vector<16x32xf32>
    %155 = arith.mulf %154, %154 : vector<16x32xf32>
    %cst_73 = arith.constant dense<0.000000e+00> : vector<16xf32>
    %156 = vector.multi_reduction <add>, %155, %cst_73 [1] : vector<16x32xf32> to vector<16xf32>
    %157 = vector.shape_cast %156 : vector<16xf32> to vector<16x1xf32>
    %cst_74 = arith.constant 3.200000e+01 : f32
    %158 = vector.broadcast %cst_74 : f32 to vector<16x1xf32>
    %159 = arith.divf %157, %158 : vector<16x1xf32>
    %160 = vector.broadcast %152 : vector<16x1xf32> to vector<16x32xf32>
    %161 = arith.subf %144, %160 : vector<16x32xf32>
    %cst_75 = arith.constant 9.99999974E-6 : f32
    %162 = vector.broadcast %cst_75 : f32 to vector<16x1xf32>
    %163 = arith.addf %159, %162 : vector<16x1xf32>
    %164 = math.rsqrt %163 : vector<16x1xf32>
    %165 = vector.broadcast %164 : vector<16x1xf32> to vector<16x32xf32>
    %166 = arith.mulf %161, %165 : vector<16x32xf32>
    %167 = vector.broadcast %146 : vector<1x32xf32> to vector<16x32xf32>
    %168 = arith.mulf %166, %167 : vector<16x32xf32>
    %169 = vector.broadcast %148 : vector<1x32xf32> to vector<16x32xf32>
    %170 = arith.addf %168, %169 : vector<16x32xf32>
    %c1 = arith.constant 1 : index
    %c0_76 = arith.constant 0 : index
    %c0_77 = arith.constant 0 : index
    %171 = vector.load %arg9[%c1, %c0_76, %c0_77] : memref<2x32x96xf32, #tpu.memory_space<vmem>>, vector<1x32x96xf32>
    %172 = vector.shape_cast %171 : vector<1x32x96xf32> to vector<32x96xf32>
    %cst_78 = arith.constant dense<0.000000e+00> : vector<16x96xf32>
    %173 = tpu.matmul %170, %172, %cst_78 {dimension_numbers = #tpu.dot_dimension_numbers<[1], [0], [0], [1], [0, 0, 1, 1], [], []>} : vector<16x32xf32>, vector<32x96xf32>, vector<16x96xf32> -> vector<16x96xf32>
    %c1_79 = arith.constant 1 : index
    %c0_80 = arith.constant 0 : index
    %c0_81 = arith.constant 0 : index
    %174 = vector.load %arg10[%c1_79, %c0_80, %c0_81] : memref<2x1x96xf32, #tpu.memory_space<vmem>>, vector<1x1x96xf32>
    %175 = vector.shape_cast %174 : vector<1x1x96xf32> to vector<1x96xf32>
    %176 = vector.broadcast %175 : vector<1x96xf32> to vector<16x96xf32>
    %177 = arith.addf %173, %176 : vector<16x96xf32>
    %178 = vector.extract_strided_slice %177 {offsets = [0, 0], sizes = [16, 32], strides = [1, 1]} : vector<16x96xf32> to vector<16x32xf32>
    %179 = vector.extract_strided_slice %177 {offsets = [0, 32], sizes = [16, 32], strides = [1, 1]} : vector<16x96xf32> to vector<16x32xf32>
    %180 = vector.extract_strided_slice %177 {offsets = [0, 64], sizes = [16, 32], strides = [1, 1]} : vector<16x96xf32> to vector<16x32xf32>
    %c1_82 = arith.constant 1 : index
    %c0_83 = arith.constant 0 : index
    %c0_84 = arith.constant 0 : index
    %181 = vector.load %arg11[%c1_82, %c0_83, %c0_84] : memref<2x32x32xf32, #tpu.memory_space<vmem>>, vector<1x32x32xf32>
    %182 = vector.shape_cast %181 : vector<1x32x32xf32> to vector<32x32xf32>
    %c1_85 = arith.constant 1 : index
    %c0_86 = arith.constant 0 : index
    %c0_87 = arith.constant 0 : index
    %183 = vector.load %arg12[%c1_85, %c0_86, %c0_87] : memref<2x1x32xf32, #tpu.memory_space<vmem>>, vector<1x1x32xf32>
    %184 = vector.shape_cast %183 : vector<1x1x32xf32> to vector<1x32xf32>
    %185 = vector.extract_strided_slice %178 {offsets = [0, 0], sizes = [16, 8], strides = [1, 1]} : vector<16x32xf32> to vector<16x8xf32>
    %186 = vector.extract_strided_slice %179 {offsets = [0, 0], sizes = [16, 8], strides = [1, 1]} : vector<16x32xf32> to vector<16x8xf32>
    %187 = vector.extract_strided_slice %180 {offsets = [0, 0], sizes = [16, 8], strides = [1, 1]} : vector<16x32xf32> to vector<16x8xf32>
    %cst_88 = arith.constant dense<0.000000e+00> : vector<16x16xf32>
    %188 = tpu.matmul %185, %186, %cst_88 {dimension_numbers = #tpu.dot_dimension_numbers<[1], [1], [0], [0], [0, 0, 1, 0], [], []>} : vector<16x8xf32>, vector<16x8xf32>, vector<16x16xf32> -> vector<16x16xf32>
    %cst_89 = arith.constant 0.353553385 : f32
    %189 = vector.broadcast %cst_89 : f32 to vector<16x16xf32>
    %190 = arith.mulf %188, %189 : vector<16x16xf32>
    %191 = arith.addf %190, %1 : vector<16x16xf32>
    %cst_90 = arith.constant dense<0xFF800000> : vector<16xf32>
    %192 = vector.multi_reduction <maximumf>, %191, %cst_90 [1] : vector<16x16xf32> to vector<16xf32>
    %193 = vector.shape_cast %192 : vector<16xf32> to vector<16x1xf32>
    %194 = vector.broadcast %193 : vector<16x1xf32> to vector<16x16xf32>
    %195 = arith.subf %191, %194 : vector<16x16xf32>
    %196 = math.exp %195 : vector<16x16xf32>
    %cst_91 = arith.constant dense<0.000000e+00> : vector<16xf32>
    %197 = vector.multi_reduction <add>, %196, %cst_91 [1] : vector<16x16xf32> to vector<16xf32>
    %198 = vector.shape_cast %197 : vector<16xf32> to vector<16x1xf32>
    %199 = tpu.reciprocal %198 {approx = true} : vector<16x1xf32> -> vector<16x1xf32>
    %200 = vector.broadcast %199 : vector<16x1xf32> to vector<16x16xf32>
    %201 = arith.mulf %196, %200 : vector<16x16xf32>
    %cst_92 = arith.constant dense<0.000000e+00> : vector<16x8xf32>
    %202 = tpu.matmul %201, %187, %cst_92 {dimension_numbers = #tpu.dot_dimension_numbers<[1], [0], [0], [1], [0, 0, 1, 1], [], []>} : vector<16x16xf32>, vector<16x8xf32>, vector<16x8xf32> -> vector<16x8xf32>
    %203 = vector.extract_strided_slice %182 {offsets = [0, 0], sizes = [8, 32], strides = [1, 1]} : vector<32x32xf32> to vector<8x32xf32>
    %cst_93 = arith.constant dense<0.000000e+00> : vector<16x32xf32>
    %204 = tpu.matmul %202, %203, %cst_93 {dimension_numbers = #tpu.dot_dimension_numbers<[1], [0], [0], [1], [0, 0, 1, 1], [], []>} : vector<16x8xf32>, vector<8x32xf32>, vector<16x32xf32> -> vector<16x32xf32>
    %205 = vector.extract_strided_slice %178 {offsets = [0, 8], sizes = [16, 8], strides = [1, 1]} : vector<16x32xf32> to vector<16x8xf32>
    %206 = vector.extract_strided_slice %179 {offsets = [0, 8], sizes = [16, 8], strides = [1, 1]} : vector<16x32xf32> to vector<16x8xf32>
    %207 = vector.extract_strided_slice %180 {offsets = [0, 8], sizes = [16, 8], strides = [1, 1]} : vector<16x32xf32> to vector<16x8xf32>
    %cst_94 = arith.constant dense<0.000000e+00> : vector<16x16xf32>
    %208 = tpu.matmul %205, %206, %cst_94 {dimension_numbers = #tpu.dot_dimension_numbers<[1], [1], [0], [0], [0, 0, 1, 0], [], []>} : vector<16x8xf32>, vector<16x8xf32>, vector<16x16xf32> -> vector<16x16xf32>
    %cst_95 = arith.constant 0.353553385 : f32
    %209 = vector.broadcast %cst_95 : f32 to vector<16x16xf32>
    %210 = arith.mulf %208, %209 : vector<16x16xf32>
    %211 = arith.addf %210, %1 : vector<16x16xf32>
    %cst_96 = arith.constant dense<0xFF800000> : vector<16xf32>
    %212 = vector.multi_reduction <maximumf>, %211, %cst_96 [1] : vector<16x16xf32> to vector<16xf32>
    %213 = vector.shape_cast %212 : vector<16xf32> to vector<16x1xf32>
    %214 = vector.broadcast %213 : vector<16x1xf32> to vector<16x16xf32>
    %215 = arith.subf %211, %214 : vector<16x16xf32>
    %216 = math.exp %215 : vector<16x16xf32>
    %cst_97 = arith.constant dense<0.000000e+00> : vector<16xf32>
    %217 = vector.multi_reduction <add>, %216, %cst_97 [1] : vector<16x16xf32> to vector<16xf32>
    %218 = vector.shape_cast %217 : vector<16xf32> to vector<16x1xf32>
    %219 = tpu.reciprocal %218 {approx = true} : vector<16x1xf32> -> vector<16x1xf32>
    %220 = vector.broadcast %219 : vector<16x1xf32> to vector<16x16xf32>
    %221 = arith.mulf %216, %220 : vector<16x16xf32>
    %cst_98 = arith.constant dense<0.000000e+00> : vector<16x8xf32>
    %222 = tpu.matmul %221, %207, %cst_98 {dimension_numbers = #tpu.dot_dimension_numbers<[1], [0], [0], [1], [0, 0, 1, 1], [], []>} : vector<16x16xf32>, vector<16x8xf32>, vector<16x8xf32> -> vector<16x8xf32>
    %223 = vector.extract_strided_slice %182 {offsets = [8, 0], sizes = [8, 32], strides = [1, 1]} : vector<32x32xf32> to vector<8x32xf32>
    %cst_99 = arith.constant dense<0.000000e+00> : vector<16x32xf32>
    %224 = tpu.matmul %222, %223, %cst_99 {dimension_numbers = #tpu.dot_dimension_numbers<[1], [0], [0], [1], [0, 0, 1, 1], [], []>} : vector<16x8xf32>, vector<8x32xf32>, vector<16x32xf32> -> vector<16x32xf32>
    %225 = arith.addf %204, %224 : vector<16x32xf32>
    %226 = vector.extract_strided_slice %178 {offsets = [0, 16], sizes = [16, 8], strides = [1, 1]} : vector<16x32xf32> to vector<16x8xf32>
    %227 = vector.extract_strided_slice %179 {offsets = [0, 16], sizes = [16, 8], strides = [1, 1]} : vector<16x32xf32> to vector<16x8xf32>
    %228 = vector.extract_strided_slice %180 {offsets = [0, 16], sizes = [16, 8], strides = [1, 1]} : vector<16x32xf32> to vector<16x8xf32>
    %cst_100 = arith.constant dense<0.000000e+00> : vector<16x16xf32>
    %229 = tpu.matmul %226, %227, %cst_100 {dimension_numbers = #tpu.dot_dimension_numbers<[1], [1], [0], [0], [0, 0, 1, 0], [], []>} : vector<16x8xf32>, vector<16x8xf32>, vector<16x16xf32> -> vector<16x16xf32>
    %cst_101 = arith.constant 0.353553385 : f32
    %230 = vector.broadcast %cst_101 : f32 to vector<16x16xf32>
    %231 = arith.mulf %229, %230 : vector<16x16xf32>
    %232 = arith.addf %231, %1 : vector<16x16xf32>
    %cst_102 = arith.constant dense<0xFF800000> : vector<16xf32>
    %233 = vector.multi_reduction <maximumf>, %232, %cst_102 [1] : vector<16x16xf32> to vector<16xf32>
    %234 = vector.shape_cast %233 : vector<16xf32> to vector<16x1xf32>
    %235 = vector.broadcast %234 : vector<16x1xf32> to vector<16x16xf32>
    %236 = arith.subf %232, %235 : vector<16x16xf32>
    %237 = math.exp %236 : vector<16x16xf32>
    %cst_103 = arith.constant dense<0.000000e+00> : vector<16xf32>
    %238 = vector.multi_reduction <add>, %237, %cst_103 [1] : vector<16x16xf32> to vector<16xf32>
    %239 = vector.shape_cast %238 : vector<16xf32> to vector<16x1xf32>
    %240 = tpu.reciprocal %239 {approx = true} : vector<16x1xf32> -> vector<16x1xf32>
    %241 = vector.broadcast %240 : vector<16x1xf32> to vector<16x16xf32>
    %242 = arith.mulf %237, %241 : vector<16x16xf32>
    %cst_104 = arith.constant dense<0.000000e+00> : vector<16x8xf32>
    %243 = tpu.matmul %242, %228, %cst_104 {dimension_numbers = #tpu.dot_dimension_numbers<[1], [0], [0], [1], [0, 0, 1, 1], [], []>} : vector<16x16xf32>, vector<16x8xf32>, vector<16x8xf32> -> vector<16x8xf32>
    %244 = vector.extract_strided_slice %182 {offsets = [16, 0], sizes = [8, 32], strides = [1, 1]} : vector<32x32xf32> to vector<8x32xf32>
    %cst_105 = arith.constant dense<0.000000e+00> : vector<16x32xf32>
    %245 = tpu.matmul %243, %244, %cst_105 {dimension_numbers = #tpu.dot_dimension_numbers<[1], [0], [0], [1], [0, 0, 1, 1], [], []>} : vector<16x8xf32>, vector<8x32xf32>, vector<16x32xf32> -> vector<16x32xf32>
    %246 = arith.addf %225, %245 : vector<16x32xf32>
    %247 = vector.extract_strided_slice %178 {offsets = [0, 24], sizes = [16, 8], strides = [1, 1]} : vector<16x32xf32> to vector<16x8xf32>
    %248 = vector.extract_strided_slice %179 {offsets = [0, 24], sizes = [16, 8], strides = [1, 1]} : vector<16x32xf32> to vector<16x8xf32>
    %249 = vector.extract_strided_slice %180 {offsets = [0, 24], sizes = [16, 8], strides = [1, 1]} : vector<16x32xf32> to vector<16x8xf32>
    %cst_106 = arith.constant dense<0.000000e+00> : vector<16x16xf32>
    %250 = tpu.matmul %247, %248, %cst_106 {dimension_numbers = #tpu.dot_dimension_numbers<[1], [1], [0], [0], [0, 0, 1, 0], [], []>} : vector<16x8xf32>, vector<16x8xf32>, vector<16x16xf32> -> vector<16x16xf32>
    %cst_107 = arith.constant 0.353553385 : f32
    %251 = vector.broadcast %cst_107 : f32 to vector<16x16xf32>
    %252 = arith.mulf %250, %251 : vector<16x16xf32>
    %253 = arith.addf %252, %1 : vector<16x16xf32>
    %cst_108 = arith.constant dense<0xFF800000> : vector<16xf32>
    %254 = vector.multi_reduction <maximumf>, %253, %cst_108 [1] : vector<16x16xf32> to vector<16xf32>
    %255 = vector.shape_cast %254 : vector<16xf32> to vector<16x1xf32>
    %256 = vector.broadcast %255 : vector<16x1xf32> to vector<16x16xf32>
    %257 = arith.subf %253, %256 : vector<16x16xf32>
    %258 = math.exp %257 : vector<16x16xf32>
    %cst_109 = arith.constant dense<0.000000e+00> : vector<16xf32>
    %259 = vector.multi_reduction <add>, %258, %cst_109 [1] : vector<16x16xf32> to vector<16xf32>
    %260 = vector.shape_cast %259 : vector<16xf32> to vector<16x1xf32>
    %261 = tpu.reciprocal %260 {approx = true} : vector<16x1xf32> -> vector<16x1xf32>
    %262 = vector.broadcast %261 : vector<16x1xf32> to vector<16x16xf32>
    %263 = arith.mulf %258, %262 : vector<16x16xf32>
    %cst_110 = arith.constant dense<0.000000e+00> : vector<16x8xf32>
    %264 = tpu.matmul %263, %249, %cst_110 {dimension_numbers = #tpu.dot_dimension_numbers<[1], [0], [0], [1], [0, 0, 1, 1], [], []>} : vector<16x16xf32>, vector<16x8xf32>, vector<16x8xf32> -> vector<16x8xf32>
    %265 = vector.extract_strided_slice %182 {offsets = [24, 0], sizes = [8, 32], strides = [1, 1]} : vector<32x32xf32> to vector<8x32xf32>
    %cst_111 = arith.constant dense<0.000000e+00> : vector<16x32xf32>
    %266 = tpu.matmul %264, %265, %cst_111 {dimension_numbers = #tpu.dot_dimension_numbers<[1], [0], [0], [1], [0, 0, 1, 1], [], []>} : vector<16x8xf32>, vector<8x32xf32>, vector<16x32xf32> -> vector<16x32xf32>
    %267 = arith.addf %246, %266 : vector<16x32xf32>
    %268 = vector.broadcast %184 : vector<1x32xf32> to vector<16x32xf32>
    %269 = arith.addf %267, %268 : vector<16x32xf32>
    %270 = arith.addf %170, %269 : vector<16x32xf32>
    %c1_112 = arith.constant 1 : index
    %c0_113 = arith.constant 0 : index
    %c0_114 = arith.constant 0 : index
    %271 = vector.load %arg17[%c1_112, %c0_113, %c0_114] : memref<2x1x32xf32, #tpu.memory_space<vmem>>, vector<1x1x32xf32>
    %272 = vector.shape_cast %271 : vector<1x1x32xf32> to vector<1x32xf32>
    %c1_115 = arith.constant 1 : index
    %c0_116 = arith.constant 0 : index
    %c0_117 = arith.constant 0 : index
    %273 = vector.load %arg18[%c1_115, %c0_116, %c0_117] : memref<2x1x32xf32, #tpu.memory_space<vmem>>, vector<1x1x32xf32>
    %274 = vector.shape_cast %273 : vector<1x1x32xf32> to vector<1x32xf32>
    %cst_118 = arith.constant dense<0.000000e+00> : vector<16xf32>
    %275 = vector.multi_reduction <add>, %270, %cst_118 [1] : vector<16x32xf32> to vector<16xf32>
    %276 = vector.shape_cast %275 : vector<16xf32> to vector<16x1xf32>
    %cst_119 = arith.constant 3.200000e+01 : f32
    %277 = vector.broadcast %cst_119 : f32 to vector<16x1xf32>
    %278 = arith.divf %276, %277 : vector<16x1xf32>
    %279 = vector.broadcast %278 : vector<16x1xf32> to vector<16x32xf32>
    %280 = arith.subf %270, %279 : vector<16x32xf32>
    %281 = arith.mulf %280, %280 : vector<16x32xf32>
    %cst_120 = arith.constant dense<0.000000e+00> : vector<16xf32>
    %282 = vector.multi_reduction <add>, %281, %cst_120 [1] : vector<16x32xf32> to vector<16xf32>
    %283 = vector.shape_cast %282 : vector<16xf32> to vector<16x1xf32>
    %cst_121 = arith.constant 3.200000e+01 : f32
    %284 = vector.broadcast %cst_121 : f32 to vector<16x1xf32>
    %285 = arith.divf %283, %284 : vector<16x1xf32>
    %286 = vector.broadcast %278 : vector<16x1xf32> to vector<16x32xf32>
    %287 = arith.subf %270, %286 : vector<16x32xf32>
    %cst_122 = arith.constant 9.99999974E-6 : f32
    %288 = vector.broadcast %cst_122 : f32 to vector<16x1xf32>
    %289 = arith.addf %285, %288 : vector<16x1xf32>
    %290 = math.rsqrt %289 : vector<16x1xf32>
    %291 = vector.broadcast %290 : vector<16x1xf32> to vector<16x32xf32>
    %292 = arith.mulf %287, %291 : vector<16x32xf32>
    %293 = vector.broadcast %272 : vector<1x32xf32> to vector<16x32xf32>
    %294 = arith.mulf %292, %293 : vector<16x32xf32>
    %295 = vector.broadcast %274 : vector<1x32xf32> to vector<16x32xf32>
    %296 = arith.addf %294, %295 : vector<16x32xf32>
    %c1_123 = arith.constant 1 : index
    %c0_124 = arith.constant 0 : index
    %c0_125 = arith.constant 0 : index
    %297 = vector.load %arg13[%c1_123, %c0_124, %c0_125] : memref<2x32x64xf32, #tpu.memory_space<vmem>>, vector<1x32x64xf32>
    %298 = vector.shape_cast %297 : vector<1x32x64xf32> to vector<32x64xf32>
    %c1_126 = arith.constant 1 : index
    %c0_127 = arith.constant 0 : index
    %c0_128 = arith.constant 0 : index
    %299 = vector.load %arg14[%c1_126, %c0_127, %c0_128] : memref<2x1x64xf32, #tpu.memory_space<vmem>>, vector<1x1x64xf32>
    %300 = vector.shape_cast %299 : vector<1x1x64xf32> to vector<1x64xf32>
    %c1_129 = arith.constant 1 : index
    %c0_130 = arith.constant 0 : index
    %c0_131 = arith.constant 0 : index
    %301 = vector.load %arg15[%c1_129, %c0_130, %c0_131] : memref<2x64x32xf32, #tpu.memory_space<vmem>>, vector<1x64x32xf32>
    %302 = vector.shape_cast %301 : vector<1x64x32xf32> to vector<64x32xf32>
    %c1_132 = arith.constant 1 : index
    %c0_133 = arith.constant 0 : index
    %c0_134 = arith.constant 0 : index
    %303 = vector.load %arg16[%c1_132, %c0_133, %c0_134] : memref<2x1x32xf32, #tpu.memory_space<vmem>>, vector<1x1x32xf32>
    %304 = vector.shape_cast %303 : vector<1x1x32xf32> to vector<1x32xf32>
    %cst_135 = arith.constant dense<0.000000e+00> : vector<16x64xf32>
    %305 = tpu.matmul %296, %298, %cst_135 {dimension_numbers = #tpu.dot_dimension_numbers<[1], [0], [0], [1], [0, 0, 1, 1], [], []>} : vector<16x32xf32>, vector<32x64xf32>, vector<16x64xf32> -> vector<16x64xf32>
    %306 = vector.broadcast %300 : vector<1x64xf32> to vector<16x64xf32>
    %307 = arith.addf %305, %306 : vector<16x64xf32>
    %cst_136 = arith.constant 0.000000e+00 : f32
    %308 = vector.broadcast %cst_136 : f32 to vector<16x64xf32>
    %309 = arith.maximumf %307, %308 : vector<16x64xf32>
    %cst_137 = arith.constant dense<0.000000e+00> : vector<16x32xf32>
    %310 = tpu.matmul %309, %302, %cst_137 {dimension_numbers = #tpu.dot_dimension_numbers<[1], [0], [0], [1], [0, 0, 1, 1], [], []>} : vector<16x64xf32>, vector<64x32xf32>, vector<16x32xf32> -> vector<16x32xf32>
    %311 = vector.broadcast %304 : vector<1x32xf32> to vector<16x32xf32>
    %312 = arith.addf %310, %311 : vector<16x32xf32>
    %313 = arith.addf %296, %312 : vector<16x32xf32>
    %c1_138 = arith.constant 1 : index
    %c0_139 = arith.constant 0 : index
    %c0_140 = arith.constant 0 : index
    %314 = vector.load %arg19[%c1_138, %c0_139, %c0_140] : memref<2x1x32xf32, #tpu.memory_space<vmem>>, vector<1x1x32xf32>
    %315 = vector.shape_cast %314 : vector<1x1x32xf32> to vector<1x32xf32>
    %c1_141 = arith.constant 1 : index
    %c0_142 = arith.constant 0 : index
    %c0_143 = arith.constant 0 : index
    %316 = vector.load %arg20[%c1_141, %c0_142, %c0_143] : memref<2x1x32xf32, #tpu.memory_space<vmem>>, vector<1x1x32xf32>
    %317 = vector.shape_cast %316 : vector<1x1x32xf32> to vector<1x32xf32>
    %cst_144 = arith.constant dense<0.000000e+00> : vector<16xf32>
    %318 = vector.multi_reduction <add>, %313, %cst_144 [1] : vector<16x32xf32> to vector<16xf32>
    %319 = vector.shape_cast %318 : vector<16xf32> to vector<16x1xf32>
    %cst_145 = arith.constant 3.200000e+01 : f32
    %320 = vector.broadcast %cst_145 : f32 to vector<16x1xf32>
    %321 = arith.divf %319, %320 : vector<16x1xf32>
    %322 = vector.broadcast %321 : vector<16x1xf32> to vector<16x32xf32>
    %323 = arith.subf %313, %322 : vector<16x32xf32>
    %324 = arith.mulf %323, %323 : vector<16x32xf32>
    %cst_146 = arith.constant dense<0.000000e+00> : vector<16xf32>
    %325 = vector.multi_reduction <add>, %324, %cst_146 [1] : vector<16x32xf32> to vector<16xf32>
    %326 = vector.shape_cast %325 : vector<16xf32> to vector<16x1xf32>
    %cst_147 = arith.constant 3.200000e+01 : f32
    %327 = vector.broadcast %cst_147 : f32 to vector<16x1xf32>
    %328 = arith.divf %326, %327 : vector<16x1xf32>
    %329 = vector.broadcast %321 : vector<16x1xf32> to vector<16x32xf32>
    %330 = arith.subf %313, %329 : vector<16x32xf32>
    %cst_148 = arith.constant 9.99999974E-6 : f32
    %331 = vector.broadcast %cst_148 : f32 to vector<16x1xf32>
    %332 = arith.addf %328, %331 : vector<16x1xf32>
    %333 = math.rsqrt %332 : vector<16x1xf32>
    %334 = vector.broadcast %333 : vector<16x1xf32> to vector<16x32xf32>
    %335 = arith.mulf %330, %334 : vector<16x32xf32>
    %336 = vector.broadcast %315 : vector<1x32xf32> to vector<16x32xf32>
    %337 = arith.mulf %335, %336 : vector<16x32xf32>
    %338 = vector.broadcast %317 : vector<1x32xf32> to vector<16x32xf32>
    %339 = arith.addf %337, %338 : vector<16x32xf32>
    %c0_149 = arith.constant 0 : index
    %c0_150 = arith.constant 0 : index
    %340 = vector.load %arg2[%c0_149, %c0_150] : memref<2x16xf32, #tpu.memory_space<vmem>>, vector<2x16xf32>
    %c0_151 = arith.constant 0 : index
    %c0_152 = arith.constant 0 : index
    %341 = vector.load %arg7[%c0_151, %c0_152] : memref<16x32xf32, #tpu.memory_space<vmem>>, vector<16x32xf32>
    %cst_153 = arith.constant dense<0.000000e+00> : vector<2x32xf32>
    %342 = tpu.matmul %340, %341, %cst_153 {dimension_numbers = #tpu.dot_dimension_numbers<[1], [0], [0], [1], [0, 0, 1, 1], [], []>} : vector<2x16xf32>, vector<16x32xf32>, vector<2x32xf32> -> vector<2x32xf32>
    %c0_154 = arith.constant 0 : index
    %c0_155 = arith.constant 0 : index
    %343 = vector.load %arg8[%c0_154, %c0_155] : memref<1x32xf32, #tpu.memory_space<vmem>>, vector<1x32xf32>
    %344 = vector.broadcast %343 : vector<1x32xf32> to vector<2x32xf32>
    %345 = arith.addf %342, %344 : vector<2x32xf32>
    %c0_156 = arith.constant 0 : index
    %c0_157 = arith.constant 0 : index
    %346 = vector.load %arg1[%c0_156, %c0_157] : memref<18x32xf32, #tpu.memory_space<vmem>>, vector<18x32xf32>
    %c0_158 = arith.constant 0 : index
    %c0_159 = arith.constant 0 : index
    %347 = vector.load %arg3[%c0_158, %c0_159] : memref<18x2xf32, #tpu.memory_space<vmem>>, vector<18x2xf32>
    %cst_160 = arith.constant dense<0.000000e+00> : vector<18x32xf32>
    %348 = tpu.matmul %347, %345, %cst_160 {dimension_numbers = #tpu.dot_dimension_numbers<[1], [0], [0], [1], [0, 0, 1, 1], [], []>} : vector<18x2xf32>, vector<2x32xf32>, vector<18x32xf32> -> vector<18x32xf32>
    %349 = arith.addf %346, %348 : vector<18x32xf32>
    %c0_161 = arith.constant 0 : index
    %c0_162 = arith.constant 0 : index
    %350 = vector.load %arg5[%c0_161, %c0_162] : memref<18x18xf32, #tpu.memory_space<vmem>>, vector<18x18xf32>
    %c0_163 = arith.constant 0 : index
    %c0_164 = arith.constant 0 : index
    %351 = vector.load %arg6[%c0_163, %c0_164] : memref<18x16xf32, #tpu.memory_space<vmem>>, vector<18x16xf32>
    %c0_165 = arith.constant 0 : index
    %c0_166 = arith.constant 0 : index
    %c0_167 = arith.constant 0 : index
    %352 = vector.load %arg21[%c0_165, %c0_166, %c0_167] : memref<2x32x96xf32, #tpu.memory_space<vmem>>, vector<1x32x96xf32>
    %353 = vector.shape_cast %352 : vector<1x32x96xf32> to vector<32x96xf32>
    %cst_168 = arith.constant dense<0.000000e+00> : vector<18x96xf32>
    %354 = tpu.matmul %349, %353, %cst_168 {dimension_numbers = #tpu.dot_dimension_numbers<[1], [0], [0], [1], [0, 0, 1, 1], [], []>} : vector<18x32xf32>, vector<32x96xf32>, vector<18x96xf32> -> vector<18x96xf32>
    %c0_169 = arith.constant 0 : index
    %c0_170 = arith.constant 0 : index
    %c0_171 = arith.constant 0 : index
    %355 = vector.load %arg22[%c0_169, %c0_170, %c0_171] : memref<2x1x96xf32, #tpu.memory_space<vmem>>, vector<1x1x96xf32>
    %356 = vector.shape_cast %355 : vector<1x1x96xf32> to vector<1x96xf32>
    %357 = vector.broadcast %356 : vector<1x96xf32> to vector<18x96xf32>
    %358 = arith.addf %354, %357 : vector<18x96xf32>
    %359 = vector.extract_strided_slice %358 {offsets = [0, 0], sizes = [18, 32], strides = [1, 1]} : vector<18x96xf32> to vector<18x32xf32>
    %360 = vector.extract_strided_slice %358 {offsets = [0, 32], sizes = [18, 32], strides = [1, 1]} : vector<18x96xf32> to vector<18x32xf32>
    %361 = vector.extract_strided_slice %358 {offsets = [0, 64], sizes = [18, 32], strides = [1, 1]} : vector<18x96xf32> to vector<18x32xf32>
    %c0_172 = arith.constant 0 : index
    %c0_173 = arith.constant 0 : index
    %c0_174 = arith.constant 0 : index
    %362 = vector.load %arg23[%c0_172, %c0_173, %c0_174] : memref<2x32x32xf32, #tpu.memory_space<vmem>>, vector<1x32x32xf32>
    %363 = vector.shape_cast %362 : vector<1x32x32xf32> to vector<32x32xf32>
    %c0_175 = arith.constant 0 : index
    %c0_176 = arith.constant 0 : index
    %c0_177 = arith.constant 0 : index
    %364 = vector.load %arg24[%c0_175, %c0_176, %c0_177] : memref<2x1x32xf32, #tpu.memory_space<vmem>>, vector<1x1x32xf32>
    %365 = vector.shape_cast %364 : vector<1x1x32xf32> to vector<1x32xf32>
    %366 = vector.extract_strided_slice %359 {offsets = [0, 0], sizes = [18, 8], strides = [1, 1]} : vector<18x32xf32> to vector<18x8xf32>
    %367 = vector.extract_strided_slice %360 {offsets = [0, 0], sizes = [18, 8], strides = [1, 1]} : vector<18x32xf32> to vector<18x8xf32>
    %368 = vector.extract_strided_slice %361 {offsets = [0, 0], sizes = [18, 8], strides = [1, 1]} : vector<18x32xf32> to vector<18x8xf32>
    %cst_178 = arith.constant dense<0.000000e+00> : vector<18x18xf32>
    %369 = tpu.matmul %366, %367, %cst_178 {dimension_numbers = #tpu.dot_dimension_numbers<[1], [1], [0], [0], [0, 0, 1, 0], [], []>} : vector<18x8xf32>, vector<18x8xf32>, vector<18x18xf32> -> vector<18x18xf32>
    %cst_179 = arith.constant 0.353553385 : f32
    %370 = vector.broadcast %cst_179 : f32 to vector<18x18xf32>
    %371 = arith.mulf %369, %370 : vector<18x18xf32>
    %372 = arith.addf %371, %350 : vector<18x18xf32>
    %cst_180 = arith.constant dense<0xFF800000> : vector<18xf32>
    %373 = vector.multi_reduction <maximumf>, %372, %cst_180 [1] : vector<18x18xf32> to vector<18xf32>
    %374 = vector.shape_cast %373 : vector<18xf32> to vector<18x1xf32>
    %375 = vector.broadcast %374 : vector<18x1xf32> to vector<18x18xf32>
    %376 = arith.subf %372, %375 : vector<18x18xf32>
    %377 = math.exp %376 : vector<18x18xf32>
    %cst_181 = arith.constant dense<0.000000e+00> : vector<18xf32>
    %378 = vector.multi_reduction <add>, %377, %cst_181 [1] : vector<18x18xf32> to vector<18xf32>
    %379 = vector.shape_cast %378 : vector<18xf32> to vector<18x1xf32>
    %380 = tpu.reciprocal %379 {approx = true} : vector<18x1xf32> -> vector<18x1xf32>
    %381 = vector.broadcast %380 : vector<18x1xf32> to vector<18x18xf32>
    %382 = arith.mulf %377, %381 : vector<18x18xf32>
    %cst_182 = arith.constant dense<0.000000e+00> : vector<18x8xf32>
    %383 = tpu.matmul %382, %368, %cst_182 {dimension_numbers = #tpu.dot_dimension_numbers<[1], [0], [0], [1], [0, 0, 1, 1], [], []>} : vector<18x18xf32>, vector<18x8xf32>, vector<18x8xf32> -> vector<18x8xf32>
    %384 = vector.extract_strided_slice %363 {offsets = [0, 0], sizes = [8, 32], strides = [1, 1]} : vector<32x32xf32> to vector<8x32xf32>
    %cst_183 = arith.constant dense<0.000000e+00> : vector<18x32xf32>
    %385 = tpu.matmul %383, %384, %cst_183 {dimension_numbers = #tpu.dot_dimension_numbers<[1], [0], [0], [1], [0, 0, 1, 1], [], []>} : vector<18x8xf32>, vector<8x32xf32>, vector<18x32xf32> -> vector<18x32xf32>
    %386 = vector.extract_strided_slice %359 {offsets = [0, 8], sizes = [18, 8], strides = [1, 1]} : vector<18x32xf32> to vector<18x8xf32>
    %387 = vector.extract_strided_slice %360 {offsets = [0, 8], sizes = [18, 8], strides = [1, 1]} : vector<18x32xf32> to vector<18x8xf32>
    %388 = vector.extract_strided_slice %361 {offsets = [0, 8], sizes = [18, 8], strides = [1, 1]} : vector<18x32xf32> to vector<18x8xf32>
    %cst_184 = arith.constant dense<0.000000e+00> : vector<18x18xf32>
    %389 = tpu.matmul %386, %387, %cst_184 {dimension_numbers = #tpu.dot_dimension_numbers<[1], [1], [0], [0], [0, 0, 1, 0], [], []>} : vector<18x8xf32>, vector<18x8xf32>, vector<18x18xf32> -> vector<18x18xf32>
    %cst_185 = arith.constant 0.353553385 : f32
    %390 = vector.broadcast %cst_185 : f32 to vector<18x18xf32>
    %391 = arith.mulf %389, %390 : vector<18x18xf32>
    %392 = arith.addf %391, %350 : vector<18x18xf32>
    %cst_186 = arith.constant dense<0xFF800000> : vector<18xf32>
    %393 = vector.multi_reduction <maximumf>, %392, %cst_186 [1] : vector<18x18xf32> to vector<18xf32>
    %394 = vector.shape_cast %393 : vector<18xf32> to vector<18x1xf32>
    %395 = vector.broadcast %394 : vector<18x1xf32> to vector<18x18xf32>
    %396 = arith.subf %392, %395 : vector<18x18xf32>
    %397 = math.exp %396 : vector<18x18xf32>
    %cst_187 = arith.constant dense<0.000000e+00> : vector<18xf32>
    %398 = vector.multi_reduction <add>, %397, %cst_187 [1] : vector<18x18xf32> to vector<18xf32>
    %399 = vector.shape_cast %398 : vector<18xf32> to vector<18x1xf32>
    %400 = tpu.reciprocal %399 {approx = true} : vector<18x1xf32> -> vector<18x1xf32>
    %401 = vector.broadcast %400 : vector<18x1xf32> to vector<18x18xf32>
    %402 = arith.mulf %397, %401 : vector<18x18xf32>
    %cst_188 = arith.constant dense<0.000000e+00> : vector<18x8xf32>
    %403 = tpu.matmul %402, %388, %cst_188 {dimension_numbers = #tpu.dot_dimension_numbers<[1], [0], [0], [1], [0, 0, 1, 1], [], []>} : vector<18x18xf32>, vector<18x8xf32>, vector<18x8xf32> -> vector<18x8xf32>
    %404 = vector.extract_strided_slice %363 {offsets = [8, 0], sizes = [8, 32], strides = [1, 1]} : vector<32x32xf32> to vector<8x32xf32>
    %cst_189 = arith.constant dense<0.000000e+00> : vector<18x32xf32>
    %405 = tpu.matmul %403, %404, %cst_189 {dimension_numbers = #tpu.dot_dimension_numbers<[1], [0], [0], [1], [0, 0, 1, 1], [], []>} : vector<18x8xf32>, vector<8x32xf32>, vector<18x32xf32> -> vector<18x32xf32>
    %406 = arith.addf %385, %405 : vector<18x32xf32>
    %407 = vector.extract_strided_slice %359 {offsets = [0, 16], sizes = [18, 8], strides = [1, 1]} : vector<18x32xf32> to vector<18x8xf32>
    %408 = vector.extract_strided_slice %360 {offsets = [0, 16], sizes = [18, 8], strides = [1, 1]} : vector<18x32xf32> to vector<18x8xf32>
    %409 = vector.extract_strided_slice %361 {offsets = [0, 16], sizes = [18, 8], strides = [1, 1]} : vector<18x32xf32> to vector<18x8xf32>
    %cst_190 = arith.constant dense<0.000000e+00> : vector<18x18xf32>
    %410 = tpu.matmul %407, %408, %cst_190 {dimension_numbers = #tpu.dot_dimension_numbers<[1], [1], [0], [0], [0, 0, 1, 0], [], []>} : vector<18x8xf32>, vector<18x8xf32>, vector<18x18xf32> -> vector<18x18xf32>
    %cst_191 = arith.constant 0.353553385 : f32
    %411 = vector.broadcast %cst_191 : f32 to vector<18x18xf32>
    %412 = arith.mulf %410, %411 : vector<18x18xf32>
    %413 = arith.addf %412, %350 : vector<18x18xf32>
    %cst_192 = arith.constant dense<0xFF800000> : vector<18xf32>
    %414 = vector.multi_reduction <maximumf>, %413, %cst_192 [1] : vector<18x18xf32> to vector<18xf32>
    %415 = vector.shape_cast %414 : vector<18xf32> to vector<18x1xf32>
    %416 = vector.broadcast %415 : vector<18x1xf32> to vector<18x18xf32>
    %417 = arith.subf %413, %416 : vector<18x18xf32>
    %418 = math.exp %417 : vector<18x18xf32>
    %cst_193 = arith.constant dense<0.000000e+00> : vector<18xf32>
    %419 = vector.multi_reduction <add>, %418, %cst_193 [1] : vector<18x18xf32> to vector<18xf32>
    %420 = vector.shape_cast %419 : vector<18xf32> to vector<18x1xf32>
    %421 = tpu.reciprocal %420 {approx = true} : vector<18x1xf32> -> vector<18x1xf32>
    %422 = vector.broadcast %421 : vector<18x1xf32> to vector<18x18xf32>
    %423 = arith.mulf %418, %422 : vector<18x18xf32>
    %cst_194 = arith.constant dense<0.000000e+00> : vector<18x8xf32>
    %424 = tpu.matmul %423, %409, %cst_194 {dimension_numbers = #tpu.dot_dimension_numbers<[1], [0], [0], [1], [0, 0, 1, 1], [], []>} : vector<18x18xf32>, vector<18x8xf32>, vector<18x8xf32> -> vector<18x8xf32>
    %425 = vector.extract_strided_slice %363 {offsets = [16, 0], sizes = [8, 32], strides = [1, 1]} : vector<32x32xf32> to vector<8x32xf32>
    %cst_195 = arith.constant dense<0.000000e+00> : vector<18x32xf32>
    %426 = tpu.matmul %424, %425, %cst_195 {dimension_numbers = #tpu.dot_dimension_numbers<[1], [0], [0], [1], [0, 0, 1, 1], [], []>} : vector<18x8xf32>, vector<8x32xf32>, vector<18x32xf32> -> vector<18x32xf32>
    %427 = arith.addf %406, %426 : vector<18x32xf32>
    %428 = vector.extract_strided_slice %359 {offsets = [0, 24], sizes = [18, 8], strides = [1, 1]} : vector<18x32xf32> to vector<18x8xf32>
    %429 = vector.extract_strided_slice %360 {offsets = [0, 24], sizes = [18, 8], strides = [1, 1]} : vector<18x32xf32> to vector<18x8xf32>
    %430 = vector.extract_strided_slice %361 {offsets = [0, 24], sizes = [18, 8], strides = [1, 1]} : vector<18x32xf32> to vector<18x8xf32>
    %cst_196 = arith.constant dense<0.000000e+00> : vector<18x18xf32>
    %431 = tpu.matmul %428, %429, %cst_196 {dimension_numbers = #tpu.dot_dimension_numbers<[1], [1], [0], [0], [0, 0, 1, 0], [], []>} : vector<18x8xf32>, vector<18x8xf32>, vector<18x18xf32> -> vector<18x18xf32>
    %cst_197 = arith.constant 0.353553385 : f32
    %432 = vector.broadcast %cst_197 : f32 to vector<18x18xf32>
    %433 = arith.mulf %431, %432 : vector<18x18xf32>
    %434 = arith.addf %433, %350 : vector<18x18xf32>
    %cst_198 = arith.constant dense<0xFF800000> : vector<18xf32>
    %435 = vector.multi_reduction <maximumf>, %434, %cst_198 [1] : vector<18x18xf32> to vector<18xf32>
    %436 = vector.shape_cast %435 : vector<18xf32> to vector<18x1xf32>
    %437 = vector.broadcast %436 : vector<18x1xf32> to vector<18x18xf32>
    %438 = arith.subf %434, %437 : vector<18x18xf32>
    %439 = math.exp %438 : vector<18x18xf32>
    %cst_199 = arith.constant dense<0.000000e+00> : vector<18xf32>
    %440 = vector.multi_reduction <add>, %439, %cst_199 [1] : vector<18x18xf32> to vector<18xf32>
    %441 = vector.shape_cast %440 : vector<18xf32> to vector<18x1xf32>
    %442 = tpu.reciprocal %441 {approx = true} : vector<18x1xf32> -> vector<18x1xf32>
    %443 = vector.broadcast %442 : vector<18x1xf32> to vector<18x18xf32>
    %444 = arith.mulf %439, %443 : vector<18x18xf32>
    %cst_200 = arith.constant dense<0.000000e+00> : vector<18x8xf32>
    %445 = tpu.matmul %444, %430, %cst_200 {dimension_numbers = #tpu.dot_dimension_numbers<[1], [0], [0], [1], [0, 0, 1, 1], [], []>} : vector<18x18xf32>, vector<18x8xf32>, vector<18x8xf32> -> vector<18x8xf32>
    %446 = vector.extract_strided_slice %363 {offsets = [24, 0], sizes = [8, 32], strides = [1, 1]} : vector<32x32xf32> to vector<8x32xf32>
    %cst_201 = arith.constant dense<0.000000e+00> : vector<18x32xf32>
    %447 = tpu.matmul %445, %446, %cst_201 {dimension_numbers = #tpu.dot_dimension_numbers<[1], [0], [0], [1], [0, 0, 1, 1], [], []>} : vector<18x8xf32>, vector<8x32xf32>, vector<18x32xf32> -> vector<18x32xf32>
    %448 = arith.addf %427, %447 : vector<18x32xf32>
    %449 = vector.broadcast %365 : vector<1x32xf32> to vector<18x32xf32>
    %450 = arith.addf %448, %449 : vector<18x32xf32>
    %451 = arith.addf %349, %450 : vector<18x32xf32>
    %c0_202 = arith.constant 0 : index
    %c0_203 = arith.constant 0 : index
    %c0_204 = arith.constant 0 : index
    %452 = vector.load %arg35[%c0_202, %c0_203, %c0_204] : memref<2x1x32xf32, #tpu.memory_space<vmem>>, vector<1x1x32xf32>
    %453 = vector.shape_cast %452 : vector<1x1x32xf32> to vector<1x32xf32>
    %c0_205 = arith.constant 0 : index
    %c0_206 = arith.constant 0 : index
    %c0_207 = arith.constant 0 : index
    %454 = vector.load %arg36[%c0_205, %c0_206, %c0_207] : memref<2x1x32xf32, #tpu.memory_space<vmem>>, vector<1x1x32xf32>
    %455 = vector.shape_cast %454 : vector<1x1x32xf32> to vector<1x32xf32>
    %cst_208 = arith.constant dense<0.000000e+00> : vector<18xf32>
    %456 = vector.multi_reduction <add>, %451, %cst_208 [1] : vector<18x32xf32> to vector<18xf32>
    %457 = vector.shape_cast %456 : vector<18xf32> to vector<18x1xf32>
    %cst_209 = arith.constant 3.200000e+01 : f32
    %458 = vector.broadcast %cst_209 : f32 to vector<18x1xf32>
    %459 = arith.divf %457, %458 : vector<18x1xf32>
    %460 = vector.broadcast %459 : vector<18x1xf32> to vector<18x32xf32>
    %461 = arith.subf %451, %460 : vector<18x32xf32>
    %462 = arith.mulf %461, %461 : vector<18x32xf32>
    %cst_210 = arith.constant dense<0.000000e+00> : vector<18xf32>
    %463 = vector.multi_reduction <add>, %462, %cst_210 [1] : vector<18x32xf32> to vector<18xf32>
    %464 = vector.shape_cast %463 : vector<18xf32> to vector<18x1xf32>
    %cst_211 = arith.constant 3.200000e+01 : f32
    %465 = vector.broadcast %cst_211 : f32 to vector<18x1xf32>
    %466 = arith.divf %464, %465 : vector<18x1xf32>
    %467 = vector.broadcast %459 : vector<18x1xf32> to vector<18x32xf32>
    %468 = arith.subf %451, %467 : vector<18x32xf32>
    %cst_212 = arith.constant 9.99999974E-6 : f32
    %469 = vector.broadcast %cst_212 : f32 to vector<18x1xf32>
    %470 = arith.addf %466, %469 : vector<18x1xf32>
    %471 = math.rsqrt %470 : vector<18x1xf32>
    %472 = vector.broadcast %471 : vector<18x1xf32> to vector<18x32xf32>
    %473 = arith.mulf %468, %472 : vector<18x32xf32>
    %474 = vector.broadcast %453 : vector<1x32xf32> to vector<18x32xf32>
    %475 = arith.mulf %473, %474 : vector<18x32xf32>
    %476 = vector.broadcast %455 : vector<1x32xf32> to vector<18x32xf32>
    %477 = arith.addf %475, %476 : vector<18x32xf32>
    %c0_213 = arith.constant 0 : index
    %c0_214 = arith.constant 0 : index
    %c0_215 = arith.constant 0 : index
    %478 = vector.load %arg25[%c0_213, %c0_214, %c0_215] : memref<2x32x32xf32, #tpu.memory_space<vmem>>, vector<1x32x32xf32>
    %479 = vector.shape_cast %478 : vector<1x32x32xf32> to vector<32x32xf32>
    %cst_216 = arith.constant dense<0.000000e+00> : vector<18x32xf32>
    %480 = tpu.matmul %477, %479, %cst_216 {dimension_numbers = #tpu.dot_dimension_numbers<[1], [0], [0], [1], [0, 0, 1, 1], [], []>} : vector<18x32xf32>, vector<32x32xf32>, vector<18x32xf32> -> vector<18x32xf32>
    %c0_217 = arith.constant 0 : index
    %c0_218 = arith.constant 0 : index
    %c0_219 = arith.constant 0 : index
    %481 = vector.load %arg26[%c0_217, %c0_218, %c0_219] : memref<2x1x32xf32, #tpu.memory_space<vmem>>, vector<1x1x32xf32>
    %482 = vector.shape_cast %481 : vector<1x1x32xf32> to vector<1x32xf32>
    %483 = vector.broadcast %482 : vector<1x32xf32> to vector<18x32xf32>
    %484 = arith.addf %480, %483 : vector<18x32xf32>
    %c0_220 = arith.constant 0 : index
    %c0_221 = arith.constant 0 : index
    %c0_222 = arith.constant 0 : index
    %485 = vector.load %arg27[%c0_220, %c0_221, %c0_222] : memref<2x32x64xf32, #tpu.memory_space<vmem>>, vector<1x32x64xf32>
    %486 = vector.shape_cast %485 : vector<1x32x64xf32> to vector<32x64xf32>
    %cst_223 = arith.constant dense<0.000000e+00> : vector<16x64xf32>
    %487 = tpu.matmul %339, %486, %cst_223 {dimension_numbers = #tpu.dot_dimension_numbers<[1], [0], [0], [1], [0, 0, 1, 1], [], []>} : vector<16x32xf32>, vector<32x64xf32>, vector<16x64xf32> -> vector<16x64xf32>
    %c0_224 = arith.constant 0 : index
    %c0_225 = arith.constant 0 : index
    %c0_226 = arith.constant 0 : index
    %488 = vector.load %arg28[%c0_224, %c0_225, %c0_226] : memref<2x1x64xf32, #tpu.memory_space<vmem>>, vector<1x1x64xf32>
    %489 = vector.shape_cast %488 : vector<1x1x64xf32> to vector<1x64xf32>
    %490 = vector.broadcast %489 : vector<1x64xf32> to vector<16x64xf32>
    %491 = arith.addf %487, %490 : vector<16x64xf32>
    %492 = vector.extract_strided_slice %491 {offsets = [0, 0], sizes = [16, 32], strides = [1, 1]} : vector<16x64xf32> to vector<16x32xf32>
    %493 = vector.extract_strided_slice %491 {offsets = [0, 32], sizes = [16, 32], strides = [1, 1]} : vector<16x64xf32> to vector<16x32xf32>
    %c0_227 = arith.constant 0 : index
    %c0_228 = arith.constant 0 : index
    %c0_229 = arith.constant 0 : index
    %494 = vector.load %arg29[%c0_227, %c0_228, %c0_229] : memref<2x32x32xf32, #tpu.memory_space<vmem>>, vector<1x32x32xf32>
    %495 = vector.shape_cast %494 : vector<1x32x32xf32> to vector<32x32xf32>
    %c0_230 = arith.constant 0 : index
    %c0_231 = arith.constant 0 : index
    %c0_232 = arith.constant 0 : index
    %496 = vector.load %arg30[%c0_230, %c0_231, %c0_232] : memref<2x1x32xf32, #tpu.memory_space<vmem>>, vector<1x1x32xf32>
    %497 = vector.shape_cast %496 : vector<1x1x32xf32> to vector<1x32xf32>
    %498 = vector.extract_strided_slice %484 {offsets = [0, 0], sizes = [18, 8], strides = [1, 1]} : vector<18x32xf32> to vector<18x8xf32>
    %499 = vector.extract_strided_slice %492 {offsets = [0, 0], sizes = [16, 8], strides = [1, 1]} : vector<16x32xf32> to vector<16x8xf32>
    %500 = vector.extract_strided_slice %493 {offsets = [0, 0], sizes = [16, 8], strides = [1, 1]} : vector<16x32xf32> to vector<16x8xf32>
    %cst_233 = arith.constant dense<0.000000e+00> : vector<18x16xf32>
    %501 = tpu.matmul %498, %499, %cst_233 {dimension_numbers = #tpu.dot_dimension_numbers<[1], [1], [0], [0], [0, 0, 1, 0], [], []>} : vector<18x8xf32>, vector<16x8xf32>, vector<18x16xf32> -> vector<18x16xf32>
    %cst_234 = arith.constant 0.353553385 : f32
    %502 = vector.broadcast %cst_234 : f32 to vector<18x16xf32>
    %503 = arith.mulf %501, %502 : vector<18x16xf32>
    %504 = arith.addf %503, %351 : vector<18x16xf32>
    %cst_235 = arith.constant dense<0xFF800000> : vector<18xf32>
    %505 = vector.multi_reduction <maximumf>, %504, %cst_235 [1] : vector<18x16xf32> to vector<18xf32>
    %506 = vector.shape_cast %505 : vector<18xf32> to vector<18x1xf32>
    %507 = vector.broadcast %506 : vector<18x1xf32> to vector<18x16xf32>
    %508 = arith.subf %504, %507 : vector<18x16xf32>
    %509 = math.exp %508 : vector<18x16xf32>
    %cst_236 = arith.constant dense<0.000000e+00> : vector<18xf32>
    %510 = vector.multi_reduction <add>, %509, %cst_236 [1] : vector<18x16xf32> to vector<18xf32>
    %511 = vector.shape_cast %510 : vector<18xf32> to vector<18x1xf32>
    %512 = tpu.reciprocal %511 {approx = true} : vector<18x1xf32> -> vector<18x1xf32>
    %513 = vector.broadcast %512 : vector<18x1xf32> to vector<18x16xf32>
    %514 = arith.mulf %509, %513 : vector<18x16xf32>
    %cst_237 = arith.constant dense<0.000000e+00> : vector<18x8xf32>
    %515 = tpu.matmul %514, %500, %cst_237 {dimension_numbers = #tpu.dot_dimension_numbers<[1], [0], [0], [1], [0, 0, 1, 1], [], []>} : vector<18x16xf32>, vector<16x8xf32>, vector<18x8xf32> -> vector<18x8xf32>
    %516 = vector.extract_strided_slice %495 {offsets = [0, 0], sizes = [8, 32], strides = [1, 1]} : vector<32x32xf32> to vector<8x32xf32>
    %cst_238 = arith.constant dense<0.000000e+00> : vector<18x32xf32>
    %517 = tpu.matmul %515, %516, %cst_238 {dimension_numbers = #tpu.dot_dimension_numbers<[1], [0], [0], [1], [0, 0, 1, 1], [], []>} : vector<18x8xf32>, vector<8x32xf32>, vector<18x32xf32> -> vector<18x32xf32>
    %518 = vector.extract_strided_slice %484 {offsets = [0, 8], sizes = [18, 8], strides = [1, 1]} : vector<18x32xf32> to vector<18x8xf32>
    %519 = vector.extract_strided_slice %492 {offsets = [0, 8], sizes = [16, 8], strides = [1, 1]} : vector<16x32xf32> to vector<16x8xf32>
    %520 = vector.extract_strided_slice %493 {offsets = [0, 8], sizes = [16, 8], strides = [1, 1]} : vector<16x32xf32> to vector<16x8xf32>
    %cst_239 = arith.constant dense<0.000000e+00> : vector<18x16xf32>
    %521 = tpu.matmul %518, %519, %cst_239 {dimension_numbers = #tpu.dot_dimension_numbers<[1], [1], [0], [0], [0, 0, 1, 0], [], []>} : vector<18x8xf32>, vector<16x8xf32>, vector<18x16xf32> -> vector<18x16xf32>
    %cst_240 = arith.constant 0.353553385 : f32
    %522 = vector.broadcast %cst_240 : f32 to vector<18x16xf32>
    %523 = arith.mulf %521, %522 : vector<18x16xf32>
    %524 = arith.addf %523, %351 : vector<18x16xf32>
    %cst_241 = arith.constant dense<0xFF800000> : vector<18xf32>
    %525 = vector.multi_reduction <maximumf>, %524, %cst_241 [1] : vector<18x16xf32> to vector<18xf32>
    %526 = vector.shape_cast %525 : vector<18xf32> to vector<18x1xf32>
    %527 = vector.broadcast %526 : vector<18x1xf32> to vector<18x16xf32>
    %528 = arith.subf %524, %527 : vector<18x16xf32>
    %529 = math.exp %528 : vector<18x16xf32>
    %cst_242 = arith.constant dense<0.000000e+00> : vector<18xf32>
    %530 = vector.multi_reduction <add>, %529, %cst_242 [1] : vector<18x16xf32> to vector<18xf32>
    %531 = vector.shape_cast %530 : vector<18xf32> to vector<18x1xf32>
    %532 = tpu.reciprocal %531 {approx = true} : vector<18x1xf32> -> vector<18x1xf32>
    %533 = vector.broadcast %532 : vector<18x1xf32> to vector<18x16xf32>
    %534 = arith.mulf %529, %533 : vector<18x16xf32>
    %cst_243 = arith.constant dense<0.000000e+00> : vector<18x8xf32>
    %535 = tpu.matmul %534, %520, %cst_243 {dimension_numbers = #tpu.dot_dimension_numbers<[1], [0], [0], [1], [0, 0, 1, 1], [], []>} : vector<18x16xf32>, vector<16x8xf32>, vector<18x8xf32> -> vector<18x8xf32>
    %536 = vector.extract_strided_slice %495 {offsets = [8, 0], sizes = [8, 32], strides = [1, 1]} : vector<32x32xf32> to vector<8x32xf32>
    %cst_244 = arith.constant dense<0.000000e+00> : vector<18x32xf32>
    %537 = tpu.matmul %535, %536, %cst_244 {dimension_numbers = #tpu.dot_dimension_numbers<[1], [0], [0], [1], [0, 0, 1, 1], [], []>} : vector<18x8xf32>, vector<8x32xf32>, vector<18x32xf32> -> vector<18x32xf32>
    %538 = arith.addf %517, %537 : vector<18x32xf32>
    %539 = vector.extract_strided_slice %484 {offsets = [0, 16], sizes = [18, 8], strides = [1, 1]} : vector<18x32xf32> to vector<18x8xf32>
    %540 = vector.extract_strided_slice %492 {offsets = [0, 16], sizes = [16, 8], strides = [1, 1]} : vector<16x32xf32> to vector<16x8xf32>
    %541 = vector.extract_strided_slice %493 {offsets = [0, 16], sizes = [16, 8], strides = [1, 1]} : vector<16x32xf32> to vector<16x8xf32>
    %cst_245 = arith.constant dense<0.000000e+00> : vector<18x16xf32>
    %542 = tpu.matmul %539, %540, %cst_245 {dimension_numbers = #tpu.dot_dimension_numbers<[1], [1], [0], [0], [0, 0, 1, 0], [], []>} : vector<18x8xf32>, vector<16x8xf32>, vector<18x16xf32> -> vector<18x16xf32>
    %cst_246 = arith.constant 0.353553385 : f32
    %543 = vector.broadcast %cst_246 : f32 to vector<18x16xf32>
    %544 = arith.mulf %542, %543 : vector<18x16xf32>
    %545 = arith.addf %544, %351 : vector<18x16xf32>
    %cst_247 = arith.constant dense<0xFF800000> : vector<18xf32>
    %546 = vector.multi_reduction <maximumf>, %545, %cst_247 [1] : vector<18x16xf32> to vector<18xf32>
    %547 = vector.shape_cast %546 : vector<18xf32> to vector<18x1xf32>
    %548 = vector.broadcast %547 : vector<18x1xf32> to vector<18x16xf32>
    %549 = arith.subf %545, %548 : vector<18x16xf32>
    %550 = math.exp %549 : vector<18x16xf32>
    %cst_248 = arith.constant dense<0.000000e+00> : vector<18xf32>
    %551 = vector.multi_reduction <add>, %550, %cst_248 [1] : vector<18x16xf32> to vector<18xf32>
    %552 = vector.shape_cast %551 : vector<18xf32> to vector<18x1xf32>
    %553 = tpu.reciprocal %552 {approx = true} : vector<18x1xf32> -> vector<18x1xf32>
    %554 = vector.broadcast %553 : vector<18x1xf32> to vector<18x16xf32>
    %555 = arith.mulf %550, %554 : vector<18x16xf32>
    %cst_249 = arith.constant dense<0.000000e+00> : vector<18x8xf32>
    %556 = tpu.matmul %555, %541, %cst_249 {dimension_numbers = #tpu.dot_dimension_numbers<[1], [0], [0], [1], [0, 0, 1, 1], [], []>} : vector<18x16xf32>, vector<16x8xf32>, vector<18x8xf32> -> vector<18x8xf32>
    %557 = vector.extract_strided_slice %495 {offsets = [16, 0], sizes = [8, 32], strides = [1, 1]} : vector<32x32xf32> to vector<8x32xf32>
    %cst_250 = arith.constant dense<0.000000e+00> : vector<18x32xf32>
    %558 = tpu.matmul %556, %557, %cst_250 {dimension_numbers = #tpu.dot_dimension_numbers<[1], [0], [0], [1], [0, 0, 1, 1], [], []>} : vector<18x8xf32>, vector<8x32xf32>, vector<18x32xf32> -> vector<18x32xf32>
    %559 = arith.addf %538, %558 : vector<18x32xf32>
    %560 = vector.extract_strided_slice %484 {offsets = [0, 24], sizes = [18, 8], strides = [1, 1]} : vector<18x32xf32> to vector<18x8xf32>
    %561 = vector.extract_strided_slice %492 {offsets = [0, 24], sizes = [16, 8], strides = [1, 1]} : vector<16x32xf32> to vector<16x8xf32>
    %562 = vector.extract_strided_slice %493 {offsets = [0, 24], sizes = [16, 8], strides = [1, 1]} : vector<16x32xf32> to vector<16x8xf32>
    %cst_251 = arith.constant dense<0.000000e+00> : vector<18x16xf32>
    %563 = tpu.matmul %560, %561, %cst_251 {dimension_numbers = #tpu.dot_dimension_numbers<[1], [1], [0], [0], [0, 0, 1, 0], [], []>} : vector<18x8xf32>, vector<16x8xf32>, vector<18x16xf32> -> vector<18x16xf32>
    %cst_252 = arith.constant 0.353553385 : f32
    %564 = vector.broadcast %cst_252 : f32 to vector<18x16xf32>
    %565 = arith.mulf %563, %564 : vector<18x16xf32>
    %566 = arith.addf %565, %351 : vector<18x16xf32>
    %cst_253 = arith.constant dense<0xFF800000> : vector<18xf32>
    %567 = vector.multi_reduction <maximumf>, %566, %cst_253 [1] : vector<18x16xf32> to vector<18xf32>
    %568 = vector.shape_cast %567 : vector<18xf32> to vector<18x1xf32>
    %569 = vector.broadcast %568 : vector<18x1xf32> to vector<18x16xf32>
    %570 = arith.subf %566, %569 : vector<18x16xf32>
    %571 = math.exp %570 : vector<18x16xf32>
    %cst_254 = arith.constant dense<0.000000e+00> : vector<18xf32>
    %572 = vector.multi_reduction <add>, %571, %cst_254 [1] : vector<18x16xf32> to vector<18xf32>
    %573 = vector.shape_cast %572 : vector<18xf32> to vector<18x1xf32>
    %574 = tpu.reciprocal %573 {approx = true} : vector<18x1xf32> -> vector<18x1xf32>
    %575 = vector.broadcast %574 : vector<18x1xf32> to vector<18x16xf32>
    %576 = arith.mulf %571, %575 : vector<18x16xf32>
    %cst_255 = arith.constant dense<0.000000e+00> : vector<18x8xf32>
    %577 = tpu.matmul %576, %562, %cst_255 {dimension_numbers = #tpu.dot_dimension_numbers<[1], [0], [0], [1], [0, 0, 1, 1], [], []>} : vector<18x16xf32>, vector<16x8xf32>, vector<18x8xf32> -> vector<18x8xf32>
    %578 = vector.extract_strided_slice %495 {offsets = [24, 0], sizes = [8, 32], strides = [1, 1]} : vector<32x32xf32> to vector<8x32xf32>
    %cst_256 = arith.constant dense<0.000000e+00> : vector<18x32xf32>
    %579 = tpu.matmul %577, %578, %cst_256 {dimension_numbers = #tpu.dot_dimension_numbers<[1], [0], [0], [1], [0, 0, 1, 1], [], []>} : vector<18x8xf32>, vector<8x32xf32>, vector<18x32xf32> -> vector<18x32xf32>
    %580 = arith.addf %559, %579 : vector<18x32xf32>
    %581 = vector.broadcast %497 : vector<1x32xf32> to vector<18x32xf32>
    %582 = arith.addf %580, %581 : vector<18x32xf32>
    %583 = arith.addf %477, %582 : vector<18x32xf32>
    %c0_257 = arith.constant 0 : index
    %c0_258 = arith.constant 0 : index
    %c0_259 = arith.constant 0 : index
    %584 = vector.load %arg37[%c0_257, %c0_258, %c0_259] : memref<2x1x32xf32, #tpu.memory_space<vmem>>, vector<1x1x32xf32>
    %585 = vector.shape_cast %584 : vector<1x1x32xf32> to vector<1x32xf32>
    %c0_260 = arith.constant 0 : index
    %c0_261 = arith.constant 0 : index
    %c0_262 = arith.constant 0 : index
    %586 = vector.load %arg38[%c0_260, %c0_261, %c0_262] : memref<2x1x32xf32, #tpu.memory_space<vmem>>, vector<1x1x32xf32>
    %587 = vector.shape_cast %586 : vector<1x1x32xf32> to vector<1x32xf32>
    %cst_263 = arith.constant dense<0.000000e+00> : vector<18xf32>
    %588 = vector.multi_reduction <add>, %583, %cst_263 [1] : vector<18x32xf32> to vector<18xf32>
    %589 = vector.shape_cast %588 : vector<18xf32> to vector<18x1xf32>
    %cst_264 = arith.constant 3.200000e+01 : f32
    %590 = vector.broadcast %cst_264 : f32 to vector<18x1xf32>
    %591 = arith.divf %589, %590 : vector<18x1xf32>
    %592 = vector.broadcast %591 : vector<18x1xf32> to vector<18x32xf32>
    %593 = arith.subf %583, %592 : vector<18x32xf32>
    %594 = arith.mulf %593, %593 : vector<18x32xf32>
    %cst_265 = arith.constant dense<0.000000e+00> : vector<18xf32>
    %595 = vector.multi_reduction <add>, %594, %cst_265 [1] : vector<18x32xf32> to vector<18xf32>
    %596 = vector.shape_cast %595 : vector<18xf32> to vector<18x1xf32>
    %cst_266 = arith.constant 3.200000e+01 : f32
    %597 = vector.broadcast %cst_266 : f32 to vector<18x1xf32>
    %598 = arith.divf %596, %597 : vector<18x1xf32>
    %599 = vector.broadcast %591 : vector<18x1xf32> to vector<18x32xf32>
    %600 = arith.subf %583, %599 : vector<18x32xf32>
    %cst_267 = arith.constant 9.99999974E-6 : f32
    %601 = vector.broadcast %cst_267 : f32 to vector<18x1xf32>
    %602 = arith.addf %598, %601 : vector<18x1xf32>
    %603 = math.rsqrt %602 : vector<18x1xf32>
    %604 = vector.broadcast %603 : vector<18x1xf32> to vector<18x32xf32>
    %605 = arith.mulf %600, %604 : vector<18x32xf32>
    %606 = vector.broadcast %585 : vector<1x32xf32> to vector<18x32xf32>
    %607 = arith.mulf %605, %606 : vector<18x32xf32>
    %608 = vector.broadcast %587 : vector<1x32xf32> to vector<18x32xf32>
    %609 = arith.addf %607, %608 : vector<18x32xf32>
    %c0_268 = arith.constant 0 : index
    %c0_269 = arith.constant 0 : index
    %c0_270 = arith.constant 0 : index
    %610 = vector.load %arg31[%c0_268, %c0_269, %c0_270] : memref<2x32x64xf32, #tpu.memory_space<vmem>>, vector<1x32x64xf32>
    %611 = vector.shape_cast %610 : vector<1x32x64xf32> to vector<32x64xf32>
    %c0_271 = arith.constant 0 : index
    %c0_272 = arith.constant 0 : index
    %c0_273 = arith.constant 0 : index
    %612 = vector.load %arg32[%c0_271, %c0_272, %c0_273] : memref<2x1x64xf32, #tpu.memory_space<vmem>>, vector<1x1x64xf32>
    %613 = vector.shape_cast %612 : vector<1x1x64xf32> to vector<1x64xf32>
    %c0_274 = arith.constant 0 : index
    %c0_275 = arith.constant 0 : index
    %c0_276 = arith.constant 0 : index
    %614 = vector.load %arg33[%c0_274, %c0_275, %c0_276] : memref<2x64x32xf32, #tpu.memory_space<vmem>>, vector<1x64x32xf32>
    %615 = vector.shape_cast %614 : vector<1x64x32xf32> to vector<64x32xf32>
    %c0_277 = arith.constant 0 : index
    %c0_278 = arith.constant 0 : index
    %c0_279 = arith.constant 0 : index
    %616 = vector.load %arg34[%c0_277, %c0_278, %c0_279] : memref<2x1x32xf32, #tpu.memory_space<vmem>>, vector<1x1x32xf32>
    %617 = vector.shape_cast %616 : vector<1x1x32xf32> to vector<1x32xf32>
    %cst_280 = arith.constant dense<0.000000e+00> : vector<18x64xf32>
    %618 = tpu.matmul %609, %611, %cst_280 {dimension_numbers = #tpu.dot_dimension_numbers<[1], [0], [0], [1], [0, 0, 1, 1], [], []>} : vector<18x32xf32>, vector<32x64xf32>, vector<18x64xf32> -> vector<18x64xf32>
    %619 = vector.broadcast %613 : vector<1x64xf32> to vector<18x64xf32>
    %620 = arith.addf %618, %619 : vector<18x64xf32>
    %cst_281 = arith.constant 0.000000e+00 : f32
    %621 = vector.broadcast %cst_281 : f32 to vector<18x64xf32>
    %622 = arith.maximumf %620, %621 : vector<18x64xf32>
    %cst_282 = arith.constant dense<0.000000e+00> : vector<18x32xf32>
    %623 = tpu.matmul %622, %615, %cst_282 {dimension_numbers = #tpu.dot_dimension_numbers<[1], [0], [0], [1], [0, 0, 1, 1], [], []>} : vector<18x64xf32>, vector<64x32xf32>, vector<18x32xf32> -> vector<18x32xf32>
    %624 = vector.broadcast %617 : vector<1x32xf32> to vector<18x32xf32>
    %625 = arith.addf %623, %624 : vector<18x32xf32>
    %626 = arith.addf %609, %625 : vector<18x32xf32>
    %c0_283 = arith.constant 0 : index
    %c0_284 = arith.constant 0 : index
    %c0_285 = arith.constant 0 : index
    %627 = vector.load %arg39[%c0_283, %c0_284, %c0_285] : memref<2x1x32xf32, #tpu.memory_space<vmem>>, vector<1x1x32xf32>
    %628 = vector.shape_cast %627 : vector<1x1x32xf32> to vector<1x32xf32>
    %c0_286 = arith.constant 0 : index
    %c0_287 = arith.constant 0 : index
    %c0_288 = arith.constant 0 : index
    %629 = vector.load %arg40[%c0_286, %c0_287, %c0_288] : memref<2x1x32xf32, #tpu.memory_space<vmem>>, vector<1x1x32xf32>
    %630 = vector.shape_cast %629 : vector<1x1x32xf32> to vector<1x32xf32>
    %cst_289 = arith.constant dense<0.000000e+00> : vector<18xf32>
    %631 = vector.multi_reduction <add>, %626, %cst_289 [1] : vector<18x32xf32> to vector<18xf32>
    %632 = vector.shape_cast %631 : vector<18xf32> to vector<18x1xf32>
    %cst_290 = arith.constant 3.200000e+01 : f32
    %633 = vector.broadcast %cst_290 : f32 to vector<18x1xf32>
    %634 = arith.divf %632, %633 : vector<18x1xf32>
    %635 = vector.broadcast %634 : vector<18x1xf32> to vector<18x32xf32>
    %636 = arith.subf %626, %635 : vector<18x32xf32>
    %637 = arith.mulf %636, %636 : vector<18x32xf32>
    %cst_291 = arith.constant dense<0.000000e+00> : vector<18xf32>
    %638 = vector.multi_reduction <add>, %637, %cst_291 [1] : vector<18x32xf32> to vector<18xf32>
    %639 = vector.shape_cast %638 : vector<18xf32> to vector<18x1xf32>
    %cst_292 = arith.constant 3.200000e+01 : f32
    %640 = vector.broadcast %cst_292 : f32 to vector<18x1xf32>
    %641 = arith.divf %639, %640 : vector<18x1xf32>
    %642 = vector.broadcast %634 : vector<18x1xf32> to vector<18x32xf32>
    %643 = arith.subf %626, %642 : vector<18x32xf32>
    %cst_293 = arith.constant 9.99999974E-6 : f32
    %644 = vector.broadcast %cst_293 : f32 to vector<18x1xf32>
    %645 = arith.addf %641, %644 : vector<18x1xf32>
    %646 = math.rsqrt %645 : vector<18x1xf32>
    %647 = vector.broadcast %646 : vector<18x1xf32> to vector<18x32xf32>
    %648 = arith.mulf %643, %647 : vector<18x32xf32>
    %649 = vector.broadcast %628 : vector<1x32xf32> to vector<18x32xf32>
    %650 = arith.mulf %648, %649 : vector<18x32xf32>
    %651 = vector.broadcast %630 : vector<1x32xf32> to vector<18x32xf32>
    %652 = arith.addf %650, %651 : vector<18x32xf32>
    %c1_294 = arith.constant 1 : index
    %c0_295 = arith.constant 0 : index
    %c0_296 = arith.constant 0 : index
    %653 = vector.load %arg21[%c1_294, %c0_295, %c0_296] : memref<2x32x96xf32, #tpu.memory_space<vmem>>, vector<1x32x96xf32>
    %654 = vector.shape_cast %653 : vector<1x32x96xf32> to vector<32x96xf32>
    %cst_297 = arith.constant dense<0.000000e+00> : vector<18x96xf32>
    %655 = tpu.matmul %652, %654, %cst_297 {dimension_numbers = #tpu.dot_dimension_numbers<[1], [0], [0], [1], [0, 0, 1, 1], [], []>} : vector<18x32xf32>, vector<32x96xf32>, vector<18x96xf32> -> vector<18x96xf32>
    %c1_298 = arith.constant 1 : index
    %c0_299 = arith.constant 0 : index
    %c0_300 = arith.constant 0 : index
    %656 = vector.load %arg22[%c1_298, %c0_299, %c0_300] : memref<2x1x96xf32, #tpu.memory_space<vmem>>, vector<1x1x96xf32>
    %657 = vector.shape_cast %656 : vector<1x1x96xf32> to vector<1x96xf32>
    %658 = vector.broadcast %657 : vector<1x96xf32> to vector<18x96xf32>
    %659 = arith.addf %655, %658 : vector<18x96xf32>
    %660 = vector.extract_strided_slice %659 {offsets = [0, 0], sizes = [18, 32], strides = [1, 1]} : vector<18x96xf32> to vector<18x32xf32>
    %661 = vector.extract_strided_slice %659 {offsets = [0, 32], sizes = [18, 32], strides = [1, 1]} : vector<18x96xf32> to vector<18x32xf32>
    %662 = vector.extract_strided_slice %659 {offsets = [0, 64], sizes = [18, 32], strides = [1, 1]} : vector<18x96xf32> to vector<18x32xf32>
    %c1_301 = arith.constant 1 : index
    %c0_302 = arith.constant 0 : index
    %c0_303 = arith.constant 0 : index
    %663 = vector.load %arg23[%c1_301, %c0_302, %c0_303] : memref<2x32x32xf32, #tpu.memory_space<vmem>>, vector<1x32x32xf32>
    %664 = vector.shape_cast %663 : vector<1x32x32xf32> to vector<32x32xf32>
    %c1_304 = arith.constant 1 : index
    %c0_305 = arith.constant 0 : index
    %c0_306 = arith.constant 0 : index
    %665 = vector.load %arg24[%c1_304, %c0_305, %c0_306] : memref<2x1x32xf32, #tpu.memory_space<vmem>>, vector<1x1x32xf32>
    %666 = vector.shape_cast %665 : vector<1x1x32xf32> to vector<1x32xf32>
    %667 = vector.extract_strided_slice %660 {offsets = [0, 0], sizes = [18, 8], strides = [1, 1]} : vector<18x32xf32> to vector<18x8xf32>
    %668 = vector.extract_strided_slice %661 {offsets = [0, 0], sizes = [18, 8], strides = [1, 1]} : vector<18x32xf32> to vector<18x8xf32>
    %669 = vector.extract_strided_slice %662 {offsets = [0, 0], sizes = [18, 8], strides = [1, 1]} : vector<18x32xf32> to vector<18x8xf32>
    %cst_307 = arith.constant dense<0.000000e+00> : vector<18x18xf32>
    %670 = tpu.matmul %667, %668, %cst_307 {dimension_numbers = #tpu.dot_dimension_numbers<[1], [1], [0], [0], [0, 0, 1, 0], [], []>} : vector<18x8xf32>, vector<18x8xf32>, vector<18x18xf32> -> vector<18x18xf32>
    %cst_308 = arith.constant 0.353553385 : f32
    %671 = vector.broadcast %cst_308 : f32 to vector<18x18xf32>
    %672 = arith.mulf %670, %671 : vector<18x18xf32>
    %673 = arith.addf %672, %350 : vector<18x18xf32>
    %cst_309 = arith.constant dense<0xFF800000> : vector<18xf32>
    %674 = vector.multi_reduction <maximumf>, %673, %cst_309 [1] : vector<18x18xf32> to vector<18xf32>
    %675 = vector.shape_cast %674 : vector<18xf32> to vector<18x1xf32>
    %676 = vector.broadcast %675 : vector<18x1xf32> to vector<18x18xf32>
    %677 = arith.subf %673, %676 : vector<18x18xf32>
    %678 = math.exp %677 : vector<18x18xf32>
    %cst_310 = arith.constant dense<0.000000e+00> : vector<18xf32>
    %679 = vector.multi_reduction <add>, %678, %cst_310 [1] : vector<18x18xf32> to vector<18xf32>
    %680 = vector.shape_cast %679 : vector<18xf32> to vector<18x1xf32>
    %681 = tpu.reciprocal %680 {approx = true} : vector<18x1xf32> -> vector<18x1xf32>
    %682 = vector.broadcast %681 : vector<18x1xf32> to vector<18x18xf32>
    %683 = arith.mulf %678, %682 : vector<18x18xf32>
    %cst_311 = arith.constant dense<0.000000e+00> : vector<18x8xf32>
    %684 = tpu.matmul %683, %669, %cst_311 {dimension_numbers = #tpu.dot_dimension_numbers<[1], [0], [0], [1], [0, 0, 1, 1], [], []>} : vector<18x18xf32>, vector<18x8xf32>, vector<18x8xf32> -> vector<18x8xf32>
    %685 = vector.extract_strided_slice %664 {offsets = [0, 0], sizes = [8, 32], strides = [1, 1]} : vector<32x32xf32> to vector<8x32xf32>
    %cst_312 = arith.constant dense<0.000000e+00> : vector<18x32xf32>
    %686 = tpu.matmul %684, %685, %cst_312 {dimension_numbers = #tpu.dot_dimension_numbers<[1], [0], [0], [1], [0, 0, 1, 1], [], []>} : vector<18x8xf32>, vector<8x32xf32>, vector<18x32xf32> -> vector<18x32xf32>
    %687 = vector.extract_strided_slice %660 {offsets = [0, 8], sizes = [18, 8], strides = [1, 1]} : vector<18x32xf32> to vector<18x8xf32>
    %688 = vector.extract_strided_slice %661 {offsets = [0, 8], sizes = [18, 8], strides = [1, 1]} : vector<18x32xf32> to vector<18x8xf32>
    %689 = vector.extract_strided_slice %662 {offsets = [0, 8], sizes = [18, 8], strides = [1, 1]} : vector<18x32xf32> to vector<18x8xf32>
    %cst_313 = arith.constant dense<0.000000e+00> : vector<18x18xf32>
    %690 = tpu.matmul %687, %688, %cst_313 {dimension_numbers = #tpu.dot_dimension_numbers<[1], [1], [0], [0], [0, 0, 1, 0], [], []>} : vector<18x8xf32>, vector<18x8xf32>, vector<18x18xf32> -> vector<18x18xf32>
    %cst_314 = arith.constant 0.353553385 : f32
    %691 = vector.broadcast %cst_314 : f32 to vector<18x18xf32>
    %692 = arith.mulf %690, %691 : vector<18x18xf32>
    %693 = arith.addf %692, %350 : vector<18x18xf32>
    %cst_315 = arith.constant dense<0xFF800000> : vector<18xf32>
    %694 = vector.multi_reduction <maximumf>, %693, %cst_315 [1] : vector<18x18xf32> to vector<18xf32>
    %695 = vector.shape_cast %694 : vector<18xf32> to vector<18x1xf32>
    %696 = vector.broadcast %695 : vector<18x1xf32> to vector<18x18xf32>
    %697 = arith.subf %693, %696 : vector<18x18xf32>
    %698 = math.exp %697 : vector<18x18xf32>
    %cst_316 = arith.constant dense<0.000000e+00> : vector<18xf32>
    %699 = vector.multi_reduction <add>, %698, %cst_316 [1] : vector<18x18xf32> to vector<18xf32>
    %700 = vector.shape_cast %699 : vector<18xf32> to vector<18x1xf32>
    %701 = tpu.reciprocal %700 {approx = true} : vector<18x1xf32> -> vector<18x1xf32>
    %702 = vector.broadcast %701 : vector<18x1xf32> to vector<18x18xf32>
    %703 = arith.mulf %698, %702 : vector<18x18xf32>
    %cst_317 = arith.constant dense<0.000000e+00> : vector<18x8xf32>
    %704 = tpu.matmul %703, %689, %cst_317 {dimension_numbers = #tpu.dot_dimension_numbers<[1], [0], [0], [1], [0, 0, 1, 1], [], []>} : vector<18x18xf32>, vector<18x8xf32>, vector<18x8xf32> -> vector<18x8xf32>
    %705 = vector.extract_strided_slice %664 {offsets = [8, 0], sizes = [8, 32], strides = [1, 1]} : vector<32x32xf32> to vector<8x32xf32>
    %cst_318 = arith.constant dense<0.000000e+00> : vector<18x32xf32>
    %706 = tpu.matmul %704, %705, %cst_318 {dimension_numbers = #tpu.dot_dimension_numbers<[1], [0], [0], [1], [0, 0, 1, 1], [], []>} : vector<18x8xf32>, vector<8x32xf32>, vector<18x32xf32> -> vector<18x32xf32>
    %707 = arith.addf %686, %706 : vector<18x32xf32>
    %708 = vector.extract_strided_slice %660 {offsets = [0, 16], sizes = [18, 8], strides = [1, 1]} : vector<18x32xf32> to vector<18x8xf32>
    %709 = vector.extract_strided_slice %661 {offsets = [0, 16], sizes = [18, 8], strides = [1, 1]} : vector<18x32xf32> to vector<18x8xf32>
    %710 = vector.extract_strided_slice %662 {offsets = [0, 16], sizes = [18, 8], strides = [1, 1]} : vector<18x32xf32> to vector<18x8xf32>
    %cst_319 = arith.constant dense<0.000000e+00> : vector<18x18xf32>
    %711 = tpu.matmul %708, %709, %cst_319 {dimension_numbers = #tpu.dot_dimension_numbers<[1], [1], [0], [0], [0, 0, 1, 0], [], []>} : vector<18x8xf32>, vector<18x8xf32>, vector<18x18xf32> -> vector<18x18xf32>
    %cst_320 = arith.constant 0.353553385 : f32
    %712 = vector.broadcast %cst_320 : f32 to vector<18x18xf32>
    %713 = arith.mulf %711, %712 : vector<18x18xf32>
    %714 = arith.addf %713, %350 : vector<18x18xf32>
    %cst_321 = arith.constant dense<0xFF800000> : vector<18xf32>
    %715 = vector.multi_reduction <maximumf>, %714, %cst_321 [1] : vector<18x18xf32> to vector<18xf32>
    %716 = vector.shape_cast %715 : vector<18xf32> to vector<18x1xf32>
    %717 = vector.broadcast %716 : vector<18x1xf32> to vector<18x18xf32>
    %718 = arith.subf %714, %717 : vector<18x18xf32>
    %719 = math.exp %718 : vector<18x18xf32>
    %cst_322 = arith.constant dense<0.000000e+00> : vector<18xf32>
    %720 = vector.multi_reduction <add>, %719, %cst_322 [1] : vector<18x18xf32> to vector<18xf32>
    %721 = vector.shape_cast %720 : vector<18xf32> to vector<18x1xf32>
    %722 = tpu.reciprocal %721 {approx = true} : vector<18x1xf32> -> vector<18x1xf32>
    %723 = vector.broadcast %722 : vector<18x1xf32> to vector<18x18xf32>
    %724 = arith.mulf %719, %723 : vector<18x18xf32>
    %cst_323 = arith.constant dense<0.000000e+00> : vector<18x8xf32>
    %725 = tpu.matmul %724, %710, %cst_323 {dimension_numbers = #tpu.dot_dimension_numbers<[1], [0], [0], [1], [0, 0, 1, 1], [], []>} : vector<18x18xf32>, vector<18x8xf32>, vector<18x8xf32> -> vector<18x8xf32>
    %726 = vector.extract_strided_slice %664 {offsets = [16, 0], sizes = [8, 32], strides = [1, 1]} : vector<32x32xf32> to vector<8x32xf32>
    %cst_324 = arith.constant dense<0.000000e+00> : vector<18x32xf32>
    %727 = tpu.matmul %725, %726, %cst_324 {dimension_numbers = #tpu.dot_dimension_numbers<[1], [0], [0], [1], [0, 0, 1, 1], [], []>} : vector<18x8xf32>, vector<8x32xf32>, vector<18x32xf32> -> vector<18x32xf32>
    %728 = arith.addf %707, %727 : vector<18x32xf32>
    %729 = vector.extract_strided_slice %660 {offsets = [0, 24], sizes = [18, 8], strides = [1, 1]} : vector<18x32xf32> to vector<18x8xf32>
    %730 = vector.extract_strided_slice %661 {offsets = [0, 24], sizes = [18, 8], strides = [1, 1]} : vector<18x32xf32> to vector<18x8xf32>
    %731 = vector.extract_strided_slice %662 {offsets = [0, 24], sizes = [18, 8], strides = [1, 1]} : vector<18x32xf32> to vector<18x8xf32>
    %cst_325 = arith.constant dense<0.000000e+00> : vector<18x18xf32>
    %732 = tpu.matmul %729, %730, %cst_325 {dimension_numbers = #tpu.dot_dimension_numbers<[1], [1], [0], [0], [0, 0, 1, 0], [], []>} : vector<18x8xf32>, vector<18x8xf32>, vector<18x18xf32> -> vector<18x18xf32>
    %cst_326 = arith.constant 0.353553385 : f32
    %733 = vector.broadcast %cst_326 : f32 to vector<18x18xf32>
    %734 = arith.mulf %732, %733 : vector<18x18xf32>
    %735 = arith.addf %734, %350 : vector<18x18xf32>
    %cst_327 = arith.constant dense<0xFF800000> : vector<18xf32>
    %736 = vector.multi_reduction <maximumf>, %735, %cst_327 [1] : vector<18x18xf32> to vector<18xf32>
    %737 = vector.shape_cast %736 : vector<18xf32> to vector<18x1xf32>
    %738 = vector.broadcast %737 : vector<18x1xf32> to vector<18x18xf32>
    %739 = arith.subf %735, %738 : vector<18x18xf32>
    %740 = math.exp %739 : vector<18x18xf32>
    %cst_328 = arith.constant dense<0.000000e+00> : vector<18xf32>
    %741 = vector.multi_reduction <add>, %740, %cst_328 [1] : vector<18x18xf32> to vector<18xf32>
    %742 = vector.shape_cast %741 : vector<18xf32> to vector<18x1xf32>
    %743 = tpu.reciprocal %742 {approx = true} : vector<18x1xf32> -> vector<18x1xf32>
    %744 = vector.broadcast %743 : vector<18x1xf32> to vector<18x18xf32>
    %745 = arith.mulf %740, %744 : vector<18x18xf32>
    %cst_329 = arith.constant dense<0.000000e+00> : vector<18x8xf32>
    %746 = tpu.matmul %745, %731, %cst_329 {dimension_numbers = #tpu.dot_dimension_numbers<[1], [0], [0], [1], [0, 0, 1, 1], [], []>} : vector<18x18xf32>, vector<18x8xf32>, vector<18x8xf32> -> vector<18x8xf32>
    %747 = vector.extract_strided_slice %664 {offsets = [24, 0], sizes = [8, 32], strides = [1, 1]} : vector<32x32xf32> to vector<8x32xf32>
    %cst_330 = arith.constant dense<0.000000e+00> : vector<18x32xf32>
    %748 = tpu.matmul %746, %747, %cst_330 {dimension_numbers = #tpu.dot_dimension_numbers<[1], [0], [0], [1], [0, 0, 1, 1], [], []>} : vector<18x8xf32>, vector<8x32xf32>, vector<18x32xf32> -> vector<18x32xf32>
    %749 = arith.addf %728, %748 : vector<18x32xf32>
    %750 = vector.broadcast %666 : vector<1x32xf32> to vector<18x32xf32>
    %751 = arith.addf %749, %750 : vector<18x32xf32>
    %752 = arith.addf %652, %751 : vector<18x32xf32>
    %c1_331 = arith.constant 1 : index
    %c0_332 = arith.constant 0 : index
    %c0_333 = arith.constant 0 : index
    %753 = vector.load %arg35[%c1_331, %c0_332, %c0_333] : memref<2x1x32xf32, #tpu.memory_space<vmem>>, vector<1x1x32xf32>
    %754 = vector.shape_cast %753 : vector<1x1x32xf32> to vector<1x32xf32>
    %c1_334 = arith.constant 1 : index
    %c0_335 = arith.constant 0 : index
    %c0_336 = arith.constant 0 : index
    %755 = vector.load %arg36[%c1_334, %c0_335, %c0_336] : memref<2x1x32xf32, #tpu.memory_space<vmem>>, vector<1x1x32xf32>
    %756 = vector.shape_cast %755 : vector<1x1x32xf32> to vector<1x32xf32>
    %cst_337 = arith.constant dense<0.000000e+00> : vector<18xf32>
    %757 = vector.multi_reduction <add>, %752, %cst_337 [1] : vector<18x32xf32> to vector<18xf32>
    %758 = vector.shape_cast %757 : vector<18xf32> to vector<18x1xf32>
    %cst_338 = arith.constant 3.200000e+01 : f32
    %759 = vector.broadcast %cst_338 : f32 to vector<18x1xf32>
    %760 = arith.divf %758, %759 : vector<18x1xf32>
    %761 = vector.broadcast %760 : vector<18x1xf32> to vector<18x32xf32>
    %762 = arith.subf %752, %761 : vector<18x32xf32>
    %763 = arith.mulf %762, %762 : vector<18x32xf32>
    %cst_339 = arith.constant dense<0.000000e+00> : vector<18xf32>
    %764 = vector.multi_reduction <add>, %763, %cst_339 [1] : vector<18x32xf32> to vector<18xf32>
    %765 = vector.shape_cast %764 : vector<18xf32> to vector<18x1xf32>
    %cst_340 = arith.constant 3.200000e+01 : f32
    %766 = vector.broadcast %cst_340 : f32 to vector<18x1xf32>
    %767 = arith.divf %765, %766 : vector<18x1xf32>
    %768 = vector.broadcast %760 : vector<18x1xf32> to vector<18x32xf32>
    %769 = arith.subf %752, %768 : vector<18x32xf32>
    %cst_341 = arith.constant 9.99999974E-6 : f32
    %770 = vector.broadcast %cst_341 : f32 to vector<18x1xf32>
    %771 = arith.addf %767, %770 : vector<18x1xf32>
    %772 = math.rsqrt %771 : vector<18x1xf32>
    %773 = vector.broadcast %772 : vector<18x1xf32> to vector<18x32xf32>
    %774 = arith.mulf %769, %773 : vector<18x32xf32>
    %775 = vector.broadcast %754 : vector<1x32xf32> to vector<18x32xf32>
    %776 = arith.mulf %774, %775 : vector<18x32xf32>
    %777 = vector.broadcast %756 : vector<1x32xf32> to vector<18x32xf32>
    %778 = arith.addf %776, %777 : vector<18x32xf32>
    %c1_342 = arith.constant 1 : index
    %c0_343 = arith.constant 0 : index
    %c0_344 = arith.constant 0 : index
    %779 = vector.load %arg25[%c1_342, %c0_343, %c0_344] : memref<2x32x32xf32, #tpu.memory_space<vmem>>, vector<1x32x32xf32>
    %780 = vector.shape_cast %779 : vector<1x32x32xf32> to vector<32x32xf32>
    %cst_345 = arith.constant dense<0.000000e+00> : vector<18x32xf32>
    %781 = tpu.matmul %778, %780, %cst_345 {dimension_numbers = #tpu.dot_dimension_numbers<[1], [0], [0], [1], [0, 0, 1, 1], [], []>} : vector<18x32xf32>, vector<32x32xf32>, vector<18x32xf32> -> vector<18x32xf32>
    %c1_346 = arith.constant 1 : index
    %c0_347 = arith.constant 0 : index
    %c0_348 = arith.constant 0 : index
    %782 = vector.load %arg26[%c1_346, %c0_347, %c0_348] : memref<2x1x32xf32, #tpu.memory_space<vmem>>, vector<1x1x32xf32>
    %783 = vector.shape_cast %782 : vector<1x1x32xf32> to vector<1x32xf32>
    %784 = vector.broadcast %783 : vector<1x32xf32> to vector<18x32xf32>
    %785 = arith.addf %781, %784 : vector<18x32xf32>
    %c1_349 = arith.constant 1 : index
    %c0_350 = arith.constant 0 : index
    %c0_351 = arith.constant 0 : index
    %786 = vector.load %arg27[%c1_349, %c0_350, %c0_351] : memref<2x32x64xf32, #tpu.memory_space<vmem>>, vector<1x32x64xf32>
    %787 = vector.shape_cast %786 : vector<1x32x64xf32> to vector<32x64xf32>
    %cst_352 = arith.constant dense<0.000000e+00> : vector<16x64xf32>
    %788 = tpu.matmul %339, %787, %cst_352 {dimension_numbers = #tpu.dot_dimension_numbers<[1], [0], [0], [1], [0, 0, 1, 1], [], []>} : vector<16x32xf32>, vector<32x64xf32>, vector<16x64xf32> -> vector<16x64xf32>
    %c1_353 = arith.constant 1 : index
    %c0_354 = arith.constant 0 : index
    %c0_355 = arith.constant 0 : index
    %789 = vector.load %arg28[%c1_353, %c0_354, %c0_355] : memref<2x1x64xf32, #tpu.memory_space<vmem>>, vector<1x1x64xf32>
    %790 = vector.shape_cast %789 : vector<1x1x64xf32> to vector<1x64xf32>
    %791 = vector.broadcast %790 : vector<1x64xf32> to vector<16x64xf32>
    %792 = arith.addf %788, %791 : vector<16x64xf32>
    %793 = vector.extract_strided_slice %792 {offsets = [0, 0], sizes = [16, 32], strides = [1, 1]} : vector<16x64xf32> to vector<16x32xf32>
    %794 = vector.extract_strided_slice %792 {offsets = [0, 32], sizes = [16, 32], strides = [1, 1]} : vector<16x64xf32> to vector<16x32xf32>
    %c1_356 = arith.constant 1 : index
    %c0_357 = arith.constant 0 : index
    %c0_358 = arith.constant 0 : index
    %795 = vector.load %arg29[%c1_356, %c0_357, %c0_358] : memref<2x32x32xf32, #tpu.memory_space<vmem>>, vector<1x32x32xf32>
    %796 = vector.shape_cast %795 : vector<1x32x32xf32> to vector<32x32xf32>
    %c1_359 = arith.constant 1 : index
    %c0_360 = arith.constant 0 : index
    %c0_361 = arith.constant 0 : index
    %797 = vector.load %arg30[%c1_359, %c0_360, %c0_361] : memref<2x1x32xf32, #tpu.memory_space<vmem>>, vector<1x1x32xf32>
    %798 = vector.shape_cast %797 : vector<1x1x32xf32> to vector<1x32xf32>
    %799 = vector.extract_strided_slice %785 {offsets = [0, 0], sizes = [18, 8], strides = [1, 1]} : vector<18x32xf32> to vector<18x8xf32>
    %800 = vector.extract_strided_slice %793 {offsets = [0, 0], sizes = [16, 8], strides = [1, 1]} : vector<16x32xf32> to vector<16x8xf32>
    %801 = vector.extract_strided_slice %794 {offsets = [0, 0], sizes = [16, 8], strides = [1, 1]} : vector<16x32xf32> to vector<16x8xf32>
    %cst_362 = arith.constant dense<0.000000e+00> : vector<18x16xf32>
    %802 = tpu.matmul %799, %800, %cst_362 {dimension_numbers = #tpu.dot_dimension_numbers<[1], [1], [0], [0], [0, 0, 1, 0], [], []>} : vector<18x8xf32>, vector<16x8xf32>, vector<18x16xf32> -> vector<18x16xf32>
    %cst_363 = arith.constant 0.353553385 : f32
    %803 = vector.broadcast %cst_363 : f32 to vector<18x16xf32>
    %804 = arith.mulf %802, %803 : vector<18x16xf32>
    %805 = arith.addf %804, %351 : vector<18x16xf32>
    %cst_364 = arith.constant dense<0xFF800000> : vector<18xf32>
    %806 = vector.multi_reduction <maximumf>, %805, %cst_364 [1] : vector<18x16xf32> to vector<18xf32>
    %807 = vector.shape_cast %806 : vector<18xf32> to vector<18x1xf32>
    %808 = vector.broadcast %807 : vector<18x1xf32> to vector<18x16xf32>
    %809 = arith.subf %805, %808 : vector<18x16xf32>
    %810 = math.exp %809 : vector<18x16xf32>
    %cst_365 = arith.constant dense<0.000000e+00> : vector<18xf32>
    %811 = vector.multi_reduction <add>, %810, %cst_365 [1] : vector<18x16xf32> to vector<18xf32>
    %812 = vector.shape_cast %811 : vector<18xf32> to vector<18x1xf32>
    %813 = tpu.reciprocal %812 {approx = true} : vector<18x1xf32> -> vector<18x1xf32>
    %814 = vector.broadcast %813 : vector<18x1xf32> to vector<18x16xf32>
    %815 = arith.mulf %810, %814 : vector<18x16xf32>
    %cst_366 = arith.constant dense<0.000000e+00> : vector<18x8xf32>
    %816 = tpu.matmul %815, %801, %cst_366 {dimension_numbers = #tpu.dot_dimension_numbers<[1], [0], [0], [1], [0, 0, 1, 1], [], []>} : vector<18x16xf32>, vector<16x8xf32>, vector<18x8xf32> -> vector<18x8xf32>
    %817 = vector.extract_strided_slice %796 {offsets = [0, 0], sizes = [8, 32], strides = [1, 1]} : vector<32x32xf32> to vector<8x32xf32>
    %cst_367 = arith.constant dense<0.000000e+00> : vector<18x32xf32>
    %818 = tpu.matmul %816, %817, %cst_367 {dimension_numbers = #tpu.dot_dimension_numbers<[1], [0], [0], [1], [0, 0, 1, 1], [], []>} : vector<18x8xf32>, vector<8x32xf32>, vector<18x32xf32> -> vector<18x32xf32>
    %819 = vector.extract_strided_slice %785 {offsets = [0, 8], sizes = [18, 8], strides = [1, 1]} : vector<18x32xf32> to vector<18x8xf32>
    %820 = vector.extract_strided_slice %793 {offsets = [0, 8], sizes = [16, 8], strides = [1, 1]} : vector<16x32xf32> to vector<16x8xf32>
    %821 = vector.extract_strided_slice %794 {offsets = [0, 8], sizes = [16, 8], strides = [1, 1]} : vector<16x32xf32> to vector<16x8xf32>
    %cst_368 = arith.constant dense<0.000000e+00> : vector<18x16xf32>
    %822 = tpu.matmul %819, %820, %cst_368 {dimension_numbers = #tpu.dot_dimension_numbers<[1], [1], [0], [0], [0, 0, 1, 0], [], []>} : vector<18x8xf32>, vector<16x8xf32>, vector<18x16xf32> -> vector<18x16xf32>
    %cst_369 = arith.constant 0.353553385 : f32
    %823 = vector.broadcast %cst_369 : f32 to vector<18x16xf32>
    %824 = arith.mulf %822, %823 : vector<18x16xf32>
    %825 = arith.addf %824, %351 : vector<18x16xf32>
    %cst_370 = arith.constant dense<0xFF800000> : vector<18xf32>
    %826 = vector.multi_reduction <maximumf>, %825, %cst_370 [1] : vector<18x16xf32> to vector<18xf32>
    %827 = vector.shape_cast %826 : vector<18xf32> to vector<18x1xf32>
    %828 = vector.broadcast %827 : vector<18x1xf32> to vector<18x16xf32>
    %829 = arith.subf %825, %828 : vector<18x16xf32>
    %830 = math.exp %829 : vector<18x16xf32>
    %cst_371 = arith.constant dense<0.000000e+00> : vector<18xf32>
    %831 = vector.multi_reduction <add>, %830, %cst_371 [1] : vector<18x16xf32> to vector<18xf32>
    %832 = vector.shape_cast %831 : vector<18xf32> to vector<18x1xf32>
    %833 = tpu.reciprocal %832 {approx = true} : vector<18x1xf32> -> vector<18x1xf32>
    %834 = vector.broadcast %833 : vector<18x1xf32> to vector<18x16xf32>
    %835 = arith.mulf %830, %834 : vector<18x16xf32>
    %cst_372 = arith.constant dense<0.000000e+00> : vector<18x8xf32>
    %836 = tpu.matmul %835, %821, %cst_372 {dimension_numbers = #tpu.dot_dimension_numbers<[1], [0], [0], [1], [0, 0, 1, 1], [], []>} : vector<18x16xf32>, vector<16x8xf32>, vector<18x8xf32> -> vector<18x8xf32>
    %837 = vector.extract_strided_slice %796 {offsets = [8, 0], sizes = [8, 32], strides = [1, 1]} : vector<32x32xf32> to vector<8x32xf32>
    %cst_373 = arith.constant dense<0.000000e+00> : vector<18x32xf32>
    %838 = tpu.matmul %836, %837, %cst_373 {dimension_numbers = #tpu.dot_dimension_numbers<[1], [0], [0], [1], [0, 0, 1, 1], [], []>} : vector<18x8xf32>, vector<8x32xf32>, vector<18x32xf32> -> vector<18x32xf32>
    %839 = arith.addf %818, %838 : vector<18x32xf32>
    %840 = vector.extract_strided_slice %785 {offsets = [0, 16], sizes = [18, 8], strides = [1, 1]} : vector<18x32xf32> to vector<18x8xf32>
    %841 = vector.extract_strided_slice %793 {offsets = [0, 16], sizes = [16, 8], strides = [1, 1]} : vector<16x32xf32> to vector<16x8xf32>
    %842 = vector.extract_strided_slice %794 {offsets = [0, 16], sizes = [16, 8], strides = [1, 1]} : vector<16x32xf32> to vector<16x8xf32>
    %cst_374 = arith.constant dense<0.000000e+00> : vector<18x16xf32>
    %843 = tpu.matmul %840, %841, %cst_374 {dimension_numbers = #tpu.dot_dimension_numbers<[1], [1], [0], [0], [0, 0, 1, 0], [], []>} : vector<18x8xf32>, vector<16x8xf32>, vector<18x16xf32> -> vector<18x16xf32>
    %cst_375 = arith.constant 0.353553385 : f32
    %844 = vector.broadcast %cst_375 : f32 to vector<18x16xf32>
    %845 = arith.mulf %843, %844 : vector<18x16xf32>
    %846 = arith.addf %845, %351 : vector<18x16xf32>
    %cst_376 = arith.constant dense<0xFF800000> : vector<18xf32>
    %847 = vector.multi_reduction <maximumf>, %846, %cst_376 [1] : vector<18x16xf32> to vector<18xf32>
    %848 = vector.shape_cast %847 : vector<18xf32> to vector<18x1xf32>
    %849 = vector.broadcast %848 : vector<18x1xf32> to vector<18x16xf32>
    %850 = arith.subf %846, %849 : vector<18x16xf32>
    %851 = math.exp %850 : vector<18x16xf32>
    %cst_377 = arith.constant dense<0.000000e+00> : vector<18xf32>
    %852 = vector.multi_reduction <add>, %851, %cst_377 [1] : vector<18x16xf32> to vector<18xf32>
    %853 = vector.shape_cast %852 : vector<18xf32> to vector<18x1xf32>
    %854 = tpu.reciprocal %853 {approx = true} : vector<18x1xf32> -> vector<18x1xf32>
    %855 = vector.broadcast %854 : vector<18x1xf32> to vector<18x16xf32>
    %856 = arith.mulf %851, %855 : vector<18x16xf32>
    %cst_378 = arith.constant dense<0.000000e+00> : vector<18x8xf32>
    %857 = tpu.matmul %856, %842, %cst_378 {dimension_numbers = #tpu.dot_dimension_numbers<[1], [0], [0], [1], [0, 0, 1, 1], [], []>} : vector<18x16xf32>, vector<16x8xf32>, vector<18x8xf32> -> vector<18x8xf32>
    %858 = vector.extract_strided_slice %796 {offsets = [16, 0], sizes = [8, 32], strides = [1, 1]} : vector<32x32xf32> to vector<8x32xf32>
    %cst_379 = arith.constant dense<0.000000e+00> : vector<18x32xf32>
    %859 = tpu.matmul %857, %858, %cst_379 {dimension_numbers = #tpu.dot_dimension_numbers<[1], [0], [0], [1], [0, 0, 1, 1], [], []>} : vector<18x8xf32>, vector<8x32xf32>, vector<18x32xf32> -> vector<18x32xf32>
    %860 = arith.addf %839, %859 : vector<18x32xf32>
    %861 = vector.extract_strided_slice %785 {offsets = [0, 24], sizes = [18, 8], strides = [1, 1]} : vector<18x32xf32> to vector<18x8xf32>
    %862 = vector.extract_strided_slice %793 {offsets = [0, 24], sizes = [16, 8], strides = [1, 1]} : vector<16x32xf32> to vector<16x8xf32>
    %863 = vector.extract_strided_slice %794 {offsets = [0, 24], sizes = [16, 8], strides = [1, 1]} : vector<16x32xf32> to vector<16x8xf32>
    %cst_380 = arith.constant dense<0.000000e+00> : vector<18x16xf32>
    %864 = tpu.matmul %861, %862, %cst_380 {dimension_numbers = #tpu.dot_dimension_numbers<[1], [1], [0], [0], [0, 0, 1, 0], [], []>} : vector<18x8xf32>, vector<16x8xf32>, vector<18x16xf32> -> vector<18x16xf32>
    %cst_381 = arith.constant 0.353553385 : f32
    %865 = vector.broadcast %cst_381 : f32 to vector<18x16xf32>
    %866 = arith.mulf %864, %865 : vector<18x16xf32>
    %867 = arith.addf %866, %351 : vector<18x16xf32>
    %cst_382 = arith.constant dense<0xFF800000> : vector<18xf32>
    %868 = vector.multi_reduction <maximumf>, %867, %cst_382 [1] : vector<18x16xf32> to vector<18xf32>
    %869 = vector.shape_cast %868 : vector<18xf32> to vector<18x1xf32>
    %870 = vector.broadcast %869 : vector<18x1xf32> to vector<18x16xf32>
    %871 = arith.subf %867, %870 : vector<18x16xf32>
    %872 = math.exp %871 : vector<18x16xf32>
    %cst_383 = arith.constant dense<0.000000e+00> : vector<18xf32>
    %873 = vector.multi_reduction <add>, %872, %cst_383 [1] : vector<18x16xf32> to vector<18xf32>
    %874 = vector.shape_cast %873 : vector<18xf32> to vector<18x1xf32>
    %875 = tpu.reciprocal %874 {approx = true} : vector<18x1xf32> -> vector<18x1xf32>
    %876 = vector.broadcast %875 : vector<18x1xf32> to vector<18x16xf32>
    %877 = arith.mulf %872, %876 : vector<18x16xf32>
    %cst_384 = arith.constant dense<0.000000e+00> : vector<18x8xf32>
    %878 = tpu.matmul %877, %863, %cst_384 {dimension_numbers = #tpu.dot_dimension_numbers<[1], [0], [0], [1], [0, 0, 1, 1], [], []>} : vector<18x16xf32>, vector<16x8xf32>, vector<18x8xf32> -> vector<18x8xf32>
    %879 = vector.extract_strided_slice %796 {offsets = [24, 0], sizes = [8, 32], strides = [1, 1]} : vector<32x32xf32> to vector<8x32xf32>
    %cst_385 = arith.constant dense<0.000000e+00> : vector<18x32xf32>
    %880 = tpu.matmul %878, %879, %cst_385 {dimension_numbers = #tpu.dot_dimension_numbers<[1], [0], [0], [1], [0, 0, 1, 1], [], []>} : vector<18x8xf32>, vector<8x32xf32>, vector<18x32xf32> -> vector<18x32xf32>
    %881 = arith.addf %860, %880 : vector<18x32xf32>
    %882 = vector.broadcast %798 : vector<1x32xf32> to vector<18x32xf32>
    %883 = arith.addf %881, %882 : vector<18x32xf32>
    %884 = arith.addf %778, %883 : vector<18x32xf32>
    %c1_386 = arith.constant 1 : index
    %c0_387 = arith.constant 0 : index
    %c0_388 = arith.constant 0 : index
    %885 = vector.load %arg37[%c1_386, %c0_387, %c0_388] : memref<2x1x32xf32, #tpu.memory_space<vmem>>, vector<1x1x32xf32>
    %886 = vector.shape_cast %885 : vector<1x1x32xf32> to vector<1x32xf32>
    %c1_389 = arith.constant 1 : index
    %c0_390 = arith.constant 0 : index
    %c0_391 = arith.constant 0 : index
    %887 = vector.load %arg38[%c1_389, %c0_390, %c0_391] : memref<2x1x32xf32, #tpu.memory_space<vmem>>, vector<1x1x32xf32>
    %888 = vector.shape_cast %887 : vector<1x1x32xf32> to vector<1x32xf32>
    %cst_392 = arith.constant dense<0.000000e+00> : vector<18xf32>
    %889 = vector.multi_reduction <add>, %884, %cst_392 [1] : vector<18x32xf32> to vector<18xf32>
    %890 = vector.shape_cast %889 : vector<18xf32> to vector<18x1xf32>
    %cst_393 = arith.constant 3.200000e+01 : f32
    %891 = vector.broadcast %cst_393 : f32 to vector<18x1xf32>
    %892 = arith.divf %890, %891 : vector<18x1xf32>
    %893 = vector.broadcast %892 : vector<18x1xf32> to vector<18x32xf32>
    %894 = arith.subf %884, %893 : vector<18x32xf32>
    %895 = arith.mulf %894, %894 : vector<18x32xf32>
    %cst_394 = arith.constant dense<0.000000e+00> : vector<18xf32>
    %896 = vector.multi_reduction <add>, %895, %cst_394 [1] : vector<18x32xf32> to vector<18xf32>
    %897 = vector.shape_cast %896 : vector<18xf32> to vector<18x1xf32>
    %cst_395 = arith.constant 3.200000e+01 : f32
    %898 = vector.broadcast %cst_395 : f32 to vector<18x1xf32>
    %899 = arith.divf %897, %898 : vector<18x1xf32>
    %900 = vector.broadcast %892 : vector<18x1xf32> to vector<18x32xf32>
    %901 = arith.subf %884, %900 : vector<18x32xf32>
    %cst_396 = arith.constant 9.99999974E-6 : f32
    %902 = vector.broadcast %cst_396 : f32 to vector<18x1xf32>
    %903 = arith.addf %899, %902 : vector<18x1xf32>
    %904 = math.rsqrt %903 : vector<18x1xf32>
    %905 = vector.broadcast %904 : vector<18x1xf32> to vector<18x32xf32>
    %906 = arith.mulf %901, %905 : vector<18x32xf32>
    %907 = vector.broadcast %886 : vector<1x32xf32> to vector<18x32xf32>
    %908 = arith.mulf %906, %907 : vector<18x32xf32>
    %909 = vector.broadcast %888 : vector<1x32xf32> to vector<18x32xf32>
    %910 = arith.addf %908, %909 : vector<18x32xf32>
    %c1_397 = arith.constant 1 : index
    %c0_398 = arith.constant 0 : index
    %c0_399 = arith.constant 0 : index
    %911 = vector.load %arg31[%c1_397, %c0_398, %c0_399] : memref<2x32x64xf32, #tpu.memory_space<vmem>>, vector<1x32x64xf32>
    %912 = vector.shape_cast %911 : vector<1x32x64xf32> to vector<32x64xf32>
    %c1_400 = arith.constant 1 : index
    %c0_401 = arith.constant 0 : index
    %c0_402 = arith.constant 0 : index
    %913 = vector.load %arg32[%c1_400, %c0_401, %c0_402] : memref<2x1x64xf32, #tpu.memory_space<vmem>>, vector<1x1x64xf32>
    %914 = vector.shape_cast %913 : vector<1x1x64xf32> to vector<1x64xf32>
    %c1_403 = arith.constant 1 : index
    %c0_404 = arith.constant 0 : index
    %c0_405 = arith.constant 0 : index
    %915 = vector.load %arg33[%c1_403, %c0_404, %c0_405] : memref<2x64x32xf32, #tpu.memory_space<vmem>>, vector<1x64x32xf32>
    %916 = vector.shape_cast %915 : vector<1x64x32xf32> to vector<64x32xf32>
    %c1_406 = arith.constant 1 : index
    %c0_407 = arith.constant 0 : index
    %c0_408 = arith.constant 0 : index
    %917 = vector.load %arg34[%c1_406, %c0_407, %c0_408] : memref<2x1x32xf32, #tpu.memory_space<vmem>>, vector<1x1x32xf32>
    %918 = vector.shape_cast %917 : vector<1x1x32xf32> to vector<1x32xf32>
    %cst_409 = arith.constant dense<0.000000e+00> : vector<18x64xf32>
    %919 = tpu.matmul %910, %912, %cst_409 {dimension_numbers = #tpu.dot_dimension_numbers<[1], [0], [0], [1], [0, 0, 1, 1], [], []>} : vector<18x32xf32>, vector<32x64xf32>, vector<18x64xf32> -> vector<18x64xf32>
    %920 = vector.broadcast %914 : vector<1x64xf32> to vector<18x64xf32>
    %921 = arith.addf %919, %920 : vector<18x64xf32>
    %cst_410 = arith.constant 0.000000e+00 : f32
    %922 = vector.broadcast %cst_410 : f32 to vector<18x64xf32>
    %923 = arith.maximumf %921, %922 : vector<18x64xf32>
    %cst_411 = arith.constant dense<0.000000e+00> : vector<18x32xf32>
    %924 = tpu.matmul %923, %916, %cst_411 {dimension_numbers = #tpu.dot_dimension_numbers<[1], [0], [0], [1], [0, 0, 1, 1], [], []>} : vector<18x64xf32>, vector<64x32xf32>, vector<18x32xf32> -> vector<18x32xf32>
    %925 = vector.broadcast %918 : vector<1x32xf32> to vector<18x32xf32>
    %926 = arith.addf %924, %925 : vector<18x32xf32>
    %927 = arith.addf %910, %926 : vector<18x32xf32>
    %c1_412 = arith.constant 1 : index
    %c0_413 = arith.constant 0 : index
    %c0_414 = arith.constant 0 : index
    %928 = vector.load %arg39[%c1_412, %c0_413, %c0_414] : memref<2x1x32xf32, #tpu.memory_space<vmem>>, vector<1x1x32xf32>
    %929 = vector.shape_cast %928 : vector<1x1x32xf32> to vector<1x32xf32>
    %c1_415 = arith.constant 1 : index
    %c0_416 = arith.constant 0 : index
    %c0_417 = arith.constant 0 : index
    %930 = vector.load %arg40[%c1_415, %c0_416, %c0_417] : memref<2x1x32xf32, #tpu.memory_space<vmem>>, vector<1x1x32xf32>
    %931 = vector.shape_cast %930 : vector<1x1x32xf32> to vector<1x32xf32>
    %cst_418 = arith.constant dense<0.000000e+00> : vector<18xf32>
    %932 = vector.multi_reduction <add>, %927, %cst_418 [1] : vector<18x32xf32> to vector<18xf32>
    %933 = vector.shape_cast %932 : vector<18xf32> to vector<18x1xf32>
    %cst_419 = arith.constant 3.200000e+01 : f32
    %934 = vector.broadcast %cst_419 : f32 to vector<18x1xf32>
    %935 = arith.divf %933, %934 : vector<18x1xf32>
    %936 = vector.broadcast %935 : vector<18x1xf32> to vector<18x32xf32>
    %937 = arith.subf %927, %936 : vector<18x32xf32>
    %938 = arith.mulf %937, %937 : vector<18x32xf32>
    %cst_420 = arith.constant dense<0.000000e+00> : vector<18xf32>
    %939 = vector.multi_reduction <add>, %938, %cst_420 [1] : vector<18x32xf32> to vector<18xf32>
    %940 = vector.shape_cast %939 : vector<18xf32> to vector<18x1xf32>
    %cst_421 = arith.constant 3.200000e+01 : f32
    %941 = vector.broadcast %cst_421 : f32 to vector<18x1xf32>
    %942 = arith.divf %940, %941 : vector<18x1xf32>
    %943 = vector.broadcast %935 : vector<18x1xf32> to vector<18x32xf32>
    %944 = arith.subf %927, %943 : vector<18x32xf32>
    %cst_422 = arith.constant 9.99999974E-6 : f32
    %945 = vector.broadcast %cst_422 : f32 to vector<18x1xf32>
    %946 = arith.addf %942, %945 : vector<18x1xf32>
    %947 = math.rsqrt %946 : vector<18x1xf32>
    %948 = vector.broadcast %947 : vector<18x1xf32> to vector<18x32xf32>
    %949 = arith.mulf %944, %948 : vector<18x32xf32>
    %950 = vector.broadcast %929 : vector<1x32xf32> to vector<18x32xf32>
    %951 = arith.mulf %949, %950 : vector<18x32xf32>
    %952 = vector.broadcast %931 : vector<1x32xf32> to vector<18x32xf32>
    %953 = arith.addf %951, %952 : vector<18x32xf32>
    %c0_423 = arith.constant 0 : index
    %c0_424 = arith.constant 0 : index
    %954 = vector.load %arg41[%c0_423, %c0_424] : memref<32x128xf32, #tpu.memory_space<vmem>>, vector<32x128xf32>
    %cst_425 = arith.constant dense<0.000000e+00> : vector<18x128xf32>
    %955 = tpu.matmul %953, %954, %cst_425 {dimension_numbers = #tpu.dot_dimension_numbers<[1], [0], [0], [1], [0, 0, 1, 1], [], []>} : vector<18x32xf32>, vector<32x128xf32>, vector<18x128xf32> -> vector<18x128xf32>
    %c0_426 = arith.constant 0 : index
    %c0_427 = arith.constant 0 : index
    %956 = vector.load %arg42[%c0_426, %c0_427] : memref<1x128xf32, #tpu.memory_space<vmem>>, vector<1x128xf32>
    %957 = vector.broadcast %956 : vector<1x128xf32> to vector<18x128xf32>
    %958 = arith.addf %955, %957 : vector<18x128xf32>
    %cst_428 = arith.constant dense<0xFF800000> : vector<18xf32>
    %959 = vector.multi_reduction <maximumf>, %958, %cst_428 [1] : vector<18x128xf32> to vector<18xf32>
    %960 = vector.shape_cast %959 : vector<18xf32> to vector<18x1xf32>
    %961 = vector.broadcast %960 : vector<18x1xf32> to vector<18x128xf32>
    %962 = arith.subf %958, %961 : vector<18x128xf32>
    %963 = math.exp %962 : vector<18x128xf32>
    %cst_429 = arith.constant dense<0.000000e+00> : vector<18xf32>
    %964 = vector.multi_reduction <add>, %963, %cst_429 [1] : vector<18x128xf32> to vector<18xf32>
    %965 = vector.shape_cast %964 : vector<18xf32> to vector<18x1xf32>
    %966 = math.log %965 : vector<18x1xf32>
    %967 = arith.addf %966, %960 : vector<18x1xf32>
    %968 = vector.broadcast %967 : vector<18x1xf32> to vector<18x128xf32>
    %969 = arith.subf %958, %968 : vector<18x128xf32>
    %c0_430 = arith.constant 0 : index
    %c0_431 = arith.constant 0 : index
    %970 = vector.load %arg43[%c0_430, %c0_431] : memref<18x128xf32, #tpu.memory_space<vmem>>, vector<18x128xf32>
    tpu.vector_store %arg43[%c0_430, %c0_431], %969 {strides = array<i32>} : memref<18x128xf32, #tpu.memory_space<vmem>>, vector<18x128xf32>,
    return
  }
}

</mosaic_0001>

<bundles_post_ra>
// kernel: ge.12
= control target key start
LH: loop header
LB: loop body
LE: loop exit
PB: predicated region body
PF: predicated region fallthrough
CT: control target
= control target key end

     0   :  { %vm8_vm0 = vcmask 72704   ;;  %vm14_vm1 = vcmask 146504   ;;  %s42_s0 = inlined_call_operand.vmem [shape: s32[2,9], index: 0, kind: input, shape index: {}]   ;;  %s43_s1 = inlined_call_operand.vmem [shape: s32[18], index: 1, kind: output, shape index: {}]  }
   0x1   :  { %v5_v0 = vld [vmem:[%s42_s0] sm:$0x3]  ;;  %s25_s0 = smov 9  }
   0x2   :  { %6 = vst [vmem:[#allocation1] sm:$0x3] %v5_v0 }
   0x9   :  { %v11_v1 = vld [vmem:[#allocation1 + $0x1] sm:$0x1]   ;;  %v7_v2 = vld [vmem:[#allocation1] sm:$0x1]  }
   0xa   :  { %12 = vrot.lane.b32.xlu0 %v11_v1, %s25_s0  ;;  %9 = vst.msk [vmem:[#allocation0] sm:$0x1] %vm8_vm0, %v7_v2  }
  0x7c   :  { %v13_v3 = vpop.permute.xlu0 %12  }
  0x7d   :  { %15 = vst.msk [vmem:[#allocation0] sm:$0x1] %vm14_vm1, %v13_v3  }
  0x84   :  { %v20_v4 = vld [vmem:[#allocation0] sm:$0x1] }
  0x85   :  { %23 = vst [vmem:[%s43_s1] sm:$0x1] %v20_v4 }

// kernel: poem_write_forward.1
= control target key start
LH: loop header
LB: loop body
LE: loop exit
PB: predicated region body
PF: predicated region fallthrough
CT: control target
= control target key end

     0   :  { %s12651_s3 = smov 9   ;;  %vm193_vm0 = vcmask 261120   ;;  %s12652_s10 = smov 10   ;;  %vm286_vm1 = vcmask 64512   ;;  %vm374_vm2 = vcmask 130048   ;;  %vm1588_vm3 = vcmask 523264   ;;  %s14770_s0 = inlined_call_operand.smem [shape: u32[44], index: -1, kind: input, shape index: {}] }
   0x1   :  { %s12714_s6 = sld [smem:[%s14770_s0 + %s12651_s3]]   ;;  %s12653_s14 = smov 96   ;;  %vm12678_vm4 = vmmov 0   ;;  %vm3356_vm5 = vcmask 1041408   ;;  %vm3346_vm6 = vcmask 15360   ;;  %vm3661_vm7 = vcmask 146432  }
   0x2   :  { %s1_s9 = sld [smem:[%s14770_s0]]   ;;  %s12654_s15 = smov 4   ;;  %vm3668_vm8 = vcmask 140288   ;;  %vm4903_vm9 = vcmask 254976   ;;  %vm5259_vm10 = vcmask 123904  }
   0x3   :  { %s12734_s13 = sld [smem:[%s14770_s0 + %s12652_s10]]   ;;  %s14783_s19 = smov 64  }
   0x4   :  { %s12756_s18 = sld [smem:[%s14770_s0 + %s12654_s15]]   ;;  %s12656_s20 = smov 120  }
   0x5   :  { %s12657_s21 = smov 88   ;;  %s12658_s22 = smov 11  }
   0x6   :  { %s12793_s25 = sld [smem:[%s14770_s0 + %s12658_s22]]   ;;  %s14781_s26 = smov 56  }
   0x7   :  { %v185_v0 = vld [vmem:[%s12714_s6 + $0x18] sm:$0xff]  ;;  %v184_v1 = vld [vmem:[%s12714_s6 + $0x10] sm:$0xff]  ;;  %v183_v3 = vld [vmem:[%s12714_s6 + $0x8] sm:$0xff]  ;;  %s14777_s27 = smov 112   ;;  %s14773_s28 = smov 72  }
   0x8   :  { %11201 = vmatprep.subr.mxu0 %v185_v0  ;;  %v12721_v2 = vld [vmem:[%s1_s9] sm:$0xff]  ;;  %v12727_v5 = vld [vmem:[%s1_s9 + $0x8] sm:$0xff]  ;;  %s14771_s29 = smov 104   ;;  %s14779_s30 = smov 80  }
   0x9   :  { %11202 = vmatpush3.msra.mxu0 %v185_v0  ;;  %11209 = vmatprep.mubr.msk.f32.mxu0 %vm193_vm0, %v12721_v2  ;;  %v182_v4 = vld [vmem:[%s12714_s6] sm:$0xff]  ;;  %s14775_s1 = smov 48   ;;  %s12665_s2 = smov 40  }
   0xa   :  { %11203 = vmatprep.subr.mxu0 %v184_v1  ;;  %v10318_v6 = vld [vmem:[%s12734_s13] ss:$0 sm:$0xff]  ;;  %v12762_v18 = vld [vmem:[%s12756_s18 + $0x8] sm:$0xff]  ;;  %s12666_s3 = smov 12   ;;  %s12667_s8 = smov 13  }
   0xb   :  { %11204 = vmatpush3.msra.mxu0 %v184_v1  ;;  %v12759_v15 = vld [vmem:[%s12756_s18] sm:$0xff]  ;;  %s12879_s7 = sld [smem:[%s14770_s0 + %s12666_s3]]   ;;  %s12668_s12 = smov 15  }
   0xc   :  { %11205 = vmatprep.subr.mxu0 %v183_v3  ;;  %v275_v45 = vld [vmem:[%s12793_s25] sm:$0xff]  ;;  %s12892_s11 = sld [smem:[%s14770_s0 + %s12667_s8]]   ;;  %s12669_s22 = smov 17  }
   0xd   :  { %11206 = vmatpush3.msra.mxu0 %v183_v3  ;;  %s12901_s17 = sld [smem:[%s14770_s0 + %s12668_s12]]   ;;  %s12670_s4 = smov 18  }
   0xe   :  { %11207 = vmatprep.subr.mxu0 %v182_v4  ;;  %s12910_s3 = sld [smem:[%s14770_s0 + %s12669_s22]]   ;;  %s12671_s10 = smov 14  }
   0xf   :  { %11208 = vmatpush3.msra.mxu0 %v182_v4  ;;  %s12915_s9 = sld [smem:[%s14770_s0 + %s12670_s4]]   ;;  %s12672_s22 = smov 16  }
  0x10   :  { %11210 = vmatmul.mubr.msk.f32.vlgmr.msra.gmra.mxu0 %vm193_vm0, %v12727_v5  ;;  %s12928_s16 = sld [smem:[%s14770_s0 + %s12671_s10]]   ;;  %s12673_s5 = smov 19  }
  0x11   :  { %s12936_s4 = sld [smem:[%s14770_s0 + %s12672_s22]]   ;;  %s12680_s15 = smov 3  }
  0x12   :  { %s12950_s12 = sld [smem:[%s14770_s0 + %s12673_s5]]   ;;  %s12688_s22 = smov 25  }
  0x13   :  { %s12690_s24 = smov 36   ;;  %s12691_s10 = smov 28  }
  0x14   :  { %s12693_s5 = smov 6  }
  0xd0   :  { %v11211_v7 = vpop.f32.mrf.mxu0 }
  0xd1   :  { %v12737_v8 = vadd.f32 %v11211_v7, %v10318_v6 }
  0xd2   :  { %v266_v9 = vpop.f32.mrf.mxu0 }
  0xd3   :  { %v12739_v10 = vadd.f32 %v10318_v6, %v266_v9  ;;  %284 = vrot.lane.b32.xlu0 %v12737_v8, %s12653_s14  ;;  %v276_v9 = vld [vmem:[%s12793_s25 + $0x8] sm:$0xff] }
  0xd5   :  { %11216 = vmatprep.mubr.msk.f32.mxu1 %vm286_vm1, %v12739_v10 }
  0xd7   :  { %282 = vrot.lane.b32.xlu0 %v12739_v10, %s12653_s14 }
 0x145   :  { %v285_v11 = vpop.permute.xlu0 %284 }
 0x146   :  { %11212 = vmatprep.subr.msk.mxu1 %vm286_vm1, %v285_v11 }
 0x147   :  { %11213 = vmatpush3.xpose.msk.msra.mxu1 %vm286_vm1, %v285_v11 }
 0x149   :  { %v283_v12 = vpop.permute.xlu0 %282 }
 0x14a   :  { %11214 = vmatprep.subr.msk.mxu1 %vm286_vm1, %v283_v12 }
 0x14b   :  { %11215 = vmatpush3.xpose.msk.msra.mxu1 %vm286_vm1, %v283_v12 }
 0x14e   :  { %11217 = vmatmul.mubr.msk.f32.vlgmr.msra.gmra.mxu1 %vm286_vm1, %v12737_v8 }
 0x20e   :  { %v11218_v13 = vpop.f32.mrf.mxu1 }
 0x20f   :  { %v371_v16 = vmul.f32 0.35355338, %v11218_v13 }
 0x210   :  { %v361_v14 = vpop.f32.mrf.mxu1 }
 0x211   :  { %v370_v17 = vmul.f32 0.35355338, %v361_v14  ;;  %v373_v21 = vadd.f32 %v371_v16, %v12762_v18 }
 0x213   :  { %v372_v19 = vadd.f32 %v370_v17, %v12759_v15  ;;  %v378_v22 = vsel %vm374_vm2, %v373_v21, -inf }
 0x215   :  { %v375_v20 = vsel %vm374_vm2, %v372_v19, -inf }
 0x216   :  { %376 = vmax.xlane.f32.xlu1 %v375_v20 }
 0x21a   :  { %379 = vmax.xlane.f32.xlu1 %v378_v22 }
 0x29f   :  { %v377_v23 = vpop.xlane.xlu1 %376 }
 0x2a0   :  { %v381_v24 = vsub.f32 %v372_v19, %v377_v23 }
 0x2a2   :  { %v383_v25 = vmul.f32 1.442695, %v381_v24 }
 0x2a3   :  { %v380_v26 = vpop.xlane.xlu1 %379 }
 0x2a4   :  { %12323 = vpow2.f32 %v383_v25  ;;  %v382_v27 = vsub.f32 %v373_v21, %v380_v26 }
 0x2a6   :  { %v385_v28 = vmul.f32 1.442695, %v382_v27 }
 0x2a8   :  { %12325 = vpow2.f32 %v385_v28 }
 0x2b1   :  { %v12324_v29 = vpop.eup %12323 }
 0x2b2   :  { %v387_v30 = vsel %vm374_vm2, %v12324_v29, 0.0 }
 0x2b3   :  { %388 = vadd.xlane.f32.xlu0 %v387_v30 }
 0x2b5   :  { %v12326_v31 = vpop.eup %12325 }
 0x2b6   :  { %v390_v32 = vsel %vm374_vm2, %v12326_v31, 0.0 }
 0x2b7   :  { %391 = vadd.xlane.f32.xlu1 %v390_v32 }
 0x2c8   :  { %399 = vrot.lane.b32.xlu1 %v12737_v8, %s14783_s19 }
 0x2c9   :  { %484 = vrot.lane.b32.xlu0 %v12739_v10, %s12656_s20 }
 0x2cc   :  { %397 = vrot.lane.b32.xlu1 %v12739_v10, %s14783_s19 }
 0x2d0   :  { %490 = vrot.lane.b32.xlu1 %v12737_v8, %s12657_s21 }
 0x2d4   :  { %488 = vrot.lane.b32.xlu1 %v12739_v10, %s12657_s21 }
 0x2d8   :  { %486 = vrot.lane.b32.xlu1 %v12737_v8, %s12656_s20 }
 0x33c   :  { %v389_v33 = vpop.xlane.xlu0 %388 }
 0x33d   :  { %12327 = vrcp.f32 %v389_v33 }
 0x340   :  { %v392_v34 = vpop.xlane.xlu1 %391  ;;  %v485_v43 = vpop.permute.xlu0 %484 }
 0x341   :  { %12329 = vrcp.f32 %v392_v34 }
 0x344   :  { %v400_v35 = vpop.permute.xlu1 %399 }
 0x345   :  { %11219 = vmatprep.subr.mxu1 %v400_v35 }
 0x346   :  { %11220 = vmatpush3.msra.mxu1 %v400_v35 }
 0x348   :  { %v398_v36 = vpop.permute.xlu1 %397 }
 0x349   :  { %11221 = vmatprep.subr.mxu1 %v398_v36 }
 0x34a   :  { %v12328_v37 = vpop.eup %12327  ;;  %11222 = vmatpush3.msra.mxu1 %v398_v36 }
 0x34b   :  { %v395_v38 = vmul.f32 %v12328_v37, %v12324_v29 }
 0x34c   :  { %v491_v39 = vpop.permute.xlu1 %490 }
 0x34d   :  { %11223 = vmatprep.mubr.msk.f32.mxu1 %vm374_vm2, %v395_v38  ;;  %11226 = vmatprep.subr.msk.mxu1 %vm286_vm1, %v491_v39 }
 0x34e   :  { %v12330_v40 = vpop.eup %12329 }
 0x34f   :  { %v396_v41 = vmul.f32 %v12330_v40, %v12326_v31 }
 0x350   :  { %v489_v42 = vpop.permute.xlu1 %488 }
 0x351   :  { %11224 = vmatmul.mubr.msk.f32.vlgmr.msra.gmra.mxu1 %vm374_vm2, %v396_v41 }
 0x352   :  { %11227 = vmatpush3.xpose.msk.msra.mxu1 %vm286_vm1, %v491_v39  ;;  %11230 = vmatprep.mubr.msk.f32.mxu1 %vm286_vm1, %v485_v43 }
 0x353   :  { %11228 = vmatprep.subr.msk.mxu1 %vm286_vm1, %v489_v42 }
 0x354   :  { %v487_v44 = vpop.permute.xlu1 %486 }
 0x356   :  { %11229 = vmatpush3.xpose.msk.msra.mxu1 %vm286_vm1, %v489_v42 }
 0x357   :  { %11245 = vmatprep.subr.mxu1 %v275_v45 }
 0x359   :  { %11231 = vmatmul.mubr.msk.f32.vlgmr.msra.gmra.mxu1 %vm286_vm1, %v487_v44 }
 0x35a   :  { %11246 = vmatpush3.msra.mxu1 %v275_v45 }
 0x411   :  { %v11225_v46 = vpop.f32.mrf.mxu1 }
 0x413   :  { %v475_v47 = vpop.f32.mrf.mxu1 }
 0x414   :  { %11247 = vmatprep.mubr.msk.f32.mxu1 %vm286_vm1, %v475_v47 }
 0x415   :  { %11248 = vmatmul.mubr.msk.f32.vlgmr.msra.gmra.mxu1 %vm286_vm1, %v11225_v46 }
 0x419   :  { %v11232_v48 = vpop.f32.mrf.mxu1 }
 0x41a   :  { %v576_v49 = vmul.f32 0.35355338, %v11232_v48 }
 0x41b   :  { %v566_v50 = vpop.f32.mrf.mxu1 }
 0x41c   :  { %v575_v51 = vmul.f32 0.35355338, %v566_v50  ;;  %v578_v52 = vadd.f32 %v576_v49, %v12762_v18 }
 0x41e   :  { %v582_v53 = vsel %vm374_vm2, %v578_v52, -inf  ;;  %v577_v54 = vadd.f32 %v575_v51, %v12759_v15 }
 0x41f   :  { %583 = vmax.xlane.f32.xlu0 %v582_v53 }
 0x420   :  { %v579_v55 = vsel %vm374_vm2, %v577_v54, -inf }
 0x421   :  { %580 = vmax.xlane.f32.xlu1 %v579_v55 }
 0x435   :  { %601 = vrot.lane.b32.xlu0 %v12739_v10, %s14781_s26 }
 0x439   :  { %850 = vrot.lane.b32.xlu0 %v12739_v10, %s14777_s27 }
 0x43d   :  { %1143 = vrot.lane.b32.xlu0 %v12737_v8, %s14773_s28 }
 0x441   :  { %1137 = vrot.lane.b32.xlu0 %v12739_v10, %s14771_s29 }
 0x4a8   :  { %v584_v56 = vpop.xlane.xlu0 %583 }
 0x4a9   :  { %v586_v57 = vsub.f32 %v578_v52, %v584_v56 }
 0x4aa   :  { %v581_v58 = vpop.xlane.xlu1 %580 }
 0x4ab   :  { %v589_v59 = vmul.f32 1.442695, %v586_v57  ;;  %v585_v60 = vsub.f32 %v577_v54, %v581_v58 }
 0x4ac   :  { %v602_v7 = vpop.permute.xlu0 %601 }
 0x4ad   :  { %12331 = vpow2.f32 %v589_v59  ;;  %v587_v61 = vmul.f32 1.442695, %v585_v60 }
 0x4af   :  { %12333 = vpow2.f32 %v587_v61 }
 0x4b0   :  { %v851_v17 = vpop.permute.xlu0 %850 }
 0x4b4   :  { %v1144_v22 = vpop.permute.xlu0 %1143 }
 0x4b8   :  { %v1138_v24 = vpop.permute.xlu0 %1137 }
 0x4ba   :  { %v12332_v62 = vpop.eup %12331 }
 0x4bb   :  { %v594_v63 = vsel %vm374_vm2, %v12332_v62, 0.0 }
 0x4bc   :  { %v12334_v0 = vpop.eup %12333  ;;  %595 = vadd.xlane.f32.xlu1 %v594_v63 }
 0x4bd   :  { %v591_v1 = vsel %vm374_vm2, %v12334_v0, 0.0 }
 0x4c0   :  { %592 = vadd.xlane.f32.xlu1 %v591_v1 }
 0x4d1   :  { %603 = vrot.lane.b32.xlu1 %v12737_v8, %s14781_s26 }
 0x4d5   :  { %856 = vrot.lane.b32.xlu1 %v12737_v8, %s14779_s30 }
 0x4d9   :  { %854 = vrot.lane.b32.xlu1 %v12739_v10, %s14779_s30 }
 0x4dd   :  { %852 = vrot.lane.b32.xlu1 %v12737_v8, %s14777_s27 }
 0x4e1   :  { %1141 = vrot.lane.b32.xlu1 %v12739_v10, %s14773_s28 }
 0x4e5   :  { %1139 = vrot.lane.b32.xlu1 %v12737_v8, %s14771_s29 }
 0x545   :  { %v596_v3 = vpop.xlane.xlu1 %595 }
 0x546   :  { %12335 = vrcp.f32 %v596_v3 }
 0x549   :  { %v593_v4 = vpop.xlane.xlu1 %592 }
 0x54a   :  { %12337 = vrcp.f32 %v593_v4 }
 0x54d   :  { %v604_v6 = vpop.permute.xlu1 %603 }
 0x54e   :  { %11233 = vmatprep.subr.mxu0 %v604_v6 }
 0x54f   :  { %11234 = vmatpush3.msra.mxu0 %v604_v6 }
 0x550   :  { %11235 = vmatprep.subr.mxu0 %v602_v7 }
 0x551   :  { %11236 = vmatpush3.msra.mxu0 %v602_v7  ;;  %v857_v16 = vpop.permute.xlu1 %856 }
 0x552   :  { %11240 = vmatprep.subr.mxu0 %v276_v9 }
 0x553   :  { %v12336_v11 = vpop.eup %12335 }
 0x554   :  { %v600_v14 = vmul.f32 %v12336_v11, %v12332_v62 }
 0x555   :  { %v855_v20 = vpop.permute.xlu1 %854 }
 0x557   :  { %v12338_v12 = vpop.eup %12337 }
 0x558   :  { %v599_v13 = vmul.f32 %v12338_v12, %v12334_v0  ;;  %v277_v0 = vld [vmem:[%s12793_s25 + $0x10] sm:$0xff] }
 0x559   :  { %v853_v23 = vpop.permute.xlu1 %852 }
 0x55a   :  { %11237 = vmatprep.mubr.msk.f32.mxu0 %vm374_vm2, %v599_v13 }
 0x55b   :  { %11238 = vmatmul.mubr.msk.f32.vlgmr.msra.gmra.mxu0 %vm374_vm2, %v600_v14 }
 0x55c   :  { %11241 = vmatpush3.msra.mxu0 %v276_v9 }
 0x55d   :  { %11250 = vmatprep.subr.msk.mxu0 %vm286_vm1, %v857_v16  ;;  %v1142_v25 = vpop.permute.xlu1 %1141 }
 0x561   :  { %v1140_v26 = vpop.permute.xlu1 %1139 }
 0x61b   :  { %v11239_v19 = vpop.f32.mrf.mxu0 }
 0x61d   :  { %v679_v21 = vpop.f32.mrf.mxu0 }
 0x61e   :  { %11242 = vmatprep.mubr.msk.f32.mxu0 %vm286_vm1, %v679_v21 }
 0x61f   :  { %11243 = vmatmul.mubr.msk.f32.vlgmr.msra.gmra.mxu0 %vm286_vm1, %v11239_v19 }
 0x620   :  { %11251 = vmatpush3.xpose.msk.msra.mxu0 %vm286_vm1, %v857_v16  ;;  %11254 = vmatprep.mubr.msk.f32.mxu0 %vm286_vm1, %v851_v17  ;;  %v11249_v16 = vpop.f32.mrf.mxu1 }
 0x621   :  { %11252 = vmatprep.subr.msk.mxu0 %vm286_vm1, %v855_v20 }
 0x622   :  { %v841_v17 = vpop.f32.mrf.mxu1 }
 0x624   :  { %11253 = vmatpush3.xpose.msk.msra.mxu0 %vm286_vm1, %v855_v20 }
 0x625   :  { %11269 = vmatprep.subr.msk.mxu0 %vm286_vm1, %v1144_v22 }
 0x627   :  { %11255 = vmatmul.mubr.msk.f32.vlgmr.msra.gmra.mxu0 %vm286_vm1, %v853_v23 }
 0x628   :  { %11270 = vmatpush3.xpose.msk.msra.mxu0 %vm286_vm1, %v1144_v22  ;;  %11273 = vmatprep.mubr.msk.f32.mxu0 %vm286_vm1, %v1138_v24 }
 0x629   :  { %11271 = vmatprep.subr.msk.mxu0 %vm286_vm1, %v1142_v25 }
 0x62c   :  { %11272 = vmatpush3.xpose.msk.msra.mxu0 %vm286_vm1, %v1142_v25 }
 0x62f   :  { %11274 = vmatmul.mubr.msk.f32.vlgmr.msra.gmra.mxu0 %vm286_vm1, %v1140_v26  ;;  %v278_v26 = vld [vmem:[%s12793_s25 + $0x18] sm:$0xff] }
 0x6df   :  { %v12841_v27 = vpop.f32.mrf.mxu0 }
 0x6e1   :  { %v12843_v28 = vpop.f32.mrf.mxu0 }
 0x6e7   :  { %v11256_v29 = vpop.f32.mrf.mxu0 }
 0x6e8   :  { %v942_v30 = vmul.f32 0.35355338, %v11256_v29  ;;  %v847_v29 = vadd.f32 %v11249_v16, %v12841_v27 }
 0x6e9   :  { %v932_v31 = vpop.f32.mrf.mxu0 }
 0x6ea   :  { %v941_v32 = vmul.f32 0.35355338, %v932_v31  ;;  %v944_v33 = vadd.f32 %v942_v30, %v12762_v18 }
 0x6ec   :  { %v948_v34 = vsel %vm374_vm2, %v944_v33, -inf  ;;  %v943_v35 = vadd.f32 %v941_v32, %v12759_v15 }
 0x6ed   :  { %949 = vmax.xlane.f32.xlu1 %v948_v34 }
 0x6ee   :  { %v945_v36 = vsel %vm374_vm2, %v943_v35, -inf }
 0x6ef   :  { %946 = vmax.xlane.f32.xlu0 %v945_v36  ;;  %v11275_v37 = vpop.f32.mrf.mxu0  ;;  %v10353_v36 = vld [vmem:[%s12879_s7] ss:$0 sm:$0xff] }
 0x6f0   :  { %v1229_v56 = vmul.f32 0.35355338, %v11275_v37 }
 0x6f1   :  { %v1219_v38 = vpop.f32.mrf.mxu0 }
 0x6f2   :  { %v1228_v39 = vmul.f32 0.35355338, %v1219_v38  ;;  %v1231_v59 = vadd.f32 %v1229_v56, %v12762_v18  ;;  %v1480_v56 = vld [vmem:[%s12892_s11 + $0x8] sm:$0xff] }
 0x6f4   :  { %v1230_v40 = vadd.f32 %v1228_v39, %v12759_v15  ;;  %v1235_v60 = vsel %vm374_vm2, %v1231_v59, -inf }
 0x6f6   :  { %v1232_v41 = vsel %vm374_vm2, %v1230_v40, -inf }
 0x6fe   :  { %969 = vrot.lane.b32.xlu1 %v12737_v8, %s14775_s1 }
 0x722   :  { %1233 = vmax.xlane.f32.xlu1 %v1232_v41 }
 0x776   :  { %v950_v42 = vpop.xlane.xlu1 %949 }
 0x777   :  { %v952_v43 = vsub.f32 %v944_v33, %v950_v42 }
 0x778   :  { %v947_v44 = vpop.xlane.xlu0 %946 }
 0x779   :  { %v955_v45 = vmul.f32 1.442695, %v952_v43  ;;  %v951_v46 = vsub.f32 %v943_v35, %v947_v44  ;;  %v842_v35 = vadd.f32 %v841_v17, %v12843_v28 }
 0x77a   :  { %v970_v47 = vpop.permute.xlu1 %969 }
 0x77b   :  { %12339 = vpow2.f32 %v955_v45  ;;  %v953_v48 = vmul.f32 1.442695, %v951_v46  ;;  %11257 = vmatprep.subr.mxu1 %v970_v47 }
 0x77c   :  { %11258 = vmatpush3.msra.mxu1 %v970_v47 }
 0x77d   :  { %12341 = vpow2.f32 %v953_v48 }
 0x788   :  { %v12340_v49 = vpop.eup %12339 }
 0x789   :  { %v960_v50 = vsel %vm374_vm2, %v12340_v49, 0.0 }
 0x78a   :  { %v12342_v51 = vpop.eup %12341  ;;  %961 = vadd.xlane.f32.xlu0 %v960_v50 }
 0x78b   :  { %v957_v52 = vsel %vm374_vm2, %v12342_v51, 0.0 }
 0x78e   :  { %958 = vadd.xlane.f32.xlu0 %v957_v52 }
 0x7a4   :  { %967 = vrot.lane.b32.xlu0 %v12739_v10, %s14775_s1 }
 0x7ab   :  { %v1234_v53 = vpop.xlane.xlu1 %1233 }
 0x7ac   :  { %v1238_v54 = vsub.f32 %v1230_v40, %v1234_v53 }
 0x7ae   :  { %v1240_v55 = vmul.f32 1.442695, %v1238_v54 }
 0x7b0   :  { %12343 = vpow2.f32 %v1240_v55  ;;  %v1481_v55 = vld [vmem:[%s12892_s11 + $0x10] sm:$0xff] }
 0x7bd   :  { %v12344_v57 = vpop.eup %12343 }
 0x7be   :  { %v1244_v58 = vsel %vm374_vm2, %v12344_v57, 0.0 }
 0x7bf   :  { %1245 = vadd.xlane.f32.xlu1 %v1244_v58  ;;  %v1491_v58 = vld [vmem:[%s12901_s17 + $0x38] sm:$0xff] }
 0x7c3   :  { %1236 = vmax.xlane.f32.xlu0 %v1235_v60  ;;  %v1489_v60 = vld [vmem:[%s12901_s17 + $0x28] sm:$0xff] }
 0x7d0   :  { %1256 = vrot.lane.b32.xlu1 %v12737_v8, %s12665_s2 }
 0x813   :  { %v962_v61 = vpop.xlane.xlu0 %961 }
 0x814   :  { %12345 = vrcp.f32 %v962_v61  ;;  %v1488_v61 = vld [vmem:[%s12901_s17 + $0x20] sm:$0xff] }
 0x817   :  { %v959_v62 = vpop.xlane.xlu0 %958 }
 0x818   :  { %12347 = vrcp.f32 %v959_v62 }
 0x81b   :  { %v968_v63 = vpop.permute.xlu0 %967 }
 0x81c   :  { %11259 = vmatprep.subr.mxu1 %v968_v63 }
 0x81d   :  { %11260 = vmatpush3.msra.mxu1 %v968_v63 }
 0x81e   :  { %11264 = vmatprep.subr.mxu1 %v277_v0 }
 0x821   :  { %v12346_v1 = vpop.eup %12345 }
 0x822   :  { %v966_v6 = vmul.f32 %v12346_v1, %v12340_v49 }
 0x825   :  { %v12348_v3 = vpop.eup %12347 }
 0x826   :  { %v965_v4 = vmul.f32 %v12348_v3, %v12342_v51 }
 0x828   :  { %11261 = vmatprep.mubr.msk.f32.mxu1 %vm374_vm2, %v965_v4 }
 0x829   :  { %11262 = vmatmul.mubr.msk.f32.vlgmr.msra.gmra.mxu1 %vm374_vm2, %v966_v6 }
 0x82a   :  { %11265 = vmatpush3.msra.mxu1 %v277_v0 }
 0x848   :  { %v1246_v7 = vpop.xlane.xlu1 %1245 }
 0x84c   :  { %v1237_v8 = vpop.xlane.xlu0 %1236  ;;  %v1257_v9 = vpop.permute.xlu1 %1256 }
 0x84d   :  { %v1239_v11 = vsub.f32 %v1231_v59, %v1237_v8  ;;  %11276 = vmatprep.subr.mxu1 %v1257_v9  ;;  %v1490_v59 = vld [vmem:[%s12901_s17 + $0x30] sm:$0xff] }
 0x84f   :  { %v1242_v12 = vmul.f32 1.442695, %v1239_v11 }
 0x851   :  { %12349 = vpow2.f32 %v1242_v12 }
 0x852   :  { %12351 = vrcp.f32 %v1246_v7  ;;  %v10354_v7 = vld [vmem:[%s12910_s3] ss:$0 sm:$0xff] }
 0x85e   :  { %v12350_v13 = vpop.eup %12349 }
 0x85f   :  { %v1247_v14 = vsel %vm374_vm2, %v12350_v13, 0.0  ;;  %v12352_v19 = vpop.eup %12351 }
 0x860   :  { %1248 = vadd.xlane.f32.xlu0 %v1247_v14  ;;  %v1252_v23 = vmul.f32 %v12352_v19, %v12344_v57  ;;  %v1479_v57 = vld [vmem:[%s12892_s11] sm:$0xff]  ;;  %v1487_v19 = vld [vmem:[%s12901_s17 + $0x18] sm:$0xff] }
 0x876   :  { %1254 = vrot.lane.b32.xlu0 %v12739_v10, %s12665_s2 }
 0x8e9   :  { %v1249_v20 = vpop.xlane.xlu0 %1248  ;;  %v11263_v21 = vpop.f32.mrf.mxu1 }
 0x8ea   :  { %12353 = vrcp.f32 %v1249_v20  ;;  %v1486_v20 = vld [vmem:[%s12901_s17 + $0x10] sm:$0xff] }
 0x8eb   :  { %v1045_v22 = vpop.f32.mrf.mxu1 }
 0x8ec   :  { %11266 = vmatprep.mubr.msk.f32.mxu1 %vm286_vm1, %v1045_v22  ;;  %v1484_v22 = vld [vmem:[%s12901_s17] sm:$0xff] }
 0x8ed   :  { %v1255_v24 = vpop.permute.xlu0 %1254  ;;  %11267 = vmatmul.mubr.msk.f32.vlgmr.msra.gmra.mxu1 %vm286_vm1, %v11263_v21  ;;  %v1485_v21 = vld [vmem:[%s12901_s17 + $0x8] sm:$0xff] }
 0x8ee   :  { %11277 = vmatpush3.msra.mxu1 %v1257_v9  ;;  %11280 = vmatprep.mubr.msk.f32.mxu1 %vm374_vm2, %v1252_v23  ;;  %v10356_v23 = vld [vmem:[%s12928_s16] ss:$0 sm:$0xff] }
 0x8ef   :  { %11278 = vmatprep.subr.mxu1 %v1255_v24 }
 0x8f0   :  { %11279 = vmatpush3.msra.mxu1 %v1255_v24 }
 0x8f1   :  { %11283 = vmatprep.subr.mxu1 %v278_v26 }
 0x8f7   :  { %v12354_v10 = vpop.eup %12353 }
 0x8f8   :  { %v1253_v25 = vmul.f32 %v12354_v10, %v12350_v13  ;;  %v10355_v13 = vld [vmem:[%s12915_s9] ss:$0 sm:$0xff] }
 0x8fa   :  { %11281 = vmatmul.mubr.msk.f32.vlgmr.msra.gmra.mxu1 %vm374_vm2, %v1253_v25 }
 0x8fb   :  { %11284 = vmatpush3.msra.mxu1 %v278_v26 }
 0x8fc   :  { %11299 = vmatprep.subr.mxu1 %v1491_v58 }
 0x9ad   :  { %v11268_v30 = vpop.f32.mrf.mxu1 }
 0x9ae   :  { %v1136_v31 = vadd.f32 %v11268_v30, %v847_v29 }
 0x9af   :  { %v1126_v32 = vpop.f32.mrf.mxu1 }
 0x9b0   :  { %v1135_v37 = vadd.f32 %v1126_v32, %v842_v35 }
 0x9ba   :  { %v11282_v33 = vpop.f32.mrf.mxu1 }
 0x9bc   :  { %v1332_v34 = vpop.f32.mrf.mxu1 }
 0x9bd   :  { %11285 = vmatprep.mubr.msk.f32.mxu1 %vm286_vm1, %v1332_v34 }
 0x9be   :  { %11286 = vmatmul.mubr.msk.f32.vlgmr.msra.gmra.mxu1 %vm286_vm1, %v11282_v33 }
 0x9bf   :  { %11300 = vmatpush3.msra.mxu1 %v1491_v58 }
 0x9c0   :  { %11301 = vmatprep.subr.mxu1 %v1490_v59 }
 0x9c1   :  { %11302 = vmatpush3.msra.mxu1 %v1490_v59 }
 0x9c2   :  { %11303 = vmatprep.subr.mxu1 %v1489_v60 }
 0x9c3   :  { %11304 = vmatpush3.msra.mxu1 %v1489_v60 }
 0x9c4   :  { %11305 = vmatprep.subr.mxu1 %v1488_v61 }
 0x9c5   :  { %11306 = vmatpush3.msra.mxu1 %v1488_v61 }
 0x9c6   :  { %11307 = vmatprep.subr.mxu1 %v1487_v19 }
 0x9c7   :  { %11308 = vmatpush3.msra.mxu1 %v1487_v19 }
 0x9c8   :  { %11309 = vmatprep.subr.mxu1 %v1486_v20 }
 0x9c9   :  { %11310 = vmatpush3.msra.mxu1 %v1486_v20 }
 0x9ca   :  { %11311 = vmatprep.subr.mxu1 %v1485_v21 }
 0x9cb   :  { %11312 = vmatpush3.msra.mxu1 %v1485_v21 }
 0x9cc   :  { %11313 = vmatprep.subr.mxu1 %v1484_v22 }
 0x9cd   :  { %11314 = vmatpush3.msra.mxu1 %v1484_v22 }
 0xa7e   :  { %v11287_v27 = vpop.f32.mrf.mxu1 }
 0xa7f   :  { %v1423_v38 = vadd.f32 %v11287_v27, %v1136_v31  ;;  %v10359_v31 = vld [vmem:[%s12936_s4] ss:$0 sm:$0xff] }
 0xa80   :  { %v1413_v39 = vpop.f32.mrf.mxu1 }
 0xa81   :  { %v1431_v40 = vadd.f32 %v10353_v36, %v1423_v38  ;;  %v1422_v41 = vadd.f32 %v1413_v39, %v1135_v37 }
 0xa83   :  { %v1430_v42 = vadd.f32 %v10353_v36, %v1422_v41  ;;  %v1433_v43 = vadd.f32 %v1431_v40, %v12727_v5 }
 0xa85   :  { %v1439_v44 = vsel %vm193_vm0, %v1433_v43, 0.0  ;;  %v1432_v45 = vadd.f32 %v1430_v42, %v12721_v2  ;;  %v1482_v2 = vld [vmem:[%s12892_s11 + $0x18] sm:$0xff] }
 0xa86   :  { %1440 = vadd.xlane.f32.xlu0 %v1439_v44  ;;  %11288 = vmatprep.subr.mxu0 %v1482_v2 }
 0xa87   :  { %v1436_v46 = vsel %vm193_vm0, %v1432_v45, 0.0  ;;  %11289 = vmatpush3.msra.mxu0 %v1482_v2 }
 0xa88   :  { %1437 = vadd.xlane.f32.xlu1 %v1436_v46  ;;  %11290 = vmatprep.subr.mxu0 %v1481_v55 }
 0xa89   :  { %11291 = vmatpush3.msra.mxu0 %v1481_v55 }
 0xa8a   :  { %11292 = vmatprep.subr.mxu0 %v1480_v56 }
 0xa8b   :  { %11293 = vmatpush3.msra.mxu0 %v1480_v56 }
 0xa8c   :  { %11294 = vmatprep.subr.mxu0 %v1479_v57 }
 0xa8d   :  { %11295 = vmatpush3.msra.mxu0 %v1479_v57  ;;  %v10362_v57 = vld [vmem:[%s12950_s12] ss:$0 sm:$0xff] }
 0xb0f   :  { %v1441_v47 = vpop.xlane.xlu0 %1440 }
 0xb10   :  { %v1444_v28 = vmul.f32 0.03125, %v1441_v47 }
 0xb11   :  { %v1438_v48 = vpop.xlane.xlu1 %1437 }
 0xb12   :  { %v1446_v49 = vsub.f32 %v1433_v43, %v1444_v28  ;;  %v1443_v50 = vmul.f32 0.03125, %v1438_v48  ;;  %v10367_v48 = vld [vmem:[%s12714_s6 + $0x38] sm:$0xff] }
 0xb13   :  { %11318 = vmatprep.subr.mxu0 %v10367_v48 }
 0xb14   :  { %v1445_v51 = vsub.f32 %v1432_v45, %v1443_v50  ;;  %v1448_v52 = vmul.f32 %v1446_v49, %v1446_v49  ;;  %v10365_v50 = vld [vmem:[%s12714_s6 + $0x28] sm:$0xff] }
 0xb16   :  { %v1452_v53 = vsel %vm193_vm0, %v1448_v52, 0.0  ;;  %v1447_v54 = vmul.f32 %v1445_v51, %v1445_v51 }
 0xb17   :  { %1453 = vadd.xlane.f32.xlu0 %v1452_v53 }
 0xb18   :  { %v1449_v5 = vsel %vm193_vm0, %v1447_v54, 0.0 }
 0xb19   :  { %1450 = vadd.xlane.f32.xlu1 %v1449_v5 }
 0xba0   :  { %v1454_v62 = vpop.xlane.xlu0 %1453 }
 0xba1   :  { %v1456_v63 = vmul.f32 0.03125, %v1454_v62 }
 0xba2   :  { %v1451_v0 = vpop.xlane.xlu1 %1450 }
 0xba3   :  { %v1458_v1 = vadd.f32 1e-05, %v1456_v63  ;;  %v1455_v3 = vmul.f32 0.03125, %v1451_v0 }
 0xba5   :  { %12355 = vrsqrt.f32 %v1458_v1  ;;  %v1457_v4 = vadd.f32 1e-05, %v1455_v3  ;;  %v10369_v3 = vld [vmem:[%s12734_s13 + $0x1] ss:$0 sm:$0xff]  ;;  %s12676_s13 = smov 7  }
 0xba7   :  { %12357 = vrsqrt.f32 %v1457_v4 }
 0xbb2   :  { %v12356_v6 = vpop.eup %12355 }
 0xbb3   :  { %v1462_v8 = vmul.f32 %v12356_v6, %v1446_v49  ;;  %v10366_v49 = vld [vmem:[%s12714_s6 + $0x30] sm:$0xff] }
 0xbb4   :  { %v12358_v9 = vpop.eup %12357 }
 0xbb5   :  { %v1461_v11 = vmul.f32 %v12358_v9, %v1445_v51  ;;  %v1470_v12 = vmul.f32 %v10354_v7, %v1462_v8  ;;  %v10364_v51 = vld [vmem:[%s12714_s6 + $0x20] sm:$0xff]  ;;  %s12674_s6 = smov 20  }
 0xbb6   :  { %s12955_s23 = sld [smem:[%s14770_s0 + %s12674_s6]]  }
 0xbb7   :  { %v1469_v14 = vmul.f32 %v10354_v7, %v1461_v11  ;;  %v1478_v17 = vadd.f32 %v10355_v13, %v1470_v12 }
 0xbb9   :  { %v1477_v16 = vadd.f32 %v10355_v13, %v1469_v14 }
 0xbbb   :  { %11296 = vmatprep.mubr.msk.f32.mxu0 %vm193_vm0, %v1477_v16 }
 0xbbc   :  { %11297 = vmatmul.mubr.msk.f32.vlgmr.msra.gmra.mxu0 %vm193_vm0, %v1478_v17  ;;  %v10363_v62 = vld [vmem:[%s12955_s23] ss:$0 sm:$0xff] }
 0xbbd   :  { %11319 = vmatpush3.msra.mxu0 %v10367_v48 }
 0xbbe   :  { %11320 = vmatprep.subr.mxu0 %v10366_v49 }
 0xbbf   :  { %11321 = vmatpush3.msra.mxu0 %v10366_v49 }
 0xbc0   :  { %11322 = vmatprep.subr.mxu0 %v10365_v50 }
 0xbc1   :  { %11323 = vmatpush3.msra.mxu0 %v10365_v50 }
 0xbc2   :  { %11324 = vmatprep.subr.mxu0 %v10364_v51 }
 0xbc3   :  { %11325 = vmatpush3.msra.mxu0 %v10364_v51 }
 0xc7c   :  { %v11298_v24 = vpop.f32.mrf.mxu0 }
 0xc7d   :  { %v1577_v10 = vadd.f32 %v11298_v24, %v10356_v23 }
 0xc7e   :  { %v1571_v25 = vpop.f32.mrf.mxu0 }
 0xc7f   :  { %v1572_v26 = vadd.f32 %v10356_v23, %v1571_v25  ;;  %v1581_v30 = vmax.f32 %v1577_v10, 0.0 }
 0xc81   :  { %v1580_v29 = vmax.f32 %v1572_v26, 0.0 }
 0xc83   :  { %11315 = vmatprep.mubr.msk.f32.mxu1 %vm1588_vm3, %v1580_v29 }
 0xc84   :  { %11316 = vmatmul.mubr.msk.f32.vlgmr.msra.gmra.mxu1 %vm1588_vm3, %v1581_v30 }
 0xd44   :  { %v11317_v32 = vpop.f32.mrf.mxu1 }
 0xd45   :  { %v1667_v33 = vadd.f32 %v11317_v32, %v10359_v31 }
 0xd46   :  { %v1661_v34 = vpop.f32.mrf.mxu1 }
 0xd47   :  { %v1662_v35 = vadd.f32 %v10359_v31, %v1661_v34  ;;  %v1671_v36 = vadd.f32 %v1667_v33, %v1478_v17 }
 0xd49   :  { %v1677_v27 = vsel %vm193_vm0, %v1671_v36, 0.0  ;;  %v1670_v37 = vadd.f32 %v1662_v35, %v1477_v16 }
 0xd4a   :  { %1678 = vadd.xlane.f32.xlu0 %v1677_v27 }
 0xd4b   :  { %v1674_v38 = vsel %vm193_vm0, %v1670_v37, 0.0 }
 0xd4c   :  { %1675 = vadd.xlane.f32.xlu1 %v1674_v38 }
 0xdd3   :  { %v1679_v39 = vpop.xlane.xlu0 %1678 }
 0xdd4   :  { %v1681_v40 = vmul.f32 0.03125, %v1679_v39 }
 0xdd5   :  { %v1676_v41 = vpop.xlane.xlu1 %1675 }
 0xdd6   :  { %v1683_v42 = vsub.f32 %v1671_v36, %v1681_v40  ;;  %v1680_v43 = vmul.f32 0.03125, %v1676_v41 }
 0xdd8   :  { %v1682_v44 = vsub.f32 %v1670_v37, %v1680_v43  ;;  %v1685_v45 = vmul.f32 %v1683_v42, %v1683_v42 }
 0xdda   :  { %v1689_v46 = vsel %vm193_vm0, %v1685_v45, 0.0  ;;  %v1684_v47 = vmul.f32 %v1682_v44, %v1682_v44 }
 0xddb   :  { %1690 = vadd.xlane.f32.xlu0 %v1689_v46 }
 0xddc   :  { %v1686_v28 = vsel %vm193_vm0, %v1684_v47, 0.0 }
 0xddd   :  { %1687 = vadd.xlane.f32.xlu1 %v1686_v28 }
 0xe64   :  { %v1691_v52 = vpop.xlane.xlu0 %1690 }
 0xe65   :  { %v1693_v53 = vmul.f32 0.03125, %v1691_v52 }
 0xe66   :  { %v1688_v54 = vpop.xlane.xlu1 %1687 }
 0xe67   :  { %v1695_v5 = vadd.f32 1e-05, %v1693_v53  ;;  %v1692_v2 = vmul.f32 0.03125, %v1688_v54 }
 0xe69   :  { %12359 = vrsqrt.f32 %v1695_v5  ;;  %v1694_v55 = vadd.f32 1e-05, %v1692_v2 }
 0xe6b   :  { %12361 = vrsqrt.f32 %v1694_v55 }
 0xe76   :  { %v12360_v56 = vpop.eup %12359 }
 0xe77   :  { %v1699_v58 = vmul.f32 %v12360_v56, %v1683_v42 }
 0xe78   :  { %v12362_v59 = vpop.eup %12361 }
 0xe79   :  { %v1698_v60 = vmul.f32 %v12362_v59, %v1682_v44  ;;  %v1707_v61 = vmul.f32 %v10362_v57, %v1699_v58  ;;  %v10372_v44 = vld [vmem:[%s12793_s25 + $0x20] sm:$0xff] }
 0xe7b   :  { %v1706_v63 = vmul.f32 %v10362_v57, %v1698_v60  ;;  %v12961_v1 = vadd.f32 %v10363_v62, %v1707_v61 }
 0xe7d   :  { %v12959_v0 = vadd.f32 %v10363_v62, %v1706_v63 }
 0xe7f   :  { %11326 = vmatprep.mubr.msk.f32.mxu0 %vm193_vm0, %v12959_v0 }
 0xe80   :  { %11327 = vmatmul.mubr.msk.f32.vlgmr.msra.gmra.mxu0 %vm193_vm0, %v12961_v1 }
 0xf40   :  { %v11328_v4 = vpop.f32.mrf.mxu0 }
 0xf41   :  { %v12968_v6 = vadd.f32 %v11328_v4, %v10369_v3 }
 0xf42   :  { %v1801_v7 = vpop.f32.mrf.mxu0 }
 0xf43   :  { %v12970_v8 = vadd.f32 %v10369_v3, %v1801_v7  ;;  %1821 = vrot.lane.b32.xlu1 %v12968_v6, %s12653_s14  ;;  %v10373_v3 = vld [vmem:[%s12793_s25 + $0x28] sm:$0xff] }
 0xf45   :  { %1819 = vrot.lane.b32.xlu0 %v12970_v8, %s12653_s14  ;;  %11333 = vmatprep.mubr.msk.f32.mxu0 %vm286_vm1, %v12970_v8 }
 0xfb5   :  { %v1822_v9 = vpop.permute.xlu1 %1821 }
 0xfb6   :  { %11329 = vmatprep.subr.msk.mxu0 %vm286_vm1, %v1822_v9 }
 0xfb7   :  { %11330 = vmatpush3.xpose.msk.msra.mxu0 %vm286_vm1, %v1822_v9  ;;  %v1820_v11 = vpop.permute.xlu0 %1819 }
 0xfb8   :  { %11331 = vmatprep.subr.msk.mxu0 %vm286_vm1, %v1820_v11 }
 0xfbb   :  { %11332 = vmatpush3.xpose.msk.msra.mxu0 %vm286_vm1, %v1820_v11 }
 0xfbe   :  { %11334 = vmatmul.mubr.msk.f32.vlgmr.msra.gmra.mxu0 %vm286_vm1, %v12968_v6 }
0x107e   :  { %v11335_v12 = vpop.f32.mrf.mxu0 }
0x107f   :  { %v1907_v13 = vmul.f32 0.35355338, %v11335_v12 }
0x1080   :  { %v1897_v14 = vpop.f32.mrf.mxu0 }
0x1081   :  { %v1906_v16 = vmul.f32 0.35355338, %v1897_v14  ;;  %v1909_v17 = vadd.f32 %v1907_v13, %v12762_v18 }
0x1083   :  { %v1913_v19 = vsel %vm374_vm2, %v1909_v17, -inf  ;;  %v1908_v20 = vadd.f32 %v1906_v16, %v12759_v15 }
0x1084   :  { %1914 = vmax.xlane.f32.xlu0 %v1913_v19 }
0x1085   :  { %v1910_v21 = vsel %vm374_vm2, %v1908_v20, -inf }
0x1086   :  { %1911 = vmax.xlane.f32.xlu1 %v1910_v21 }
0x1097   :  { %1934 = vrot.lane.b32.xlu1 %v12968_v6, %s14783_s19 }
0x109b   :  { %2025 = vrot.lane.b32.xlu1 %v12968_v6, %s12657_s21 }
0x109f   :  { %2023 = vrot.lane.b32.xlu1 %v12970_v8, %s12657_s21 }
0x110d   :  { %v1915_v22 = vpop.xlane.xlu0 %1914 }
0x110e   :  { %v1917_v23 = vsub.f32 %v1909_v17, %v1915_v22 }
0x110f   :  { %v1912_v24 = vpop.xlane.xlu1 %1911 }
0x1110   :  { %v1920_v10 = vmul.f32 1.442695, %v1917_v23  ;;  %v1916_v25 = vsub.f32 %v1908_v20, %v1912_v24 }
0x1112   :  { %12363 = vpow2.f32 %v1920_v10  ;;  %v1918_v26 = vmul.f32 1.442695, %v1916_v25 }
0x1113   :  { %v1935_v29 = vpop.permute.xlu1 %1934 }
0x1114   :  { %12365 = vpow2.f32 %v1918_v26  ;;  %11336 = vmatprep.subr.mxu1 %v1935_v29 }
0x1115   :  { %11337 = vmatpush3.msra.mxu1 %v1935_v29 }
0x1117   :  { %v2026_v34 = vpop.permute.xlu1 %2025 }
0x111b   :  { %v2024_v35 = vpop.permute.xlu1 %2023 }
0x111f   :  { %v12364_v30 = vpop.eup %12363 }
0x1120   :  { %v1925_v31 = vsel %vm374_vm2, %v12364_v30, 0.0 }
0x1121   :  { %v12366_v32 = vpop.eup %12365  ;;  %1926 = vadd.xlane.f32.xlu0 %v1925_v31  ;;  %v12643_v31 = vld [vmem:[%s12756_s18 + $0x8] sm:$0xff] }
0x1122   :  { %v1922_v33 = vsel %vm374_vm2, %v12366_v32, 0.0 }
0x1123   :  { %1923 = vadd.xlane.f32.xlu1 %v1922_v33 }
0x1134   :  { %2021 = vrot.lane.b32.xlu1 %v12968_v6, %s12656_s20 }
0x1137   :  { %1932 = vrot.lane.b32.xlu0 %v12970_v8, %s14783_s19 }
0x113b   :  { %2019 = vrot.lane.b32.xlu0 %v12970_v8, %s12656_s20 }
0x11aa   :  { %v1927_v36 = vpop.xlane.xlu0 %1926 }
0x11ab   :  { %12367 = vrcp.f32 %v1927_v36 }
0x11ac   :  { %v1924_v27 = vpop.xlane.xlu1 %1923 }
0x11ad   :  { %12369 = vrcp.f32 %v1924_v27 }
0x11ae   :  { %v1933_v37 = vpop.permute.xlu0 %1932 }
0x11af   :  { %11338 = vmatprep.subr.mxu1 %v1933_v37 }
0x11b0   :  { %11339 = vmatpush3.msra.mxu1 %v1933_v37  ;;  %v2022_v43 = vpop.permute.xlu1 %2021 }
0x11b1   :  { %11343 = vmatprep.subr.msk.mxu1 %vm286_vm1, %v2026_v34 }
0x11b2   :  { %v2020_v42 = vpop.permute.xlu0 %2019 }
0x11b8   :  { %v12368_v38 = vpop.eup %12367 }
0x11b9   :  { %v1931_v41 = vmul.f32 %v12368_v38, %v12364_v30 }
0x11ba   :  { %v12370_v39 = vpop.eup %12369 }
0x11bb   :  { %v1930_v40 = vmul.f32 %v12370_v39, %v12366_v32 }
0x11bd   :  { %11340 = vmatprep.mubr.msk.f32.mxu1 %vm374_vm2, %v1930_v40 }
0x11be   :  { %11341 = vmatmul.mubr.msk.f32.vlgmr.msra.gmra.mxu1 %vm374_vm2, %v1931_v41 }
0x11bf   :  { %11344 = vmatpush3.xpose.msk.msra.mxu1 %vm286_vm1, %v2026_v34  ;;  %11347 = vmatprep.mubr.msk.f32.mxu1 %vm286_vm1, %v2020_v42  ;;  %v12644_v34 = vld [vmem:[%s12756_s18] sm:$0xff]  ;;  %s13140_s18 = sld [smem:[%s14770_s0 + %s12680_s15]]   ;;  %s12684_s15 = smov 5  }
0x11c0   :  { %11345 = vmatprep.subr.msk.mxu1 %vm286_vm1, %v2024_v35 }
0x11c3   :  { %11346 = vmatpush3.xpose.msk.msra.mxu1 %vm286_vm1, %v2024_v35 }
0x11c4   :  { %11362 = vmatprep.subr.mxu1 %v10372_v44 }
0x11c6   :  { %11348 = vmatmul.mubr.msk.f32.vlgmr.msra.gmra.mxu1 %vm286_vm1, %v2022_v43 }
0x11c7   :  { %11363 = vmatpush3.msra.mxu1 %v10372_v44 }
0x127e   :  { %v11342_v45 = vpop.f32.mrf.mxu1 }
0x1280   :  { %v2010_v46 = vpop.f32.mrf.mxu1 }
0x1281   :  { %11364 = vmatprep.mubr.msk.f32.mxu1 %vm286_vm1, %v2010_v46 }
0x1282   :  { %11365 = vmatmul.mubr.msk.f32.vlgmr.msra.gmra.mxu1 %vm286_vm1, %v11342_v45 }
0x1286   :  { %v11349_v47 = vpop.f32.mrf.mxu1 }
0x1287   :  { %v2111_v28 = vmul.f32 0.35355338, %v11349_v47 }
0x1288   :  { %v2101_v48 = vpop.f32.mrf.mxu1 }
0x1289   :  { %v2110_v49 = vmul.f32 0.35355338, %v2101_v48  ;;  %v2113_v50 = vadd.f32 %v2111_v28, %v12762_v18 }
0x128b   :  { %v2117_v51 = vsel %vm374_vm2, %v2113_v50, -inf  ;;  %v2112_v52 = vadd.f32 %v2110_v49, %v12759_v15 }
0x128c   :  { %2118 = vmax.xlane.f32.xlu1 %v2117_v51 }
0x128d   :  { %v2114_v53 = vsel %vm374_vm2, %v2112_v52, -inf }
0x128e   :  { %2115 = vmax.xlane.f32.xlu0 %v2114_v53 }
0x129d   :  { %2138 = vrot.lane.b32.xlu1 %v12968_v6, %s14781_s26 }
0x12a1   :  { %2391 = vrot.lane.b32.xlu1 %v12968_v6, %s14779_s30 }
0x12a5   :  { %2389 = vrot.lane.b32.xlu1 %v12970_v8, %s14779_s30 }
0x12a9   :  { %2387 = vrot.lane.b32.xlu1 %v12968_v6, %s14777_s27 }
0x12ad   :  { %2676 = vrot.lane.b32.xlu1 %v12970_v8, %s14773_s28 }
0x12b1   :  { %2674 = vrot.lane.b32.xlu1 %v12968_v6, %s14771_s29 }
0x1315   :  { %v2119_v15 = vpop.xlane.xlu1 %2118 }
0x1316   :  { %v2121_v18 = vsub.f32 %v2113_v50, %v2119_v15 }
0x1317   :  { %v2116_v54 = vpop.xlane.xlu0 %2115 }
0x1318   :  { %v2124_v5 = vmul.f32 1.442695, %v2121_v18  ;;  %v2120_v2 = vsub.f32 %v2112_v52, %v2116_v54 }
0x1319   :  { %v2139_v55 = vpop.permute.xlu1 %2138 }
0x131a   :  { %12371 = vpow2.f32 %v2124_v5  ;;  %v2122_v56 = vmul.f32 1.442695, %v2120_v2  ;;  %11350 = vmatprep.subr.mxu0 %v2139_v55 }
0x131b   :  { %11351 = vmatpush3.msra.mxu0 %v2139_v55 }
0x131c   :  { %12373 = vpow2.f32 %v2122_v56 }
0x131d   :  { %v2392_v12 = vpop.permute.xlu1 %2391 }
0x1321   :  { %v2390_v16 = vpop.permute.xlu1 %2389 }
0x1325   :  { %v2388_v20 = vpop.permute.xlu1 %2387 }
0x1327   :  { %v12372_v57 = vpop.eup %12371 }
0x1328   :  { %v2129_v58 = vsel %vm374_vm2, %v12372_v57, 0.0 }
0x1329   :  { %v12374_v59 = vpop.eup %12373  ;;  %2130 = vadd.xlane.f32.xlu0 %v2129_v58  ;;  %v2677_v22 = vpop.permute.xlu1 %2676  ;;  %v10374_v58 = vld [vmem:[%s12793_s25 + $0x30] sm:$0xff] }
0x132a   :  { %v2126_v60 = vsel %vm374_vm2, %v12374_v59, 0.0 }
0x132d   :  { %2127 = vadd.xlane.f32.xlu0 %v2126_v60  ;;  %v2675_v23 = vpop.permute.xlu1 %2674 }
0x1343   :  { %2136 = vrot.lane.b32.xlu0 %v12970_v8, %s14781_s26 }
0x1347   :  { %2385 = vrot.lane.b32.xlu0 %v12970_v8, %s14777_s27 }
0x134b   :  { %2678 = vrot.lane.b32.xlu0 %v12968_v6, %s14773_s28 }
0x134f   :  { %2672 = vrot.lane.b32.xlu0 %v12970_v8, %s14771_s29 }
0x13b2   :  { %v2131_v61 = vpop.xlane.xlu0 %2130 }
0x13b3   :  { %12375 = vrcp.f32 %v2131_v61 }
0x13b6   :  { %v2128_v62 = vpop.xlane.xlu0 %2127 }
0x13b7   :  { %12377 = vrcp.f32 %v2128_v62 }
0x13ba   :  { %v2137_v63 = vpop.permute.xlu0 %2136 }
0x13bb   :  { %11352 = vmatprep.subr.mxu0 %v2137_v63 }
0x13bc   :  { %11353 = vmatpush3.msra.mxu0 %v2137_v63 }
0x13bd   :  { %11357 = vmatprep.subr.mxu0 %v10373_v3 }
0x13be   :  { %v2386_v13 = vpop.permute.xlu0 %2385 }
0x13c0   :  { %v12376_v4 = vpop.eup %12375 }
0x13c1   :  { %v2135_v11 = vmul.f32 %v12376_v4, %v12372_v57 }
0x13c2   :  { %v2679_v19 = vpop.permute.xlu0 %2678 }
0x13c4   :  { %v12378_v7 = vpop.eup %12377 }
0x13c5   :  { %v2134_v9 = vmul.f32 %v12378_v7, %v12374_v59 }
0x13c6   :  { %v2673_v21 = vpop.permute.xlu0 %2672 }
0x13c7   :  { %11354 = vmatprep.mubr.msk.f32.mxu0 %vm374_vm2, %v2134_v9 }
0x13c8   :  { %11355 = vmatmul.mubr.msk.f32.vlgmr.msra.gmra.mxu0 %vm374_vm2, %v2135_v11 }
0x13c9   :  { %11358 = vmatpush3.msra.mxu0 %v10373_v3 }
0x13ca   :  { %11367 = vmatprep.subr.msk.mxu0 %vm286_vm1, %v2392_v12 }
0x1488   :  { %v11356_v14 = vpop.f32.mrf.mxu0 }
0x148a   :  { %v2214_v17 = vpop.f32.mrf.mxu0 }
0x148b   :  { %11359 = vmatprep.mubr.msk.f32.mxu0 %vm286_vm1, %v2214_v17 }
0x148c   :  { %11360 = vmatmul.mubr.msk.f32.vlgmr.msra.gmra.mxu0 %vm286_vm1, %v11356_v14 }
0x148d   :  { %11368 = vmatpush3.xpose.msk.msra.mxu0 %vm286_vm1, %v2392_v12  ;;  %11371 = vmatprep.mubr.msk.f32.mxu0 %vm286_vm1, %v2386_v13  ;;  %v11366_v12 = vpop.f32.mrf.mxu1 }
0x148e   :  { %11369 = vmatprep.subr.msk.mxu0 %vm286_vm1, %v2390_v16 }
0x148f   :  { %v2376_v13 = vpop.f32.mrf.mxu1 }
0x1491   :  { %11370 = vmatpush3.xpose.msk.msra.mxu0 %vm286_vm1, %v2390_v16 }
0x1492   :  { %11386 = vmatprep.subr.msk.mxu0 %vm286_vm1, %v2679_v19 }
0x1494   :  { %11372 = vmatmul.mubr.msk.f32.vlgmr.msra.gmra.mxu0 %vm286_vm1, %v2388_v20 }
0x1495   :  { %11387 = vmatpush3.xpose.msk.msra.mxu0 %vm286_vm1, %v2679_v19  ;;  %11390 = vmatprep.mubr.msk.f32.mxu0 %vm286_vm1, %v2673_v21 }
0x1496   :  { %11388 = vmatprep.subr.msk.mxu0 %vm286_vm1, %v2677_v22 }
0x1499   :  { %11389 = vmatpush3.xpose.msk.msra.mxu0 %vm286_vm1, %v2677_v22 }
0x149c   :  { %11391 = vmatmul.mubr.msk.f32.vlgmr.msra.gmra.mxu0 %vm286_vm1, %v2675_v23  ;;  %v10375_v23 = vld [vmem:[%s12793_s25 + $0x38] sm:$0xff]  ;;  %s12681_s25 = smov 21  }
0x154c   :  { %v13056_v24 = vpop.f32.mrf.mxu0 }
0x154e   :  { %v13058_v10 = vpop.f32.mrf.mxu0 }
0x1554   :  { %v11373_v25 = vpop.f32.mrf.mxu0 }
0x1555   :  { %v2477_v26 = vmul.f32 0.35355338, %v11373_v25  ;;  %v2382_v25 = vadd.f32 %v11366_v12, %v13056_v24 }
0x1556   :  { %v2467_v29 = vpop.f32.mrf.mxu0 }
0x1557   :  { %v2476_v30 = vmul.f32 0.35355338, %v2467_v29  ;;  %v2479_v32 = vadd.f32 %v12643_v31, %v2477_v26 }
0x1559   :  { %v2483_v33 = vsel %vm374_vm2, %v2479_v32, -inf  ;;  %v2478_v35 = vadd.f32 %v12644_v34, %v2476_v30 }
0x155a   :  { %2484 = vmax.xlane.f32.xlu1 %v2483_v33  ;;  %v2377_v33 = vadd.f32 %v2376_v13, %v13058_v10 }
0x155b   :  { %v2480_v36 = vsel %vm374_vm2, %v2478_v35, -inf }
0x155c   :  { %2481 = vmax.xlane.f32.xlu0 %v2480_v36  ;;  %v11392_v27 = vpop.f32.mrf.mxu0 }
0x155d   :  { %v2764_v15 = vmul.f32 0.35355338, %v11392_v27 }
0x155e   :  { %v2754_v37 = vpop.f32.mrf.mxu0 }
0x155f   :  { %v2763_v38 = vmul.f32 0.35355338, %v2754_v37  ;;  %v2766_v5 = vadd.f32 %v12643_v31, %v2764_v15  ;;  %v12675_v15 = vmov 0.0  }
0x1561   :  { %v2765_v39 = vadd.f32 %v12644_v34, %v2763_v38  ;;  %v2770_v2 = vsel %vm374_vm2, %v2766_v5, -inf  ;;  %v10409_v34 = vld [vmem:[%s12879_s7 + $0x1] ss:$0 sm:$0xff]  ;;  %s10281_s7 = sld [smem:[%s14770_s0 + %s12676_s13]]   ;;  %s12694_s13 = smov 29  }
0x1563   :  { %v2767_v40 = vsel %vm374_vm2, %v2765_v39, -inf }
0x1567   :  { %v3259_v13 = vld [vmem:[%s10281_s7 + $0x8] sm:$0xff] }
0x156b   :  { %2504 = vrot.lane.b32.xlu1 %v12968_v6, %s14775_s1 }
0x158f   :  { %2768 = vmax.xlane.f32.xlu1 %v2767_v40 }
0x15e3   :  { %v2485_v41 = vpop.xlane.xlu1 %2484 }
0x15e4   :  { %v2487_v42 = vsub.f32 %v2479_v32, %v2485_v41 }
0x15e5   :  { %v2482_v43 = vpop.xlane.xlu0 %2481 }
0x15e6   :  { %v2490_v44 = vmul.f32 1.442695, %v2487_v42  ;;  %v2486_v45 = vsub.f32 %v2478_v35, %v2482_v43 }
0x15e7   :  { %v2505_v46 = vpop.permute.xlu1 %2504 }
0x15e8   :  { %12379 = vpow2.f32 %v2490_v44  ;;  %v2488_v47 = vmul.f32 1.442695, %v2486_v45  ;;  %11374 = vmatprep.subr.mxu1 %v2505_v46 }
0x15e9   :  { %11375 = vmatpush3.msra.mxu1 %v2505_v46 }
0x15ea   :  { %12381 = vpow2.f32 %v2488_v47 }
0x15f5   :  { %v12380_v28 = vpop.eup %12379 }
0x15f6   :  { %v2495_v48 = vsel %vm374_vm2, %v12380_v28, 0.0 }
0x15f7   :  { %v12382_v49 = vpop.eup %12381  ;;  %2496 = vadd.xlane.f32.xlu0 %v2495_v48 }
0x15f8   :  { %v2492_v50 = vsel %vm374_vm2, %v12382_v49, 0.0 }
0x15fb   :  { %2493 = vadd.xlane.f32.xlu0 %v2492_v50  ;;  %v10417_v50 = vld [vmem:[%s12892_s11 + $0x38] sm:$0xff] }
0x15fc   :  { %11405 = vmatprep.subr.mxu0 %v10417_v50 }
0x15fd   :  { %11406 = vmatpush3.msra.mxu0 %v10417_v50 }
0x1611   :  { %2502 = vrot.lane.b32.xlu0 %v12970_v8, %s14775_s1 }
0x1618   :  { %v2769_v51 = vpop.xlane.xlu1 %2768 }
0x1619   :  { %v2773_v52 = vsub.f32 %v2765_v39, %v2769_v51  ;;  %v10416_v51 = vld [vmem:[%s12892_s11 + $0x30] sm:$0xff] }
0x161a   :  { %11407 = vmatprep.subr.mxu0 %v10416_v51 }
0x161b   :  { %v2775_v53 = vmul.f32 1.442695, %v2773_v52  ;;  %v10415_v52 = vld [vmem:[%s12892_s11 + $0x28] sm:$0xff]  ;;  %11408 = vmatpush3.msra.mxu0 %v10416_v51 }
0x161c   :  { %11409 = vmatprep.subr.mxu0 %v10415_v52 }
0x161d   :  { %12383 = vpow2.f32 %v2775_v53  ;;  %v10414_v53 = vld [vmem:[%s12892_s11 + $0x20] sm:$0xff]  ;;  %11410 = vmatpush3.msra.mxu0 %v10415_v52  ;;  %s12677_s11 = smov 2  }
0x161e   :  { %11411 = vmatprep.subr.mxu0 %v10414_v53  ;;  %s10276_s8 = sld [smem:[%s14770_s0 + %s12677_s11]]  }
0x161f   :  { %11412 = vmatpush3.msra.mxu0 %v10414_v53  ;;  %s13145_s11 = sld [smem:[%s14770_s0 + %s12681_s25]]   ;;  %s12685_s25 = smov 23  }
0x1620   :  { %11435 = vmatprep.subr.mxu0 %v12675_v15 }
0x162a   :  { %v12384_v18 = vpop.eup %12383 }
0x162b   :  { %v2779_v54 = vsel %vm374_vm2, %v12384_v18, 0.0 }
0x162c   :  { %2780 = vadd.xlane.f32.xlu1 %v2779_v54  ;;  %v10425_v54 = vld [vmem:[%s12901_s17 + $0x70] sm:$0xff] }
0x1630   :  { %2771 = vmax.xlane.f32.xlu0 %v2770_v2  ;;  %v10423_v2 = vld [vmem:[%s12901_s17 + $0x60] sm:$0xff] }
0x163d   :  { %2791 = vrot.lane.b32.xlu1 %v12968_v6, %s12665_s2 }
0x1680   :  { %v2497_v55 = vpop.xlane.xlu0 %2496 }
0x1681   :  { %12385 = vrcp.f32 %v2497_v55 }
0x1684   :  { %v2494_v56 = vpop.xlane.xlu0 %2493 }
0x1685   :  { %12387 = vrcp.f32 %v2494_v56 }
0x1688   :  { %v2503_v57 = vpop.permute.xlu0 %2502 }
0x1689   :  { %11376 = vmatprep.subr.mxu1 %v2503_v57 }
0x168a   :  { %11377 = vmatpush3.msra.mxu1 %v2503_v57 }
0x168b   :  { %11381 = vmatprep.subr.mxu1 %v10374_v58 }
0x168e   :  { %v12386_v59 = vpop.eup %12385 }
0x168f   :  { %v2501_v62 = vmul.f32 %v12386_v59, %v12380_v28 }
0x1692   :  { %v12388_v60 = vpop.eup %12387 }
0x1693   :  { %v2500_v61 = vmul.f32 %v12388_v60, %v12382_v49 }
0x1695   :  { %11378 = vmatprep.mubr.msk.f32.mxu1 %vm374_vm2, %v2500_v61 }
0x1696   :  { %11379 = vmatmul.mubr.msk.f32.vlgmr.msra.gmra.mxu1 %vm374_vm2, %v2501_v62  ;;  %v10412_v62 = vld [vmem:[%s12910_s3 + $0x1] ss:$0 sm:$0xff]  ;;  %s12679_s3 = smov 8  }
0x1697   :  { %11382 = vmatpush3.msra.mxu1 %v10374_v58  ;;  %s10282_s6 = sld [smem:[%s14770_s0 + %s12679_s3]]   ;;  %s12683_s3 = smov 22  }
0x16b5   :  { %v2781_v63 = vpop.xlane.xlu1 %2780 }
0x16b9   :  { %v2792_v6 = vpop.permute.xlu1 %2791  ;;  %v2772_v3 = vpop.xlane.xlu0 %2771 }
0x16ba   :  { %v2774_v4 = vsub.f32 %v2766_v5, %v2772_v3  ;;  %11393 = vmatprep.subr.mxu1 %v2792_v6  ;;  %v10424_v5 = vld [vmem:[%s12901_s17 + $0x68] sm:$0xff] }
0x16bc   :  { %v2777_v7 = vmul.f32 1.442695, %v2774_v4 }
0x16be   :  { %12389 = vpow2.f32 %v2777_v7  ;;  %v10413_v7 = vld [vmem:[%s12915_s9 + $0x1] ss:$0 sm:$0xff]  ;;  %s13599_s9 = sld [smem:[%s14770_s0 + %s12690_s24]]  }
0x16bf   :  { %12391 = vrcp.f32 %v2781_v63 }
0x16cb   :  { %v12390_v9 = vpop.eup %12389 }
0x16cc   :  { %v2782_v11 = vsel %vm374_vm2, %v12390_v9, 0.0  ;;  %v12392_v14 = vpop.eup %12391 }
0x16cd   :  { %2783 = vadd.xlane.f32.xlu0 %v2782_v11  ;;  %v2787_v20 = vmul.f32 %v12392_v14, %v12384_v18  ;;  %v10426_v18 = vld [vmem:[%s12901_s17 + $0x78] sm:$0xff]  ;;  %v3258_v14 = vld [vmem:[%s10281_s7] sm:$0xff]  ;;  %s13570_s7 = sld [smem:[%s14770_s0 + %s12688_s22]]  }
0x16ce   :  { %s13690_s22 = sld [smem:[%s14770_s0 + %s12693_s5]]   ;;  %s12695_s5 = smov 30  }
0x16e3   :  { %2789 = vrot.lane.b32.xlu0 %v12970_v8, %s12665_s2 }
0x1756   :  { %v11380_v16 = vpop.f32.mrf.mxu1  ;;  %v2784_v17 = vpop.xlane.xlu0 %2783 }
0x1757   :  { %12393 = vrcp.f32 %v2784_v17  ;;  %v10422_v17 = vld [vmem:[%s12901_s17 + $0x58] sm:$0xff] }
0x1758   :  { %v2580_v19 = vpop.f32.mrf.mxu1 }
0x1759   :  { %11383 = vmatprep.mubr.msk.f32.mxu1 %vm286_vm1, %v2580_v19  ;;  %v10421_v19 = vld [vmem:[%s12901_s17 + $0x50] sm:$0xff] }
0x175a   :  { %11384 = vmatmul.mubr.msk.f32.vlgmr.msra.gmra.mxu1 %vm286_vm1, %v11380_v16  ;;  %v2790_v21 = vpop.permute.xlu0 %2789  ;;  %v3257_v16 = vld [vmem:[%s10276_s8] sm:$0x3] }
0x175b   :  { %11394 = vmatpush3.msra.mxu1 %v2792_v6  ;;  %11397 = vmatprep.mubr.msk.f32.mxu1 %vm374_vm2, %v2787_v20  ;;  %v10420_v20 = vld [vmem:[%s12901_s17 + $0x48] sm:$0xff] }
0x175c   :  { %11395 = vmatprep.subr.mxu1 %v2790_v21 }
0x175d   :  { %11396 = vmatpush3.msra.mxu1 %v2790_v21  ;;  %v10419_v21 = vld [vmem:[%s12901_s17 + $0x40] sm:$0xff]  ;;  %s13770_s17 = sld [smem:[%s14770_s0 + %s12694_s13]]  }
0x175e   :  { %11400 = vmatprep.subr.mxu1 %v10375_v23  ;;  %s13916_s13 = sld [smem:[%s14770_s0 + %s12695_s5]]  }
0x1764   :  { %v12394_v8 = vpop.eup %12393 }
0x1765   :  { %v2788_v22 = vmul.f32 %v12394_v8, %v12390_v9  ;;  %v10428_v8 = vld [vmem:[%s12928_s16 + $0x1] ss:$0 sm:$0xff]  ;;  %s12682_s16 = smov 1  }
0x1766   :  { %s10275_s8 = sld [smem:[%s14770_s0 + %s12682_s16]]  }
0x1767   :  { %11398 = vmatmul.mubr.msk.f32.vlgmr.msra.gmra.mxu1 %vm374_vm2, %v2788_v22  ;;  %s13347_s16 = sld [smem:[%s14770_s0 + %s12685_s25]]  }
0x1768   :  { %11401 = vmatpush3.msra.mxu1 %v10375_v23  ;;  %s13627_s25 = sld [smem:[%s14770_s0 + %s12691_s10]]   ;;  %s12697_s10 = smov 33  }
0x1769   :  { %11416 = vmatprep.subr.mxu1 %v10426_v18  ;;  %s13958_s5 = sld [smem:[%s14770_s0 + %s12697_s10]]   ;;  %s12698_s10 = smov 37  }
0x181a   :  { %v11385_v26 = vpop.f32.mrf.mxu1 }
0x181b   :  { %v2671_v29 = vadd.f32 %v11385_v26, %v2382_v25  ;;  %v10438_v26 = vld [vmem:[%s10282_s6] ss:$0 sm:$0xff]  ;;  %s13200_s6 = sld [smem:[%s14770_s0 + %s12683_s3]]   ;;  %s12687_s3 = smov 27  }
0x181c   :  { %v2661_v30 = vpop.f32.mrf.mxu1 }
0x181d   :  { %v2670_v36 = vadd.f32 %v2661_v30, %v2377_v33  ;;  %v3343_v33 = vld [vmem:[%s13140_s18] sm:$0xff] }
0x1821   :  { %v10444_v52 = vld [vmem:[%s13200_s6] ss:$0 sm:$0xff] }
0x1827   :  { %v11399_v31 = vpop.f32.mrf.mxu1 }
0x1829   :  { %v2867_v32 = vpop.f32.mrf.mxu1 }
0x182a   :  { %11402 = vmatprep.mubr.msk.f32.mxu1 %vm286_vm1, %v2867_v32 }
0x182b   :  { %11403 = vmatmul.mubr.msk.f32.vlgmr.msra.gmra.mxu1 %vm286_vm1, %v11399_v31 }
0x182c   :  { %11417 = vmatpush3.msra.mxu1 %v10426_v18 }
0x182d   :  { %11418 = vmatprep.subr.mxu1 %v10425_v54 }
0x182e   :  { %11419 = vmatpush3.msra.mxu1 %v10425_v54 }
0x182f   :  { %11420 = vmatprep.subr.mxu1 %v10424_v5 }
0x1830   :  { %11421 = vmatpush3.msra.mxu1 %v10424_v5 }
0x1831   :  { %11422 = vmatprep.subr.mxu1 %v10423_v2 }
0x1832   :  { %11423 = vmatpush3.msra.mxu1 %v10423_v2 }
0x1833   :  { %11424 = vmatprep.subr.mxu1 %v10422_v17 }
0x1834   :  { %11425 = vmatpush3.msra.mxu1 %v10422_v17 }
0x1835   :  { %11426 = vmatprep.subr.mxu1 %v10421_v19 }
0x1836   :  { %11427 = vmatpush3.msra.mxu1 %v10421_v19 }
0x1837   :  { %11428 = vmatprep.subr.mxu1 %v10420_v20 }
0x1838   :  { %11429 = vmatpush3.msra.mxu1 %v10420_v20 }
0x1839   :  { %11430 = vmatprep.subr.mxu1 %v10419_v21 }
0x183a   :  { %11431 = vmatpush3.msra.mxu1 %v10419_v21 }
0x183b   :  { %11453 = vmatprep.subr.mxu1 %v12675_v15 }
0x18eb   :  { %v11404_v35 = vpop.f32.mrf.mxu1 }
0x18ec   :  { %v2958_v27 = vadd.f32 %v11404_v35, %v2671_v29 }
0x18ed   :  { %v2948_v37 = vpop.f32.mrf.mxu1 }
0x18ee   :  { %v2966_v38 = vadd.f32 %v10409_v34, %v2958_v27  ;;  %v2957_v39 = vadd.f32 %v2948_v37, %v2670_v36  ;;  %v3452_v36 = vld [vmem:[%s13145_s11 + $0x18] sm:$0xff]  ;;  %v3451_v27 = vld [vmem:[%s13145_s11 + $0x10] sm:$0xff]  ;;  %v3344_v37 = vld [vmem:[%s13140_s18 + $0x8] sm:$0xff] }
0x18f0   :  { %v2965_v40 = vadd.f32 %v10409_v34, %v2957_v39  ;;  %v2968_v24 = vadd.f32 %v2966_v38, %v12961_v1  ;;  %v3345_v38 = vld [vmem:[%s13140_s18 + $0x10] sm:$0x3]  ;;  %v3450_v39 = vld [vmem:[%s13145_s11 + $0x8] sm:$0xff]  ;;  %s13265_s18 = sld [smem:[%s14770_s0 + %s12684_s15]]  }
0x18f1   :  { %s13542_s15 = sld [smem:[%s14770_s0 + %s12687_s3]]  }
0x18f2   :  { %v2976_v41 = vsel %vm193_vm0, %v2968_v24, 0.0  ;;  %v2967_v42 = vadd.f32 %v2965_v40, %v12959_v0  ;;  %v3449_v40 = vld [vmem:[%s13145_s11] sm:$0xff] }
0x18f3   :  { %2977 = vadd.xlane.f32.xlu0 %v2976_v41 }
0x18f4   :  { %v2973_v43 = vsel %vm193_vm0, %v2967_v42, 0.0 }
0x18f5   :  { %2974 = vadd.xlane.f32.xlu1 %v2973_v43 }
0x18f6   :  { %v13272_v17 = vld [vmem:[%s13265_s18 + $0x8] sm:$0xff] }
0x197c   :  { %v2978_v10 = vpop.xlane.xlu0 %2977 }
0x197d   :  { %v2980_v44 = vmul.f32 0.03125, %v2978_v10  ;;  %v3341_v10 = vld [vmem:[%s10275_s8 + $0x8] sm:$0xff] }
0x197e   :  { %v2975_v45 = vpop.xlane.xlu1 %2974 }
0x197f   :  { %v2982_v46 = vsub.f32 %v2968_v24, %v2980_v44  ;;  %v2979_v47 = vmul.f32 0.03125, %v2975_v45  ;;  %v3340_v24 = vld [vmem:[%s10275_s8] sm:$0xff] }
0x1981   :  { %v2981_v28 = vsub.f32 %v2967_v42, %v2979_v47  ;;  %v2984_v48 = vmul.f32 %v2982_v46, %v2982_v46  ;;  %v3342_v47 = vld [vmem:[%s10275_s8 + $0x10] sm:$0x3] }
0x1983   :  { %v2988_v1 = vsel %vm193_vm0, %v2984_v48, 0.0  ;;  %v2983_v49 = vmul.f32 %v2981_v28, %v2981_v28 }
0x1984   :  { %2989 = vadd.xlane.f32.xlu0 %v2988_v1 }
0x1985   :  { %v2985_v0 = vsel %vm193_vm0, %v2983_v49, 0.0 }
0x1986   :  { %2986 = vadd.xlane.f32.xlu1 %v2985_v0 }
0x1a0d   :  { %v2990_v55 = vpop.xlane.xlu0 %2989 }
0x1a0e   :  { %v2992_v56 = vmul.f32 0.03125, %v2990_v55 }
0x1a0f   :  { %v2987_v57 = vpop.xlane.xlu1 %2986 }
0x1a10   :  { %v2994_v58 = vadd.f32 1e-05, %v2992_v56  ;;  %v2991_v59 = vmul.f32 0.03125, %v2987_v57 }
0x1a12   :  { %12395 = vrsqrt.f32 %v2994_v58  ;;  %v2993_v60 = vadd.f32 1e-05, %v2991_v59 }
0x1a14   :  { %12397 = vrsqrt.f32 %v2993_v60 }
0x1a1f   :  { %v12396_v61 = vpop.eup %12395 }
0x1a20   :  { %v2998_v63 = vmul.f32 %v12396_v61, %v2982_v46 }
0x1a21   :  { %v12398_v6 = vpop.eup %12397 }
0x1a22   :  { %v2997_v3 = vmul.f32 %v12398_v6, %v2981_v28  ;;  %v3006_v4 = vmul.f32 %v10412_v62, %v2998_v63 }
0x1a24   :  { %v3005_v9 = vmul.f32 %v10412_v62, %v2997_v3  ;;  %v13116_v12 = vadd.f32 %v10413_v7, %v3006_v4  ;;  %v13268_v4 = vld [vmem:[%s13265_s18] sm:$0xff] }
0x1a26   :  { %v13114_v11 = vadd.f32 %v10413_v7, %v3005_v9 }
0x1a28   :  { %11413 = vmatprep.mubr.msk.f32.mxu0 %vm193_vm0, %v13114_v11 }
0x1a29   :  { %11414 = vmatmul.mubr.msk.f32.vlgmr.msra.gmra.mxu0 %vm193_vm0, %v13116_v12 }
0x1a2a   :  { %11436 = vmatpush3.msra.mxu0 %v3259_v13  ;;  %11439 = vmatprep.mubr.msk.f32.mxu0 %vm12678_vm4, %v12675_v15 }
0x1a2b   :  { %11437 = vmatprep.subr.mxu0 %v12675_v15 }
0x1a2c   :  { %11438 = vmatpush3.msra.mxu0 %v3258_v14 }
0x1a2d   :  { %11440 = vmatmul.mubr.msk.f32.vlgmr.msra.gmra.mxu0 %vm374_vm2, %v3257_v16  ;;  %11442 = vmatprep.subr.mxu0 %v12675_v15 }
0x1a2e   :  { %11444 = vmatprep.mubr.msk.f32.mxu0 %vm12678_vm4, %v12675_v15 }
0x1ae9   :  { %v11415_v22 = vpop.f32.mrf.mxu0 }
0x1aea   :  { %v3117_v23 = vadd.f32 %v11415_v22, %v10428_v8 }
0x1aeb   :  { %v3111_v25 = vpop.f32.mrf.mxu0 }
0x1aec   :  { %v3112_v29 = vadd.f32 %v10428_v8, %v3111_v25  ;;  %v3121_v34 = vmax.f32 %v3117_v23, 0.0  ;;  %v13277_v23 = vld [vmem:[%s13265_s18 + $0x10] sm:$0x3] }
0x1aed   :  { %v3336_v30 = vpop.f32.mrf.mxu0 }
0x1aee   :  { %v3120_v31 = vmax.f32 %v3112_v29, 0.0  ;;  %v3337_v32 = vadd.f32 %v10438_v26, %v3336_v30 }
0x1aef   :  { %v11441_v35 = vpop.f32.mrf.mxu0 }
0x1af0   :  { %11432 = vmatprep.mubr.msk.f32.mxu1 %vm1588_vm3, %v3120_v31  ;;  %11443 = vmatpush3.msk.msra.mxu0 %vm3356_vm5, %v3337_v32 }
0x1af1   :  { %11433 = vmatmul.mubr.msk.f32.vlgmr.msra.gmra.mxu1 %vm1588_vm3, %v3121_v34  ;;  %11445 = vmatmul.mubr.msk.f32.vlgmr.msra.gmra.mxu0 %vm3346_vm6, %v3343_v33 }
0x1af2   :  { %11447 = vmatprep.mubr.msk.f32.mxu0 %vm12678_vm4, %v12675_v15  ;;  %11454 = vmatpush3.msra.mxu1 %v3452_v36 }
0x1af3   :  { %11455 = vmatprep.subr.mxu1 %v12675_v15  ;;  %11461 = vmatprep.mubr.msk.f32.mxu1 %vm12678_vm4, %v12675_v15 }
0x1af4   :  { %11456 = vmatpush3.msra.mxu1 %v3451_v27  ;;  %11470 = vmatprep.subr.mxu0 %v12675_v15 }
0x1af5   :  { %11448 = vmatmul.mubr.msk.f32.gmra.mxu0 %vm3346_vm6, %v3344_v37  ;;  %11457 = vmatprep.subr.mxu1 %v12675_v15 }
0x1af6   :  { %11450 = vmatprep.mubr.msk.f32.mxu0 %vm12678_vm4, %v12675_v15  ;;  %11458 = vmatpush3.msra.mxu1 %v3450_v39 }
0x1af7   :  { %11459 = vmatprep.subr.mxu1 %v12675_v15 }
0x1af8   :  { %11460 = vmatpush3.msra.mxu1 %v3449_v40 }
0x1af9   :  { %11451 = vmatmul.mubr.msk.f32.gmra.mxu0 %vm3346_vm6, %v3345_v38  ;;  %11485 = vmatprep.subr.mxu1 %v12675_v15 }
0x1afa   :  { %11476 = vmatprep.mubr.msk.f32.mxu0 %vm12678_vm4, %v12675_v15 }
0x1bb1   :  { %v3426_v41 = vpop.f32.mrf.mxu0  ;;  %v13195_v49 = vpop.f32.mrf.mxu1 }
0x1bb2   :  { %v13177_v42 = vadd.f32 %v3426_v41, %v3340_v24 }
0x1bb3   :  { %v11446_v43 = vpop.f32.mrf.mxu0  ;;  %v13202_v0 = vpop.f32.mrf.mxu1 }
0x1bb4   :  { %11462 = vmatmul.mubr.msk.f32.vlgmr.msra.gmra.mxu1 %vm193_vm0, %v13177_v42 }
0x1bb5   :  { %v3431_v44 = vpop.f32.mrf.mxu0  ;;  %11464 = vmatprep.mubr.msk.f32.mxu1 %vm12678_vm4, %v12675_v15 }
0x1bb6   :  { %v13183_v45 = vadd.f32 %v3431_v44, %v3341_v10 }
0x1bb7   :  { %v11449_v46 = vpop.f32.mrf.mxu0 }
0x1bb8   :  { %11465 = vmatmul.mubr.msk.f32.gmra.mxu1 %vm193_vm0, %v13183_v45 }
0x1bb9   :  { %v3436_v28 = vpop.f32.mrf.mxu0  ;;  %11467 = vmatprep.mubr.msk.f32.mxu1 %vm12678_vm4, %v12675_v15 }
0x1bba   :  { %v13189_v48 = vadd.f32 %v3436_v28, %v3342_v47 }
0x1bbb   :  { %v11452_v1 = vpop.f32.mrf.mxu0 }
0x1bbc   :  { %11468 = vmatmul.mubr.msk.f32.gmra.mxu1 %vm193_vm0, %v13189_v48 }
0x1bbd   :  { %11491 = vmatprep.mubr.msk.f32.mxu1 %vm12678_vm4, %v12675_v15 }
0x1c74   :  { %v3535_v50 = vpop.f32.mrf.mxu1 }
0x1c75   :  { %v13215_v56 = vadd.f32 %v10444_v52, %v3535_v50 }
0x1c76   :  { %v11463_v51 = vpop.f32.mrf.mxu1 }
0x1c78   :  { %v3540_v53 = vpop.f32.mrf.mxu1 }
0x1c79   :  { %v13205_v18 = vadd.f32 %v10444_v52, %v3540_v53 }
0x1c7a   :  { %v11466_v54 = vpop.f32.mrf.mxu1 }
0x1c7b   :  { %3559 = vrot.lane.b32.xlu0 %v13205_v18, %s12653_s14 }
0x1c7c   :  { %v3545_v5 = vpop.f32.mrf.mxu1 }
0x1c7d   :  { %v13209_v2 = vadd.f32 %v10444_v52, %v3545_v5 }
0x1c7e   :  { %v11469_v55 = vpop.f32.mrf.mxu1 }
0x1c7f   :  { %3803 = vrot.lane.b32.xlu0 %v13205_v18, %s12657_s21  ;;  %3561 = vrot.lane.b32.xlu1 %v13209_v2, %s12653_s14 }
0x1c83   :  { %3795 = vrot.lane.b32.xlu0 %v13215_v56, %s12656_s20  ;;  %3557 = vrot.lane.b32.xlu1 %v13215_v56, %s12653_s14 }
0x1c87   :  { %3799 = vrot.lane.b32.xlu0 %v13209_v2, %s12656_s20  ;;  %3805 = vrot.lane.b32.xlu1 %v13209_v2, %s12657_s21 }
0x1c8b   :  { %3801 = vrot.lane.b32.xlu1 %v13215_v56, %s12657_s21 }
0x1c8f   :  { %3797 = vrot.lane.b32.xlu1 %v13205_v18, %s12656_s20 }
0x1ced   :  { %v3560_v58 = vpop.permute.xlu0 %3559 }
0x1cf1   :  { %v3562_v57 = vpop.permute.xlu1 %3561  ;;  %v3804_v61 = vpop.permute.xlu0 %3803 }
0x1cf2   :  { %11471 = vmatpush3.xpose.msk.msra.mxu0 %vm286_vm1, %v3562_v57 }
0x1cf3   :  { %11472 = vmatprep.subr.mxu0 %v12675_v15 }
0x1cf5   :  { %v3558_v59 = vpop.permute.xlu1 %3557  ;;  %v3796_v63 = vpop.permute.xlu0 %3795 }
0x1cf6   :  { %11473 = vmatpush3.xpose.msk.msra.mxu0 %vm286_vm1, %v3560_v58 }
0x1cf7   :  { %11474 = vmatprep.subr.mxu0 %v12675_v15 }
0x1cf9   :  { %v3806_v60 = vpop.permute.xlu1 %3805  ;;  %v3800_v3 = vpop.permute.xlu0 %3799 }
0x1cfa   :  { %11475 = vmatpush3.xpose.msk.msra.mxu0 %vm286_vm1, %v3558_v59 }
0x1cfb   :  { %11500 = vmatprep.subr.mxu0 %v12675_v15 }
0x1cfd   :  { %11477 = vmatmul.mubr.msk.f32.vlgmr.msra.gmra.mxu0 %vm286_vm1, %v13215_v56  ;;  %v3802_v62 = vpop.permute.xlu1 %3801 }
0x1cfe   :  { %11501 = vmatpush3.xpose.msk.msra.mxu0 %vm286_vm1, %v3806_v60  ;;  %11479 = vmatprep.mubr.msk.f32.mxu0 %vm12678_vm4, %v12675_v15 }
0x1cff   :  { %11502 = vmatprep.subr.mxu0 %v12675_v15 }
0x1d01   :  { %11480 = vmatmul.mubr.msk.f32.gmra.mxu0 %vm286_vm1, %v13205_v18  ;;  %v3798_v6 = vpop.permute.xlu1 %3797 }
0x1d02   :  { %11503 = vmatpush3.xpose.msk.msra.mxu0 %vm286_vm1, %v3804_v61  ;;  %11482 = vmatprep.mubr.msk.f32.mxu0 %vm12678_vm4, %v12675_v15 }
0x1d03   :  { %11504 = vmatprep.subr.mxu0 %v12675_v15 }
0x1d05   :  { %11483 = vmatmul.mubr.msk.f32.gmra.mxu0 %vm286_vm1, %v13209_v2 }
0x1d06   :  { %11505 = vmatpush3.xpose.msk.msra.mxu0 %vm286_vm1, %v3802_v62  ;;  %11506 = vmatprep.mubr.msk.f32.mxu0 %vm12678_vm4, %v12675_v15 }
0x1d07   :  { %11530 = vmatprep.subr.mxu0 %v12675_v15 }
0x1d09   :  { %11507 = vmatmul.mubr.msk.f32.vlgmr.msra.gmra.mxu0 %vm286_vm1, %v3796_v63 }
0x1d0a   :  { %11509 = vmatprep.mubr.msk.f32.mxu0 %vm12678_vm4, %v12675_v15 }
0x1d0d   :  { %11510 = vmatmul.mubr.msk.f32.gmra.mxu0 %vm286_vm1, %v3798_v6 }
0x1d0e   :  { %11512 = vmatprep.mubr.msk.f32.mxu0 %vm12678_vm4, %v12675_v15 }
0x1d11   :  { %11513 = vmatmul.mubr.msk.f32.gmra.mxu0 %vm286_vm1, %v3800_v3 }
0x1d12   :  { %11532 = vmatprep.mubr.msk.f32.mxu0 %vm12678_vm4, %v12675_v15 }
0x1dbd   :  { %v3641_v7 = vpop.f32.mrf.mxu0 }
0x1dbe   :  { %v3655_v9 = vmul.f32 0.35355338, %v3641_v7 }
0x1dbf   :  { %v11478_v13 = vpop.f32.mrf.mxu0 }
0x1dc0   :  { %v3658_v14 = vadd.f32 %v3655_v9, %v13268_v4 }
0x1dc1   :  { %v3646_v16 = vpop.f32.mrf.mxu0 }
0x1dc2   :  { %v3656_v19 = vmul.f32 0.35355338, %v3646_v16  ;;  %v3662_v20 = vsel %vm3661_vm7, %v3658_v14, -inf }
0x1dc3   :  { %3663 = vmax.xlane.f32.xlu1 %v3662_v20  ;;  %v11481_v21 = vpop.f32.mrf.mxu0 }
0x1dc4   :  { %v3659_v8 = vadd.f32 %v3656_v19, %v13272_v17 }
0x1dc5   :  { %v3651_v22 = vpop.f32.mrf.mxu0 }
0x1dc6   :  { %v3657_v25 = vmul.f32 0.35355338, %v3651_v22  ;;  %v3665_v26 = vsel %vm3661_vm7, %v3659_v8, -inf }
0x1dc7   :  { %3666 = vmax.xlane.f32.xlu0 %v3665_v26  ;;  %v11484_v29 = vpop.f32.mrf.mxu0 }
0x1dc8   :  { %v3660_v30 = vadd.f32 %v3657_v25, %v13277_v23 }
0x1dc9   :  { %v3885_v31 = vpop.f32.mrf.mxu0 }
0x1dca   :  { %v3899_v32 = vmul.f32 0.35355338, %v3885_v31  ;;  %v3669_v33 = vsel %vm3668_vm8, %v3660_v30, -inf }
0x1dcb   :  { %3670 = vmax.xlane.f32.xlu0 %v3669_v33  ;;  %v11508_v34 = vpop.f32.mrf.mxu0 }
0x1dcc   :  { %v3902_v35 = vadd.f32 %v3899_v32, %v13268_v4 }
0x1dcd   :  { %v3890_v36 = vpop.f32.mrf.mxu0 }
0x1dce   :  { %v3900_v27 = vmul.f32 0.35355338, %v3890_v36  ;;  %v3905_v37 = vsel %vm3661_vm7, %v3902_v35, -inf }
0x1dcf   :  { %3906 = vmax.xlane.f32.xlu1 %v3905_v37  ;;  %v11511_v38 = vpop.f32.mrf.mxu0 }
0x1dd0   :  { %v3903_v39 = vadd.f32 %v3900_v27, %v13272_v17 }
0x1dd1   :  { %v3895_v40 = vpop.f32.mrf.mxu0 }
0x1dd2   :  { %v3901_v24 = vmul.f32 0.35355338, %v3895_v40  ;;  %v3908_v41 = vsel %vm3661_vm7, %v3903_v39, -inf }
0x1dd3   :  { %3909 = vmax.xlane.f32.xlu0 %v3908_v41  ;;  %v11514_v43 = vpop.f32.mrf.mxu0 }
0x1dd4   :  { %v3904_v10 = vadd.f32 %v3901_v24, %v13277_v23 }
0x1dd6   :  { %v3911_v44 = vsel %vm3668_vm8, %v3904_v10, -inf }
0x1dd7   :  { %3912 = vmax.xlane.f32.xlu1 %v3911_v44 }
0x1de8   :  { %3698 = vrot.lane.b32.xlu1 %v13205_v18, %s14783_s19 }
0x1de9   :  { %3700 = vrot.lane.b32.xlu0 %v13209_v2, %s14783_s19 }
0x1dec   :  { %3696 = vrot.lane.b32.xlu1 %v13215_v56, %s14783_s19  ;;  %s14044_s19 = sld [smem:[%s14770_s0 + %s12665_s2]]  }
0x1ded   :  { %3942 = vrot.lane.b32.xlu0 %v13209_v2, %s14781_s26 }
0x1e4c   :  { %v3664_v46 = vpop.xlane.xlu1 %3663 }
0x1e4d   :  { %v3672_v47 = vsub.f32 %v3658_v14, %v3664_v46 }
0x1e4f   :  { %v3675_v28 = vmul.f32 1.442695, %v3672_v47 }
0x1e50   :  { %v3667_v1 = vpop.xlane.xlu0 %3666 }
0x1e51   :  { %12399 = vpow2.f32 %v3675_v28  ;;  %v3673_v50 = vsub.f32 %v3659_v8, %v3667_v1 }
0x1e53   :  { %v3677_v51 = vmul.f32 1.442695, %v3673_v50  ;;  %v3549_v50 = vld [vmem:[%s13347_s16] sm:$0xff] }
0x1e54   :  { %v3671_v52 = vpop.xlane.xlu0 %3670 }
0x1e55   :  { %12401 = vpow2.f32 %v3677_v51  ;;  %v3674_v53 = vsub.f32 %v3660_v30, %v3671_v52  ;;  %v3550_v51 = vld [vmem:[%s13347_s16 + $0x8] sm:$0xff] }
0x1e56   :  { %11531 = vmatpush3.msra.mxu0 %v3550_v51 }
0x1e57   :  { %v3679_v54 = vmul.f32 1.442695, %v3674_v53  ;;  %11552 = vmatprep.subr.mxu0 %v12675_v15 }
0x1e58   :  { %v3907_v5 = vpop.xlane.xlu1 %3906 }
0x1e59   :  { %12403 = vpow2.f32 %v3679_v54  ;;  %v3914_v55 = vsub.f32 %v3902_v35, %v3907_v5 }
0x1e5b   :  { %v3917_v57 = vmul.f32 1.442695, %v3914_v55 }
0x1e5c   :  { %v3910_v58 = vpop.xlane.xlu0 %3909 }
0x1e5d   :  { %12405 = vpow2.f32 %v3917_v57  ;;  %v3915_v59 = vsub.f32 %v3903_v39, %v3910_v58 }
0x1e5e   :  { %v12400_v60 = vpop.eup %12399 }
0x1e5f   :  { %v3919_v61 = vmul.f32 1.442695, %v3915_v59  ;;  %v3681_v62 = vsel %vm3661_vm7, %v12400_v60, 0.0 }
0x1e60   :  { %v3701_v63 = vpop.permute.xlu0 %3700  ;;  %3682 = vadd.xlane.f32.xlu0 %v3681_v62  ;;  %v3913_v6 = vpop.xlane.xlu1 %3912 }
0x1e61   :  { %12407 = vpow2.f32 %v3919_v61  ;;  %v3916_v3 = vsub.f32 %v3904_v10, %v3913_v6  ;;  %11486 = vmatpush3.msk.msra.mxu1 %vm3356_vm5, %v3701_v63 }
0x1e62   :  { %v12402_v7 = vpop.eup %12401  ;;  %11487 = vmatprep.subr.mxu1 %v12675_v15 }
0x1e63   :  { %v3921_v9 = vmul.f32 1.442695, %v3916_v3  ;;  %v3684_v13 = vsel %vm3661_vm7, %v12402_v7, 0.0 }
0x1e64   :  { %3685 = vadd.xlane.f32.xlu1 %v3684_v13  ;;  %v3699_v14 = vpop.permute.xlu1 %3698  ;;  %v3943_v30 = vpop.permute.xlu0 %3942 }
0x1e65   :  { %12409 = vpow2.f32 %v3921_v9  ;;  %11488 = vmatpush3.msra.mxu1 %v3699_v14 }
0x1e66   :  { %v12404_v16 = vpop.eup %12403  ;;  %11489 = vmatprep.subr.mxu1 %v12675_v15 }
0x1e67   :  { %v3687_v19 = vsel %vm3668_vm8, %v12404_v16, 0.0 }
0x1e68   :  { %3688 = vadd.xlane.f32.xlu0 %v3687_v19  ;;  %v3697_v20 = vpop.permute.xlu1 %3696 }
0x1e69   :  { %11490 = vmatpush3.msra.mxu1 %v3697_v20 }
0x1e6a   :  { %v12406_v21 = vpop.eup %12405  ;;  %11515 = vmatprep.subr.mxu1 %v12675_v15 }
0x1e6b   :  { %v3923_v8 = vsel %vm3661_vm7, %v12406_v21, 0.0 }
0x1e6c   :  { %3924 = vadd.xlane.f32.xlu1 %v3923_v8 }
0x1e6e   :  { %v12408_v22 = vpop.eup %12407 }
0x1e6f   :  { %v3926_v25 = vsel %vm3661_vm7, %v12408_v22, 0.0 }
0x1e70   :  { %3927 = vadd.xlane.f32.xlu0 %v3926_v25 }
0x1e72   :  { %v12410_v26 = vpop.eup %12409 }
0x1e73   :  { %v3929_v29 = vsel %vm3668_vm8, %v12410_v26, 0.0 }
0x1e74   :  { %3930 = vadd.xlane.f32.xlu1 %v3929_v29 }
0x1e85   :  { %3940 = vrot.lane.b32.xlu1 %v13205_v18, %s14781_s26 }
0x1e86   :  { %3938 = vrot.lane.b32.xlu0 %v13215_v56, %s14781_s26  ;;  %s14785_s26 = smov 64  }
0x1e89   :  { %4225 = vrot.lane.b32.xlu1 %v13209_v2, %s14779_s30 }
0x1e8a   :  { %4223 = vrot.lane.b32.xlu0 %v13205_v18, %s14779_s30 }
0x1e8d   :  { %4221 = vrot.lane.b32.xlu1 %v13215_v56, %s14779_s30 }
0x1e8e   :  { %4215 = vrot.lane.b32.xlu0 %v13215_v56, %s14777_s27 }
0x1e91   :  { %4217 = vrot.lane.b32.xlu1 %v13205_v18, %s14777_s27 }
0x1e92   :  { %4219 = vrot.lane.b32.xlu0 %v13209_v2, %s14777_s27 }
0x1ee9   :  { %v3683_v31 = vpop.xlane.xlu0 %3682 }
0x1eea   :  { %12411 = vrcp.f32 %v3683_v31 }
0x1eed   :  { %v3686_v32 = vpop.xlane.xlu1 %3685 }
0x1eee   :  { %12413 = vrcp.f32 %v3686_v32 }
0x1ef1   :  { %v3689_v33 = vpop.xlane.xlu0 %3688 }
0x1ef2   :  { %12415 = vrcp.f32 %v3689_v33 }
0x1ef5   :  { %v3925_v34 = vpop.xlane.xlu1 %3924 }
0x1ef6   :  { %12417 = vrcp.f32 %v3925_v34 }
0x1ef7   :  { %v12412_v35 = vpop.eup %12411 }
0x1ef8   :  { %v3693_v36 = vmul.f32 %v12412_v35, %v12400_v60 }
0x1ef9   :  { %v3928_v27 = vpop.xlane.xlu0 %3927 }
0x1efa   :  { %12419 = vrcp.f32 %v3928_v27  ;;  %11492 = vmatmul.mubr.msk.f32.vlgmr.msra.gmra.mxu1 %vm3661_vm7, %v3693_v36 }
0x1efb   :  { %v12414_v37 = vpop.eup %12413  ;;  %11516 = vmatpush3.msk.msra.mxu1 %vm3356_vm5, %v3943_v30  ;;  %11494 = vmatprep.mubr.msk.f32.mxu1 %vm12678_vm4, %v12675_v15 }
0x1efc   :  { %v3694_v38 = vmul.f32 %v12414_v37, %v12402_v7  ;;  %11517 = vmatprep.subr.mxu1 %v12675_v15 }
0x1efd   :  { %v3931_v39 = vpop.xlane.xlu1 %3930  ;;  %v3939_v44 = vpop.permute.xlu0 %3938 }
0x1efe   :  { %12421 = vrcp.f32 %v3931_v39  ;;  %11495 = vmatmul.mubr.msk.f32.gmra.mxu1 %vm3661_vm7, %v3694_v38 }
0x1eff   :  { %v12416_v40 = vpop.eup %12415  ;;  %11497 = vmatprep.mubr.msk.f32.mxu1 %vm12678_vm4, %v12675_v15 }
0x1f00   :  { %v3695_v24 = vmul.f32 %v12416_v40, %v12404_v16 }
0x1f01   :  { %v3941_v41 = vpop.permute.xlu1 %3940  ;;  %v4224_v62 = vpop.permute.xlu0 %4223 }
0x1f02   :  { %11498 = vmatmul.mubr.msk.f32.gmra.mxu1 %vm3661_vm7, %v3695_v24 }
0x1f03   :  { %v12418_v43 = vpop.eup %12417  ;;  %11518 = vmatpush3.msra.mxu1 %v3941_v41  ;;  %11521 = vmatprep.mubr.msk.f32.mxu1 %vm12678_vm4, %v12675_v15 }
0x1f04   :  { %v3935_v10 = vmul.f32 %v12418_v43, %v12406_v21  ;;  %11519 = vmatprep.subr.mxu1 %v12675_v15 }
0x1f05   :  { %11520 = vmatpush3.msra.mxu1 %v3939_v44  ;;  %v4226_v59 = vpop.permute.xlu1 %4225  ;;  %v4216_v9 = vpop.permute.xlu0 %4215 }
0x1f06   :  { %11522 = vmatmul.mubr.msk.f32.vlgmr.msra.gmra.mxu1 %vm3661_vm7, %v3935_v10  ;;  %11541 = vmatprep.subr.mxu1 %v12675_v15 }
0x1f07   :  { %v12420_v46 = vpop.eup %12419  ;;  %11524 = vmatprep.mubr.msk.f32.mxu1 %vm12678_vm4, %v12675_v15  ;;  %11542 = vmatpush3.msra.mxu1 %v3549_v50 }
0x1f08   :  { %v3936_v47 = vmul.f32 %v12420_v46, %v12408_v22  ;;  %11567 = vmatprep.subr.mxu1 %v12675_v15 }
0x1f09   :  { %v4222_v3 = vpop.permute.xlu1 %4221  ;;  %v4220_v14 = vpop.permute.xlu0 %4219 }
0x1f0a   :  { %11525 = vmatmul.mubr.msk.f32.gmra.mxu1 %vm3661_vm7, %v3936_v47 }
0x1f0b   :  { %v12422_v28 = vpop.eup %12421  ;;  %11527 = vmatprep.mubr.msk.f32.mxu1 %vm12678_vm4, %v12675_v15 }
0x1f0c   :  { %v3937_v1 = vmul.f32 %v12422_v28, %v12410_v26 }
0x1f0d   :  { %v4218_v13 = vpop.permute.xlu1 %4217 }
0x1f0e   :  { %11528 = vmatmul.mubr.msk.f32.gmra.mxu1 %vm3661_vm7, %v3937_v1 }
0x1f0f   :  { %11543 = vmatprep.mubr.msk.f32.mxu1 %vm12678_vm4, %v12675_v15 }
0x1fba   :  { %v3781_v52 = vpop.f32.mrf.mxu1 }
0x1fbb   :  { %11544 = vmatmul.mubr.msk.f32.vlgmr.msra.gmra.mxu1 %vm286_vm1, %v3781_v52 }
0x1fbc   :  { %v11493_v53 = vpop.f32.mrf.mxu1  ;;  %11546 = vmatprep.mubr.msk.f32.mxu1 %vm12678_vm4, %v12675_v15 }
0x1fbe   :  { %v3786_v54 = vpop.f32.mrf.mxu1 }
0x1fbf   :  { %11547 = vmatmul.mubr.msk.f32.gmra.mxu1 %vm286_vm1, %v3786_v54 }
0x1fc0   :  { %v11496_v5 = vpop.f32.mrf.mxu1  ;;  %11549 = vmatprep.mubr.msk.f32.mxu1 %vm12678_vm4, %v12675_v15 }
0x1fc2   :  { %v3791_v55 = vpop.f32.mrf.mxu1 }
0x1fc3   :  { %11550 = vmatmul.mubr.msk.f32.gmra.mxu1 %vm286_vm1, %v3791_v55 }
0x1fc4   :  { %v11499_v57 = vpop.f32.mrf.mxu1  ;;  %11573 = vmatprep.mubr.msk.f32.mxu1 %vm12678_vm4, %v12675_v15 }
0x1fc6   :  { %v4023_v58 = vpop.f32.mrf.mxu1 }
0x1fc7   :  { %11533 = vmatmul.mubr.msk.f32.vlgmr.msra.gmra.mxu0 %vm286_vm1, %v4023_v58 }
0x1fc8   :  { %11553 = vmatpush3.xpose.msk.msra.mxu0 %vm286_vm1, %v4226_v59  ;;  %v11523_v60 = vpop.f32.mrf.mxu1  ;;  %11535 = vmatprep.mubr.msk.f32.mxu0 %vm12678_vm4, %v12675_v15 }
0x1fc9   :  { %11554 = vmatprep.subr.mxu0 %v12675_v15 }
0x1fca   :  { %v4028_v61 = vpop.f32.mrf.mxu1 }
0x1fcb   :  { %11536 = vmatmul.mubr.msk.f32.gmra.mxu0 %vm286_vm1, %v4028_v61 }
0x1fcc   :  { %11555 = vmatpush3.xpose.msk.msra.mxu0 %vm286_vm1, %v4224_v62  ;;  %v11526_v63 = vpop.f32.mrf.mxu1  ;;  %11538 = vmatprep.mubr.msk.f32.mxu0 %vm12678_vm4, %v12675_v15 }
0x1fcd   :  { %11556 = vmatprep.subr.mxu0 %v12675_v15 }
0x1fce   :  { %v4033_v6 = vpop.f32.mrf.mxu1 }
0x1fcf   :  { %11539 = vmatmul.mubr.msk.f32.gmra.mxu0 %vm286_vm1, %v4033_v6 }
0x1fd0   :  { %11557 = vmatpush3.xpose.msk.msra.mxu0 %vm286_vm1, %v4222_v3  ;;  %v11529_v7 = vpop.f32.mrf.mxu1  ;;  %11558 = vmatprep.mubr.msk.f32.mxu0 %vm12678_vm4, %v12675_v15 }
0x1fd1   :  { %11582 = vmatprep.subr.mxu0 %v12675_v15 }
0x1fd3   :  { %11559 = vmatmul.mubr.msk.f32.vlgmr.msra.gmra.mxu0 %vm286_vm1, %v4216_v9 }
0x1fd4   :  { %11561 = vmatprep.mubr.msk.f32.mxu0 %vm12678_vm4, %v12675_v15 }
0x1fd7   :  { %11562 = vmatmul.mubr.msk.f32.gmra.mxu0 %vm286_vm1, %v4218_v13 }
0x1fd8   :  { %11564 = vmatprep.mubr.msk.f32.mxu0 %vm12678_vm4, %v12675_v15 }
0x1fdb   :  { %11565 = vmatmul.mubr.msk.f32.gmra.mxu0 %vm286_vm1, %v4220_v14 }
0x1fdc   :  { %11584 = vmatprep.mubr.msk.f32.mxu0 %vm12678_vm4, %v12675_v15 }
0x207b   :  { %v4201_v16 = vpop.f32.mrf.mxu1 }
0x207d   :  { %v11545_v19 = vpop.f32.mrf.mxu1 }
0x207f   :  { %v4206_v20 = vpop.f32.mrf.mxu1 }
0x2081   :  { %v11548_v21 = vpop.f32.mrf.mxu1 }
0x2083   :  { %v4211_v8 = vpop.f32.mrf.mxu1 }
0x2085   :  { %v11551_v22 = vpop.f32.mrf.mxu1 }
0x2087   :  { %v4112_v25 = vpop.f32.mrf.mxu0 }
0x2088   :  { %v13386_v26 = vadd.f32 %v4201_v16, %v4112_v25 }
0x2089   :  { %v11534_v29 = vpop.f32.mrf.mxu0 }
0x208b   :  { %v4117_v30 = vpop.f32.mrf.mxu0 }
0x208c   :  { %v13388_v31 = vadd.f32 %v4206_v20, %v4117_v30 }
0x208d   :  { %v11537_v32 = vpop.f32.mrf.mxu0 }
0x208f   :  { %v4122_v33 = vpop.f32.mrf.mxu0 }
0x2090   :  { %v13390_v34 = vadd.f32 %v4211_v8, %v4122_v33 }
0x2091   :  { %v11540_v35 = vpop.f32.mrf.mxu0 }
0x2093   :  { %v4305_v36 = vpop.f32.mrf.mxu0 }
0x2094   :  { %v4319_v27 = vmul.f32 0.35355338, %v4305_v36 }
0x2095   :  { %v11560_v37 = vpop.f32.mrf.mxu0 }
0x2096   :  { %v4322_v38 = vadd.f32 %v4319_v27, %v13268_v4  ;;  %v3551_v27 = vld [vmem:[%s13347_s16 + $0x10] sm:$0xff] }
0x2097   :  { %v4310_v39 = vpop.f32.mrf.mxu0  ;;  %11583 = vmatpush3.msra.mxu0 %v3551_v27 }
0x2098   :  { %v4320_v40 = vmul.f32 0.35355338, %v4310_v39  ;;  %v4325_v24 = vsel %vm3661_vm7, %v4322_v38, -inf  ;;  %11608 = vmatprep.subr.mxu0 %v12675_v15 }
0x2099   :  { %4326 = vmax.xlane.f32.xlu1 %v4325_v24  ;;  %v11563_v41 = vpop.f32.mrf.mxu0 }
0x209a   :  { %v4323_v43 = vadd.f32 %v4320_v40, %v13272_v17 }
0x209b   :  { %v4315_v10 = vpop.f32.mrf.mxu0 }
0x209c   :  { %v4321_v44 = vmul.f32 0.35355338, %v4315_v10  ;;  %v4328_v46 = vsel %vm3661_vm7, %v4323_v43, -inf }
0x209d   :  { %4329 = vmax.xlane.f32.xlu0 %v4328_v46  ;;  %v11566_v47 = vpop.f32.mrf.mxu0 }
0x209e   :  { %v4324_v28 = vadd.f32 %v4321_v44, %v13277_v23 }
0x20a0   :  { %v4331_v1 = vsel %vm3668_vm8, %v4324_v28, -inf }
0x20a1   :  { %4332 = vmax.xlane.f32.xlu0 %v4331_v1 }
0x20aa   :  { %4360 = vrot.lane.b32.xlu1 %v13205_v18, %s14775_s1 }
0x20ae   :  { %4358 = vrot.lane.b32.xlu1 %v13215_v56, %s14775_s1 }
0x20b7   :  { %4362 = vrot.lane.b32.xlu0 %v13209_v2, %s14775_s1  ;;  %s12702_s1 = smov 39  }
0x2122   :  { %v4327_v50 = vpop.xlane.xlu1 %4326 }
0x2123   :  { %v4334_v51 = vsub.f32 %v4322_v38, %v4327_v50 }
0x2125   :  { %v4337_v52 = vmul.f32 1.442695, %v4334_v51 }
0x2126   :  { %v4330_v53 = vpop.xlane.xlu0 %4329  ;;  %v4361_v57 = vpop.permute.xlu1 %4360 }
0x2127   :  { %12423 = vpow2.f32 %v4337_v52  ;;  %v4335_v54 = vsub.f32 %v4323_v43, %v4330_v53 }
0x2129   :  { %v4339_v5 = vmul.f32 1.442695, %v4335_v54 }
0x212a   :  { %v4333_v55 = vpop.xlane.xlu0 %4332  ;;  %v4359_v59 = vpop.permute.xlu1 %4358 }
0x212b   :  { %12425 = vpow2.f32 %v4339_v5  ;;  %v4336_v6 = vsub.f32 %v4324_v28, %v4333_v55 }
0x212d   :  { %v4341_v3 = vmul.f32 1.442695, %v4336_v6 }
0x212e   :  { %v4363_v58 = vpop.permute.xlu0 %4362 }
0x212f   :  { %11568 = vmatpush3.msk.msra.mxu1 %vm3356_vm5, %v4363_v58  ;;  %12427 = vpow2.f32 %v4341_v3 }
0x2130   :  { %11569 = vmatprep.subr.mxu1 %v12675_v15 }
0x2131   :  { %11570 = vmatpush3.msra.mxu1 %v4361_v57 }
0x2132   :  { %11571 = vmatprep.subr.mxu1 %v12675_v15 }
0x2133   :  { %11572 = vmatpush3.msra.mxu1 %v4359_v59 }
0x2134   :  { %v12424_v60 = vpop.eup %12423  ;;  %11593 = vmatprep.subr.mxu1 %v12675_v15 }
0x2135   :  { %v4343_v61 = vsel %vm3661_vm7, %v12424_v60, 0.0 }
0x2136   :  { %4344 = vadd.xlane.f32.xlu1 %v4343_v61 }
0x2138   :  { %v12426_v62 = vpop.eup %12425 }
0x2139   :  { %v4346_v63 = vsel %vm3661_vm7, %v12426_v62, 0.0 }
0x213a   :  { %4347 = vadd.xlane.f32.xlu0 %v4346_v63 }
0x213c   :  { %v12428_v7 = vpop.eup %12427 }
0x213d   :  { %v4349_v9 = vsel %vm3668_vm8, %v12428_v7, 0.0 }
0x2147   :  { %4557 = vrot.lane.b32.xlu1 %v13205_v18, %s14773_s28 }
0x2150   :  { %4559 = vrot.lane.b32.xlu0 %v13209_v2, %s14773_s28 }
0x2154   :  { %4555 = vrot.lane.b32.xlu0 %v13215_v56, %s14773_s28 }
0x2158   :  { %4551 = vrot.lane.b32.xlu0 %v13205_v18, %s14771_s29 }
0x216b   :  { %4350 = vadd.xlane.f32.xlu1 %v4349_v9 }
0x217c   :  { %4549 = vrot.lane.b32.xlu1 %v13215_v56, %s14771_s29 }
0x2180   :  { %4553 = vrot.lane.b32.xlu1 %v13209_v2, %s14771_s29 }
0x21bf   :  { %v4345_v13 = vpop.xlane.xlu1 %4344 }
0x21c0   :  { %12429 = vrcp.f32 %v4345_v13 }
0x21c3   :  { %v4348_v14 = vpop.xlane.xlu0 %4347  ;;  %v4558_v22 = vpop.permute.xlu1 %4557 }
0x21c4   :  { %12431 = vrcp.f32 %v4348_v14 }
0x21c7   :  { %v4560_v20 = vpop.permute.xlu0 %4559 }
0x21cb   :  { %v4556_v25 = vpop.permute.xlu0 %4555 }
0x21cd   :  { %v12430_v16 = vpop.eup %12429 }
0x21ce   :  { %v4355_v19 = vmul.f32 %v12430_v16, %v12424_v60 }
0x21cf   :  { %v4552_v35 = vpop.permute.xlu0 %4551 }
0x21d0   :  { %11574 = vmatmul.mubr.msk.f32.vlgmr.msra.gmra.mxu1 %vm3661_vm7, %v4355_v19 }
0x21d1   :  { %v12432_v21 = vpop.eup %12431  ;;  %11594 = vmatpush3.xpose.msk.msra.mxu1 %vm286_vm1, %v4560_v20  ;;  %11576 = vmatprep.mubr.msk.f32.mxu1 %vm12678_vm4, %v12675_v15 }
0x21d2   :  { %11595 = vmatprep.subr.mxu1 %v12675_v15  ;;  %v4356_v8 = vmul.f32 %v12432_v21, %v12426_v62 }
0x21d4   :  { %11577 = vmatmul.mubr.msk.f32.gmra.mxu1 %vm3661_vm7, %v4356_v8 }
0x21d5   :  { %11596 = vmatpush3.xpose.msk.msra.mxu1 %vm286_vm1, %v4558_v22  ;;  %11579 = vmatprep.mubr.msk.f32.mxu1 %vm12678_vm4, %v12675_v15 }
0x21d6   :  { %11597 = vmatprep.subr.mxu1 %v12675_v15 }
0x21d9   :  { %11598 = vmatpush3.xpose.msk.msra.mxu1 %vm286_vm1, %v4556_v25 }
0x21da   :  { %11623 = vmatprep.subr.mxu1 %v12675_v15 }
0x21f4   :  { %v4351_v29 = vpop.xlane.xlu1 %4350 }
0x21f5   :  { %12433 = vrcp.f32 %v4351_v29  ;;  %v10431_v29 = vld [vmem:[%s12936_s4 + $0x1] ss:$0 sm:$0xff]  ;;  %s12686_s4 = smov 24  }
0x21f6   :  { %s13516_s8 = sld [smem:[%s14770_s0 + %s12686_s4]]  }
0x21f8   :  { %v4550_v33 = vpop.permute.xlu1 %4549 }
0x21fc   :  { %v4554_v36 = vpop.permute.xlu1 %4553 }
0x2202   :  { %v12434_v30 = vpop.eup %12433 }
0x2203   :  { %v4357_v32 = vmul.f32 %v12434_v30, %v12428_v7  ;;  %v3201_v30 = vadd.f32 %v10431_v29, %v13202_v0 }
0x2205   :  { %11580 = vmatmul.mubr.msk.f32.gmra.mxu1 %vm3661_vm7, %v4357_v32  ;;  %v3206_v32 = vadd.f32 %v13195_v49, %v10431_v29 }
0x2206   :  { %11599 = vmatprep.mubr.msk.f32.mxu1 %vm12678_vm4, %v12675_v15 }
0x2209   :  { %11600 = vmatmul.mubr.msk.f32.vlgmr.msra.gmra.mxu1 %vm286_vm1, %v4550_v33  ;;  %v3209_v33 = vadd.f32 %v3201_v30, %v13114_v11 }
0x220a   :  { %11602 = vmatprep.mubr.msk.f32.mxu1 %vm12678_vm4, %v12675_v15 }
0x220d   :  { %11603 = vmatmul.mubr.msk.f32.gmra.mxu1 %vm286_vm1, %v4552_v35  ;;  %v13489_v35 = vadd.f32 %v3206_v32, %v13116_v12 }
0x220e   :  { %11605 = vmatprep.mubr.msk.f32.mxu1 %vm12678_vm4, %v12675_v15 }
0x2211   :  { %11606 = vmatmul.mubr.msk.f32.gmra.mxu1 %vm286_vm1, %v4554_v36  ;;  %v3552_v36 = vld [vmem:[%s13347_s16 + $0x18] sm:$0xff] }
0x2212   :  { %11625 = vmatprep.mubr.msk.f32.mxu1 %vm12678_vm4, %v12675_v15  ;;  %11624 = vmatpush3.msra.mxu1 %v3552_v36 }
0x2290   :  { %v4443_v37 = vpop.f32.mrf.mxu1 }
0x2291   :  { %11585 = vmatmul.mubr.msk.f32.vlgmr.msra.gmra.mxu0 %vm286_vm1, %v4443_v37 }
0x2292   :  { %v11575_v38 = vpop.f32.mrf.mxu1  ;;  %11587 = vmatprep.mubr.msk.f32.mxu0 %vm12678_vm4, %v12675_v15 }
0x2294   :  { %v4448_v39 = vpop.f32.mrf.mxu1 }
0x2295   :  { %11588 = vmatmul.mubr.msk.f32.gmra.mxu0 %vm286_vm1, %v4448_v39 }
0x2296   :  { %v11578_v40 = vpop.f32.mrf.mxu1  ;;  %11590 = vmatprep.mubr.msk.f32.mxu0 %vm12678_vm4, %v12675_v15 }
0x22c5   :  { %v4453_v24 = vpop.f32.mrf.mxu1 }
0x22c6   :  { %11591 = vmatmul.mubr.msk.f32.gmra.mxu0 %vm286_vm1, %v4453_v24 }
0x22c7   :  { %v11581_v41 = vpop.f32.mrf.mxu1  ;;  %11614 = vmatprep.mubr.msk.f32.mxu0 %vm12678_vm4, %v12675_v15 }
0x22c9   :  { %v4639_v43 = vpop.f32.mrf.mxu1 }
0x22ca   :  { %v4653_v10 = vmul.f32 0.35355338, %v4639_v43 }
0x22cb   :  { %v11601_v44 = vpop.f32.mrf.mxu1 }
0x22cc   :  { %v4656_v46 = vadd.f32 %v4653_v10, %v13268_v4 }
0x22cd   :  { %v4644_v47 = vpop.f32.mrf.mxu1 }
0x22ce   :  { %v4654_v28 = vmul.f32 0.35355338, %v4644_v47  ;;  %v4659_v1 = vsel %vm3661_vm7, %v4656_v46, -inf }
0x22cf   :  { %4660 = vmax.xlane.f32.xlu0 %v4659_v1  ;;  %v11604_v50 = vpop.f32.mrf.mxu1  ;;  %v10500_v1 = vld [vmem:[%s13516_s8] ss:$0 sm:$0xff] }
0x22d0   :  { %v4657_v51 = vadd.f32 %v4654_v28, %v13272_v17 }
0x22d1   :  { %v4649_v52 = vpop.f32.mrf.mxu1 }
0x22d2   :  { %v4655_v53 = vmul.f32 0.35355338, %v4649_v52  ;;  %v4662_v54 = vsel %vm3661_vm7, %v4657_v51, -inf }
0x22d3   :  { %4663 = vmax.xlane.f32.xlu1 %v4662_v54  ;;  %v11607_v5 = vpop.f32.mrf.mxu1 }
0x22d4   :  { %v4658_v55 = vadd.f32 %v4655_v53, %v13277_v23 }
0x22d6   :  { %v4665_v57 = vsel %vm3668_vm8, %v4658_v55, -inf }
0x22d7   :  { %4666 = vmax.xlane.f32.xlu0 %v4665_v57 }
0x22e4   :  { %4696 = vrot.lane.b32.xlu1 %v13209_v2, %s12665_s2 }
0x2351   :  { %v4532_v4 = vpop.f32.mrf.mxu0 }
0x2352   :  { %v13467_v58 = vadd.f32 %v4532_v4, %v13386_v26 }
0x2353   :  { %v11586_v59 = vpop.f32.mrf.mxu0 }
0x2355   :  { %v4537_v17 = vpop.f32.mrf.mxu0 }
0x2356   :  { %v13470_v60 = vadd.f32 %v4537_v17, %v13388_v31 }
0x2357   :  { %v11589_v61 = vpop.f32.mrf.mxu0 }
0x2358   :  { %v4661_v62 = vpop.xlane.xlu0 %4660 }
0x2359   :  { %v4668_v63 = vsub.f32 %v4656_v46, %v4661_v62 }
0x235b   :  { %v4671_v6 = vmul.f32 1.442695, %v4668_v63 }
0x235c   :  { %v4664_v23 = vpop.xlane.xlu1 %4663 }
0x235d   :  { %12435 = vpow2.f32 %v4671_v6  ;;  %v4669_v3 = vsub.f32 %v4657_v51, %v4664_v23 }
0x235f   :  { %v4673_v7 = vmul.f32 1.442695, %v4669_v3 }
0x2360   :  { %v4697_v9 = vpop.permute.xlu1 %4696  ;;  %v4667_v13 = vpop.xlane.xlu0 %4666 }
0x2361   :  { %12437 = vpow2.f32 %v4673_v7  ;;  %v4670_v2 = vsub.f32 %v4658_v55, %v4667_v13  ;;  %11609 = vmatpush3.msk.msra.mxu0 %vm3356_vm5, %v4697_v9 }
0x2362   :  { %11610 = vmatprep.subr.mxu0 %v12675_v15 }
0x2363   :  { %v4675_v26 = vmul.f32 1.442695, %v4670_v2 }
0x2365   :  { %12439 = vpow2.f32 %v4675_v26 }
0x236a   :  { %v12436_v31 = vpop.eup %12435 }
0x236b   :  { %v4677_v14 = vsel %vm3661_vm7, %v12436_v31, 0.0 }
0x236c   :  { %4678 = vadd.xlane.f32.xlu0 %v4677_v14  ;;  %v5057_v14 = vld [vmem:[%s13542_s15 + $0x10] sm:$0xff] }
0x236e   :  { %v12438_v16 = vpop.eup %12437 }
0x236f   :  { %v4680_v19 = vsel %vm3661_vm7, %v12438_v16, 0.0 }
0x2370   :  { %4681 = vadd.xlane.f32.xlu1 %v4680_v19  ;;  %v5055_v19 = vld [vmem:[%s13542_s15] sm:$0xff] }
0x2372   :  { %v12440_v20 = vpop.eup %12439 }
0x2373   :  { %v4683_v21 = vsel %vm3668_vm8, %v12440_v20, 0.0 }
0x2374   :  { %4684 = vadd.xlane.f32.xlu0 %v4683_v21 }
0x2381   :  { %4692 = vrot.lane.b32.xlu1 %v13215_v56, %s12665_s2  ;;  %v3215_v56 = vsel %vm193_vm0, %v3209_v33, 0.0 }
0x2386   :  { %v4542_v8 = vpop.f32.mrf.mxu0 }
0x2387   :  { %v13480_v22 = vadd.f32 %v4542_v8, %v13390_v34  ;;  %v3218_v34 = vsel %vm193_vm0, %v13489_v35, 0.0 }
0x2388   :  { %v11592_v25 = vpop.f32.mrf.mxu0 }
0x238a   :  { %4694 = vrot.lane.b32.xlu0 %v13205_v18, %s12665_s2 }
0x23a5   :  { %3216 = vadd.xlane.f32.xlu1 %v3215_v56 }
0x23a9   :  { %3219 = vadd.xlane.f32.xlu0 %v3218_v34 }
0x23f5   :  { %v4679_v18 = vpop.xlane.xlu0 %4678 }
0x23f6   :  { %12441 = vrcp.f32 %v4679_v18 }
0x23f9   :  { %v4682_v27 = vpop.xlane.xlu1 %4681 }
0x23fa   :  { %12443 = vrcp.f32 %v4682_v27 }
0x23fd   :  { %v4685_v0 = vpop.xlane.xlu0 %4684  ;;  %v4693_v12 = vpop.permute.xlu1 %4692 }
0x23fe   :  { %12445 = vrcp.f32 %v4685_v0 }
0x2401   :  { %v4695_v49 = vpop.permute.xlu0 %4694 }
0x2402   :  { %11611 = vmatpush3.msra.mxu0 %v4695_v49 }
0x2403   :  { %v12442_v11 = vpop.eup %12441  ;;  %11612 = vmatprep.subr.mxu0 %v12675_v15 }
0x2404   :  { %v4689_v37 = vmul.f32 %v12442_v11, %v12436_v31  ;;  %11613 = vmatpush3.msra.mxu0 %v4693_v12 }
0x2405   :  { %11634 = vmatprep.subr.mxu0 %v12675_v15 }
0x2406   :  { %11615 = vmatmul.mubr.msk.f32.vlgmr.msra.gmra.mxu0 %vm3661_vm7, %v4689_v37 }
0x2407   :  { %v12444_v38 = vpop.eup %12443  ;;  %11617 = vmatprep.mubr.msk.f32.mxu0 %vm12678_vm4, %v12675_v15 }
0x2408   :  { %v4690_v39 = vmul.f32 %v12444_v38, %v12438_v16  ;;  %v5056_v16 = vld [vmem:[%s13542_s15 + $0x8] sm:$0xff] }
0x240a   :  { %11618 = vmatmul.mubr.msk.f32.gmra.mxu0 %vm3661_vm7, %v4690_v39 }
0x240b   :  { %v12446_v40 = vpop.eup %12445  ;;  %11620 = vmatprep.mubr.msk.f32.mxu0 %vm12678_vm4, %v12675_v15 }
0x240c   :  { %v4691_v24 = vmul.f32 %v12446_v40, %v12440_v20  ;;  %v10436_v40 = vld [vmem:[%s12950_s12 + $0x1] ss:$0 sm:$0xff]  ;;  %s12689_s12 = smov 35  }
0x240d   :  { %s13594_s4 = sld [smem:[%s14770_s0 + %s12689_s12]]   ;;  %s12692_s12 = smov 26  }
0x240e   :  { %11621 = vmatmul.mubr.msk.f32.gmra.mxu0 %vm3661_vm7, %v4691_v24  ;;  %s13647_s24 = sld [smem:[%s14770_s0 + %s12692_s12]]   ;;  %s12696_s12 = smov 31  }
0x240f   :  { %11642 = vmatprep.mubr.msk.f32.mxu0 %vm12678_vm4, %v12675_v15  ;;  %s13945_s3 = sld [smem:[%s14770_s0 + %s12696_s12]]   ;;  %s12701_s12 = smov 34  }
0x242e   :  { %v3217_v28 = vpop.xlane.xlu1 %3216 }
0x242f   :  { %v3221_v53 = vmul.f32 0.03125, %v3217_v28 }
0x2431   :  { %v13522_v17 = vsub.f32 %v3209_v33, %v3221_v53 }
0x2432   :  { %v3220_v5 = vpop.xlane.xlu0 %3219 }
0x2433   :  { %v3222_v61 = vmul.f32 0.03125, %v3220_v5  ;;  %v3225_v9 = vmul.f32 %v13522_v17, %v13522_v17 }
0x2435   :  { %v13528_v7 = vsub.f32 %v13489_v35, %v3222_v61  ;;  %v3227_v26 = vsel %vm193_vm0, %v3225_v9, 0.0 }
0x24c6   :  { %v4777_v41 = vpop.f32.mrf.mxu0 }
0x24c7   :  { %11626 = vmatmul.mubr.msk.f32.vlgmr.msra.gmra.mxu1 %vm286_vm1, %v4777_v41  ;;  %v10437_v41 = vld [vmem:[%s12955_s23 + $0x1] ss:$0 sm:$0xff]  ;;  %s14790_s23 = smov 72  }
0x24c8   :  { %v11616_v43 = vpop.f32.mrf.mxu0  ;;  %11628 = vmatprep.mubr.msk.f32.mxu1 %vm12678_vm4, %v12675_v15 }
0x24ca   :  { %v4782_v10 = vpop.f32.mrf.mxu0 }
0x24cb   :  { %11629 = vmatmul.mubr.msk.f32.gmra.mxu1 %vm286_vm1, %v4782_v10 }
0x24cc   :  { %v11619_v44 = vpop.f32.mrf.mxu0  ;;  %11631 = vmatprep.mubr.msk.f32.mxu1 %vm12678_vm4, %v12675_v15 }
0x24ce   :  { %v4787_v46 = vpop.f32.mrf.mxu0 }
0x24cf   :  { %11632 = vmatmul.mubr.msk.f32.gmra.mxu1 %vm286_vm1, %v4787_v46 }
0x24d0   :  { %v11622_v47 = vpop.f32.mrf.mxu0 }
0x2587   :  { %v4866_v50 = vpop.f32.mrf.mxu1 }
0x2588   :  { %v4880_v51 = vadd.f32 %v4866_v50, %v13467_v58  ;;  %v4957_v50 = vld [vmem:[%s13570_s7 + $0x10] sm:$0xff] }
0x2589   :  { %v11627_v52 = vpop.f32.mrf.mxu1 }
0x258a   :  { %v4889_v54 = vadd.f32 %v10500_v1, %v4880_v51  ;;  %v4956_v51 = vld [vmem:[%s13570_s7 + $0x8] sm:$0xff]  ;;  %v4955_v52 = vld [vmem:[%s13570_s7] sm:$0xff] }
0x258b   :  { %v4871_v55 = vpop.f32.mrf.mxu1 }
0x258c   :  { %v4881_v57 = vadd.f32 %v4871_v55, %v13470_v60  ;;  %v4892_v4 = vadd.f32 %v4889_v54, %v13177_v42 }
0x258d   :  { %v11630_v59 = vpop.f32.mrf.mxu1 }
0x258e   :  { %v4890_v62 = vadd.f32 %v10500_v1, %v4881_v57  ;;  %v4897_v63 = vsel %vm193_vm0, %v4892_v4, 0.0 }
0x258f   :  { %4898 = vadd.xlane.f32.xlu0 %v4897_v63  ;;  %v4876_v6 = vpop.f32.mrf.mxu1  ;;  %v10501_v63 = vld [vmem:[%s13594_s4] ss:$0 sm:$0xff] }
0x2590   :  { %v4882_v58 = vadd.f32 %v4876_v6, %v13480_v22  ;;  %v4893_v23 = vadd.f32 %v4890_v62, %v13183_v45  ;;  %v3226_v45 = vmul.f32 %v13528_v7, %v13528_v7 }
0x2591   :  { %v11633_v3 = vpop.f32.mrf.mxu1 }
0x2592   :  { %v4891_v60 = vadd.f32 %v10500_v1, %v4882_v58  ;;  %v4900_v42 = vsel %vm193_vm0, %v4893_v23, 0.0  ;;  %v3230_v31 = vsel %vm193_vm0, %v3226_v45, 0.0  ;;  %v4958_v1 = vld [vmem:[%s13570_s7 + $0x18] sm:$0xff]  ;;  %v10502_v58 = vld [vmem:[%s13599_s9] ss:$0 sm:$0xff] }
0x2593   :  { %4901 = vadd.xlane.f32.xlu1 %v4900_v42  ;;  %11635 = vmatpush3.msra.mxu0 %v4958_v1 }
0x2594   :  { %v4894_v13 = vadd.f32 %v4891_v60, %v13189_v48  ;;  %v5058_v48 = vld [vmem:[%s13542_s15 + $0x18] sm:$0xff]  ;;  %11636 = vmatprep.subr.mxu0 %v12675_v15 }
0x2595   :  { %11651 = vmatprep.subr.mxu1 %v5058_v48  ;;  %11637 = vmatpush3.msra.mxu0 %v4957_v50 }
0x2596   :  { %v4904_v2 = vsel %vm4903_vm9, %v4894_v13, 0.0  ;;  %11652 = vmatpush3.msra.mxu1 %v5058_v48  ;;  %11638 = vmatprep.subr.mxu0 %v12675_v15 }
0x2597   :  { %4905 = vadd.xlane.f32.xlu0 %v4904_v2  ;;  %3228 = vadd.xlane.f32.xlu1 %v3227_v26 }
0x2598   :  { %11653 = vmatprep.subr.mxu1 %v5057_v14  ;;  %11639 = vmatpush3.msra.mxu0 %v4956_v51 }
0x2599   :  { %11654 = vmatpush3.msra.mxu1 %v5057_v14  ;;  %11640 = vmatprep.subr.mxu0 %v12675_v15 }
0x259a   :  { %11655 = vmatprep.subr.mxu1 %v5056_v16  ;;  %11641 = vmatpush3.msra.mxu0 %v4955_v52 }
0x259b   :  { %3231 = vadd.xlane.f32.xlu0 %v3230_v31  ;;  %11656 = vmatpush3.msra.mxu1 %v5056_v16  ;;  %v10507_v31 = vld [vmem:[%s13627_s25] ss:$0 sm:$0xff] }
0x259c   :  { %11657 = vmatprep.subr.mxu1 %v5055_v19  ;;  %11662 = vmatprep.subr.mxu0 %v12675_v15 }
0x259d   :  { %11658 = vmatpush3.msra.mxu1 %v5055_v19 }
0x259e   :  { %11675 = vmatprep.subr.mxu1 %v12675_v15 }
0x2618   :  { %v4899_v20 = vpop.xlane.xlu0 %4898 }
0x2619   :  { %v4907_v21 = vmul.f32 0.03125, %v4899_v20  ;;  %v10503_v20 = vld [vmem:[%s13647_s24] ss:$0 sm:$0xff] }
0x261b   :  { %v13549_v8 = vsub.f32 %v4892_v4, %v4907_v21 }
0x261c   :  { %v4902_v22 = vpop.xlane.xlu1 %4901 }
0x261d   :  { %v4908_v25 = vmul.f32 0.03125, %v4902_v22  ;;  %v4913_v29 = vmul.f32 %v13549_v8, %v13549_v8 }
0x261f   :  { %v13553_v30 = vsub.f32 %v4893_v23, %v4908_v25  ;;  %v4916_v32 = vsel %vm193_vm0, %v4913_v29, 0.0 }
0x2620   :  { %v4906_v33 = vpop.xlane.xlu0 %4905  ;;  %4917 = vadd.xlane.f32.xlu1 %v4916_v32  ;;  %v3229_v35 = vpop.xlane.xlu1 %3228 }
0x2621   :  { %v4909_v56 = vmul.f32 0.03125, %v4906_v33  ;;  %v3233_v34 = vmul.f32 0.03125, %v3229_v35  ;;  %v4914_v36 = vmul.f32 %v13553_v30, %v13553_v30 }
0x2623   :  { %v13558_v18 = vsub.f32 %v4894_v13, %v4909_v56  ;;  %v3235_v27 = vadd.f32 1e-05, %v3233_v34  ;;  %v4919_v0 = vsel %vm193_vm0, %v4914_v36, 0.0 }
0x2624   :  { %v3232_v49 = vpop.xlane.xlu0 %3231  ;;  %4920 = vadd.xlane.f32.xlu0 %v4919_v0  ;;  %v13693_v0 = vld [vmem:[%s13690_s22] sm:$0xff] }
0x2625   :  { %12447 = vrsqrt.f32 %v3235_v27  ;;  %v3234_v11 = vmul.f32 0.03125, %v3232_v49  ;;  %v4915_v12 = vmul.f32 %v13558_v18, %v13558_v18 }
0x2627   :  { %v3236_v37 = vadd.f32 1e-05, %v3234_v11  ;;  %v4922_v38 = vsel %vm4903_vm9, %v4915_v12, 0.0 }
0x2628   :  { %4923 = vadd.xlane.f32.xlu1 %v4922_v38  ;;  %v13697_v38 = vld [vmem:[%s13690_s22 + $0x8] sm:$0xff] }
0x2629   :  { %12449 = vrsqrt.f32 %v3236_v37 }
0x2632   :  { %v12448_v39 = vpop.eup %12447 }
0x2633   :  { %v3239_v24 = vmul.f32 %v12448_v39, %v13522_v17 }
0x2635   :  { %v3247_v43 = vmul.f32 %v10436_v40, %v3239_v24 }
0x2636   :  { %v12450_v10 = vpop.eup %12449 }
0x2637   :  { %v3240_v44 = vmul.f32 %v12450_v10, %v13528_v7  ;;  %v13573_v46 = vadd.f32 %v10437_v41, %v3247_v43  ;;  %v13702_v10 = vld [vmem:[%s13690_s22 + $0x10] sm:$0x3] }
0x2639   :  { %v3248_v47 = vmul.f32 %v10436_v40, %v3240_v44  ;;  %11659 = vmatprep.mubr.msk.f32.mxu1 %vm193_vm0, %v13573_v46 }
0x263b   :  { %v13577_v28 = vadd.f32 %v10437_v41, %v3248_v47 }
0x263d   :  { %11660 = vmatmul.mubr.msk.f32.vlgmr.msra.gmra.mxu1 %vm193_vm0, %v13577_v28 }
0x263e   :  { %11679 = vmatprep.mubr.msk.f32.mxu1 %vm12678_vm4, %v12675_v15 }
0x26a9   :  { %v4918_v53 = vpop.xlane.xlu1 %4917 }
0x26aa   :  { %v4925_v54 = vmul.f32 0.03125, %v4918_v53 }
0x26ac   :  { %v4928_v5 = vadd.f32 1e-05, %v4925_v54 }
0x26ad   :  { %v4921_v55 = vpop.xlane.xlu0 %4920 }
0x26ae   :  { %12451 = vrsqrt.f32 %v4928_v5  ;;  %v4926_v57 = vmul.f32 0.03125, %v4921_v55 }
0x26b0   :  { %v4929_v4 = vadd.f32 1e-05, %v4926_v57 }
0x26b1   :  { %v4924_v59 = vpop.xlane.xlu1 %4923 }
0x26b2   :  { %12453 = vrsqrt.f32 %v4929_v4  ;;  %v4927_v17 = vmul.f32 0.03125, %v4924_v59 }
0x26b4   :  { %v4930_v61 = vadd.f32 1e-05, %v4927_v17 }
0x26b6   :  { %12455 = vrsqrt.f32 %v4930_v61 }
0x26bb   :  { %v12452_v62 = vpop.eup %12451 }
0x26bc   :  { %v4934_v6 = vmul.f32 %v12452_v62, %v13549_v8 }
0x26be   :  { %v4943_v23 = vmul.f32 %v10501_v63, %v4934_v6 }
0x26bf   :  { %v12454_v3 = vpop.eup %12453 }
0x26c0   :  { %v13604_v7 = vadd.f32 %v10502_v58, %v4943_v23  ;;  %v4935_v60 = vmul.f32 %v12454_v3, %v13553_v30 }
0x26c2   :  { %11643 = vmatmul.mubr.msk.f32.vlgmr.msra.gmra.mxu0 %vm193_vm0, %v13604_v7  ;;  %v4944_v42 = vmul.f32 %v10501_v63, %v4935_v60 }
0x26c3   :  { %v12456_v9 = vpop.eup %12455  ;;  %11645 = vmatprep.mubr.msk.f32.mxu0 %vm12678_vm4, %v12675_v15 }
0x26c4   :  { %v13611_v13 = vadd.f32 %v10502_v58, %v4944_v42  ;;  %v4936_v2 = vmul.f32 %v12456_v9, %v13558_v18 }
0x26c6   :  { %11646 = vmatmul.mubr.msk.f32.gmra.mxu0 %vm193_vm0, %v13611_v13  ;;  %v4945_v26 = vmul.f32 %v10501_v63, %v4936_v2 }
0x26c7   :  { %11648 = vmatprep.mubr.msk.f32.mxu0 %vm12678_vm4, %v12675_v15 }
0x26c8   :  { %v13618_v45 = vadd.f32 %v10502_v58, %v4945_v26 }
0x26ca   :  { %11649 = vmatmul.mubr.msk.f32.gmra.mxu0 %vm193_vm0, %v13618_v45 }
0x26cb   :  { %11666 = vmatprep.mubr.msk.f32.mxu0 %vm12678_vm4, %v12675_v15 }
0x26fd   :  { %v11661_v48 = vpop.f32.mrf.mxu1 }
0x26fe   :  { %v13630_v14 = vadd.f32 %v11661_v48, %v10507_v31 }
0x26ff   :  { %v5138_v16 = vpop.f32.mrf.mxu1 }
0x2700   :  { %v13632_v19 = vadd.f32 %v10507_v31, %v5138_v16  ;;  %5390 = vrot.lane.b32.xlu0 %v13630_v14, %s12656_s20  ;;  %11663 = vmatpush3.xpose.msk.msra.mxu0 %vm286_vm1, %v13630_v14 }
0x2701   :  { %11664 = vmatprep.subr.mxu0 %v12675_v15 }
0x2702   :  { %5388 = vrot.lane.b32.xlu1 %v13632_v19, %s12656_s20 }
0x2704   :  { %11665 = vmatpush3.xpose.msk.msra.mxu0 %vm286_vm1, %v13632_v19 }
0x2705   :  { %11688 = vmatprep.subr.mxu0 %v12675_v15 }
0x2772   :  { %v5391_v25 = vpop.permute.xlu0 %5390 }
0x2774   :  { %v5389_v33 = vpop.permute.xlu1 %5388 }
0x2782   :  { %v5041_v21 = vpop.f32.mrf.mxu0 }
0x2783   :  { %v13650_v8 = vadd.f32 %v10503_v20, %v5041_v21 }
0x2784   :  { %v11644_v22 = vpop.f32.mrf.mxu0 }
0x2785   :  { %5382 = vrot.lane.b32.xlu1 %v13650_v8, %s12656_s20  ;;  %11667 = vmatmul.mubr.msk.f32.vlgmr.msra.gmra.mxu0 %vm286_vm1, %v13650_v8 }
0x2786   :  { %11689 = vmatpush3.xpose.msk.msra.mxu0 %vm286_vm1, %v5391_v25  ;;  %v5046_v29 = vpop.f32.mrf.mxu0  ;;  %11669 = vmatprep.mubr.msk.f32.mxu0 %vm12678_vm4, %v12675_v15 }
0x2787   :  { %v13659_v30 = vadd.f32 %v10503_v20, %v5046_v29  ;;  %11690 = vmatprep.subr.mxu0 %v12675_v15 }
0x2788   :  { %v11647_v32 = vpop.f32.mrf.mxu0 }
0x2789   :  { %5384 = vrot.lane.b32.xlu0 %v13659_v30, %s12656_s20  ;;  %11670 = vmatmul.mubr.msk.f32.gmra.mxu0 %vm286_vm1, %v13659_v30 }
0x278a   :  { %11691 = vmatpush3.xpose.msk.msra.mxu0 %vm286_vm1, %v5389_v33  ;;  %v5051_v35 = vpop.f32.mrf.mxu0  ;;  %11672 = vmatprep.mubr.msk.f32.mxu0 %vm12678_vm4, %v12675_v15 }
0x278b   :  { %v13669_v56 = vadd.f32 %v10503_v20, %v5051_v35  ;;  %11714 = vmatprep.subr.mxu0 %v12675_v15 }
0x278c   :  { %v11650_v34 = vpop.f32.mrf.mxu0 }
0x278d   :  { %5386 = vrot.lane.b32.xlu1 %v13669_v56, %s12656_s20  ;;  %11673 = vmatmul.mubr.msk.f32.gmra.mxu0 %vm286_vm1, %v13669_v56 }
0x278e   :  { %11692 = vmatprep.mubr.msk.f32.mxu0 %vm12678_vm4, %v12675_v15 }
0x27f7   :  { %v5383_v36 = vpop.permute.xlu1 %5382 }
0x27f8   :  { %11693 = vmatmul.mubr.msk.f32.vlgmr.msra.gmra.mxu0 %vm286_vm1, %v5383_v36 }
0x27f9   :  { %11695 = vmatprep.mubr.msk.f32.mxu0 %vm12678_vm4, %v12675_v15 }
0x27fb   :  { %v5385_v18 = vpop.permute.xlu0 %5384 }
0x27fc   :  { %11696 = vmatmul.mubr.msk.f32.gmra.mxu0 %vm286_vm1, %v5385_v18 }
0x27fd   :  { %11698 = vmatprep.mubr.msk.f32.mxu0 %vm12678_vm4, %v12675_v15 }
0x27ff   :  { %v5387_v27 = vpop.permute.xlu1 %5386 }
0x2800   :  { %11699 = vmatmul.mubr.msk.f32.gmra.mxu0 %vm286_vm1, %v5387_v27 }
0x2801   :  { %11716 = vmatprep.mubr.msk.f32.mxu0 %vm12678_vm4, %v12675_v15 }
0x2845   :  { %v5233_v49 = vpop.f32.mrf.mxu0 }
0x2846   :  { %v5247_v11 = vmul.f32 0.35355338, %v5233_v49 }
0x2847   :  { %v11668_v12 = vpop.f32.mrf.mxu0 }
0x2848   :  { %v5250_v37 = vadd.f32 %v5247_v11, %v13693_v0 }
0x2849   :  { %v5238_v39 = vpop.f32.mrf.mxu0 }
0x284a   :  { %v5248_v40 = vmul.f32 0.35355338, %v5238_v39  ;;  %v5253_v24 = vsel %vm374_vm2, %v5250_v37, -inf }
0x284b   :  { %5254 = vmax.xlane.f32.xlu0 %v5253_v24  ;;  %v11671_v41 = vpop.f32.mrf.mxu0 }
0x284c   :  { %v5251_v43 = vadd.f32 %v5248_v40, %v13697_v38 }
0x284d   :  { %v5243_v44 = vpop.f32.mrf.mxu0 }
0x284e   :  { %v5249_v47 = vmul.f32 0.35355338, %v5243_v44  ;;  %v5256_v1 = vsel %vm374_vm2, %v5251_v43, -inf }
0x284f   :  { %5257 = vmax.xlane.f32.xlu1 %v5256_v1  ;;  %v11674_v50 = vpop.f32.mrf.mxu0 }
0x2850   :  { %v5252_v51 = vadd.f32 %v5249_v47, %v13702_v10 }
0x2852   :  { %v5260_v52 = vsel %vm5259_vm10, %v5252_v51, -inf }
0x2853   :  { %5261 = vmax.xlane.f32.xlu0 %v5260_v52 }
0x28b8   :  { %v5468_v53 = vpop.f32.mrf.mxu0 }
0x28b9   :  { %v5482_v54 = vmul.f32 0.35355338, %v5468_v53 }
0x28ba   :  { %v11694_v5 = vpop.f32.mrf.mxu0 }
0x28bb   :  { %v5485_v55 = vadd.f32 %v5482_v54, %v13693_v0 }
0x28bc   :  { %v5473_v57 = vpop.f32.mrf.mxu0 }
0x28bd   :  { %v5483_v4 = vmul.f32 0.35355338, %v5473_v57  ;;  %v5488_v59 = vsel %vm374_vm2, %v5485_v55, -inf }
0x28be   :  { %5489 = vmax.xlane.f32.xlu0 %v5488_v59  ;;  %v11697_v17 = vpop.f32.mrf.mxu0 }
0x28bf   :  { %v5486_v61 = vadd.f32 %v5483_v4, %v13697_v38 }
0x28c0   :  { %v5478_v62 = vpop.f32.mrf.mxu0 }
0x28c1   :  { %v5484_v63 = vmul.f32 0.35355338, %v5478_v62  ;;  %v5491_v6 = vsel %vm374_vm2, %v5486_v61, -inf }
0x28c2   :  { %5492 = vmax.xlane.f32.xlu1 %v5491_v6  ;;  %v11700_v58 = vpop.f32.mrf.mxu0 }
0x28c3   :  { %v5487_v23 = vadd.f32 %v5484_v63, %v13702_v10 }
0x28c5   :  { %v5494_v3 = vsel %vm5259_vm10, %v5487_v23, -inf }
0x28c6   :  { %5495 = vmax.xlane.f32.xlu0 %v5494_v3 }
0x28d3   :  { %5289 = vrot.lane.b32.xlu1 %v13630_v14, %s12653_s14 }
0x28d4   :  { %v5255_v9 = vpop.xlane.xlu0 %5254 }
0x28d5   :  { %v5263_v26 = vsub.f32 %v5250_v37, %v5255_v9  ;;  %v5147_v9 = vld [vmem:[%s13770_s17] sm:$0xff] }
0x28d7   :  { %v5266_v48 = vmul.f32 1.442695, %v5263_v26 }
0x28d8   :  { %v5258_v60 = vpop.xlane.xlu1 %5257 }
0x28d9   :  { %v5264_v42 = vsub.f32 %v5251_v43, %v5258_v60 }
0x28db   :  { %v5268_v2 = vmul.f32 1.442695, %v5264_v42 }
0x28dc   :  { %v5262_v31 = vpop.xlane.xlu0 %5261 }
0x28dd   :  { %12457 = vpow2.f32 %v5268_v2  ;;  %v5265_v16 = vsub.f32 %v5252_v51, %v5262_v31  ;;  %v5148_v2 = vld [vmem:[%s13770_s17 + $0x8] sm:$0xff] }
0x28de   :  { %12459 = vpow2.f32 %v5266_v48  ;;  %11715 = vmatpush3.msra.mxu0 %v5148_v2 }
0x28df   :  { %v5270_v20 = vmul.f32 1.442695, %v5265_v16  ;;  %11736 = vmatprep.subr.mxu0 %v12675_v15 }
0x28e1   :  { %12461 = vpow2.f32 %v5270_v20 }
0x28ea   :  { %v13715_v21 = vpop.eup %12457 }
0x28eb   :  { %v5275_v22 = vsel %vm374_vm2, %v13715_v21, 0.0  ;;  %v12460_v25 = vpop.eup %12459 }
0x28ec   :  { %5276 = vadd.xlane.f32.xlu0 %v5275_v22  ;;  %v5272_v29 = vsel %vm374_vm2, %v12460_v25, 0.0 }
0x28ee   :  { %v13720_v32 = vpop.eup %12461 }
0x28ef   :  { %v5278_v33 = vsel %vm5259_vm10, %v13720_v32, 0.0 }
0x28f7   :  { %5273 = vadd.xlane.f32.xlu1 %v5272_v29 }
0x28fb   :  { %5279 = vadd.xlane.f32.xlu1 %v5278_v33 }
0x2947   :  { %v5490_v35 = vpop.xlane.xlu0 %5489 }
0x2948   :  { %v5497_v34 = vsub.f32 %v5485_v55, %v5490_v35 }
0x294a   :  { %v5500_v36 = vmul.f32 1.442695, %v5497_v34 }
0x294b   :  { %v5493_v18 = vpop.xlane.xlu1 %5492 }
0x294c   :  { %12463 = vpow2.f32 %v5500_v36  ;;  %v5498_v27 = vsub.f32 %v5486_v61, %v5493_v18 }
0x294e   :  { %v5502_v49 = vmul.f32 1.442695, %v5498_v27 }
0x294f   :  { %v5496_v11 = vpop.xlane.xlu0 %5495  ;;  %v5290_v12 = vpop.permute.xlu1 %5289 }
0x2950   :  { %12465 = vpow2.f32 %v5502_v49  ;;  %v5499_v37 = vsub.f32 %v5487_v23, %v5496_v11  ;;  %11676 = vmatpush3.msra.mxu1 %v5290_v12 }
0x2951   :  { %11677 = vmatprep.subr.mxu1 %v12675_v15 }
0x2952   :  { %v5504_v39 = vmul.f32 1.442695, %v5499_v37 }
0x2954   :  { %12467 = vpow2.f32 %v5504_v39 }
0x2959   :  { %v12464_v40 = vpop.eup %12463 }
0x295a   :  { %v5506_v24 = vsel %vm374_vm2, %v12464_v40, 0.0 }
0x295b   :  { %5507 = vadd.xlane.f32.xlu0 %v5506_v24 }
0x295d   :  { %v12466_v41 = vpop.eup %12465 }
0x295e   :  { %v5509_v43 = vsel %vm374_vm2, %v12466_v41, 0.0 }
0x295f   :  { %5510 = vadd.xlane.f32.xlu1 %v5509_v43 }
0x2961   :  { %v12468_v44 = vpop.eup %12467 }
0x2962   :  { %v5512_v47 = vsel %vm5259_vm10, %v12468_v44, 0.0 }
0x2963   :  { %5513 = vadd.xlane.f32.xlu0 %v5512_v47 }
0x2970   :  { %5523 = vrot.lane.b32.xlu1 %v13630_v14, %s12657_s21 }
0x2974   :  { %5521 = vrot.lane.b32.xlu1 %v13632_v19, %s12657_s21 }
0x2975   :  { %v5277_v50 = vpop.xlane.xlu0 %5276 }
0x2978   :  { %5800 = vrot.lane.b32.xlu1 %v13632_v19, %s14777_s27 }
0x2979   :  { %5287 = vrot.lane.b32.xlu0 %v13632_v19, %s12653_s14 }
0x297c   :  { %5796 = vrot.lane.b32.xlu1 %v13659_v30, %s14777_s27 }
0x297d   :  { %5802 = vrot.lane.b32.xlu0 %v13630_v14, %s14777_s27 }
0x2980   :  { %v5274_v1 = vpop.xlane.xlu1 %5273 }
0x2981   :  { %5794 = vrot.lane.b32.xlu0 %v13650_v8, %s14777_s27  ;;  %12469 = vrcp.f32 %v5274_v1 }
0x2982   :  { %12471 = vrcp.f32 %v5277_v50 }
0x2984   :  { %v5280_v51 = vpop.xlane.xlu1 %5279 }
0x2985   :  { %5798 = vrot.lane.b32.xlu0 %v13669_v56, %s14777_s27  ;;  %12473 = vrcp.f32 %v5280_v51  ;;  %s12700_s27 = smov 32  }
0x298e   :  { %v12470_v5 = vpop.eup %12469 }
0x298f   :  { %v5284_v4 = vmul.f32 %v12470_v5, %v12460_v25  ;;  %v12472_v59 = vpop.eup %12471 }
0x2990   :  { %v5285_v61 = vmul.f32 %v12472_v59, %v13715_v21 }
0x2992   :  { %v12474_v62 = vpop.eup %12473 }
0x2993   :  { %v5286_v63 = vmul.f32 %v12474_v62, %v13720_v32 }
0x29e4   :  { %v5508_v52 = vpop.xlane.xlu0 %5507 }
0x29e5   :  { %12475 = vrcp.f32 %v5508_v52 }
0x29e8   :  { %v5511_v53 = vpop.xlane.xlu1 %5510 }
0x29e9   :  { %12477 = vrcp.f32 %v5511_v53 }
0x29ec   :  { %v5514_v54 = vpop.xlane.xlu0 %5513  ;;  %v5524_v55 = vpop.permute.xlu1 %5523 }
0x29ed   :  { %12479 = vrcp.f32 %v5514_v54 }
0x29f0   :  { %v5288_v57 = vpop.permute.xlu0 %5287  ;;  %v5522_v17 = vpop.permute.xlu1 %5521 }
0x29f1   :  { %11678 = vmatpush3.msra.mxu1 %v5288_v57 }
0x29f2   :  { %11680 = vmatmul.mubr.msk.f32.vlgmr.msra.gmra.mxu1 %vm374_vm2, %v5284_v4  ;;  %11701 = vmatprep.subr.mxu1 %v12675_v15  ;;  %v12476_v6 = vpop.eup %12475 }
0x29f3   :  { %11702 = vmatpush3.msra.mxu1 %v5524_v55  ;;  %11682 = vmatprep.mubr.msk.f32.mxu1 %vm12678_vm4, %v12675_v15  ;;  %v5518_v58 = vmul.f32 %v12476_v6, %v12464_v40 }
0x29f4   :  { %11703 = vmatprep.subr.mxu1 %v12675_v15  ;;  %v5803_v25 = vpop.permute.xlu0 %5802  ;;  %v5801_v33 = vpop.permute.xlu1 %5800 }
0x29f5   :  { %11704 = vmatpush3.msra.mxu1 %v5522_v17 }
0x29f6   :  { %11683 = vmatmul.mubr.msk.f32.gmra.mxu1 %vm374_vm2, %v5285_v61  ;;  %11725 = vmatprep.subr.mxu1 %v12675_v15  ;;  %v12478_v23 = vpop.eup %12477 }
0x29f7   :  { %11685 = vmatprep.mubr.msk.f32.mxu1 %vm12678_vm4, %v12675_v15  ;;  %v5519_v3 = vmul.f32 %v12478_v23, %v12466_v41 }
0x29f8   :  { %v5795_v18 = vpop.permute.xlu0 %5794  ;;  %v5797_v27 = vpop.permute.xlu1 %5796 }
0x29fa   :  { %11686 = vmatmul.mubr.msk.f32.gmra.mxu1 %vm374_vm2, %v5286_v63  ;;  %v12480_v60 = vpop.eup %12479 }
0x29fb   :  { %11705 = vmatprep.mubr.msk.f32.mxu1 %vm12678_vm4, %v12675_v15  ;;  %v5520_v42 = vmul.f32 %v12480_v60, %v12468_v44 }
0x29fc   :  { %v5799_v49 = vpop.permute.xlu0 %5798 }
0x29fe   :  { %11706 = vmatmul.mubr.msk.f32.vlgmr.msra.gmra.mxu1 %vm374_vm2, %v5518_v58 }
0x29ff   :  { %11708 = vmatprep.mubr.msk.f32.mxu1 %vm12678_vm4, %v12675_v15  ;;  %11726 = vmatpush3.msra.mxu1 %v5147_v9 }
0x2a00   :  { %11749 = vmatprep.subr.mxu1 %v12675_v15 }
0x2a02   :  { %11709 = vmatmul.mubr.msk.f32.gmra.mxu1 %vm374_vm2, %v5519_v3 }
0x2a03   :  { %11711 = vmatprep.mubr.msk.f32.mxu1 %vm12678_vm4, %v12675_v15 }
0x2a06   :  { %11712 = vmatmul.mubr.msk.f32.gmra.mxu1 %vm374_vm2, %v5520_v42 }
0x2a07   :  { %11727 = vmatprep.mubr.msk.f32.mxu1 %vm12678_vm4, %v12675_v15 }
0x2ab2   :  { %v5368_v26 = vpop.f32.mrf.mxu1 }
0x2ab3   :  { %11728 = vmatmul.mubr.msk.f32.vlgmr.msra.gmra.mxu1 %vm286_vm1, %v5368_v26 }
0x2ab4   :  { %v11681_v31 = vpop.f32.mrf.mxu1  ;;  %11730 = vmatprep.mubr.msk.f32.mxu1 %vm12678_vm4, %v12675_v15 }
0x2ab6   :  { %v5373_v48 = vpop.f32.mrf.mxu1 }
0x2ab7   :  { %11731 = vmatmul.mubr.msk.f32.gmra.mxu1 %vm286_vm1, %v5373_v48 }
0x2ab8   :  { %v11684_v16 = vpop.f32.mrf.mxu1  ;;  %11733 = vmatprep.mubr.msk.f32.mxu1 %vm12678_vm4, %v12675_v15 }
0x2aba   :  { %v5378_v20 = vpop.f32.mrf.mxu1 }
0x2abb   :  { %11734 = vmatmul.mubr.msk.f32.gmra.mxu1 %vm286_vm1, %v5378_v20 }
0x2abc   :  { %v11687_v21 = vpop.f32.mrf.mxu1  ;;  %11753 = vmatprep.mubr.msk.f32.mxu1 %vm12678_vm4, %v12675_v15 }
0x2abe   :  { %v5602_v22 = vpop.f32.mrf.mxu1 }
0x2abf   :  { %11717 = vmatmul.mubr.msk.f32.vlgmr.msra.gmra.mxu0 %vm286_vm1, %v5602_v22 }
0x2ac0   :  { %11737 = vmatpush3.xpose.msk.msra.mxu0 %vm286_vm1, %v5803_v25  ;;  %v11707_v29 = vpop.f32.mrf.mxu1  ;;  %11719 = vmatprep.mubr.msk.f32.mxu0 %vm12678_vm4, %v12675_v15 }
0x2ac1   :  { %11738 = vmatprep.subr.mxu0 %v12675_v15 }
0x2ac2   :  { %v5607_v32 = vpop.f32.mrf.mxu1 }
0x2ac3   :  { %11720 = vmatmul.mubr.msk.f32.gmra.mxu0 %vm286_vm1, %v5607_v32 }
0x2ac4   :  { %11739 = vmatpush3.xpose.msk.msra.mxu0 %vm286_vm1, %v5801_v33  ;;  %v11710_v35 = vpop.f32.mrf.mxu1  ;;  %11722 = vmatprep.mubr.msk.f32.mxu0 %vm12678_vm4, %v12675_v15 }
0x2ac5   :  { %11762 = vmatprep.subr.mxu0 %v12675_v15 }
0x2ac6   :  { %v5612_v34 = vpop.f32.mrf.mxu1 }
0x2ac7   :  { %11723 = vmatmul.mubr.msk.f32.gmra.mxu0 %vm286_vm1, %v5612_v34 }
0x2ac8   :  { %v11713_v36 = vpop.f32.mrf.mxu1  ;;  %11740 = vmatprep.mubr.msk.f32.mxu0 %vm12678_vm4, %v12675_v15 }
0x2acb   :  { %11741 = vmatmul.mubr.msk.f32.vlgmr.msra.gmra.mxu0 %vm286_vm1, %v5795_v18 }
0x2acc   :  { %11743 = vmatprep.mubr.msk.f32.mxu0 %vm12678_vm4, %v12675_v15 }
0x2acf   :  { %11744 = vmatmul.mubr.msk.f32.gmra.mxu0 %vm286_vm1, %v5797_v27 }
0x2ad0   :  { %11746 = vmatprep.mubr.msk.f32.mxu0 %vm12678_vm4, %v12675_v15 }
0x2ad3   :  { %11747 = vmatmul.mubr.msk.f32.gmra.mxu0 %vm286_vm1, %v5799_v49 }
0x2ad4   :  { %11764 = vmatprep.mubr.msk.f32.mxu0 %vm12678_vm4, %v12675_v15 }
0x2b73   :  { %v5780_v11 = vpop.f32.mrf.mxu1 }
0x2b75   :  { %v11729_v12 = vpop.f32.mrf.mxu1 }
0x2b77   :  { %v5785_v37 = vpop.f32.mrf.mxu1 }
0x2b79   :  { %v11732_v39 = vpop.f32.mrf.mxu1 }
0x2b7b   :  { %v5790_v40 = vpop.f32.mrf.mxu1 }
0x2b7d   :  { %v11735_v24 = vpop.f32.mrf.mxu1 }
0x2b7f   :  { %v5691_v41 = vpop.f32.mrf.mxu0 }
0x2b80   :  { %v13807_v43 = vadd.f32 %v5780_v11, %v5691_v41 }
0x2b81   :  { %v11718_v44 = vpop.f32.mrf.mxu0 }
0x2b82   :  { %v5149_v44 = vld [vmem:[%s13770_s17 + $0x10] sm:$0xff] }
0x2b83   :  { %v5696_v47 = vpop.f32.mrf.mxu0  ;;  %11763 = vmatpush3.msra.mxu0 %v5149_v44 }
0x2b84   :  { %v13809_v1 = vadd.f32 %v5785_v37, %v5696_v47  ;;  %11786 = vmatprep.subr.mxu0 %v12675_v15 }
0x2b85   :  { %v11721_v50 = vpop.f32.mrf.mxu0 }
0x2b87   :  { %v5701_v51 = vpop.f32.mrf.mxu0 }
0x2b88   :  { %v13811_v52 = vadd.f32 %v5790_v40, %v5701_v51 }
0x2b89   :  { %v11724_v53 = vpop.f32.mrf.mxu0 }
0x2b8b   :  { %v5880_v54 = vpop.f32.mrf.mxu0 }
0x2b8c   :  { %v5894_v5 = vmul.f32 0.35355338, %v5880_v54 }
0x2b8d   :  { %v11742_v55 = vpop.f32.mrf.mxu0 }
0x2b8e   :  { %v5897_v57 = vadd.f32 %v5894_v5, %v13693_v0 }
0x2b8f   :  { %v5885_v4 = vpop.f32.mrf.mxu0 }
0x2b90   :  { %v5895_v59 = vmul.f32 0.35355338, %v5885_v4  ;;  %v5900_v17 = vsel %vm374_vm2, %v5897_v57, -inf }
0x2b91   :  { %5901 = vmax.xlane.f32.xlu1 %v5900_v17  ;;  %v11745_v61 = vpop.f32.mrf.mxu0 }
0x2b92   :  { %v5898_v62 = vadd.f32 %v5895_v59, %v13697_v38 }
0x2b93   :  { %v5890_v63 = vpop.f32.mrf.mxu0 }
0x2b94   :  { %v5896_v6 = vmul.f32 0.35355338, %v5890_v63  ;;  %v5903_v58 = vsel %vm374_vm2, %v5898_v62, -inf }
0x2b95   :  { %5904 = vmax.xlane.f32.xlu0 %v5903_v58  ;;  %v11748_v23 = vpop.f32.mrf.mxu0 }
0x2b96   :  { %v5899_v3 = vadd.f32 %v5896_v6, %v13702_v10 }
0x2b98   :  { %v5906_v60 = vsel %vm5259_vm10, %v5899_v3, -inf }
0x2b99   :  { %5907 = vmax.xlane.f32.xlu0 %v5906_v60 }
0x2c1a   :  { %v5902_v42 = vpop.xlane.xlu1 %5901 }
0x2c1b   :  { %v5909_v9 = vsub.f32 %v5897_v57, %v5902_v42 }
0x2c1d   :  { %v5912_v2 = vmul.f32 1.442695, %v5909_v9 }
0x2c1e   :  { %v5905_v26 = vpop.xlane.xlu0 %5904 }
0x2c1f   :  { %12481 = vpow2.f32 %v5912_v2  ;;  %v5910_v31 = vsub.f32 %v5898_v62, %v5905_v26 }
0x2c21   :  { %v5914_v48 = vmul.f32 1.442695, %v5910_v31 }
0x2c22   :  { %v5908_v25 = vpop.xlane.xlu0 %5907 }
0x2c23   :  { %12483 = vpow2.f32 %v5914_v48  ;;  %v5911_v29 = vsub.f32 %v5899_v3, %v5908_v25 }
0x2c25   :  { %v5916_v32 = vmul.f32 1.442695, %v5911_v29 }
0x2c27   :  { %12485 = vpow2.f32 %v5916_v32 }
0x2c2c   :  { %v12482_v16 = vpop.eup %12481 }
0x2c2d   :  { %v5918_v20 = vsel %vm374_vm2, %v12482_v16, 0.0 }
0x2c2e   :  { %5919 = vadd.xlane.f32.xlu1 %v5918_v20 }
0x2c30   :  { %v12484_v21 = vpop.eup %12483 }
0x2c31   :  { %v5921_v22 = vsel %vm374_vm2, %v12484_v21, 0.0 }
0x2c32   :  { %5922 = vadd.xlane.f32.xlu0 %v5921_v22 }
0x2c34   :  { %v12486_v33 = vpop.eup %12485 }
0x2c35   :  { %v5924_v35 = vsel %vm5259_vm10, %v12486_v33, 0.0 }
0x2c3f   :  { %5933 = vrot.lane.b32.xlu1 %v13632_v19, %s14779_s30 }
0x2c43   :  { %6128 = vrot.lane.b32.xlu1 %v13630_v14, %s14771_s29 }
0x2c48   :  { %5935 = vrot.lane.b32.xlu0 %v13630_v14, %s14779_s30 }
0x2c4c   :  { %6126 = vrot.lane.b32.xlu0 %v13632_v19, %s14771_s29 }
0x2c50   :  { %6122 = vrot.lane.b32.xlu0 %v13659_v30, %s14771_s29 }
0x2c67   :  { %5925 = vadd.xlane.f32.xlu1 %v5924_v35 }
0x2c78   :  { %6120 = vrot.lane.b32.xlu1 %v13650_v8, %s14771_s29 }
0x2c7c   :  { %6124 = vrot.lane.b32.xlu1 %v13669_v56, %s14771_s29  ;;  %s13973_s29 = sld [smem:[%s14770_s0 + %s12698_s10]]  }
0x2c7d   :  { %s14003_s10 = sld [smem:[%s14770_s0 + %s12700_s27]]   ;;  %s14791_s27 = smov 104  }
0x2cb7   :  { %v5920_v34 = vpop.xlane.xlu1 %5919 }
0x2cb8   :  { %12487 = vrcp.f32 %v5920_v34 }
0x2cbb   :  { %v5923_v36 = vpop.xlane.xlu0 %5922  ;;  %v5934_v27 = vpop.permute.xlu1 %5933 }
0x2cbc   :  { %12489 = vrcp.f32 %v5923_v36 }
0x2cbf   :  { %v5936_v18 = vpop.permute.xlu0 %5935  ;;  %v6129_v11 = vpop.permute.xlu1 %6128 }
0x2cc0   :  { %11750 = vmatpush3.msra.mxu1 %v5936_v18 }
0x2cc1   :  { %11751 = vmatprep.subr.mxu1 %v12675_v15 }
0x2cc2   :  { %11752 = vmatpush3.msra.mxu1 %v5934_v27 }
0x2cc3   :  { %11773 = vmatprep.subr.mxu1 %v12675_v15  ;;  %v6127_v12 = vpop.permute.xlu0 %6126 }
0x2cc5   :  { %v12488_v30 = vpop.eup %12487 }
0x2cc6   :  { %v5930_v49 = vmul.f32 %v12488_v30, %v12482_v16 }
0x2cc7   :  { %v6123_v41 = vpop.permute.xlu0 %6122 }
0x2cc8   :  { %11754 = vmatmul.mubr.msk.f32.vlgmr.msra.gmra.mxu1 %vm374_vm2, %v5930_v49 }
0x2cc9   :  { %v12490_v8 = vpop.eup %12489  ;;  %11774 = vmatpush3.xpose.msk.msra.mxu1 %vm286_vm1, %v6129_v11  ;;  %11756 = vmatprep.mubr.msk.f32.mxu1 %vm12678_vm4, %v12675_v15 }
0x2cca   :  { %11775 = vmatprep.subr.mxu1 %v12675_v15  ;;  %v5931_v56 = vmul.f32 %v12490_v8, %v12484_v21  ;;  %v5150_v8 = vld [vmem:[%s13770_s17 + $0x18] sm:$0xff] }
0x2ccc   :  { %11757 = vmatmul.mubr.msk.f32.gmra.mxu1 %vm374_vm2, %v5931_v56 }
0x2ccd   :  { %11776 = vmatpush3.xpose.msk.msra.mxu1 %vm286_vm1, %v6127_v12  ;;  %11759 = vmatprep.mubr.msk.f32.mxu1 %vm12678_vm4, %v12675_v15 }
0x2cce   :  { %11799 = vmatprep.subr.mxu1 %v12675_v15 }
0x2cf0   :  { %v5926_v37 = vpop.xlane.xlu1 %5925 }
0x2cf1   :  { %12491 = vrcp.f32 %v5926_v37 }
0x2cf4   :  { %v6121_v24 = vpop.permute.xlu1 %6120 }
0x2cf8   :  { %v6125_v47 = vpop.permute.xlu1 %6124 }
0x2cfe   :  { %v12492_v39 = vpop.eup %12491 }
0x2cff   :  { %v5932_v40 = vmul.f32 %v12492_v39, %v12486_v33 }
0x2d01   :  { %11760 = vmatmul.mubr.msk.f32.gmra.mxu1 %vm374_vm2, %v5932_v40 }
0x2d02   :  { %11777 = vmatprep.mubr.msk.f32.mxu1 %vm12678_vm4, %v12675_v15 }
0x2d05   :  { %11778 = vmatmul.mubr.msk.f32.vlgmr.msra.gmra.mxu1 %vm286_vm1, %v6121_v24 }
0x2d06   :  { %11780 = vmatprep.mubr.msk.f32.mxu1 %vm12678_vm4, %v12675_v15  ;;  %11800 = vmatpush3.msra.mxu1 %v5150_v8 }
0x2d07   :  { %11827 = vmatprep.subr.mxu1 %v12675_v15 }
0x2d09   :  { %11781 = vmatmul.mubr.msk.f32.gmra.mxu1 %vm286_vm1, %v6123_v41 }
0x2d0a   :  { %11783 = vmatprep.mubr.msk.f32.mxu1 %vm12678_vm4, %v12675_v15 }
0x2d0d   :  { %11784 = vmatmul.mubr.msk.f32.gmra.mxu1 %vm286_vm1, %v6125_v47 }
0x2d0e   :  { %11801 = vmatprep.mubr.msk.f32.mxu1 %vm12678_vm4, %v12675_v15 }
0x2d88   :  { %v6014_v50 = vpop.f32.mrf.mxu1 }
0x2d89   :  { %11765 = vmatmul.mubr.msk.f32.vlgmr.msra.gmra.mxu0 %vm286_vm1, %v6014_v50 }
0x2d8a   :  { %v11755_v51 = vpop.f32.mrf.mxu1  ;;  %11767 = vmatprep.mubr.msk.f32.mxu0 %vm12678_vm4, %v12675_v15 }
0x2d8c   :  { %v6019_v53 = vpop.f32.mrf.mxu1 }
0x2d8d   :  { %11768 = vmatmul.mubr.msk.f32.gmra.mxu0 %vm286_vm1, %v6019_v53 }
0x2d8e   :  { %v11758_v54 = vpop.f32.mrf.mxu1  ;;  %11770 = vmatprep.mubr.msk.f32.mxu0 %vm12678_vm4, %v12675_v15 }
0x2dc1   :  { %v6024_v5 = vpop.f32.mrf.mxu1 }
0x2dc2   :  { %11771 = vmatmul.mubr.msk.f32.gmra.mxu0 %vm286_vm1, %v6024_v5 }
0x2dc3   :  { %v11761_v55 = vpop.f32.mrf.mxu1  ;;  %11790 = vmatprep.mubr.msk.f32.mxu0 %vm12678_vm4, %v12675_v15 }
0x2dc4   :  { %v10554_v55 = vld [vmem:[%s13916_s13] ss:$0 sm:$0xff] }
0x2dc5   :  { %v6206_v57 = vpop.f32.mrf.mxu1 }
0x2dc6   :  { %v6220_v4 = vmul.f32 0.35355338, %v6206_v57 }
0x2dc7   :  { %v11779_v59 = vpop.f32.mrf.mxu1 }
0x2dc8   :  { %v6223_v17 = vadd.f32 %v6220_v4, %v13693_v0 }
0x2dc9   :  { %v6211_v61 = vpop.f32.mrf.mxu1 }
0x2dca   :  { %v6221_v62 = vmul.f32 0.35355338, %v6211_v61  ;;  %v6226_v63 = vsel %vm374_vm2, %v6223_v17, -inf }
0x2dcb   :  { %6227 = vmax.xlane.f32.xlu0 %v6226_v63  ;;  %v11782_v6 = vpop.f32.mrf.mxu1 }
0x2dcc   :  { %v6224_v58 = vadd.f32 %v6221_v62, %v13697_v38 }
0x2dcd   :  { %v6216_v23 = vpop.f32.mrf.mxu1 }
0x2dce   :  { %v6222_v3 = vmul.f32 0.35355338, %v6216_v23  ;;  %v6229_v60 = vsel %vm374_vm2, %v6224_v58, -inf }
0x2dcf   :  { %6230 = vmax.xlane.f32.xlu1 %v6229_v60  ;;  %v11785_v42 = vpop.f32.mrf.mxu1 }
0x2dd0   :  { %v6225_v9 = vadd.f32 %v6222_v3, %v13702_v10 }
0x2dd2   :  { %v6232_v2 = vsel %vm5259_vm10, %v6225_v9, -inf }
0x2dd3   :  { %6233 = vmax.xlane.f32.xlu0 %v6232_v2 }
0x2e49   :  { %v6103_v0 = vpop.f32.mrf.mxu0 }
0x2e4a   :  { %v13878_v26 = vadd.f32 %v6103_v0, %v13807_v43 }
0x2e4b   :  { %v11766_v31 = vpop.f32.mrf.mxu0 }
0x2e4d   :  { %v6108_v48 = vpop.f32.mrf.mxu0 }
0x2e4e   :  { %v13881_v16 = vadd.f32 %v6108_v48, %v13809_v1 }
0x2e4f   :  { %v11769_v38 = vpop.f32.mrf.mxu0 }
0x2e54   :  { %v6228_v20 = vpop.xlane.xlu0 %6227 }
0x2e55   :  { %v6235_v21 = vsub.f32 %v6223_v17, %v6228_v20 }
0x2e57   :  { %v6238_v22 = vmul.f32 1.442695, %v6235_v21 }
0x2e58   :  { %v6231_v25 = vpop.xlane.xlu1 %6230 }
0x2e59   :  { %12493 = vpow2.f32 %v6238_v22  ;;  %v6236_v29 = vsub.f32 %v6224_v58, %v6231_v25 }
0x2e5b   :  { %v6240_v10 = vmul.f32 1.442695, %v6236_v29 }
0x2e5c   :  { %v6234_v32 = vpop.xlane.xlu0 %6233 }
0x2e5d   :  { %12495 = vpow2.f32 %v6240_v10  ;;  %v6237_v33 = vsub.f32 %v6225_v9, %v6234_v32 }
0x2e5f   :  { %v6242_v35 = vmul.f32 1.442695, %v6237_v33 }
0x2e61   :  { %12497 = vpow2.f32 %v6242_v35 }
0x2e66   :  { %v12494_v43 = vpop.eup %12493 }
0x2e67   :  { %v6244_v34 = vsel %vm374_vm2, %v12494_v43, 0.0 }
0x2e68   :  { %6245 = vadd.xlane.f32.xlu0 %v6244_v34  ;;  %v6519_v34 = vld [vmem:[%s13945_s3 + $0x10] sm:$0xff] }
0x2e6a   :  { %v12496_v1 = vpop.eup %12495 }
0x2e6b   :  { %v6247_v36 = vsel %vm374_vm2, %v12496_v1, 0.0 }
0x2e6c   :  { %6248 = vadd.xlane.f32.xlu1 %v6247_v36  ;;  %v6517_v36 = vld [vmem:[%s13945_s3] sm:$0xff] }
0x2e6e   :  { %v12498_v18 = vpop.eup %12497 }
0x2e6f   :  { %v6250_v27 = vsel %vm5259_vm10, %v12498_v18, 0.0 }
0x2e70   :  { %6251 = vadd.xlane.f32.xlu0 %v6250_v27  ;;  %v6528_v27 = vld [vmem:[%s13958_s5 + $0x30] sm:$0xff] }
0x2e7d   :  { %6261 = vrot.lane.b32.xlu1 %v13630_v14, %s14773_s28 }
0x2e82   :  { %v6113_v30 = vpop.f32.mrf.mxu0 }
0x2e83   :  { %v6119_v49 = vadd.f32 %v6113_v30, %v13811_v52  ;;  %v6527_v30 = vld [vmem:[%s13958_s5 + $0x28] sm:$0xff] }
0x2e84   :  { %v11772_v11 = vpop.f32.mrf.mxu0 }
0x2e85   :  { %v6525_v11 = vld [vmem:[%s13958_s5 + $0x18] sm:$0xff] }
0x2e86   :  { %6259 = vrot.lane.b32.xlu0 %v13632_v19, %s14773_s28  ;;  %s12699_s28 = smov 38  }
0x2e87   :  { %s13978_s30 = sld [smem:[%s14770_s0 + %s12699_s28]]  }
0x2e88   :  { %s14018_s28 = sld [smem:[%s14770_s0 + %s12701_s12]]   ;;  %s14789_s12 = smov 48  }
0x2ef1   :  { %v6246_v56 = vpop.xlane.xlu0 %6245 }
0x2ef2   :  { %12499 = vrcp.f32 %v6246_v56 }
0x2ef5   :  { %v6249_v12 = vpop.xlane.xlu1 %6248 }
0x2ef6   :  { %12501 = vrcp.f32 %v6249_v12 }
0x2ef9   :  { %v6252_v37 = vpop.xlane.xlu0 %6251  ;;  %v6262_v39 = vpop.permute.xlu1 %6261 }
0x2efa   :  { %12503 = vrcp.f32 %v6252_v37  ;;  %11787 = vmatpush3.msra.mxu0 %v6262_v39 }
0x2efb   :  { %11788 = vmatprep.subr.mxu0 %v12675_v15 }
0x2efd   :  { %v6260_v14 = vpop.permute.xlu0 %6259 }
0x2efe   :  { %11789 = vmatpush3.msra.mxu0 %v6260_v14 }
0x2eff   :  { %v12500_v52 = vpop.eup %12499  ;;  %11810 = vmatprep.subr.mxu0 %v12675_v15 }
0x2f00   :  { %v6256_v19 = vmul.f32 %v12500_v52, %v12494_v43  ;;  %v6520_v43 = vld [vmem:[%s13945_s3 + $0x18] sm:$0xff] }
0x2f02   :  { %11791 = vmatmul.mubr.msk.f32.vlgmr.msra.gmra.mxu0 %vm374_vm2, %v6256_v19 }
0x2f03   :  { %v12502_v40 = vpop.eup %12501  ;;  %11793 = vmatprep.mubr.msk.f32.mxu0 %vm12678_vm4, %v12675_v15  ;;  %11811 = vmatpush3.msra.mxu0 %v6520_v43 }
0x2f04   :  { %v6257_v24 = vmul.f32 %v12502_v40, %v12496_v1  ;;  %11812 = vmatprep.subr.mxu0 %v12675_v15  ;;  %v6518_v1 = vld [vmem:[%s13945_s3 + $0x8] sm:$0xff] }
0x2f05   :  { %11813 = vmatpush3.msra.mxu0 %v6519_v34 }
0x2f06   :  { %11794 = vmatmul.mubr.msk.f32.gmra.mxu0 %vm374_vm2, %v6257_v24  ;;  %11814 = vmatprep.subr.mxu0 %v12675_v15 }
0x2f07   :  { %v12504_v41 = vpop.eup %12503  ;;  %11796 = vmatprep.mubr.msk.f32.mxu0 %vm12678_vm4, %v12675_v15  ;;  %11815 = vmatpush3.msra.mxu0 %v6518_v1 }
0x2f08   :  { %v6258_v44 = vmul.f32 %v12504_v41, %v12498_v18  ;;  %11816 = vmatprep.subr.mxu0 %v12675_v15  ;;  %v6529_v18 = vld [vmem:[%s13958_s5 + $0x38] sm:$0xff]  ;;  %v10555_v41 = vld [vmem:[%s13973_s29] ss:$0 sm:$0xff] }
0x2f09   :  { %11817 = vmatpush3.msra.mxu0 %v6517_v36 }
0x2f0a   :  { %11797 = vmatmul.mubr.msk.f32.gmra.mxu0 %vm374_vm2, %v6258_v44  ;;  %11852 = vmatprep.subr.mxu0 %v12675_v15 }
0x2f0b   :  { %11818 = vmatprep.mubr.msk.f32.mxu0 %vm12678_vm4, %v12675_v15 }
0x2fc2   :  { %v6340_v47 = vpop.f32.mrf.mxu0 }
0x2fc3   :  { %11802 = vmatmul.mubr.msk.f32.vlgmr.msra.gmra.mxu1 %vm286_vm1, %v6340_v47  ;;  %v10556_v47 = vld [vmem:[%s13978_s30] ss:$0 sm:$0xff] }
0x2fc4   :  { %v11792_v50 = vpop.f32.mrf.mxu0  ;;  %11804 = vmatprep.mubr.msk.f32.mxu1 %vm12678_vm4, %v12675_v15  ;;  %11828 = vmatpush3.msra.mxu1 %v6529_v18 }
0x2fc5   :  { %11829 = vmatprep.subr.mxu1 %v12675_v15 }
0x2fc6   :  { %v6345_v51 = vpop.f32.mrf.mxu0  ;;  %11830 = vmatpush3.msra.mxu1 %v6528_v27 }
0x2fc7   :  { %11805 = vmatmul.mubr.msk.f32.gmra.mxu1 %vm286_vm1, %v6345_v51  ;;  %11831 = vmatprep.subr.mxu1 %v12675_v15 }
0x2fc8   :  { %v11795_v53 = vpop.f32.mrf.mxu0  ;;  %11807 = vmatprep.mubr.msk.f32.mxu1 %vm12678_vm4, %v12675_v15  ;;  %11832 = vmatpush3.msra.mxu1 %v6527_v30 }
0x2fc9   :  { %11833 = vmatprep.subr.mxu1 %v12675_v15 }
0x2fca   :  { %v6350_v54 = vpop.f32.mrf.mxu0 }
0x2fcb   :  { %11808 = vmatmul.mubr.msk.f32.gmra.mxu1 %vm286_vm1, %v6350_v54 }
0x2fcc   :  { %v11798_v5 = vpop.f32.mrf.mxu0  ;;  %11843 = vmatprep.mubr.msk.f32.mxu1 %vm12678_vm4, %v12675_v15 }
0x3083   :  { %v6429_v57 = vpop.f32.mrf.mxu1 }
0x3084   :  { %v6443_v4 = vadd.f32 %v6429_v57, %v13878_v26 }
0x3085   :  { %v11803_v59 = vpop.f32.mrf.mxu1 }
0x3086   :  { %v6452_v17 = vadd.f32 %v10554_v55, %v6443_v4 }
0x3087   :  { %v6434_v61 = vpop.f32.mrf.mxu1 }
0x3088   :  { %v6444_v62 = vadd.f32 %v6434_v61, %v13881_v16  ;;  %v6455_v63 = vadd.f32 %v6452_v17, %v13604_v7  ;;  %v6524_v61 = vld [vmem:[%s13958_s5 + $0x10] sm:$0xff] }
0x3089   :  { %v11806_v6 = vpop.f32.mrf.mxu1 }
0x308a   :  { %v6453_v58 = vadd.f32 %v10554_v55, %v6444_v62  ;;  %v6460_v23 = vsel %vm193_vm0, %v6455_v63, 0.0  ;;  %v6523_v62 = vld [vmem:[%s13958_s5 + $0x8] sm:$0xff]  ;;  %v10557_v6 = vld [vmem:[%s14003_s10] ss:$0 sm:$0xff] }
0x308b   :  { %6461 = vadd.xlane.f32.xlu1 %v6460_v23  ;;  %v6439_v3 = vpop.f32.mrf.mxu1 }
0x308c   :  { %v6445_v60 = vadd.f32 %v6439_v3, %v6119_v49  ;;  %v6456_v42 = vadd.f32 %v6453_v58, %v13611_v13  ;;  %v6526_v49 = vld [vmem:[%s13958_s5 + $0x20] sm:$0xff] }
0x308d   :  { %v11809_v9 = vpop.f32.mrf.mxu1  ;;  %11834 = vmatpush3.msra.mxu1 %v6526_v49 }
0x308e   :  { %v6454_v2 = vadd.f32 %v10554_v55, %v6445_v60  ;;  %v6463_v0 = vsel %vm193_vm0, %v6456_v42, 0.0  ;;  %11835 = vmatprep.subr.mxu1 %v12675_v15 }
0x308f   :  { %6464 = vadd.xlane.f32.xlu0 %v6463_v0  ;;  %11836 = vmatpush3.msra.mxu1 %v6525_v11 }
0x3090   :  { %v6457_v26 = vadd.f32 %v6454_v2, %v13618_v45  ;;  %11837 = vmatprep.subr.mxu1 %v12675_v15 }
0x3091   :  { %11838 = vmatpush3.msra.mxu1 %v6524_v61 }
0x3092   :  { %v6466_v31 = vsel %vm4903_vm9, %v6457_v26, 0.0  ;;  %11839 = vmatprep.subr.mxu1 %v12675_v15 }
0x3093   :  { %6467 = vadd.xlane.f32.xlu1 %v6466_v31  ;;  %11840 = vmatpush3.msra.mxu1 %v6523_v62 }
0x3094   :  { %11841 = vmatprep.subr.mxu1 %v12675_v15 }
0x3114   :  { %v6462_v7 = vpop.xlane.xlu1 %6461 }
0x3115   :  { %v6469_v48 = vmul.f32 0.03125, %v6462_v7 }
0x3117   :  { %v13927_v16 = vsub.f32 %v6455_v63, %v6469_v48  ;;  %v6522_v63 = vld [vmem:[%s13958_s5] sm:$0xff] }
0x3118   :  { %v6465_v38 = vpop.xlane.xlu0 %6464  ;;  %11842 = vmatpush3.msra.mxu1 %v6522_v63  ;;  %v10566_v63 = vld [vmem:[%s14044_s19] ss:$0 sm:$0xff] }
0x3119   :  { %v6470_v20 = vmul.f32 0.03125, %v6465_v38  ;;  %v6475_v21 = vmul.f32 %v13927_v16, %v13927_v16  ;;  %11869 = vmatprep.subr.mxu1 %v12675_v15 }
0x311b   :  { %v13931_v13 = vsub.f32 %v6456_v42, %v6470_v20  ;;  %v6478_v22 = vsel %vm193_vm0, %v6475_v21, 0.0 }
0x311c   :  { %6479 = vadd.xlane.f32.xlu0 %v6478_v22  ;;  %v6468_v25 = vpop.xlane.xlu1 %6467 }
0x311d   :  { %v6471_v29 = vmul.f32 0.03125, %v6468_v25  ;;  %v6476_v45 = vmul.f32 %v13931_v13, %v13931_v13 }
0x311f   :  { %v13936_v10 = vsub.f32 %v6457_v26, %v6471_v29  ;;  %v6481_v32 = vsel %vm193_vm0, %v6476_v45, 0.0 }
0x3120   :  { %6482 = vadd.xlane.f32.xlu1 %v6481_v32 }
0x3121   :  { %v6477_v33 = vmul.f32 %v13936_v10, %v13936_v10 }
0x3123   :  { %v6484_v35 = vsel %vm4903_vm9, %v6477_v33, 0.0 }
0x3124   :  { %6485 = vadd.xlane.f32.xlu0 %v6484_v35 }
0x31a5   :  { %v6480_v8 = vpop.xlane.xlu0 %6479 }
0x31a6   :  { %v6487_v56 = vmul.f32 0.03125, %v6480_v8 }
0x31a8   :  { %v6490_v12 = vadd.f32 1e-05, %v6487_v56 }
0x31a9   :  { %v6483_v37 = vpop.xlane.xlu1 %6482 }
0x31aa   :  { %12505 = vrsqrt.f32 %v6490_v12  ;;  %v6488_v39 = vmul.f32 0.03125, %v6483_v37 }
0x31ac   :  { %v6491_v14 = vadd.f32 1e-05, %v6488_v39 }
0x31ad   :  { %v6486_v52 = vpop.xlane.xlu0 %6485 }
0x31ae   :  { %12507 = vrsqrt.f32 %v6491_v14  ;;  %v6489_v19 = vmul.f32 0.03125, %v6486_v52 }
0x31b0   :  { %v6492_v40 = vadd.f32 1e-05, %v6489_v19 }
0x31b2   :  { %12509 = vrsqrt.f32 %v6492_v40 }
0x31b7   :  { %v12506_v24 = vpop.eup %12505 }
0x31b8   :  { %v6496_v44 = vmul.f32 %v12506_v24, %v13927_v16  ;;  %v10561_v16 = vld [vmem:[%s14018_s28] ss:$0 sm:$0xff]  ;;  %v10570_v24 = vld [vmem:[%s13145_s11 + $0x38] sm:$0xff] }
0x31ba   :  { %v6505_v50 = vmul.f32 %v10555_v41, %v6496_v44  ;;  %v10568_v44 = vld [vmem:[%s13145_s11 + $0x28] sm:$0xff] }
0x31bb   :  { %v12508_v51 = vpop.eup %12507 }
0x31bc   :  { %v6514_v53 = vadd.f32 %v10556_v47, %v6505_v50  ;;  %v6497_v54 = vmul.f32 %v12508_v51, %v13931_v13 }
0x31be   :  { %11819 = vmatmul.mubr.msk.f32.vlgmr.msra.gmra.mxu0 %vm193_vm0, %v6514_v53  ;;  %v6506_v5 = vmul.f32 %v10555_v41, %v6497_v54 }
0x31bf   :  { %v12510_v55 = vpop.eup %12509  ;;  %11821 = vmatprep.mubr.msk.f32.mxu0 %vm12678_vm4, %v12675_v15  ;;  %11853 = vmatpush3.msra.mxu0 %v10570_v24  ;;  %v14135_v24 = vld [vmem:[%s13265_s18 + $0x10] sm:$0x3] }
0x31c0   :  { %v6515_v57 = vadd.f32 %v10556_v47, %v6506_v5  ;;  %v6498_v4 = vmul.f32 %v12510_v55, %v13936_v10  ;;  %11854 = vmatprep.subr.mxu0 %v12675_v15 }
0x31c2   :  { %11822 = vmatmul.mubr.msk.f32.gmra.mxu0 %vm193_vm0, %v6515_v57  ;;  %v6507_v59 = vmul.f32 %v10555_v41, %v6498_v4  ;;  %v10569_v41 = vld [vmem:[%s13145_s11 + $0x30] sm:$0xff] }
0x31c3   :  { %11824 = vmatprep.mubr.msk.f32.mxu0 %vm12678_vm4, %v12675_v15  ;;  %11855 = vmatpush3.msra.mxu0 %v10569_v41 }
0x31c4   :  { %v6516_v17 = vadd.f32 %v10556_v47, %v6507_v59  ;;  %11856 = vmatprep.subr.mxu0 %v12675_v15  ;;  %v10567_v47 = vld [vmem:[%s13145_s11 + $0x20] sm:$0xff]  ;;  %s14038_s11 = sld [smem:[%s14770_s0 + %s12702_s1]]   ;;  %s14788_s1 = smov 112  }
0x31c5   :  { %11857 = vmatpush3.msra.mxu0 %v10568_v44 }
0x31c6   :  { %11825 = vmatmul.mubr.msk.f32.gmra.mxu0 %vm193_vm0, %v6516_v17  ;;  %11858 = vmatprep.subr.mxu0 %v12675_v15 }
0x31c7   :  { %11860 = vmatprep.mubr.msk.f32.mxu0 %vm12678_vm4, %v12675_v15  ;;  %11859 = vmatpush3.msra.mxu0 %v10567_v47 }
0x31c8   :  { %11884 = vmatprep.subr.mxu0 %v12675_v15 }
0x31ca   :  { %v10565_v61 = vld [vmem:[%s14038_s11] ss:$0 sm:$0xff] }
0x327e   :  { %v6612_v58 = vpop.f32.mrf.mxu0 }
0x327f   :  { %v6613_v23 = vadd.f32 %v10557_v6, %v6612_v58 }
0x3280   :  { %v11820_v3 = vpop.f32.mrf.mxu0 }
0x3281   :  { %v6626_v60 = vmax.f32 %v6613_v23, 0.0 }
0x3282   :  { %v6617_v42 = vpop.f32.mrf.mxu0 }
0x3283   :  { %v6618_v9 = vadd.f32 %v10557_v6, %v6617_v42  ;;  %11844 = vmatmul.mubr.msk.f32.vlgmr.msra.gmra.mxu1 %vm1588_vm3, %v6626_v60 }
0x3284   :  { %v11823_v2 = vpop.f32.mrf.mxu0  ;;  %11846 = vmatprep.mubr.msk.f32.mxu1 %vm12678_vm4, %v12675_v15 }
0x3285   :  { %v6627_v0 = vmax.f32 %v6618_v9, 0.0 }
0x3286   :  { %v6622_v26 = vpop.f32.mrf.mxu0 }
0x3287   :  { %v6623_v31 = vadd.f32 %v10557_v6, %v6622_v26  ;;  %11847 = vmatmul.mubr.msk.f32.gmra.mxu1 %vm1588_vm3, %v6627_v0 }
0x3288   :  { %v11826_v7 = vpop.f32.mrf.mxu0  ;;  %11849 = vmatprep.mubr.msk.f32.mxu1 %vm12678_vm4, %v12675_v15 }
0x3289   :  { %v6628_v48 = vmax.f32 %v6623_v31, 0.0 }
0x328b   :  { %11850 = vmatmul.mubr.msk.f32.gmra.mxu1 %vm1588_vm3, %v6628_v48  ;;  %v10572_v48 = vld [vmem:[%s13200_s6 + $0x1] ss:$0 sm:$0xff]  ;;  %s14786_s6 = smov 56  }
0x328c   :  { %11875 = vmatprep.mubr.msk.f32.mxu1 %vm12678_vm4, %v12675_v15 }
0x3343   :  { %v6710_v38 = vpop.f32.mrf.mxu1 }
0x3344   :  { %v6711_v20 = vadd.f32 %v10561_v16, %v6710_v38 }
0x3345   :  { %v11845_v21 = vpop.f32.mrf.mxu1 }
0x3346   :  { %v6724_v13 = vadd.f32 %v6711_v20, %v6514_v53 }
0x3347   :  { %v6715_v22 = vpop.f32.mrf.mxu1 }
0x3348   :  { %v6716_v25 = vadd.f32 %v10561_v16, %v6715_v22  ;;  %v6729_v29 = vsel %vm193_vm0, %v6724_v13, 0.0 }
0x3349   :  { %6730 = vadd.xlane.f32.xlu1 %v6729_v29  ;;  %v11848_v45 = vpop.f32.mrf.mxu1 }
0x334a   :  { %v6725_v10 = vadd.f32 %v6716_v25, %v6515_v57 }
0x334b   :  { %v6720_v32 = vpop.f32.mrf.mxu1 }
0x334c   :  { %v6721_v33 = vadd.f32 %v10561_v16, %v6720_v32  ;;  %v6732_v35 = vsel %vm193_vm0, %v6725_v10, 0.0 }
0x334d   :  { %6733 = vadd.xlane.f32.xlu0 %v6732_v35  ;;  %v11851_v43 = vpop.f32.mrf.mxu1 }
0x334e   :  { %v6726_v34 = vadd.f32 %v6721_v33, %v6516_v17 }
0x3350   :  { %v6735_v1 = vsel %vm4903_vm9, %v6726_v34, 0.0 }
0x3351   :  { %6736 = vadd.xlane.f32.xlu1 %v6735_v1 }
0x33d2   :  { %v6731_v36 = vpop.xlane.xlu1 %6730 }
0x33d3   :  { %v6738_v18 = vmul.f32 0.03125, %v6731_v36 }
0x33d5   :  { %v6741_v27 = vsub.f32 %v6724_v13, %v6738_v18 }
0x33d6   :  { %v6734_v30 = vpop.xlane.xlu0 %6733 }
0x33d7   :  { %v6739_v49 = vmul.f32 0.03125, %v6734_v30  ;;  %v6744_v11 = vmul.f32 %v6741_v27, %v6741_v27  ;;  %v14125_v30 = vld [vmem:[%s13265_s18] sm:$0xff] }
0x33d9   :  { %v6742_v8 = vsub.f32 %v6725_v10, %v6739_v49  ;;  %v6747_v56 = vsel %vm193_vm0, %v6744_v11, 0.0 }
0x33da   :  { %6748 = vadd.xlane.f32.xlu0 %v6747_v56  ;;  %v6737_v12 = vpop.xlane.xlu1 %6736 }
0x33db   :  { %v6740_v37 = vmul.f32 0.03125, %v6737_v12  ;;  %v6745_v39 = vmul.f32 %v6742_v8, %v6742_v8 }
0x33dd   :  { %v6743_v14 = vsub.f32 %v6726_v34, %v6740_v37  ;;  %v6750_v52 = vsel %vm193_vm0, %v6745_v39, 0.0  ;;  %v14130_v37 = vld [vmem:[%s13265_s18 + $0x8] sm:$0xff]  ;;  %s14787_s18 = smov 80  }
0x33de   :  { %6751 = vadd.xlane.f32.xlu1 %v6750_v52 }
0x33df   :  { %v6746_v19 = vmul.f32 %v6743_v14, %v6743_v14 }
0x33e1   :  { %v6753_v40 = vsel %vm4903_vm9, %v6746_v19, 0.0 }
0x33e2   :  { %6754 = vadd.xlane.f32.xlu0 %v6753_v40 }
0x3463   :  { %v6749_v50 = vpop.xlane.xlu0 %6748 }
0x3464   :  { %v6756_v51 = vmul.f32 0.03125, %v6749_v50 }
0x3466   :  { %v6759_v53 = vadd.f32 1e-05, %v6756_v51 }
0x3467   :  { %v6752_v54 = vpop.xlane.xlu1 %6751 }
0x3468   :  { %12511 = vrsqrt.f32 %v6759_v53  ;;  %v6757_v5 = vmul.f32 0.03125, %v6752_v54 }
0x346a   :  { %v6760_v55 = vadd.f32 1e-05, %v6757_v5 }
0x346b   :  { %v6755_v57 = vpop.xlane.xlu0 %6754 }
0x346c   :  { %12513 = vrsqrt.f32 %v6760_v55  ;;  %v6758_v4 = vmul.f32 0.03125, %v6755_v57 }
0x346e   :  { %v6761_v59 = vadd.f32 1e-05, %v6758_v4 }
0x3470   :  { %12515 = vrsqrt.f32 %v6761_v59 }
0x3475   :  { %v12512_v17 = vpop.eup %12511 }
0x3476   :  { %v6765_v62 = vmul.f32 %v12512_v17, %v6741_v27 }
0x3478   :  { %v6774_v6 = vmul.f32 %v10565_v61, %v6765_v62 }
0x3479   :  { %v12514_v58 = vpop.eup %12513 }
0x347a   :  { %v14048_v23 = vadd.f32 %v10566_v63, %v6774_v6  ;;  %v6766_v3 = vmul.f32 %v12514_v58, %v6742_v8 }
0x347c   :  { %11861 = vmatmul.mubr.msk.f32.vlgmr.msra.gmra.mxu0 %vm193_vm0, %v14048_v23  ;;  %v6775_v60 = vmul.f32 %v10565_v61, %v6766_v3 }
0x347d   :  { %v12516_v42 = vpop.eup %12515  ;;  %11863 = vmatprep.mubr.msk.f32.mxu0 %vm12678_vm4, %v12675_v15 }
0x347e   :  { %v14054_v9 = vadd.f32 %v10566_v63, %v6775_v60  ;;  %v6767_v2 = vmul.f32 %v12516_v42, %v6743_v14 }
0x3480   :  { %11864 = vmatmul.mubr.msk.f32.gmra.mxu0 %vm193_vm0, %v14054_v9  ;;  %v6776_v0 = vmul.f32 %v10565_v61, %v6767_v2 }
0x3481   :  { %11866 = vmatprep.mubr.msk.f32.mxu0 %vm12678_vm4, %v12675_v15 }
0x3482   :  { %v14060_v26 = vadd.f32 %v10566_v63, %v6776_v0 }
0x3484   :  { %11867 = vmatmul.mubr.msk.f32.gmra.mxu0 %vm193_vm0, %v14060_v26 }
0x3485   :  { %11890 = vmatprep.mubr.msk.f32.mxu0 %vm12678_vm4, %v12675_v15 }
0x353c   :  { %v6874_v31 = vpop.f32.mrf.mxu0 }
0x353d   :  { %v14077_v25 = vadd.f32 %v10572_v48, %v6874_v31 }
0x353e   :  { %v11862_v7 = vpop.f32.mrf.mxu0 }
0x3540   :  { %v6879_v16 = vpop.f32.mrf.mxu0 }
0x3541   :  { %v14067_v38 = vadd.f32 %v10572_v48, %v6879_v16 }
0x3542   :  { %v11865_v20 = vpop.f32.mrf.mxu0 }
0x3543   :  { %6900 = vrot.lane.b32.xlu0 %v14067_v38, %s12653_s14 }
0x3544   :  { %v6884_v21 = vpop.f32.mrf.mxu0 }
0x3545   :  { %v14071_v13 = vadd.f32 %v10572_v48, %v6884_v21 }
0x3546   :  { %v11868_v22 = vpop.f32.mrf.mxu0 }
0x3547   :  { %7142 = vrot.lane.b32.xlu0 %v14067_v38, %s12657_s21  ;;  %6902 = vrot.lane.b32.xlu1 %v14071_v13, %s12653_s14 }
0x354b   :  { %7134 = vrot.lane.b32.xlu0 %v14077_v25, %s12656_s20  ;;  %6898 = vrot.lane.b32.xlu1 %v14077_v25, %s12653_s14 }
0x354f   :  { %7138 = vrot.lane.b32.xlu0 %v14071_v13, %s12656_s20  ;;  %7144 = vrot.lane.b32.xlu1 %v14071_v13, %s12657_s21 }
0x3553   :  { %7140 = vrot.lane.b32.xlu1 %v14077_v25, %s12657_s21 }
0x3557   :  { %7136 = vrot.lane.b32.xlu1 %v14067_v38, %s12656_s20 }
0x35b5   :  { %v6901_v45 = vpop.permute.xlu0 %6900 }
0x35b9   :  { %v6903_v29 = vpop.permute.xlu1 %6902  ;;  %v7143_v33 = vpop.permute.xlu0 %7142 }
0x35ba   :  { %11870 = vmatpush3.xpose.msk.msra.mxu1 %vm286_vm1, %v6903_v29 }
0x35bb   :  { %11871 = vmatprep.subr.mxu1 %v12675_v15 }
0x35bd   :  { %v6899_v10 = vpop.permute.xlu1 %6898  ;;  %v7135_v43 = vpop.permute.xlu0 %7134 }
0x35be   :  { %11872 = vmatpush3.xpose.msk.msra.mxu1 %vm286_vm1, %v6901_v45 }
0x35bf   :  { %11873 = vmatprep.subr.mxu1 %v12675_v15 }
0x35c1   :  { %v7145_v32 = vpop.permute.xlu1 %7144  ;;  %v7139_v1 = vpop.permute.xlu0 %7138 }
0x35c2   :  { %11874 = vmatpush3.xpose.msk.msra.mxu1 %vm286_vm1, %v6899_v10 }
0x35c3   :  { %11899 = vmatprep.subr.mxu1 %v12675_v15 }
0x35c5   :  { %11876 = vmatmul.mubr.msk.f32.vlgmr.msra.gmra.mxu1 %vm286_vm1, %v14077_v25  ;;  %v7141_v35 = vpop.permute.xlu1 %7140 }
0x35c6   :  { %11900 = vmatpush3.xpose.msk.msra.mxu1 %vm286_vm1, %v7145_v32  ;;  %11878 = vmatprep.mubr.msk.f32.mxu1 %vm12678_vm4, %v12675_v15 }
0x35c7   :  { %11901 = vmatprep.subr.mxu1 %v12675_v15 }
0x35c9   :  { %11879 = vmatmul.mubr.msk.f32.gmra.mxu1 %vm286_vm1, %v14067_v38  ;;  %v7137_v34 = vpop.permute.xlu1 %7136 }
0x35ca   :  { %11902 = vmatpush3.xpose.msk.msra.mxu1 %vm286_vm1, %v7143_v33  ;;  %11881 = vmatprep.mubr.msk.f32.mxu1 %vm12678_vm4, %v12675_v15 }
0x35cb   :  { %11903 = vmatprep.subr.mxu1 %v12675_v15 }
0x35cd   :  { %11882 = vmatmul.mubr.msk.f32.gmra.mxu1 %vm286_vm1, %v14071_v13 }
0x35ce   :  { %11904 = vmatpush3.xpose.msk.msra.mxu1 %vm286_vm1, %v7141_v35  ;;  %11905 = vmatprep.mubr.msk.f32.mxu1 %vm12678_vm4, %v12675_v15 }
0x35cf   :  { %11929 = vmatprep.subr.mxu1 %v12675_v15 }
0x35d1   :  { %11906 = vmatmul.mubr.msk.f32.vlgmr.msra.gmra.mxu1 %vm286_vm1, %v7135_v43 }
0x35d2   :  { %11908 = vmatprep.mubr.msk.f32.mxu1 %vm12678_vm4, %v12675_v15 }
0x35d5   :  { %11909 = vmatmul.mubr.msk.f32.gmra.mxu1 %vm286_vm1, %v7137_v34 }
0x35d6   :  { %11911 = vmatprep.mubr.msk.f32.mxu1 %vm12678_vm4, %v12675_v15 }
0x35d9   :  { %11912 = vmatmul.mubr.msk.f32.gmra.mxu1 %vm286_vm1, %v7139_v1 }
0x35da   :  { %11931 = vmatprep.mubr.msk.f32.mxu1 %vm12678_vm4, %v12675_v15 }
0x3685   :  { %v6982_v36 = vpop.f32.mrf.mxu1 }
0x3686   :  { %v6996_v18 = vmul.f32 0.35355338, %v6982_v36 }
0x3687   :  { %v11877_v27 = vpop.f32.mrf.mxu1 }
0x3688   :  { %v6999_v49 = vadd.f32 %v14125_v30, %v6996_v18 }
0x3689   :  { %v6987_v11 = vpop.f32.mrf.mxu1 }
0x368a   :  { %v6997_v8 = vmul.f32 0.35355338, %v6987_v11  ;;  %v7002_v56 = vsel %vm3661_vm7, %v6999_v49, -inf }
0x368b   :  { %7003 = vmax.xlane.f32.xlu1 %v7002_v56  ;;  %v11880_v12 = vpop.f32.mrf.mxu1 }
0x368c   :  { %v7000_v39 = vadd.f32 %v14130_v37, %v6997_v8 }
0x368d   :  { %v6992_v14 = vpop.f32.mrf.mxu1 }
0x368e   :  { %v6998_v52 = vmul.f32 0.35355338, %v6992_v14  ;;  %v7005_v19 = vsel %vm3661_vm7, %v7000_v39, -inf }
0x368f   :  { %7006 = vmax.xlane.f32.xlu0 %v7005_v19  ;;  %v11883_v40 = vpop.f32.mrf.mxu1 }
0x3690   :  { %v7001_v41 = vadd.f32 %v14135_v24, %v6998_v52 }
0x3691   :  { %v7224_v44 = vpop.f32.mrf.mxu1 }
0x3692   :  { %v7238_v47 = vmul.f32 0.35355338, %v7224_v44  ;;  %v7008_v50 = vsel %vm3668_vm8, %v7001_v41, -inf }
0x3693   :  { %7009 = vmax.xlane.f32.xlu0 %v7008_v50  ;;  %v11907_v51 = vpop.f32.mrf.mxu1 }
0x3694   :  { %v7241_v53 = vadd.f32 %v14125_v30, %v7238_v47 }
0x3695   :  { %v7229_v54 = vpop.f32.mrf.mxu1 }
0x3696   :  { %v7239_v5 = vmul.f32 0.35355338, %v7229_v54  ;;  %v7244_v55 = vsel %vm3661_vm7, %v7241_v53, -inf }
0x3697   :  { %7245 = vmax.xlane.f32.xlu1 %v7244_v55  ;;  %v11910_v57 = vpop.f32.mrf.mxu1 }
0x3698   :  { %v7242_v4 = vadd.f32 %v14130_v37, %v7239_v5 }
0x3699   :  { %v7234_v59 = vpop.f32.mrf.mxu1 }
0x369a   :  { %v7240_v17 = vmul.f32 0.35355338, %v7234_v59  ;;  %v7247_v61 = vsel %vm3661_vm7, %v7242_v4, -inf }
0x369b   :  { %7248 = vmax.xlane.f32.xlu0 %v7247_v61  ;;  %v11913_v62 = vpop.f32.mrf.mxu1 }
0x369c   :  { %v7243_v63 = vadd.f32 %v14135_v24, %v7240_v17 }
0x369e   :  { %v7250_v6 = vsel %vm3668_vm8, %v7243_v63, -inf }
0x369f   :  { %7251 = vmax.xlane.f32.xlu1 %v7250_v6 }
0x36b0   :  { %7037 = vrot.lane.b32.xlu1 %v14067_v38, %s14785_s26 }
0x36b1   :  { %7039 = vrot.lane.b32.xlu0 %v14071_v13, %s14785_s26 }
0x36b4   :  { %7035 = vrot.lane.b32.xlu1 %v14077_v25, %s14785_s26 }
0x36b5   :  { %7281 = vrot.lane.b32.xlu0 %v14071_v13, %s14786_s6 }
0x3714   :  { %v7004_v58 = vpop.xlane.xlu1 %7003 }
0x3715   :  { %v7011_v3 = vsub.f32 %v6999_v49, %v7004_v58 }
0x3717   :  { %v7014_v60 = vmul.f32 1.442695, %v7011_v3 }
0x3718   :  { %v7007_v42 = vpop.xlane.xlu0 %7006 }
0x3719   :  { %12517 = vpow2.f32 %v7014_v60  ;;  %v7012_v2 = vsub.f32 %v7000_v39, %v7007_v42  ;;  %v10576_v60 = vld [vmem:[%s13347_s16 + $0x20] sm:$0xff]  ;;  %v10577_v42 = vld [vmem:[%s13347_s16 + $0x28] sm:$0xff] }
0x371a   :  { %11930 = vmatpush3.msra.mxu1 %v10577_v42 }
0x371b   :  { %v7016_v0 = vmul.f32 1.442695, %v7012_v2  ;;  %11951 = vmatprep.subr.mxu1 %v12675_v15 }
0x371c   :  { %v7010_v31 = vpop.xlane.xlu0 %7009 }
0x371d   :  { %12519 = vpow2.f32 %v7016_v0  ;;  %v7013_v7 = vsub.f32 %v7001_v41, %v7010_v31 }
0x371f   :  { %v7018_v48 = vmul.f32 1.442695, %v7013_v7 }
0x3720   :  { %v7246_v16 = vpop.xlane.xlu1 %7245 }
0x3721   :  { %12521 = vpow2.f32 %v7018_v48  ;;  %v7253_v20 = vsub.f32 %v7241_v53, %v7246_v16 }
0x3723   :  { %v7256_v21 = vmul.f32 1.442695, %v7253_v20 }
0x3724   :  { %v7249_v22 = vpop.xlane.xlu0 %7248 }
0x3725   :  { %12523 = vpow2.f32 %v7256_v21  ;;  %v7254_v29 = vsub.f32 %v7242_v4, %v7249_v22 }
0x3726   :  { %v12518_v45 = vpop.eup %12517 }
0x3727   :  { %v7258_v10 = vmul.f32 1.442695, %v7254_v29  ;;  %v7020_v32 = vsel %vm3661_vm7, %v12518_v45, 0.0 }
0x3728   :  { %v7040_v33 = vpop.permute.xlu0 %7039  ;;  %7021 = vadd.xlane.f32.xlu0 %v7020_v32  ;;  %v7252_v35 = vpop.xlane.xlu1 %7251 }
0x3729   :  { %12525 = vpow2.f32 %v7258_v10  ;;  %v7255_v43 = vsub.f32 %v7243_v63, %v7252_v35  ;;  %11885 = vmatpush3.msk.msra.mxu0 %vm3356_vm5, %v7040_v33 }
0x372a   :  { %v12520_v34 = vpop.eup %12519  ;;  %11886 = vmatprep.subr.mxu0 %v12675_v15 }
0x372b   :  { %v7260_v1 = vmul.f32 1.442695, %v7255_v43  ;;  %v7023_v36 = vsel %vm3661_vm7, %v12520_v34, 0.0 }
0x372c   :  { %7024 = vadd.xlane.f32.xlu1 %v7023_v36  ;;  %v7038_v18 = vpop.permute.xlu1 %7037  ;;  %v7282_v19 = vpop.permute.xlu0 %7281 }
0x372d   :  { %12527 = vpow2.f32 %v7260_v1  ;;  %11887 = vmatpush3.msra.mxu0 %v7038_v18 }
0x372e   :  { %v12522_v27 = vpop.eup %12521  ;;  %11888 = vmatprep.subr.mxu0 %v12675_v15 }
0x372f   :  { %v7026_v49 = vsel %vm3668_vm8, %v12522_v27, 0.0 }
0x3730   :  { %7027 = vadd.xlane.f32.xlu0 %v7026_v49  ;;  %v7036_v11 = vpop.permute.xlu1 %7035 }
0x3731   :  { %11889 = vmatpush3.msra.mxu0 %v7036_v11 }
0x3732   :  { %v12524_v8 = vpop.eup %12523  ;;  %11914 = vmatprep.subr.mxu0 %v12675_v15 }
0x3733   :  { %v7262_v56 = vsel %vm3661_vm7, %v12524_v8, 0.0 }
0x3734   :  { %7263 = vadd.xlane.f32.xlu1 %v7262_v56 }
0x3736   :  { %v12526_v12 = vpop.eup %12525 }
0x3737   :  { %v7265_v39 = vsel %vm3661_vm7, %v12526_v12, 0.0 }
0x3738   :  { %7266 = vadd.xlane.f32.xlu0 %v7265_v39 }
0x373a   :  { %v12528_v14 = vpop.eup %12527 }
0x373b   :  { %v7268_v52 = vsel %vm3668_vm8, %v12528_v14, 0.0 }
0x373c   :  { %7269 = vadd.xlane.f32.xlu1 %v7268_v52 }
0x374d   :  { %7279 = vrot.lane.b32.xlu1 %v14067_v38, %s14786_s6 }
0x374e   :  { %7277 = vrot.lane.b32.xlu0 %v14077_v25, %s14786_s6 }
0x3751   :  { %7564 = vrot.lane.b32.xlu1 %v14071_v13, %s14787_s18 }
0x3752   :  { %7562 = vrot.lane.b32.xlu0 %v14067_v38, %s14787_s18 }
0x3755   :  { %7560 = vrot.lane.b32.xlu1 %v14077_v25, %s14787_s18 }
0x3756   :  { %7554 = vrot.lane.b32.xlu0 %v14077_v25, %s14788_s1 }
0x3759   :  { %7556 = vrot.lane.b32.xlu1 %v14067_v38, %s14788_s1 }
0x375a   :  { %7558 = vrot.lane.b32.xlu0 %v14071_v13, %s14788_s1 }
0x37b1   :  { %v7022_v40 = vpop.xlane.xlu0 %7021 }
0x37b2   :  { %12529 = vrcp.f32 %v7022_v40 }
0x37b5   :  { %v7025_v41 = vpop.xlane.xlu1 %7024 }
0x37b6   :  { %12531 = vrcp.f32 %v7025_v41 }
0x37b9   :  { %v7028_v44 = vpop.xlane.xlu0 %7027 }
0x37ba   :  { %12533 = vrcp.f32 %v7028_v44 }
0x37bd   :  { %v7264_v47 = vpop.xlane.xlu1 %7263 }
0x37be   :  { %12535 = vrcp.f32 %v7264_v47 }
0x37bf   :  { %v12530_v50 = vpop.eup %12529 }
0x37c0   :  { %v7032_v51 = vmul.f32 %v12530_v50, %v12518_v45 }
0x37c1   :  { %v7267_v53 = vpop.xlane.xlu0 %7266 }
0x37c2   :  { %12537 = vrcp.f32 %v7267_v53  ;;  %11891 = vmatmul.mubr.msk.f32.vlgmr.msra.gmra.mxu0 %vm3661_vm7, %v7032_v51 }
0x37c3   :  { %v12532_v54 = vpop.eup %12531  ;;  %11915 = vmatpush3.msk.msra.mxu0 %vm3356_vm5, %v7282_v19  ;;  %11893 = vmatprep.mubr.msk.f32.mxu0 %vm12678_vm4, %v12675_v15 }
0x37c4   :  { %v7033_v5 = vmul.f32 %v12532_v54, %v12520_v34  ;;  %11916 = vmatprep.subr.mxu0 %v12675_v15 }
0x37c5   :  { %v7270_v55 = vpop.xlane.xlu1 %7269  ;;  %v7278_v62 = vpop.permute.xlu0 %7277 }
0x37c6   :  { %12539 = vrcp.f32 %v7270_v55  ;;  %11894 = vmatmul.mubr.msk.f32.gmra.mxu0 %vm3661_vm7, %v7033_v5 }
0x37c7   :  { %v12534_v57 = vpop.eup %12533  ;;  %11896 = vmatprep.mubr.msk.f32.mxu0 %vm12678_vm4, %v12675_v15 }
0x37c8   :  { %v7034_v4 = vmul.f32 %v12534_v57, %v12522_v27 }
0x37c9   :  { %v7280_v59 = vpop.permute.xlu1 %7279  ;;  %v7563_v45 = vpop.permute.xlu0 %7562 }
0x37ca   :  { %11897 = vmatmul.mubr.msk.f32.gmra.mxu0 %vm3661_vm7, %v7034_v4 }
0x37cb   :  { %v12536_v17 = vpop.eup %12535  ;;  %11917 = vmatpush3.msra.mxu0 %v7280_v59  ;;  %11920 = vmatprep.mubr.msk.f32.mxu0 %vm12678_vm4, %v12675_v15 }
0x37cc   :  { %v7274_v61 = vmul.f32 %v12536_v17, %v12524_v8  ;;  %11918 = vmatprep.subr.mxu0 %v12675_v15 }
0x37cd   :  { %11919 = vmatpush3.msra.mxu0 %v7278_v62  ;;  %v7565_v21 = vpop.permute.xlu1 %7564  ;;  %v7555_v43 = vpop.permute.xlu0 %7554 }
0x37ce   :  { %11921 = vmatmul.mubr.msk.f32.vlgmr.msra.gmra.mxu0 %vm3661_vm7, %v7274_v61  ;;  %11940 = vmatprep.subr.mxu0 %v12675_v15 }
0x37cf   :  { %v12538_v63 = vpop.eup %12537  ;;  %11923 = vmatprep.mubr.msk.f32.mxu0 %vm12678_vm4, %v12675_v15  ;;  %11941 = vmatpush3.msra.mxu0 %v10576_v60 }
0x37d0   :  { %v7275_v6 = vmul.f32 %v12538_v63, %v12526_v12  ;;  %11966 = vmatprep.subr.mxu0 %v12675_v15 }
0x37d1   :  { %v7561_v33 = vpop.permute.xlu1 %7560  ;;  %v7559_v1 = vpop.permute.xlu0 %7558 }
0x37d2   :  { %11924 = vmatmul.mubr.msk.f32.gmra.mxu0 %vm3661_vm7, %v7275_v6 }
0x37d3   :  { %v12540_v58 = vpop.eup %12539  ;;  %11926 = vmatprep.mubr.msk.f32.mxu0 %vm12678_vm4, %v12675_v15 }
0x37d4   :  { %v7276_v3 = vmul.f32 %v12540_v58, %v12528_v14 }
0x37d5   :  { %v7557_v34 = vpop.permute.xlu1 %7556 }
0x37d6   :  { %11927 = vmatmul.mubr.msk.f32.gmra.mxu0 %vm3661_vm7, %v7276_v3 }
0x37d7   :  { %11942 = vmatprep.mubr.msk.f32.mxu0 %vm12678_vm4, %v12675_v15 }
0x3882   :  { %v7120_v2 = vpop.f32.mrf.mxu0 }
0x3883   :  { %11943 = vmatmul.mubr.msk.f32.vlgmr.msra.gmra.mxu0 %vm286_vm1, %v7120_v2 }
0x3884   :  { %v11892_v0 = vpop.f32.mrf.mxu0  ;;  %11945 = vmatprep.mubr.msk.f32.mxu0 %vm12678_vm4, %v12675_v15 }
0x3886   :  { %v7125_v31 = vpop.f32.mrf.mxu0 }
0x3887   :  { %11946 = vmatmul.mubr.msk.f32.gmra.mxu0 %vm286_vm1, %v7125_v31 }
0x3888   :  { %v11895_v7 = vpop.f32.mrf.mxu0  ;;  %11948 = vmatprep.mubr.msk.f32.mxu0 %vm12678_vm4, %v12675_v15 }
0x388a   :  { %v7130_v48 = vpop.f32.mrf.mxu0 }
0x388b   :  { %11949 = vmatmul.mubr.msk.f32.gmra.mxu0 %vm286_vm1, %v7130_v48 }
0x388c   :  { %v11898_v16 = vpop.f32.mrf.mxu0  ;;  %11972 = vmatprep.mubr.msk.f32.mxu0 %vm12678_vm4, %v12675_v15 }
0x388e   :  { %v7362_v20 = vpop.f32.mrf.mxu0 }
0x388f   :  { %11932 = vmatmul.mubr.msk.f32.vlgmr.msra.gmra.mxu1 %vm286_vm1, %v7362_v20 }
0x3890   :  { %11952 = vmatpush3.xpose.msk.msra.mxu1 %vm286_vm1, %v7565_v21  ;;  %v11922_v22 = vpop.f32.mrf.mxu0  ;;  %11934 = vmatprep.mubr.msk.f32.mxu1 %vm12678_vm4, %v12675_v15 }
0x3891   :  { %11953 = vmatprep.subr.mxu1 %v12675_v15 }
0x3892   :  { %v7367_v29 = vpop.f32.mrf.mxu0 }
0x3893   :  { %11935 = vmatmul.mubr.msk.f32.gmra.mxu1 %vm286_vm1, %v7367_v29 }
0x3894   :  { %11954 = vmatpush3.xpose.msk.msra.mxu1 %vm286_vm1, %v7563_v45  ;;  %v11925_v10 = vpop.f32.mrf.mxu0  ;;  %11937 = vmatprep.mubr.msk.f32.mxu1 %vm12678_vm4, %v12675_v15 }
0x3895   :  { %11955 = vmatprep.subr.mxu1 %v12675_v15 }
0x3896   :  { %v7372_v32 = vpop.f32.mrf.mxu0 }
0x3897   :  { %11938 = vmatmul.mubr.msk.f32.gmra.mxu1 %vm286_vm1, %v7372_v32 }
0x3898   :  { %11956 = vmatpush3.xpose.msk.msra.mxu1 %vm286_vm1, %v7561_v33  ;;  %v11928_v35 = vpop.f32.mrf.mxu0  ;;  %11957 = vmatprep.mubr.msk.f32.mxu1 %vm12678_vm4, %v12675_v15 }
0x3899   :  { %11981 = vmatprep.subr.mxu1 %v12675_v15 }
0x389b   :  { %11958 = vmatmul.mubr.msk.f32.vlgmr.msra.gmra.mxu1 %vm286_vm1, %v7555_v43 }
0x389c   :  { %11960 = vmatprep.mubr.msk.f32.mxu1 %vm12678_vm4, %v12675_v15 }
0x389f   :  { %11961 = vmatmul.mubr.msk.f32.gmra.mxu1 %vm286_vm1, %v7557_v34 }
0x38a0   :  { %11963 = vmatprep.mubr.msk.f32.mxu1 %vm12678_vm4, %v12675_v15 }
0x38a3   :  { %11964 = vmatmul.mubr.msk.f32.gmra.mxu1 %vm286_vm1, %v7559_v1 }
0x38a4   :  { %11983 = vmatprep.mubr.msk.f32.mxu1 %vm12678_vm4, %v12675_v15 }
0x3943   :  { %v7540_v36 = vpop.f32.mrf.mxu0 }
0x3945   :  { %v11944_v18 = vpop.f32.mrf.mxu0 }
0x3947   :  { %v7545_v27 = vpop.f32.mrf.mxu0 }
0x3949   :  { %v11947_v49 = vpop.f32.mrf.mxu0 }
0x394b   :  { %v7550_v11 = vpop.f32.mrf.mxu0 }
0x394d   :  { %v11950_v8 = vpop.f32.mrf.mxu0 }
0x394f   :  { %v7451_v56 = vpop.f32.mrf.mxu1 }
0x3950   :  { %v14238_v12 = vadd.f32 %v7540_v36, %v7451_v56 }
0x3951   :  { %v11933_v39 = vpop.f32.mrf.mxu1 }
0x3953   :  { %v7456_v14 = vpop.f32.mrf.mxu1 }
0x3954   :  { %v14240_v52 = vadd.f32 %v7545_v27, %v7456_v14 }
0x3955   :  { %v11936_v19 = vpop.f32.mrf.mxu1 }
0x3957   :  { %v7461_v40 = vpop.f32.mrf.mxu1 }
0x3958   :  { %v14242_v41 = vadd.f32 %v7550_v11, %v7461_v40 }
0x3959   :  { %v11939_v44 = vpop.f32.mrf.mxu1 }
0x395a   :  { %v10578_v44 = vld [vmem:[%s13347_s16 + $0x30] sm:$0xff] }
0x395b   :  { %v7644_v47 = vpop.f32.mrf.mxu1  ;;  %11982 = vmatpush3.msra.mxu1 %v10578_v44 }
0x395c   :  { %v7658_v50 = vmul.f32 0.35355338, %v7644_v47  ;;  %12007 = vmatprep.subr.mxu1 %v12675_v15 }
0x395d   :  { %v11959_v51 = vpop.f32.mrf.mxu1 }
0x395e   :  { %v7661_v53 = vadd.f32 %v14125_v30, %v7658_v50 }
0x395f   :  { %v7649_v54 = vpop.f32.mrf.mxu1 }
0x3960   :  { %v7659_v5 = vmul.f32 0.35355338, %v7649_v54  ;;  %v7664_v55 = vsel %vm3661_vm7, %v7661_v53, -inf }
0x3961   :  { %7665 = vmax.xlane.f32.xlu1 %v7664_v55  ;;  %v11962_v57 = vpop.f32.mrf.mxu1 }
0x3962   :  { %v7662_v4 = vadd.f32 %v14130_v37, %v7659_v5 }
0x3963   :  { %v7654_v59 = vpop.f32.mrf.mxu1 }
0x3964   :  { %v7660_v17 = vmul.f32 0.35355338, %v7654_v59  ;;  %v7667_v61 = vsel %vm3661_vm7, %v7662_v4, -inf }
0x3965   :  { %7668 = vmax.xlane.f32.xlu0 %v7667_v61  ;;  %v11965_v62 = vpop.f32.mrf.mxu1 }
0x3966   :  { %v7663_v63 = vadd.f32 %v14135_v24, %v7660_v17 }
0x3968   :  { %v7670_v6 = vsel %vm3668_vm8, %v7663_v63, -inf }
0x3969   :  { %7671 = vmax.xlane.f32.xlu0 %v7670_v6 }
0x3972   :  { %7699 = vrot.lane.b32.xlu1 %v14067_v38, %s14789_s12 }
0x3976   :  { %7697 = vrot.lane.b32.xlu1 %v14077_v25, %s14789_s12 }
0x397f   :  { %7701 = vrot.lane.b32.xlu0 %v14071_v13, %s14789_s12 }
0x39ea   :  { %v7666_v58 = vpop.xlane.xlu1 %7665 }
0x39eb   :  { %v7673_v3 = vsub.f32 %v7661_v53, %v7666_v58 }
0x39ed   :  { %v7676_v60 = vmul.f32 1.442695, %v7673_v3 }
0x39ee   :  { %v7669_v42 = vpop.xlane.xlu0 %7668  ;;  %v7700_v7 = vpop.permute.xlu1 %7699 }
0x39ef   :  { %12541 = vpow2.f32 %v7676_v60  ;;  %v7674_v2 = vsub.f32 %v7662_v4, %v7669_v42 }
0x39f1   :  { %v7678_v0 = vmul.f32 1.442695, %v7674_v2 }
0x39f2   :  { %v7672_v31 = vpop.xlane.xlu0 %7671  ;;  %v7698_v16 = vpop.permute.xlu1 %7697 }
0x39f3   :  { %12543 = vpow2.f32 %v7678_v0  ;;  %v7675_v45 = vsub.f32 %v7663_v63, %v7672_v31 }
0x39f5   :  { %v7680_v10 = vmul.f32 1.442695, %v7675_v45 }
0x39f6   :  { %v7702_v48 = vpop.permute.xlu0 %7701 }
0x39f7   :  { %11967 = vmatpush3.msk.msra.mxu0 %vm3356_vm5, %v7702_v48  ;;  %12545 = vpow2.f32 %v7680_v10 }
0x39f8   :  { %11968 = vmatprep.subr.mxu0 %v12675_v15 }
0x39f9   :  { %11969 = vmatpush3.msra.mxu0 %v7700_v7 }
0x39fa   :  { %11970 = vmatprep.subr.mxu0 %v12675_v15 }
0x39fb   :  { %11971 = vmatpush3.msra.mxu0 %v7698_v16 }
0x39fc   :  { %v12542_v20 = vpop.eup %12541  ;;  %11992 = vmatprep.subr.mxu0 %v12675_v15 }
0x39fd   :  { %v7682_v21 = vsel %vm3661_vm7, %v12542_v20, 0.0 }
0x39fe   :  { %7683 = vadd.xlane.f32.xlu1 %v7682_v21 }
0x3a00   :  { %v12544_v22 = vpop.eup %12543 }
0x3a01   :  { %v7685_v29 = vsel %vm3661_vm7, %v12544_v22, 0.0 }
0x3a02   :  { %7686 = vadd.xlane.f32.xlu0 %v7685_v29 }
0x3a04   :  { %v12546_v32 = vpop.eup %12545 }
0x3a05   :  { %v7688_v33 = vsel %vm3668_vm8, %v12546_v32, 0.0 }
0x3a0f   :  { %7896 = vrot.lane.b32.xlu1 %v14067_v38, %s14790_s23 }
0x3a18   :  { %7898 = vrot.lane.b32.xlu0 %v14071_v13, %s14790_s23 }
0x3a1c   :  { %7894 = vrot.lane.b32.xlu0 %v14077_v25, %s14790_s23 }
0x3a20   :  { %7890 = vrot.lane.b32.xlu0 %v14067_v38, %s14791_s27 }
0x3a33   :  { %7689 = vadd.xlane.f32.xlu1 %v7688_v33 }
0x3a44   :  { %7888 = vrot.lane.b32.xlu1 %v14077_v25, %s14791_s27 }
0x3a48   :  { %7892 = vrot.lane.b32.xlu1 %v14071_v13, %s14791_s27 }
0x3a87   :  { %v7684_v35 = vpop.xlane.xlu1 %7683 }
0x3a88   :  { %12547 = vrcp.f32 %v7684_v35 }
0x3a8b   :  { %v7687_v43 = vpop.xlane.xlu0 %7686  ;;  %v7897_v49 = vpop.permute.xlu1 %7896 }
0x3a8c   :  { %12549 = vrcp.f32 %v7687_v43 }
0x3a8f   :  { %v7899_v36 = vpop.permute.xlu0 %7898 }
0x3a93   :  { %v7895_v11 = vpop.permute.xlu0 %7894 }
0x3a95   :  { %v12548_v34 = vpop.eup %12547 }
0x3a96   :  { %v7694_v1 = vmul.f32 %v12548_v34, %v12542_v20 }
0x3a97   :  { %v7891_v19 = vpop.permute.xlu0 %7890 }
0x3a98   :  { %11973 = vmatmul.mubr.msk.f32.vlgmr.msra.gmra.mxu0 %vm3661_vm7, %v7694_v1 }
0x3a99   :  { %v12550_v18 = vpop.eup %12549  ;;  %11993 = vmatpush3.xpose.msk.msra.mxu0 %vm286_vm1, %v7899_v36  ;;  %11975 = vmatprep.mubr.msk.f32.mxu0 %vm12678_vm4, %v12675_v15 }
0x3a9a   :  { %11994 = vmatprep.subr.mxu0 %v12675_v15  ;;  %v7695_v27 = vmul.f32 %v12550_v18, %v12544_v22 }
0x3a9c   :  { %11976 = vmatmul.mubr.msk.f32.gmra.mxu0 %vm3661_vm7, %v7695_v27 }
0x3a9d   :  { %11995 = vmatpush3.xpose.msk.msra.mxu0 %vm286_vm1, %v7897_v49  ;;  %11978 = vmatprep.mubr.msk.f32.mxu0 %vm12678_vm4, %v12675_v15  ;;  %v10579_v49 = vld [vmem:[%s13347_s16 + $0x38] sm:$0xff] }
0x3a9e   :  { %11996 = vmatprep.subr.mxu0 %v12675_v15 }
0x3aa1   :  { %11997 = vmatpush3.xpose.msk.msra.mxu0 %vm286_vm1, %v7895_v11 }
0x3aa2   :  { %12022 = vmatprep.subr.mxu0 %v12675_v15 }
0x3abc   :  { %v7690_v8 = vpop.xlane.xlu1 %7689 }
0x3abd   :  { %12551 = vrcp.f32 %v7690_v8 }
0x3ac0   :  { %v7889_v14 = vpop.permute.xlu1 %7888 }
0x3ac4   :  { %v7893_v40 = vpop.permute.xlu1 %7892 }
0x3aca   :  { %v12552_v56 = vpop.eup %12551 }
0x3acb   :  { %v7696_v39 = vmul.f32 %v12552_v56, %v12546_v32 }
0x3acd   :  { %11979 = vmatmul.mubr.msk.f32.gmra.mxu0 %vm3661_vm7, %v7696_v39 }
0x3ace   :  { %11998 = vmatprep.mubr.msk.f32.mxu0 %vm12678_vm4, %v12675_v15 }
0x3ad1   :  { %11999 = vmatmul.mubr.msk.f32.vlgmr.msra.gmra.mxu0 %vm286_vm1, %v7889_v14 }
0x3ad2   :  { %12001 = vmatprep.mubr.msk.f32.mxu0 %vm12678_vm4, %v12675_v15  ;;  %12023 = vmatpush3.msra.mxu0 %v10579_v49 }
0x3ad5   :  { %12002 = vmatmul.mubr.msk.f32.gmra.mxu0 %vm286_vm1, %v7891_v19 }
0x3ad6   :  { %12004 = vmatprep.mubr.msk.f32.mxu0 %vm12678_vm4, %v12675_v15 }
0x3ad9   :  { %12005 = vmatmul.mubr.msk.f32.gmra.mxu0 %vm286_vm1, %v7893_v40 }
0x3ada   :  { %12024 = vmatprep.mubr.msk.f32.mxu0 %vm12678_vm4, %v12675_v15 }
0x3b58   :  { %v7782_v47 = vpop.f32.mrf.mxu0 }
0x3b59   :  { %11984 = vmatmul.mubr.msk.f32.vlgmr.msra.gmra.mxu1 %vm286_vm1, %v7782_v47  ;;  %v10650_v47 = vld [vmem:[%s13542_s15 + $0x38] sm:$0xff] }
0x3b5a   :  { %v11974_v50 = vpop.f32.mrf.mxu0  ;;  %11986 = vmatprep.mubr.msk.f32.mxu1 %vm12678_vm4, %v12675_v15  ;;  %12050 = vmatprep.subr.mxu0 %v10650_v47 }
0x3b5c   :  { %v7787_v51 = vpop.f32.mrf.mxu0 }
0x3b5d   :  { %11987 = vmatmul.mubr.msk.f32.gmra.mxu1 %vm286_vm1, %v7787_v51  ;;  %v10649_v51 = vld [vmem:[%s13542_s15 + $0x30] sm:$0xff] }
0x3b5e   :  { %v11977_v53 = vpop.f32.mrf.mxu0  ;;  %11989 = vmatprep.mubr.msk.f32.mxu1 %vm12678_vm4, %v12675_v15 }
0x3b8d   :  { %v7792_v54 = vpop.f32.mrf.mxu0 }
0x3b8e   :  { %11990 = vmatmul.mubr.msk.f32.gmra.mxu1 %vm286_vm1, %v7792_v54  ;;  %v10648_v54 = vld [vmem:[%s13542_s15 + $0x28] sm:$0xff] }
0x3b8f   :  { %v11980_v5 = vpop.f32.mrf.mxu0  ;;  %12013 = vmatprep.mubr.msk.f32.mxu1 %vm12678_vm4, %v12675_v15 }
0x3b91   :  { %v7978_v55 = vpop.f32.mrf.mxu0 }
0x3b92   :  { %v7992_v57 = vmul.f32 0.35355338, %v7978_v55  ;;  %v10647_v55 = vld [vmem:[%s13542_s15 + $0x20] sm:$0xff] }
0x3b93   :  { %v12000_v4 = vpop.f32.mrf.mxu0 }
0x3b94   :  { %v7995_v59 = vadd.f32 %v14125_v30, %v7992_v57 }
0x3b95   :  { %v7983_v17 = vpop.f32.mrf.mxu0 }
0x3b96   :  { %v7993_v61 = vmul.f32 0.35355338, %v7983_v17  ;;  %v7998_v62 = vsel %vm3661_vm7, %v7995_v59, -inf  ;;  %v10633_v17 = vld [vmem:[%s13516_s8 + $0x1] ss:$0 sm:$0xff]  ;;  %s12705_s8 = smov 43  }
0x3b97   :  { %7999 = vmax.xlane.f32.xlu0 %v7998_v62  ;;  %v12003_v63 = vpop.f32.mrf.mxu0 }
0x3b98   :  { %v7996_v6 = vadd.f32 %v14130_v37, %v7993_v61 }
0x3b99   :  { %v7988_v58 = vpop.f32.mrf.mxu0 }
0x3b9a   :  { %v7994_v3 = vmul.f32 0.35355338, %v7988_v58  ;;  %v8001_v60 = vsel %vm3661_vm7, %v7996_v6, -inf }
0x3b9b   :  { %8002 = vmax.xlane.f32.xlu1 %v8001_v60  ;;  %v12006_v42 = vpop.f32.mrf.mxu0 }
0x3b9c   :  { %v7997_v2 = vadd.f32 %v14135_v24, %v7994_v3 }
0x3b9e   :  { %v8004_v0 = vsel %vm3668_vm8, %v7997_v2, -inf }
0x3b9f   :  { %8005 = vmax.xlane.f32.xlu0 %v8004_v0 }
0x3bac   :  { %8035 = vrot.lane.b32.xlu1 %v14071_v13, %s12665_s2 }
0x3c19   :  { %v7871_v30 = vpop.f32.mrf.mxu1 }
0x3c1a   :  { %v14319_v31 = vadd.f32 %v7871_v30, %v14238_v12 }
0x3c1b   :  { %v11985_v7 = vpop.f32.mrf.mxu1 }
0x3c1d   :  { %v7876_v37 = vpop.f32.mrf.mxu1 }
0x3c1e   :  { %v14322_v48 = vadd.f32 %v7876_v37, %v14240_v52 }
0x3c1f   :  { %v11988_v16 = vpop.f32.mrf.mxu1 }
0x3c20   :  { %v8000_v20 = vpop.xlane.xlu0 %7999 }
0x3c21   :  { %v8007_v21 = vsub.f32 %v7995_v59, %v8000_v20 }
0x3c23   :  { %v8010_v22 = vmul.f32 1.442695, %v8007_v21 }
0x3c24   :  { %v8003_v24 = vpop.xlane.xlu1 %8002 }
0x3c25   :  { %12553 = vpow2.f32 %v8010_v22  ;;  %v8008_v29 = vsub.f32 %v7996_v6, %v8003_v24 }
0x3c27   :  { %v8012_v45 = vmul.f32 1.442695, %v8008_v29 }
0x3c28   :  { %v8036_v10 = vpop.permute.xlu1 %8035  ;;  %v8006_v32 = vpop.xlane.xlu0 %8005 }
0x3c29   :  { %12555 = vpow2.f32 %v8012_v45  ;;  %v8009_v13 = vsub.f32 %v7997_v2, %v8006_v32  ;;  %12008 = vmatpush3.msk.msra.mxu1 %vm3356_vm5, %v8036_v10 }
0x3c2a   :  { %12009 = vmatprep.subr.mxu1 %v12675_v15 }
0x3c2b   :  { %v8014_v12 = vmul.f32 1.442695, %v8009_v13 }
0x3c2d   :  { %12557 = vpow2.f32 %v8014_v12 }
0x3c32   :  { %v12554_v52 = vpop.eup %12553 }
0x3c33   :  { %v8016_v33 = vsel %vm3661_vm7, %v12554_v52, 0.0 }
0x3c34   :  { %8017 = vadd.xlane.f32.xlu0 %v8016_v33 }
0x3c36   :  { %v12556_v35 = vpop.eup %12555 }
0x3c37   :  { %v8019_v43 = vsel %vm3661_vm7, %v12556_v35, 0.0 }
0x3c38   :  { %8020 = vadd.xlane.f32.xlu1 %v8019_v43  ;;  %v10640_v43 = vld [vmem:[%s13570_s7 + $0x30] sm:$0xff] }
0x3c3a   :  { %v12558_v34 = vpop.eup %12557 }
0x3c3b   :  { %v8022_v1 = vsel %vm3668_vm8, %v12558_v34, 0.0 }
0x3c3c   :  { %8023 = vadd.xlane.f32.xlu0 %v8022_v1  ;;  %v10638_v1 = vld [vmem:[%s13570_s7 + $0x20] sm:$0xff] }
0x3c49   :  { %8031 = vrot.lane.b32.xlu1 %v14077_v25, %s12665_s2 }
0x3c4e   :  { %v7881_v36 = vpop.f32.mrf.mxu1 }
0x3c4f   :  { %v14332_v18 = vadd.f32 %v7881_v36, %v14242_v41 }
0x3c50   :  { %v11991_v27 = vpop.f32.mrf.mxu1 }
0x3c52   :  { %8033 = vrot.lane.b32.xlu0 %v14067_v38, %s12665_s2 }
0x3cbd   :  { %v8018_v11 = vpop.xlane.xlu0 %8017 }
0x3cbe   :  { %12559 = vrcp.f32 %v8018_v11 }
0x3cc1   :  { %v8021_v8 = vpop.xlane.xlu1 %8020 }
0x3cc2   :  { %12561 = vrcp.f32 %v8021_v8 }
0x3cc5   :  { %v8024_v56 = vpop.xlane.xlu0 %8023  ;;  %v8032_v25 = vpop.permute.xlu1 %8031 }
0x3cc6   :  { %12563 = vrcp.f32 %v8024_v56 }
0x3cc9   :  { %v8034_v39 = vpop.permute.xlu0 %8033 }
0x3cca   :  { %12010 = vmatpush3.msra.mxu1 %v8034_v39 }
0x3ccb   :  { %v12560_v14 = vpop.eup %12559  ;;  %12011 = vmatprep.subr.mxu1 %v12675_v15 }
0x3ccc   :  { %v8028_v41 = vmul.f32 %v12560_v14, %v12554_v52  ;;  %12012 = vmatpush3.msra.mxu1 %v8032_v25 }
0x3ccd   :  { %12033 = vmatprep.subr.mxu1 %v12675_v15 }
0x3cce   :  { %12014 = vmatmul.mubr.msk.f32.vlgmr.msra.gmra.mxu1 %vm3661_vm7, %v8028_v41  ;;  %v10636_v41 = vld [vmem:[%s13594_s4 + $0x1] ss:$0 sm:$0xff]  ;;  %s10317_s4 = sld [smem:[%s14770_s0 + %s12705_s8]]  }
0x3ccf   :  { %v12562_v38 = vpop.eup %12561  ;;  %12016 = vmatprep.mubr.msk.f32.mxu1 %vm12678_vm4, %v12675_v15 }
0x3cd0   :  { %v8029_v19 = vmul.f32 %v12562_v38, %v12556_v35  ;;  %v10641_v35 = vld [vmem:[%s13570_s7 + $0x38] sm:$0xff] }
0x3cd1   :  { %12034 = vmatpush3.msra.mxu1 %v10641_v35 }
0x3cd2   :  { %12017 = vmatmul.mubr.msk.f32.gmra.mxu1 %vm3661_vm7, %v8029_v19  ;;  %12035 = vmatprep.subr.mxu1 %v12675_v15  ;;  %v10637_v19 = vld [vmem:[%s13599_s9 + $0x1] ss:$0 sm:$0xff] }
0x3cd3   :  { %v12564_v40 = vpop.eup %12563  ;;  %12019 = vmatprep.mubr.msk.f32.mxu1 %vm12678_vm4, %v12675_v15  ;;  %12036 = vmatpush3.msra.mxu1 %v10640_v43 }
0x3cd4   :  { %v8030_v44 = vmul.f32 %v12564_v40, %v12558_v34  ;;  %12037 = vmatprep.subr.mxu1 %v12675_v15  ;;  %v10639_v34 = vld [vmem:[%s13570_s7 + $0x28] sm:$0xff] }
0x3cd5   :  { %12038 = vmatpush3.msra.mxu1 %v10639_v34 }
0x3cd6   :  { %12020 = vmatmul.mubr.msk.f32.gmra.mxu1 %vm3661_vm7, %v8030_v44  ;;  %12039 = vmatprep.subr.mxu1 %v12675_v15  ;;  %v10652_v44 = vld [vmem:[%s13627_s25 + $0x1] ss:$0 sm:$0xff] }
0x3cd7   :  { %12041 = vmatprep.mubr.msk.f32.mxu1 %vm12678_vm4, %v12675_v15  ;;  %12040 = vmatpush3.msra.mxu1 %v10638_v1 }
0x3cd8   :  { %12061 = vmatprep.subr.mxu1 %v12675_v15 }
0x3d8e   :  { %v8116_v50 = vpop.f32.mrf.mxu1 }
0x3d8f   :  { %12025 = vmatmul.mubr.msk.f32.vlgmr.msra.gmra.mxu0 %vm286_vm1, %v8116_v50 }
0x3d90   :  { %v12015_v53 = vpop.f32.mrf.mxu1  ;;  %12027 = vmatprep.mubr.msk.f32.mxu0 %vm12678_vm4, %v12675_v15  ;;  %12051 = vmatpush3.msra.mxu0 %v10650_v47 }
0x3d91   :  { %12052 = vmatprep.subr.mxu0 %v10649_v51 }
0x3d92   :  { %v8121_v5 = vpop.f32.mrf.mxu1  ;;  %12053 = vmatpush3.msra.mxu0 %v10649_v51 }
0x3d93   :  { %12028 = vmatmul.mubr.msk.f32.gmra.mxu0 %vm286_vm1, %v8121_v5  ;;  %12054 = vmatprep.subr.mxu0 %v10648_v54 }
0x3d94   :  { %v12018_v57 = vpop.f32.mrf.mxu1  ;;  %12030 = vmatprep.mubr.msk.f32.mxu0 %vm12678_vm4, %v12675_v15  ;;  %12055 = vmatpush3.msra.mxu0 %v10648_v54 }
0x3d95   :  { %12056 = vmatprep.subr.mxu0 %v10647_v55 }
0x3d96   :  { %v8126_v4 = vpop.f32.mrf.mxu1  ;;  %12057 = vmatpush3.msra.mxu0 %v10647_v55 }
0x3d97   :  { %12031 = vmatmul.mubr.msk.f32.gmra.mxu0 %vm286_vm1, %v8126_v4  ;;  %12074 = vmatprep.subr.mxu0 %v12675_v15 }
0x3d98   :  { %v12021_v59 = vpop.f32.mrf.mxu1  ;;  %12058 = vmatprep.mubr.msk.f32.mxu0 %vm193_vm0, %v13573_v46 }
0x3d9b   :  { %12059 = vmatmul.mubr.msk.f32.vlgmr.msra.gmra.mxu0 %vm193_vm0, %v13577_v28 }
0x3d9c   :  { %12078 = vmatprep.mubr.msk.f32.mxu0 %vm12678_vm4, %v12675_v15 }
0x3e4f   :  { %v8205_v61 = vpop.f32.mrf.mxu0 }
0x3e50   :  { %v8219_v62 = vadd.f32 %v8205_v61, %v14319_v31 }
0x3e51   :  { %v12026_v63 = vpop.f32.mrf.mxu0 }
0x3e52   :  { %v8228_v6 = vadd.f32 %v10633_v17, %v8219_v62  ;;  %v10643_v63 = vld [vmem:[%s13647_s24 + $0x1] ss:$0 sm:$0xff] }
0x3e53   :  { %v8210_v58 = vpop.f32.mrf.mxu0 }
0x3e54   :  { %v8220_v3 = vadd.f32 %v8210_v58, %v14322_v48  ;;  %v8231_v60 = vadd.f32 %v8228_v6, %v14048_v23 }
0x3e55   :  { %v12029_v42 = vpop.f32.mrf.mxu0 }
0x3e56   :  { %v8229_v2 = vadd.f32 %v10633_v17, %v8220_v3  ;;  %v8238_v46 = vsel %vm193_vm0, %v8231_v60, 0.0 }
0x3e57   :  { %8239 = vadd.xlane.f32.xlu1 %v8238_v46  ;;  %v8215_v28 = vpop.f32.mrf.mxu0 }
0x3e58   :  { %v8221_v0 = vadd.f32 %v8215_v28, %v14332_v18  ;;  %v8232_v30 = vadd.f32 %v8229_v2, %v14054_v9 }
0x3e59   :  { %v12032_v7 = vpop.f32.mrf.mxu0 }
0x3e5a   :  { %v8230_v37 = vadd.f32 %v10633_v17, %v8221_v0  ;;  %v8241_v31 = vsel %vm193_vm0, %v8232_v30, 0.0 }
0x3e5b   :  { %8242 = vadd.xlane.f32.xlu0 %v8241_v31  ;;  %v12060_v40 = vpop.f32.mrf.mxu0  ;;  %v14438_v31 = vld [vmem:[%s13690_s22] sm:$0xff] }
0x3e5c   :  { %v8233_v16 = vadd.f32 %v8230_v37, %v14060_v26  ;;  %v14392_v54 = vadd.f32 %v12060_v40, %v10652_v44 }
0x3e5d   :  { %v8476_v5 = vpop.f32.mrf.mxu0 }
0x3e5e   :  { %v8244_v48 = vsel %vm4903_vm9, %v8233_v16, 0.0  ;;  %v14403_v17 = vadd.f32 %v10652_v44, %v8476_v5 }
0x3e5f   :  { %8245 = vadd.xlane.f32.xlu0 %v8244_v48 }
0x3ee0   :  { %v8240_v23 = vpop.xlane.xlu1 %8239 }
0x3ee1   :  { %v8247_v20 = vmul.f32 0.03125, %v8240_v23 }
0x3ee3   :  { %v8250_v21 = vsub.f32 %v8231_v60, %v8247_v20 }
0x3ee4   :  { %v8243_v22 = vpop.xlane.xlu0 %8242 }
0x3ee5   :  { %v8248_v24 = vmul.f32 0.03125, %v8243_v22  ;;  %v8253_v29 = vmul.f32 %v8250_v21, %v8250_v21  ;;  %v14443_v22 = vld [vmem:[%s13690_s22 + $0x8] sm:$0xff] }
0x3ee7   :  { %v8251_v45 = vsub.f32 %v8232_v30, %v8248_v24  ;;  %v8256_v9 = vsel %vm193_vm0, %v8253_v29, 0.0 }
0x3ee8   :  { %8257 = vadd.xlane.f32.xlu1 %v8256_v9  ;;  %v8246_v10 = vpop.xlane.xlu0 %8245 }
0x3ee9   :  { %v8249_v32 = vmul.f32 0.03125, %v8246_v10  ;;  %v8254_v13 = vmul.f32 %v8251_v45, %v8251_v45 }
0x3eeb   :  { %v8252_v26 = vsub.f32 %v8233_v16, %v8249_v32  ;;  %v8259_v12 = vsel %vm193_vm0, %v8254_v13, 0.0  ;;  %v14448_v32 = vld [vmem:[%s13690_s22 + $0x10] sm:$0x3] }
0x3eec   :  { %8260 = vadd.xlane.f32.xlu0 %v8259_v12 }
0x3eed   :  { %v8255_v52 = vmul.f32 %v8252_v26, %v8252_v26 }
0x3eef   :  { %v8262_v33 = vsel %vm4903_vm9, %v8255_v52, 0.0 }
0x3ef0   :  { %8263 = vadd.xlane.f32.xlu1 %v8262_v33 }
0x3f71   :  { %v8258_v36 = vpop.xlane.xlu1 %8257 }
0x3f72   :  { %v8265_v18 = vmul.f32 0.03125, %v8258_v36 }
0x3f74   :  { %v8268_v27 = vadd.f32 1e-05, %v8265_v18 }
0x3f75   :  { %v8261_v49 = vpop.xlane.xlu0 %8260 }
0x3f76   :  { %12565 = vrsqrt.f32 %v8268_v27  ;;  %v8266_v11 = vmul.f32 0.03125, %v8261_v49 }
0x3f78   :  { %v8269_v8 = vadd.f32 1e-05, %v8266_v11 }
0x3f79   :  { %v8264_v56 = vpop.xlane.xlu1 %8263 }
0x3f7a   :  { %12567 = vrsqrt.f32 %v8269_v8  ;;  %v8267_v39 = vmul.f32 0.03125, %v8264_v56 }
0x3f7c   :  { %v8270_v14 = vadd.f32 1e-05, %v8267_v39 }
0x3f7e   :  { %12569 = vrsqrt.f32 %v8270_v14 }
0x3f83   :  { %v12566_v25 = vpop.eup %12565 }
0x3f84   :  { %v8274_v38 = vmul.f32 %v12566_v25, %v8250_v21 }
0x3f86   :  { %v8283_v47 = vmul.f32 %v10636_v41, %v8274_v38 }
0x3f87   :  { %v12568_v50 = vpop.eup %12567 }
0x3f88   :  { %v14390_v51 = vadd.f32 %v10637_v19, %v8283_v47  ;;  %v8275_v53 = vmul.f32 %v12568_v50, %v8251_v45 }
0x3f8a   :  { %12042 = vmatmul.mubr.msk.f32.vlgmr.msra.gmra.mxu1 %vm193_vm0, %v14390_v51  ;;  %v8284_v55 = vmul.f32 %v10636_v41, %v8275_v53 }
0x3f8b   :  { %v12570_v57 = vpop.eup %12569  ;;  %12062 = vmatpush3.xpose.msk.msra.mxu1 %vm286_vm1, %v14392_v54  ;;  %12044 = vmatprep.mubr.msk.f32.mxu1 %vm12678_vm4, %v12675_v15 }
0x3f8c   :  { %v8276_v4 = vmul.f32 %v12570_v57, %v8252_v26  ;;  %12063 = vmatprep.subr.mxu1 %v12675_v15  ;;  %v14401_v59 = vadd.f32 %v10637_v19, %v8284_v55 }
0x3f8e   :  { %12045 = vmatmul.mubr.msk.f32.gmra.mxu1 %vm193_vm0, %v14401_v59  ;;  %v8285_v61 = vmul.f32 %v10636_v41, %v8276_v4 }
0x3f8f   :  { %12064 = vmatpush3.xpose.msk.msra.mxu1 %vm286_vm1, %v14403_v17  ;;  %12047 = vmatprep.mubr.msk.f32.mxu1 %vm12678_vm4, %v12675_v15 }
0x3f90   :  { %v14411_v62 = vadd.f32 %v10637_v19, %v8285_v61  ;;  %12100 = vmatprep.subr.mxu1 %v12675_v15 }
0x3f92   :  { %12048 = vmatmul.mubr.msk.f32.gmra.mxu1 %vm193_vm0, %v14411_v62 }
0x3f93   :  { %12065 = vmatprep.mubr.msk.f32.mxu1 %vm12678_vm4, %v12675_v15 }
0x404a   :  { %v8383_v6 = vpop.f32.mrf.mxu1 }
0x404b   :  { %v14419_v58 = vadd.f32 %v10643_v63, %v8383_v6 }
0x404c   :  { %v12043_v3 = vpop.f32.mrf.mxu1 }
0x404d   :  { %12066 = vmatmul.mubr.msk.f32.vlgmr.msra.gmra.mxu1 %vm286_vm1, %v14419_v58 }
0x404e   :  { %v8388_v60 = vpop.f32.mrf.mxu1  ;;  %12068 = vmatprep.mubr.msk.f32.mxu1 %vm12678_vm4, %v12675_v15 }
0x404f   :  { %v14425_v42 = vadd.f32 %v10643_v63, %v8388_v60 }
0x4050   :  { %v12046_v2 = vpop.f32.mrf.mxu1 }
0x4051   :  { %12069 = vmatmul.mubr.msk.f32.gmra.mxu1 %vm286_vm1, %v14425_v42 }
0x4052   :  { %v8393_v46 = vpop.f32.mrf.mxu1  ;;  %12071 = vmatprep.mubr.msk.f32.mxu1 %vm12678_vm4, %v12675_v15 }
0x4053   :  { %v14431_v28 = vadd.f32 %v10643_v63, %v8393_v46 }
0x4054   :  { %v12049_v0 = vpop.f32.mrf.mxu1 }
0x4055   :  { %12072 = vmatmul.mubr.msk.f32.gmra.mxu1 %vm286_vm1, %v14431_v28 }
0x4056   :  { %12104 = vmatprep.mubr.msk.f32.mxu1 %vm12678_vm4, %v12675_v15 }
0x410d   :  { %v8573_v30 = vpop.f32.mrf.mxu1 }
0x410e   :  { %v8587_v7 = vmul.f32 0.35355338, %v8573_v30 }
0x410f   :  { %v12067_v37 = vpop.f32.mrf.mxu1 }
0x4110   :  { %v8590_v16 = vadd.f32 %v14438_v31, %v8587_v7 }
0x4111   :  { %v8578_v48 = vpop.f32.mrf.mxu1 }
0x4112   :  { %v8588_v23 = vmul.f32 0.35355338, %v8578_v48  ;;  %v8593_v20 = vsel %vm374_vm2, %v8590_v16, -inf }
0x4113   :  { %8594 = vmax.xlane.f32.xlu0 %v8593_v20  ;;  %v12070_v21 = vpop.f32.mrf.mxu1 }
0x4114   :  { %v8591_v24 = vadd.f32 %v14443_v22, %v8588_v23 }
0x4115   :  { %v8583_v29 = vpop.f32.mrf.mxu1 }
0x4116   :  { %v8589_v45 = vmul.f32 0.35355338, %v8583_v29  ;;  %v8596_v9 = vsel %vm374_vm2, %v8591_v24, -inf }
0x4117   :  { %8597 = vmax.xlane.f32.xlu1 %v8596_v9  ;;  %v12073_v10 = vpop.f32.mrf.mxu1 }
0x4118   :  { %v8592_v13 = vadd.f32 %v14448_v32, %v8589_v45 }
0x411a   :  { %v8599_v26 = vsel %vm5259_vm10, %v8592_v13, -inf }
0x411b   :  { %8600 = vmax.xlane.f32.xlu0 %v8599_v26 }
0x419c   :  { %v8595_v12 = vpop.xlane.xlu0 %8594 }
0x419d   :  { %v8602_v52 = vsub.f32 %v8590_v16, %v8595_v12 }
0x419f   :  { %v8605_v33 = vmul.f32 1.442695, %v8602_v52 }
0x41a0   :  { %v8598_v35 = vpop.xlane.xlu1 %8597 }
0x41a1   :  { %12571 = vpow2.f32 %v8605_v33  ;;  %v8603_v43 = vsub.f32 %v8591_v24, %v8598_v35 }
0x41a3   :  { %v8607_v34 = vmul.f32 1.442695, %v8603_v43 }
0x41a4   :  { %v8601_v49 = vpop.xlane.xlu0 %8600 }
0x41a5   :  { %12573 = vpow2.f32 %v8607_v34  ;;  %v8604_v11 = vsub.f32 %v8592_v13, %v8601_v49 }
0x41a7   :  { %v8609_v8 = vmul.f32 1.442695, %v8604_v11 }
0x41a9   :  { %12575 = vpow2.f32 %v8609_v8 }
0x41ae   :  { %v12572_v1 = vpop.eup %12571 }
0x41af   :  { %v8611_v36 = vsel %vm374_vm2, %v12572_v1, 0.0 }
0x41b0   :  { %8612 = vadd.xlane.f32.xlu1 %v8611_v36 }
0x41b2   :  { %v12574_v18 = vpop.eup %12573 }
0x41b3   :  { %v8614_v27 = vsel %vm374_vm2, %v12574_v18, 0.0 }
0x41b4   :  { %8615 = vadd.xlane.f32.xlu0 %v8614_v27 }
0x41b6   :  { %v12576_v56 = vpop.eup %12575 }
0x41b7   :  { %v8617_v39 = vsel %vm5259_vm10, %v12576_v56, 0.0 }
0x41c1   :  { %8626 = vrot.lane.b32.xlu1 %v14403_v17, %s12653_s14 }
0x41c5   :  { %8729 = vrot.lane.b32.xlu1 %v14392_v54, %s12656_s20 }
0x41ca   :  { %8628 = vrot.lane.b32.xlu0 %v14392_v54, %s12653_s14  ;;  %s12703_s14 = smov 41  }
0x41ce   :  { %8727 = vrot.lane.b32.xlu0 %v14403_v17, %s12656_s20 }
0x41d2   :  { %8723 = vrot.lane.b32.xlu0 %v14425_v42, %s12656_s20 }
0x41e9   :  { %8618 = vadd.xlane.f32.xlu1 %v8617_v39 }
0x41fa   :  { %8721 = vrot.lane.b32.xlu1 %v14419_v58, %s12656_s20 }
0x41fe   :  { %8725 = vrot.lane.b32.xlu1 %v14431_v28, %s12656_s20 }
0x4239   :  { %v8613_v14 = vpop.xlane.xlu1 %8612 }
0x423a   :  { %12577 = vrcp.f32 %v8613_v14  ;;  %v10656_v14 = vld [vmem:[%s13770_s17 + $0x28] sm:$0xff] }
0x423d   :  { %v8616_v25 = vpop.xlane.xlu0 %8615  ;;  %v8627_v38 = vpop.permute.xlu1 %8626 }
0x423e   :  { %12579 = vrcp.f32 %v8616_v25 }
0x4241   :  { %v8629_v41 = vpop.permute.xlu0 %8628  ;;  %v8730_v44 = vpop.permute.xlu1 %8729 }
0x4242   :  { %12075 = vmatpush3.msra.mxu0 %v8629_v41 }
0x4243   :  { %12076 = vmatprep.subr.mxu0 %v12675_v15 }
0x4244   :  { %12077 = vmatpush3.msra.mxu0 %v8627_v38 }
0x4245   :  { %12087 = vmatprep.subr.mxu0 %v12675_v15  ;;  %v8728_v53 = vpop.permute.xlu0 %8727 }
0x4247   :  { %v12578_v19 = vpop.eup %12577 }
0x4248   :  { %v8623_v40 = vmul.f32 %v12578_v19, %v12572_v1 }
0x4249   :  { %v8724_v61 = vpop.permute.xlu0 %8723 }
0x424a   :  { %12079 = vmatmul.mubr.msk.f32.vlgmr.msra.gmra.mxu0 %vm374_vm2, %v8623_v40 }
0x424b   :  { %v12580_v47 = vpop.eup %12579  ;;  %12088 = vmatpush3.xpose.msk.msra.mxu0 %vm286_vm1, %v8730_v44  ;;  %12081 = vmatprep.mubr.msk.f32.mxu0 %vm12678_vm4, %v12675_v15 }
0x424c   :  { %12089 = vmatprep.subr.mxu0 %v12675_v15  ;;  %v8624_v50 = vmul.f32 %v12580_v47, %v12574_v18 }
0x424e   :  { %12082 = vmatmul.mubr.msk.f32.gmra.mxu0 %vm374_vm2, %v8624_v50  ;;  %v10655_v50 = vld [vmem:[%s13770_s17 + $0x20] sm:$0xff] }
0x424f   :  { %12090 = vmatpush3.xpose.msk.msra.mxu0 %vm286_vm1, %v8728_v53  ;;  %12084 = vmatprep.mubr.msk.f32.mxu0 %vm12678_vm4, %v12675_v15 }
0x4250   :  { %12113 = vmatprep.subr.mxu0 %v12675_v15 }
0x4272   :  { %v8619_v5 = vpop.xlane.xlu1 %8618 }
0x4273   :  { %12581 = vrcp.f32 %v8619_v5 }
0x4276   :  { %v8722_v4 = vpop.permute.xlu1 %8721 }
0x427a   :  { %v8726_v63 = vpop.permute.xlu1 %8725 }
0x4280   :  { %v12582_v55 = vpop.eup %12581 }
0x4281   :  { %v8625_v57 = vmul.f32 %v12582_v55, %v12576_v56 }
0x4283   :  { %12085 = vmatmul.mubr.msk.f32.gmra.mxu0 %vm374_vm2, %v8625_v57 }
0x4284   :  { %12091 = vmatprep.mubr.msk.f32.mxu0 %vm12678_vm4, %v12675_v15 }
0x4287   :  { %12092 = vmatmul.mubr.msk.f32.vlgmr.msra.gmra.mxu0 %vm286_vm1, %v8722_v4 }
0x4288   :  { %12094 = vmatprep.mubr.msk.f32.mxu0 %vm12678_vm4, %v12675_v15  ;;  %12114 = vmatpush3.msra.mxu0 %v10656_v14 }
0x4289   :  { %12135 = vmatprep.subr.mxu0 %v12675_v15 }
0x428b   :  { %12095 = vmatmul.mubr.msk.f32.gmra.mxu0 %vm286_vm1, %v8724_v61 }
0x428c   :  { %12097 = vmatprep.mubr.msk.f32.mxu0 %vm12678_vm4, %v12675_v15 }
0x428f   :  { %12098 = vmatmul.mubr.msk.f32.gmra.mxu0 %vm286_vm1, %v8726_v63 }
0x4290   :  { %12115 = vmatprep.mubr.msk.f32.mxu0 %vm12678_vm4, %v12675_v15 }
0x430a   :  { %v14493_v6 = vpop.f32.mrf.mxu0 }
0x430c   :  { %v12080_v3 = vpop.f32.mrf.mxu0 }
0x430e   :  { %v14495_v60 = vpop.f32.mrf.mxu0 }
0x4310   :  { %v12083_v2 = vpop.f32.mrf.mxu0 }
0x4343   :  { %v14497_v46 = vpop.f32.mrf.mxu0 }
0x4345   :  { %v12086_v0 = vpop.f32.mrf.mxu0 }
0x4347   :  { %v8807_v30 = vpop.f32.mrf.mxu0 }
0x4348   :  { %v8821_v7 = vmul.f32 0.35355338, %v8807_v30 }
0x4349   :  { %v12093_v37 = vpop.f32.mrf.mxu0 }
0x434a   :  { %v8824_v16 = vadd.f32 %v14438_v31, %v8821_v7 }
0x434b   :  { %v8812_v48 = vpop.f32.mrf.mxu0 }
0x434c   :  { %v8822_v23 = vmul.f32 0.35355338, %v8812_v48  ;;  %v8827_v20 = vsel %vm374_vm2, %v8824_v16, -inf }
0x434d   :  { %8828 = vmax.xlane.f32.xlu0 %v8827_v20  ;;  %v12096_v21 = vpop.f32.mrf.mxu0 }
0x434e   :  { %v8825_v24 = vadd.f32 %v14443_v22, %v8822_v23 }
0x434f   :  { %v8817_v29 = vpop.f32.mrf.mxu0 }
0x4350   :  { %v8823_v45 = vmul.f32 0.35355338, %v8817_v29  ;;  %v8830_v9 = vsel %vm374_vm2, %v8825_v24, -inf }
0x4351   :  { %8831 = vmax.xlane.f32.xlu1 %v8830_v9  ;;  %v12099_v10 = vpop.f32.mrf.mxu0 }
0x4352   :  { %v8826_v13 = vadd.f32 %v14448_v32, %v8823_v45 }
0x4354   :  { %v8833_v26 = vsel %vm5259_vm10, %v8826_v13, -inf }
0x4355   :  { %8834 = vmax.xlane.f32.xlu0 %v8833_v26 }
0x43d6   :  { %v8829_v12 = vpop.xlane.xlu0 %8828 }
0x43d7   :  { %v8836_v52 = vsub.f32 %v8824_v16, %v8829_v12 }
0x43d9   :  { %v8839_v33 = vmul.f32 1.442695, %v8836_v52 }
0x43da   :  { %v8832_v35 = vpop.xlane.xlu1 %8831 }
0x43db   :  { %12583 = vpow2.f32 %v8839_v33  ;;  %v8837_v43 = vsub.f32 %v8825_v24, %v8832_v35 }
0x43dd   :  { %v8841_v34 = vmul.f32 1.442695, %v8837_v43 }
0x43de   :  { %v8835_v1 = vpop.xlane.xlu0 %8834 }
0x43df   :  { %12585 = vpow2.f32 %v8841_v34  ;;  %v8838_v36 = vsub.f32 %v8826_v13, %v8835_v1 }
0x43e1   :  { %v8843_v18 = vmul.f32 1.442695, %v8838_v36 }
0x43e3   :  { %12587 = vpow2.f32 %v8843_v18 }
0x43e8   :  { %v12584_v27 = vpop.eup %12583 }
0x43e9   :  { %v8845_v49 = vsel %vm374_vm2, %v12584_v27, 0.0 }
0x43ea   :  { %8846 = vadd.xlane.f32.xlu0 %v8845_v49 }
0x43ec   :  { %v12586_v11 = vpop.eup %12585 }
0x43ed   :  { %v8848_v8 = vsel %vm374_vm2, %v12586_v11, 0.0 }
0x43ee   :  { %8849 = vadd.xlane.f32.xlu1 %v8848_v8 }
0x43f0   :  { %v12588_v56 = vpop.eup %12587 }
0x43f1   :  { %v8851_v39 = vsel %vm5259_vm10, %v12588_v56, 0.0 }
0x43f2   :  { %8852 = vadd.xlane.f32.xlu0 %v8851_v39 }
0x43ff   :  { %8862 = vrot.lane.b32.xlu1 %v14392_v54, %s12657_s21 }
0x4403   :  { %9141 = vrot.lane.b32.xlu1 %v14392_v54, %s14788_s1 }
0x4407   :  { %9139 = vrot.lane.b32.xlu1 %v14403_v17, %s14788_s1 }
0x4408   :  { %8860 = vrot.lane.b32.xlu0 %v14403_v17, %s12657_s21 }
0x440b   :  { %9135 = vrot.lane.b32.xlu1 %v14425_v42, %s14788_s1 }
0x440c   :  { %9133 = vrot.lane.b32.xlu0 %v14419_v58, %s14788_s1 }
0x4410   :  { %9137 = vrot.lane.b32.xlu0 %v14431_v28, %s14788_s1 }
0x4473   :  { %v8847_v25 = vpop.xlane.xlu0 %8846 }
0x4474   :  { %12589 = vrcp.f32 %v8847_v25 }
0x4477   :  { %v8850_v41 = vpop.xlane.xlu1 %8849 }
0x4478   :  { %12591 = vrcp.f32 %v8850_v41 }
0x447b   :  { %v8863_v38 = vpop.permute.xlu1 %8862  ;;  %v8853_v19 = vpop.xlane.xlu0 %8852 }
0x447c   :  { %12593 = vrcp.f32 %v8853_v19  ;;  %12101 = vmatpush3.msra.mxu1 %v8863_v38 }
0x447d   :  { %12102 = vmatprep.subr.mxu1 %v12675_v15 }
0x447f   :  { %v8861_v40 = vpop.permute.xlu0 %8860  ;;  %v9142_v4 = vpop.permute.xlu1 %9141 }
0x4480   :  { %12103 = vmatpush3.msra.mxu1 %v8861_v40 }
0x4481   :  { %v12590_v44 = vpop.eup %12589  ;;  %12124 = vmatprep.subr.mxu1 %v12675_v15 }
0x4482   :  { %v8857_v47 = vmul.f32 %v12590_v44, %v12584_v27 }
0x4483   :  { %v9140_v3 = vpop.permute.xlu1 %9139  ;;  %v9134_v0 = vpop.permute.xlu0 %9133 }
0x4484   :  { %12105 = vmatmul.mubr.msk.f32.vlgmr.msra.gmra.mxu1 %vm374_vm2, %v8857_v47 }
0x4485   :  { %v12592_v53 = vpop.eup %12591  ;;  %12107 = vmatprep.mubr.msk.f32.mxu1 %vm12678_vm4, %v12675_v15  ;;  %12125 = vmatpush3.msra.mxu1 %v10655_v50 }
0x4486   :  { %v8858_v5 = vmul.f32 %v12592_v53, %v12586_v11  ;;  %12148 = vmatprep.subr.mxu1 %v12675_v15 }
0x4487   :  { %v9136_v37 = vpop.permute.xlu1 %9135  ;;  %v9138_v23 = vpop.permute.xlu0 %9137 }
0x4488   :  { %12108 = vmatmul.mubr.msk.f32.gmra.mxu1 %vm374_vm2, %v8858_v5 }
0x4489   :  { %v12594_v55 = vpop.eup %12593  ;;  %12110 = vmatprep.mubr.msk.f32.mxu1 %vm12678_vm4, %v12675_v15 }
0x448a   :  { %v8859_v57 = vmul.f32 %v12594_v55, %v12588_v56 }
0x448c   :  { %12111 = vmatmul.mubr.msk.f32.gmra.mxu1 %vm374_vm2, %v8859_v57 }
0x448d   :  { %12126 = vmatprep.mubr.msk.f32.mxu1 %vm12678_vm4, %v12675_v15 }
0x4490   :  { %12127 = vmatmul.mubr.msk.f32.vlgmr.msra.gmra.mxu1 %vm286_vm1, %v14493_v6 }
0x4491   :  { %12129 = vmatprep.mubr.msk.f32.mxu1 %vm12678_vm4, %v12675_v15 }
0x4494   :  { %12130 = vmatmul.mubr.msk.f32.gmra.mxu1 %vm286_vm1, %v14495_v60 }
0x4495   :  { %12132 = vmatprep.mubr.msk.f32.mxu1 %vm12678_vm4, %v12675_v15 }
0x4498   :  { %12133 = vmatmul.mubr.msk.f32.gmra.mxu1 %vm286_vm1, %v14497_v46 }
0x4499   :  { %12152 = vmatprep.mubr.msk.f32.mxu1 %vm12678_vm4, %v12675_v15 }
0x4544   :  { %v8941_v61 = vpop.f32.mrf.mxu1 }
0x4545   :  { %12116 = vmatmul.mubr.msk.f32.vlgmr.msra.gmra.mxu0 %vm286_vm1, %v8941_v61 }
0x4546   :  { %12136 = vmatpush3.xpose.msk.msra.mxu0 %vm286_vm1, %v9142_v4  ;;  %v12106_v63 = vpop.f32.mrf.mxu1  ;;  %12118 = vmatprep.mubr.msk.f32.mxu0 %vm12678_vm4, %v12675_v15 }
0x4547   :  { %12137 = vmatprep.subr.mxu0 %v12675_v15 }
0x4548   :  { %v8946_v6 = vpop.f32.mrf.mxu1 }
0x4549   :  { %12119 = vmatmul.mubr.msk.f32.gmra.mxu0 %vm286_vm1, %v8946_v6 }
0x454a   :  { %12138 = vmatpush3.xpose.msk.msra.mxu0 %vm286_vm1, %v9140_v3  ;;  %v12109_v60 = vpop.f32.mrf.mxu1  ;;  %12121 = vmatprep.mubr.msk.f32.mxu0 %vm12678_vm4, %v12675_v15 }
0x454b   :  { %12161 = vmatprep.subr.mxu0 %v12675_v15 }
0x454c   :  { %v8951_v2 = vpop.f32.mrf.mxu1 }
0x454d   :  { %12122 = vmatmul.mubr.msk.f32.gmra.mxu0 %vm286_vm1, %v8951_v2 }
0x454e   :  { %v12112_v46 = vpop.f32.mrf.mxu1  ;;  %12139 = vmatprep.mubr.msk.f32.mxu0 %vm12678_vm4, %v12675_v15 }
0x4550   :  { %v14562_v30 = vpop.f32.mrf.mxu1 }
0x4551   :  { %12140 = vmatmul.mubr.msk.f32.vlgmr.msra.gmra.mxu0 %vm286_vm1, %v9134_v0 }
0x4552   :  { %v12128_v7 = vpop.f32.mrf.mxu1  ;;  %12142 = vmatprep.mubr.msk.f32.mxu0 %vm12678_vm4, %v12675_v15 }
0x4554   :  { %v14567_v16 = vpop.f32.mrf.mxu1 }
0x4555   :  { %12143 = vmatmul.mubr.msk.f32.gmra.mxu0 %vm286_vm1, %v9136_v37 }
0x4556   :  { %v12131_v48 = vpop.f32.mrf.mxu1  ;;  %12145 = vmatprep.mubr.msk.f32.mxu0 %vm12678_vm4, %v12675_v15 }
0x4558   :  { %v14572_v20 = vpop.f32.mrf.mxu1 }
0x4559   :  { %12146 = vmatmul.mubr.msk.f32.gmra.mxu0 %vm286_vm1, %v9138_v23 }
0x455a   :  { %v12134_v21 = vpop.f32.mrf.mxu1  ;;  %12163 = vmatprep.mubr.msk.f32.mxu0 %vm12678_vm4, %v12675_v15 }
0x455b   :  { %v10657_v21 = vld [vmem:[%s13770_s17 + $0x30] sm:$0xff] }
0x455c   :  { %12162 = vmatpush3.msra.mxu0 %v10657_v21 }
0x455d   :  { %12185 = vmatprep.subr.mxu0 %v12675_v15 }
0x4605   :  { %v14577_v24 = vpop.f32.mrf.mxu0 }
0x4607   :  { %v12117_v29 = vpop.f32.mrf.mxu0 }
0x4609   :  { %v14579_v45 = vpop.f32.mrf.mxu0 }
0x460b   :  { %v12120_v9 = vpop.f32.mrf.mxu0 }
0x460d   :  { %v14581_v10 = vpop.f32.mrf.mxu0 }
0x460f   :  { %v12123_v13 = vpop.f32.mrf.mxu0 }
0x4611   :  { %v9219_v26 = vpop.f32.mrf.mxu0 }
0x4612   :  { %v9233_v12 = vmul.f32 0.35355338, %v9219_v26 }
0x4613   :  { %v12141_v52 = vpop.f32.mrf.mxu0 }
0x4614   :  { %v9236_v33 = vadd.f32 %v14438_v31, %v9233_v12 }
0x4615   :  { %v9224_v35 = vpop.f32.mrf.mxu0 }
0x4616   :  { %v9234_v43 = vmul.f32 0.35355338, %v9224_v35  ;;  %v9239_v34 = vsel %vm374_vm2, %v9236_v33, -inf }
0x4617   :  { %9240 = vmax.xlane.f32.xlu1 %v9239_v34  ;;  %v12144_v1 = vpop.f32.mrf.mxu0 }
0x4618   :  { %v9237_v36 = vadd.f32 %v14443_v22, %v9234_v43 }
0x4619   :  { %v9229_v18 = vpop.f32.mrf.mxu0 }
0x461a   :  { %v9235_v27 = vmul.f32 0.35355338, %v9229_v18  ;;  %v9242_v49 = vsel %vm374_vm2, %v9237_v36, -inf }
0x461b   :  { %9243 = vmax.xlane.f32.xlu0 %v9242_v49  ;;  %v12147_v11 = vpop.f32.mrf.mxu0 }
0x461c   :  { %v9238_v8 = vadd.f32 %v14448_v32, %v9235_v27 }
0x461e   :  { %v9245_v56 = vsel %vm5259_vm10, %v9238_v8, -inf }
0x461f   :  { %9246 = vmax.xlane.f32.xlu0 %v9245_v56 }
0x46a0   :  { %v9241_v39 = vpop.xlane.xlu1 %9240 }
0x46a1   :  { %v9248_v14 = vsub.f32 %v9236_v33, %v9241_v39 }
0x46a3   :  { %v9251_v25 = vmul.f32 1.442695, %v9248_v14 }
0x46a4   :  { %v9244_v41 = vpop.xlane.xlu0 %9243 }
0x46a5   :  { %12595 = vpow2.f32 %v9251_v25  ;;  %v9249_v38 = vsub.f32 %v9237_v36, %v9244_v41 }
0x46a7   :  { %v9253_v19 = vmul.f32 1.442695, %v9249_v38 }
0x46a8   :  { %v9247_v53 = vpop.xlane.xlu0 %9246 }
0x46a9   :  { %12597 = vpow2.f32 %v9253_v19  ;;  %v9250_v5 = vsub.f32 %v9238_v8, %v9247_v53 }
0x46ab   :  { %v9255_v55 = vmul.f32 1.442695, %v9250_v5 }
0x46ad   :  { %12599 = vpow2.f32 %v9255_v55 }
0x46b2   :  { %v12596_v40 = vpop.eup %12595 }
0x46b3   :  { %v9257_v44 = vsel %vm374_vm2, %v12596_v40, 0.0 }
0x46b4   :  { %9258 = vadd.xlane.f32.xlu1 %v9257_v44 }
0x46b6   :  { %v12598_v47 = vpop.eup %12597 }
0x46b7   :  { %v9260_v50 = vsel %vm374_vm2, %v12598_v47, 0.0 }
0x46b8   :  { %9261 = vadd.xlane.f32.xlu0 %v9260_v50 }
0x46ba   :  { %v12600_v57 = vpop.eup %12599 }
0x46bb   :  { %v9263_v4 = vsel %vm5259_vm10, %v12600_v57, 0.0 }
0x46c5   :  { %9272 = vrot.lane.b32.xlu1 %v14403_v17, %s14787_s18 }
0x46c9   :  { %9467 = vrot.lane.b32.xlu1 %v14392_v54, %s14791_s27 }
0x46ce   :  { %9274 = vrot.lane.b32.xlu0 %v14392_v54, %s14787_s18 }
0x46d2   :  { %9465 = vrot.lane.b32.xlu0 %v14403_v17, %s14791_s27 }
0x46d6   :  { %9461 = vrot.lane.b32.xlu0 %v14425_v42, %s14791_s27 }
0x46ed   :  { %9264 = vadd.xlane.f32.xlu1 %v9263_v4 }
0x46fe   :  { %9459 = vrot.lane.b32.xlu1 %v14419_v58, %s14791_s27 }
0x4702   :  { %9463 = vrot.lane.b32.xlu1 %v14431_v28, %s14791_s27 }
0x473d   :  { %v9259_v61 = vpop.xlane.xlu1 %9258 }
0x473e   :  { %12601 = vrcp.f32 %v9259_v61 }
0x4741   :  { %v9262_v63 = vpop.xlane.xlu0 %9261  ;;  %v9273_v3 = vpop.permute.xlu1 %9272 }
0x4742   :  { %12603 = vrcp.f32 %v9262_v63 }
0x4745   :  { %v9275_v6 = vpop.permute.xlu0 %9274  ;;  %v9468_v2 = vpop.permute.xlu1 %9467 }
0x4746   :  { %12149 = vmatpush3.msra.mxu1 %v9275_v6 }
0x4747   :  { %12150 = vmatprep.subr.mxu1 %v12675_v15 }
0x4748   :  { %12151 = vmatpush3.msra.mxu1 %v9273_v3 }
0x4749   :  { %12172 = vmatprep.subr.mxu1 %v12675_v15  ;;  %v9466_v46 = vpop.permute.xlu0 %9465 }
0x474b   :  { %v12602_v42 = vpop.eup %12601 }
0x474c   :  { %v9269_v60 = vmul.f32 %v12602_v42, %v12596_v40 }
0x474d   :  { %v9462_v23 = vpop.permute.xlu0 %9461 }
0x474e   :  { %12153 = vmatmul.mubr.msk.f32.vlgmr.msra.gmra.mxu1 %vm374_vm2, %v9269_v60  ;;  %v9130_v60 = vadd.f32 %v14572_v20, %v14581_v10 }
0x474f   :  { %v12604_v58 = vpop.eup %12603  ;;  %12173 = vmatpush3.xpose.msk.msra.mxu1 %vm286_vm1, %v9468_v2  ;;  %12155 = vmatprep.mubr.msk.f32.mxu1 %vm12678_vm4, %v12675_v15 }
0x4750   :  { %12174 = vmatprep.subr.mxu1 %v12675_v15  ;;  %v9270_v28 = vmul.f32 %v12604_v58, %v12598_v47 }
0x4752   :  { %12156 = vmatmul.mubr.msk.f32.gmra.mxu1 %vm374_vm2, %v9270_v28 }
0x4753   :  { %12175 = vmatpush3.xpose.msk.msra.mxu1 %vm286_vm1, %v9466_v46  ;;  %12158 = vmatprep.mubr.msk.f32.mxu1 %vm12678_vm4, %v12675_v15  ;;  %v10658_v46 = vld [vmem:[%s13770_s17 + $0x38] sm:$0xff] }
0x4754   :  { %12198 = vmatprep.subr.mxu1 %v12675_v15 }
0x4776   :  { %v9265_v0 = vpop.xlane.xlu1 %9264 }
0x4777   :  { %12605 = vrcp.f32 %v9265_v0 }
0x477a   :  { %v9460_v48 = vpop.permute.xlu1 %9459 }
0x477e   :  { %v9464_v29 = vpop.permute.xlu1 %9463 }
0x4784   :  { %v12606_v7 = vpop.eup %12605 }
0x4785   :  { %v9271_v37 = vmul.f32 %v12606_v7, %v12600_v57 }
0x4787   :  { %12159 = vmatmul.mubr.msk.f32.gmra.mxu1 %vm374_vm2, %v9271_v37 }
0x4788   :  { %12176 = vmatprep.mubr.msk.f32.mxu1 %vm12678_vm4, %v12675_v15 }
0x478b   :  { %12177 = vmatmul.mubr.msk.f32.vlgmr.msra.gmra.mxu1 %vm286_vm1, %v9460_v48 }
0x478c   :  { %12179 = vmatprep.mubr.msk.f32.mxu1 %vm12678_vm4, %v12675_v15  ;;  %12199 = vmatpush3.msra.mxu1 %v10658_v46 }
0x478d   :  { %12226 = vmatprep.subr.mxu1 %v12675_v15 }
0x478f   :  { %12180 = vmatmul.mubr.msk.f32.gmra.mxu1 %vm286_vm1, %v9462_v23 }
0x4790   :  { %12182 = vmatprep.mubr.msk.f32.mxu1 %vm12678_vm4, %v12675_v15 }
0x4793   :  { %12183 = vmatmul.mubr.msk.f32.gmra.mxu1 %vm286_vm1, %v9464_v29 }
0x4794   :  { %12200 = vmatprep.mubr.msk.f32.mxu1 %vm12678_vm4, %v12675_v15 }
0x480e   :  { %v9353_v9 = vpop.f32.mrf.mxu1 }
0x480f   :  { %12164 = vmatmul.mubr.msk.f32.vlgmr.msra.gmra.mxu0 %vm286_vm1, %v9353_v9 }
0x4810   :  { %v12154_v13 = vpop.f32.mrf.mxu1  ;;  %12166 = vmatprep.mubr.msk.f32.mxu0 %vm12678_vm4, %v12675_v15 }
0x4812   :  { %v9358_v26 = vpop.f32.mrf.mxu1 }
0x4813   :  { %12167 = vmatmul.mubr.msk.f32.gmra.mxu0 %vm286_vm1, %v9358_v26 }
0x4814   :  { %v12157_v12 = vpop.f32.mrf.mxu1  ;;  %12169 = vmatprep.mubr.msk.f32.mxu0 %vm12678_vm4, %v12675_v15 }
0x4847   :  { %v9363_v52 = vpop.f32.mrf.mxu1 }
0x4848   :  { %12170 = vmatmul.mubr.msk.f32.gmra.mxu0 %vm286_vm1, %v9363_v52 }
0x4849   :  { %v12160_v33 = vpop.f32.mrf.mxu1  ;;  %12189 = vmatprep.mubr.msk.f32.mxu0 %vm12678_vm4, %v12675_v15 }
0x484b   :  { %v9545_v35 = vpop.f32.mrf.mxu1 }
0x484c   :  { %v9559_v43 = vmul.f32 0.35355338, %v9545_v35  ;;  %v10704_v35 = vld [vmem:[%s13916_s13 + $0x1] ss:$0 sm:$0xff] }
0x484d   :  { %v12178_v34 = vpop.f32.mrf.mxu1 }
0x484e   :  { %v9562_v1 = vadd.f32 %v14438_v31, %v9559_v43  ;;  %v9120_v31 = vadd.f32 %v14562_v30, %v14577_v24 }
0x484f   :  { %v9550_v36 = vpop.f32.mrf.mxu1 }
0x4850   :  { %v9560_v18 = vmul.f32 0.35355338, %v9550_v36  ;;  %v9565_v27 = vsel %vm374_vm2, %v9562_v1, -inf }
0x4851   :  { %9566 = vmax.xlane.f32.xlu0 %v9565_v27  ;;  %v12181_v49 = vpop.f32.mrf.mxu1 }
0x4852   :  { %v9563_v11 = vadd.f32 %v14443_v22, %v9560_v18  ;;  %v9125_v22 = vadd.f32 %v14567_v16, %v14579_v45 }
0x4853   :  { %v9555_v8 = vpop.f32.mrf.mxu1 }
0x4854   :  { %v9561_v56 = vmul.f32 0.35355338, %v9555_v8  ;;  %v9568_v39 = vsel %vm374_vm2, %v9563_v11, -inf }
0x4855   :  { %9569 = vmax.xlane.f32.xlu1 %v9568_v39  ;;  %v12184_v14 = vpop.f32.mrf.mxu1 }
0x4856   :  { %v9564_v25 = vadd.f32 %v14448_v32, %v9561_v56 }
0x4858   :  { %v9571_v41 = vsel %vm5259_vm10, %v9564_v25, -inf }
0x4859   :  { %9572 = vmax.xlane.f32.xlu0 %v9571_v41 }
0x48cf   :  { %v9442_v38 = vpop.f32.mrf.mxu0 }
0x48d0   :  { %v14649_v19 = vadd.f32 %v9442_v38, %v9120_v31 }
0x48d1   :  { %v12165_v40 = vpop.f32.mrf.mxu0 }
0x48d3   :  { %v9447_v44 = vpop.f32.mrf.mxu0 }
0x48d4   :  { %v14653_v47 = vadd.f32 %v9447_v44, %v9125_v22 }
0x48d5   :  { %v12168_v50 = vpop.f32.mrf.mxu0 }
0x48da   :  { %v9567_v53 = vpop.xlane.xlu0 %9566 }
0x48db   :  { %v9574_v5 = vsub.f32 %v9562_v1, %v9567_v53 }
0x48dd   :  { %v9577_v32 = vmul.f32 1.442695, %v9574_v5 }
0x48de   :  { %v9570_v55 = vpop.xlane.xlu1 %9569 }
0x48df   :  { %12607 = vpow2.f32 %v9577_v32  ;;  %v9575_v57 = vsub.f32 %v9563_v11, %v9570_v55 }
0x48e1   :  { %v9579_v4 = vmul.f32 1.442695, %v9575_v57 }
0x48e2   :  { %v9573_v61 = vpop.xlane.xlu0 %9572 }
0x48e3   :  { %12609 = vpow2.f32 %v9579_v4  ;;  %v9576_v30 = vsub.f32 %v9564_v25, %v9573_v61 }
0x48e5   :  { %v9581_v24 = vmul.f32 1.442695, %v9576_v30 }
0x48e7   :  { %12611 = vpow2.f32 %v9581_v24  ;;  %v10712_v24 = vld [vmem:[%s13945_s3 + $0x38] sm:$0xff] }
0x48ec   :  { %v12608_v63 = vpop.eup %12607 }
0x48ed   :  { %v9583_v16 = vsel %vm374_vm2, %v12608_v63, 0.0 }
0x48ee   :  { %9584 = vadd.xlane.f32.xlu0 %v9583_v16  ;;  %v10710_v16 = vld [vmem:[%s13945_s3 + $0x28] sm:$0xff] }
0x48f0   :  { %v12610_v45 = vpop.eup %12609 }
0x48f1   :  { %v9586_v6 = vsel %vm374_vm2, %v12610_v45, 0.0 }
0x48f2   :  { %9587 = vadd.xlane.f32.xlu1 %v9586_v6  ;;  %v10721_v6 = vld [vmem:[%s13958_s5 + $0x78] sm:$0xff] }
0x48f4   :  { %v12612_v3 = vpop.eup %12611 }
0x48f5   :  { %v9589_v42 = vsel %vm5259_vm10, %v12612_v3, 0.0 }
0x48f6   :  { %9590 = vadd.xlane.f32.xlu0 %v9589_v42  ;;  %v10719_v42 = vld [vmem:[%s13958_s5 + $0x68] sm:$0xff] }
0x4903   :  { %9600 = vrot.lane.b32.xlu1 %v14392_v54, %s14790_s23 }
0x4908   :  { %v9452_v2 = vpop.f32.mrf.mxu0 }
0x4909   :  { %v9458_v58 = vadd.f32 %v9452_v2, %v9130_v60  ;;  %v10718_v60 = vld [vmem:[%s13958_s5 + $0x60] sm:$0xff]  ;;  %v10717_v2 = vld [vmem:[%s13958_s5 + $0x58] sm:$0xff] }
0x490a   :  { %v12171_v28 = vpop.f32.mrf.mxu0 }
0x490c   :  { %9598 = vrot.lane.b32.xlu0 %v14403_v17, %s14790_s23 }
0x4977   :  { %v9585_v0 = vpop.xlane.xlu0 %9584 }
0x4978   :  { %12613 = vrcp.f32 %v9585_v0 }
0x497b   :  { %v9588_v7 = vpop.xlane.xlu1 %9587 }
0x497c   :  { %12615 = vrcp.f32 %v9588_v7 }
0x497f   :  { %v9601_v37 = vpop.permute.xlu1 %9600  ;;  %v9591_v48 = vpop.xlane.xlu0 %9590 }
0x4980   :  { %12617 = vrcp.f32 %v9591_v48  ;;  %12186 = vmatpush3.msra.mxu0 %v9601_v37 }
0x4981   :  { %12187 = vmatprep.subr.mxu0 %v12675_v15 }
0x4983   :  { %v9599_v54 = vpop.permute.xlu0 %9598 }
0x4984   :  { %12188 = vmatpush3.msra.mxu0 %v9599_v54 }
0x4985   :  { %v12614_v20 = vpop.eup %12613  ;;  %12209 = vmatprep.subr.mxu0 %v12675_v15 }
0x4986   :  { %v9595_v17 = vmul.f32 %v12614_v20, %v12608_v63  ;;  %v10711_v63 = vld [vmem:[%s13945_s3 + $0x30] sm:$0xff] }
0x4988   :  { %12190 = vmatmul.mubr.msk.f32.vlgmr.msra.gmra.mxu0 %vm374_vm2, %v9595_v17 }
0x4989   :  { %v12616_v10 = vpop.eup %12615  ;;  %12192 = vmatprep.mubr.msk.f32.mxu0 %vm12678_vm4, %v12675_v15  ;;  %12210 = vmatpush3.msra.mxu0 %v10712_v24 }
0x498a   :  { %v9596_v23 = vmul.f32 %v12616_v10, %v12610_v45  ;;  %12211 = vmatprep.subr.mxu0 %v12675_v15  ;;  %v10709_v45 = vld [vmem:[%s13945_s3 + $0x20] sm:$0xff] }
0x498b   :  { %12212 = vmatpush3.msra.mxu0 %v10711_v63  ;;  %v10707_v10 = vld [vmem:[%s13973_s29 + $0x1] ss:$0 sm:$0xff]  ;;  %s10315_s29 = sld [smem:[%s14770_s0 + %s12703_s14]]  }
0x498c   :  { %12193 = vmatmul.mubr.msk.f32.gmra.mxu0 %vm374_vm2, %v9596_v23  ;;  %12213 = vmatprep.subr.mxu0 %v12675_v15 }
0x498d   :  { %v12618_v21 = vpop.eup %12617  ;;  %12195 = vmatprep.mubr.msk.f32.mxu0 %vm12678_vm4, %v12675_v15  ;;  %12214 = vmatpush3.msra.mxu0 %v10710_v16 }
0x498e   :  { %v9597_v29 = vmul.f32 %v12618_v21, %v12612_v3  ;;  %12215 = vmatprep.subr.mxu0 %v12675_v15  ;;  %v10720_v3 = vld [vmem:[%s13958_s5 + $0x70] sm:$0xff]  ;;  %v10708_v21 = vld [vmem:[%s13978_s30 + $0x1] ss:$0 sm:$0xff] }
0x498f   :  { %12216 = vmatpush3.msra.mxu0 %v10709_v45 }
0x4990   :  { %12196 = vmatmul.mubr.msk.f32.gmra.mxu0 %vm374_vm2, %v9597_v29  ;;  %12251 = vmatprep.subr.mxu0 %v12675_v15 }
0x4991   :  { %12217 = vmatprep.mubr.msk.f32.mxu0 %vm12678_vm4, %v12675_v15 }
0x4a48   :  { %v9679_v9 = vpop.f32.mrf.mxu0 }
0x4a49   :  { %12201 = vmatmul.mubr.msk.f32.vlgmr.msra.gmra.mxu1 %vm286_vm1, %v9679_v9 }
0x4a4a   :  { %v12191_v13 = vpop.f32.mrf.mxu0  ;;  %12203 = vmatprep.mubr.msk.f32.mxu1 %vm12678_vm4, %v12675_v15  ;;  %12227 = vmatpush3.msra.mxu1 %v10721_v6 }
0x4a4b   :  { %12228 = vmatprep.subr.mxu1 %v12675_v15 }
0x4a4c   :  { %v9684_v26 = vpop.f32.mrf.mxu0  ;;  %12229 = vmatpush3.msra.mxu1 %v10720_v3 }
0x4a4d   :  { %12204 = vmatmul.mubr.msk.f32.gmra.mxu1 %vm286_vm1, %v9684_v26  ;;  %12230 = vmatprep.subr.mxu1 %v12675_v15 }
0x4a4e   :  { %v12194_v12 = vpop.f32.mrf.mxu0  ;;  %12206 = vmatprep.mubr.msk.f32.mxu1 %vm12678_vm4, %v12675_v15  ;;  %12231 = vmatpush3.msra.mxu1 %v10719_v42 }
0x4a4f   :  { %12232 = vmatprep.subr.mxu1 %v12675_v15 }
0x4a50   :  { %v9689_v52 = vpop.f32.mrf.mxu0  ;;  %12233 = vmatpush3.msra.mxu1 %v10718_v60 }
0x4a51   :  { %12207 = vmatmul.mubr.msk.f32.gmra.mxu1 %vm286_vm1, %v9689_v52  ;;  %12234 = vmatprep.subr.mxu1 %v12675_v15 }
0x4a52   :  { %v12197_v33 = vpop.f32.mrf.mxu0  ;;  %12242 = vmatprep.mubr.msk.f32.mxu1 %vm12678_vm4, %v12675_v15  ;;  %12235 = vmatpush3.msra.mxu1 %v10717_v2 }
0x4a53   :  { %12236 = vmatprep.subr.mxu1 %v12675_v15 }
0x4b09   :  { %v9768_v43 = vpop.f32.mrf.mxu1 }
0x4b0a   :  { %v9782_v34 = vadd.f32 %v9768_v43, %v14649_v19 }
0x4b0b   :  { %v12202_v1 = vpop.f32.mrf.mxu1 }
0x4b0c   :  { %v9791_v36 = vadd.f32 %v10704_v35, %v9782_v34  ;;  %v10716_v1 = vld [vmem:[%s13958_s5 + $0x50] sm:$0xff] }
0x4b0d   :  { %v9773_v18 = vpop.f32.mrf.mxu1  ;;  %12237 = vmatpush3.msra.mxu1 %v10716_v1  ;;  %v10734_v1 = vld [vmem:[%s14044_s19 + $0x1] ss:$0 sm:$0xff]  ;;  %s12704_s19 = smov 42  }
0x4b0e   :  { %v9783_v27 = vadd.f32 %v9773_v18, %v14653_v47  ;;  %v9794_v49 = vadd.f32 %v9791_v36, %v14390_v51  ;;  %12238 = vmatprep.subr.mxu1 %v12675_v15  ;;  %v10715_v36 = vld [vmem:[%s13958_s5 + $0x48] sm:$0xff]  ;;  %v10714_v18 = vld [vmem:[%s13958_s5 + $0x40] sm:$0xff]  ;;  %s10316_s16 = sld [smem:[%s14770_s0 + %s12704_s19]]  }
0x4b0f   :  { %v12205_v11 = vpop.f32.mrf.mxu1  ;;  %12239 = vmatpush3.msra.mxu1 %v10715_v36 }
0x4b10   :  { %v9792_v8 = vadd.f32 %v10704_v35, %v9783_v27  ;;  %v9801_v56 = vsel %vm193_vm0, %v9794_v49, 0.0  ;;  %12240 = vmatprep.subr.mxu1 %v12675_v15  ;;  %v10723_v27 = vld [vmem:[%s14003_s10 + $0x1] ss:$0 sm:$0xff] }
0x4b11   :  { %9802 = vadd.xlane.f32.xlu1 %v9801_v56  ;;  %v9778_v39 = vpop.f32.mrf.mxu1  ;;  %12241 = vmatpush3.msra.mxu1 %v10714_v18 }
0x4b12   :  { %v9784_v14 = vadd.f32 %v9778_v39, %v9458_v58  ;;  %v9795_v25 = vadd.f32 %v9792_v8, %v14401_v59 }
0x4b13   :  { %v12208_v41 = vpop.f32.mrf.mxu1 }
0x4b14   :  { %v9793_v31 = vadd.f32 %v10704_v35, %v9784_v14  ;;  %v9804_v38 = vsel %vm193_vm0, %v9795_v25, 0.0 }
0x4b15   :  { %9805 = vadd.xlane.f32.xlu0 %v9804_v38 }
0x4b16   :  { %v9796_v19 = vadd.f32 %v9793_v31, %v14411_v62 }
0x4b18   :  { %v9807_v40 = vsel %vm4903_vm9, %v9796_v19, 0.0 }
0x4b19   :  { %9808 = vadd.xlane.f32.xlu1 %v9807_v40 }
0x4b9a   :  { %v9803_v51 = vpop.xlane.xlu1 %9802 }
0x4b9b   :  { %v9810_v22 = vmul.f32 0.03125, %v9803_v51  ;;  %v10727_v51 = vld [vmem:[%s14018_s28 + $0x1] ss:$0 sm:$0xff] }
0x4b9d   :  { %v9813_v44 = vsub.f32 %v9794_v49, %v9810_v22 }
0x4b9e   :  { %v9806_v47 = vpop.xlane.xlu0 %9805 }
0x4b9f   :  { %v9811_v50 = vmul.f32 0.03125, %v9806_v47  ;;  %v9816_v53 = vmul.f32 %v9813_v44, %v9813_v44 }
0x4ba1   :  { %v9814_v5 = vsub.f32 %v9795_v25, %v9811_v50  ;;  %v9819_v59 = vsel %vm193_vm0, %v9816_v53, 0.0 }
0x4ba2   :  { %9820 = vadd.xlane.f32.xlu0 %v9819_v59  ;;  %v9809_v32 = vpop.xlane.xlu1 %9808 }
0x4ba3   :  { %v9812_v55 = vmul.f32 0.03125, %v9809_v32  ;;  %v9817_v57 = vmul.f32 %v9814_v5, %v9814_v5 }
0x4ba5   :  { %v9815_v62 = vsub.f32 %v9796_v19, %v9812_v55  ;;  %v9822_v4 = vsel %vm193_vm0, %v9817_v57, 0.0 }
0x4ba6   :  { %9823 = vadd.xlane.f32.xlu1 %v9822_v4 }
0x4ba7   :  { %v9818_v61 = vmul.f32 %v9815_v62, %v9815_v62 }
0x4ba9   :  { %v9825_v30 = vsel %vm4903_vm9, %v9818_v61, 0.0 }
0x4baa   :  { %9826 = vadd.xlane.f32.xlu0 %v9825_v30 }
0x4c2b   :  { %v9821_v58 = vpop.xlane.xlu0 %9820 }
0x4c2c   :  { %v9828_v28 = vmul.f32 0.03125, %v9821_v58 }
0x4c2e   :  { %v9831_v46 = vadd.f32 1e-05, %v9828_v28 }
0x4c2f   :  { %v9824_v0 = vpop.xlane.xlu1 %9823 }
0x4c30   :  { %12619 = vrsqrt.f32 %v9831_v46  ;;  %v9829_v7 = vmul.f32 0.03125, %v9824_v0 }
0x4c32   :  { %v9832_v37 = vadd.f32 1e-05, %v9829_v7 }
0x4c33   :  { %v9827_v48 = vpop.xlane.xlu0 %9826 }
0x4c34   :  { %12621 = vrsqrt.f32 %v9832_v37  ;;  %v9830_v54 = vmul.f32 0.03125, %v9827_v48 }
0x4c36   :  { %v9833_v20 = vadd.f32 1e-05, %v9830_v54  ;;  %v10136_v54 = vld [vmem:[%s10315_s29 + $0x18] sm:$0xff] }
0x4c38   :  { %12623 = vrsqrt.f32 %v9833_v20  ;;  %v10135_v20 = vld [vmem:[%s10315_s29 + $0x10] sm:$0xff] }
0x4c3d   :  { %v12620_v17 = vpop.eup %12619 }
0x4c3e   :  { %v9837_v23 = vmul.f32 %v12620_v17, %v9813_v44  ;;  %v10134_v17 = vld [vmem:[%s10315_s29 + $0x8] sm:$0xff] }
0x4c40   :  { %v9846_v29 = vmul.f32 %v10707_v10, %v9837_v23 }
0x4c41   :  { %v12622_v9 = vpop.eup %12621 }
0x4c42   :  { %v9855_v13 = vadd.f32 %v10708_v21, %v9846_v29  ;;  %v9838_v26 = vmul.f32 %v12622_v9, %v9814_v5 }
0x4c44   :  { %12218 = vmatmul.mubr.msk.f32.vlgmr.msra.gmra.mxu0 %vm193_vm0, %v9855_v13  ;;  %v9847_v12 = vmul.f32 %v10707_v10, %v9838_v26 }
0x4c45   :  { %v12624_v52 = vpop.eup %12623  ;;  %12220 = vmatprep.mubr.msk.f32.mxu0 %vm12678_vm4, %v12675_v15  ;;  %12252 = vmatpush3.msra.mxu0 %v10136_v54 }
0x4c46   :  { %v9839_v33 = vmul.f32 %v12624_v52, %v9815_v62  ;;  %v9856_v35 = vadd.f32 %v10708_v21, %v9847_v12  ;;  %12253 = vmatprep.subr.mxu0 %v12675_v15 }
0x4c47   :  { %12254 = vmatpush3.msra.mxu0 %v10135_v20 }
0x4c48   :  { %12221 = vmatmul.mubr.msk.f32.gmra.mxu0 %vm193_vm0, %v9856_v35  ;;  %v9848_v43 = vmul.f32 %v10707_v10, %v9839_v33  ;;  %12255 = vmatprep.subr.mxu0 %v12675_v15  ;;  %v10133_v10 = vld [vmem:[%s10315_s29] sm:$0xff] }
0x4c49   :  { %12223 = vmatprep.mubr.msk.f32.mxu0 %vm12678_vm4, %v12675_v15  ;;  %12256 = vmatpush3.msra.mxu0 %v10134_v17 }
0x4c4a   :  { %v9857_v34 = vadd.f32 %v10708_v21, %v9848_v43  ;;  %12257 = vmatprep.subr.mxu0 %v12675_v15  ;;  %v10733_v43 = vld [vmem:[%s14038_s11 + $0x1] ss:$0 sm:$0xff] }
0x4c4b   :  { %12258 = vmatpush3.msra.mxu0 %v10133_v10 }
0x4c4c   :  { %12224 = vmatmul.mubr.msk.f32.gmra.mxu0 %vm193_vm0, %v9857_v34 }
0x4c4d   :  { %12259 = vmatprep.mubr.msk.f32.mxu0 %vm12678_vm4, %v12675_v15 }
0x4d04   :  { %v9957_v49 = vpop.f32.mrf.mxu0 }
0x4d05   :  { %v9958_v11 = vadd.f32 %v10723_v27, %v9957_v49 }
0x4d06   :  { %v12219_v8 = vpop.f32.mrf.mxu0 }
0x4d07   :  { %v9971_v56 = vmax.f32 %v9958_v11, 0.0 }
0x4d08   :  { %v9962_v39 = vpop.f32.mrf.mxu0 }
0x4d09   :  { %v9963_v14 = vadd.f32 %v10723_v27, %v9962_v39  ;;  %12243 = vmatmul.mubr.msk.f32.vlgmr.msra.gmra.mxu1 %vm1588_vm3, %v9971_v56 }
0x4d0a   :  { %v12222_v25 = vpop.f32.mrf.mxu0  ;;  %12245 = vmatprep.mubr.msk.f32.mxu1 %vm12678_vm4, %v12675_v15 }
0x4d0b   :  { %v9972_v41 = vmax.f32 %v9963_v14, 0.0 }
0x4d0c   :  { %v9967_v31 = vpop.f32.mrf.mxu0 }
0x4d0d   :  { %v9968_v38 = vadd.f32 %v10723_v27, %v9967_v31  ;;  %12246 = vmatmul.mubr.msk.f32.gmra.mxu1 %vm1588_vm3, %v9972_v41  ;;  %v10735_v41 = vld [vmem:[%s10316_s16] ss:$0 sm:$0xff] }
0x4d0e   :  { %v12225_v19 = vpop.f32.mrf.mxu0  ;;  %12248 = vmatprep.mubr.msk.f32.mxu1 %vm12678_vm4, %v12675_v15 }
0x4d0f   :  { %v9973_v40 = vmax.f32 %v9968_v38, 0.0 }
0x4d11   :  { %12249 = vmatmul.mubr.msk.f32.gmra.mxu1 %vm1588_vm3, %v9973_v40 }
0x4dc9   :  { %v10055_v22 = vpop.f32.mrf.mxu1 }
0x4dca   :  { %v10056_v44 = vadd.f32 %v10727_v51, %v10055_v22 }
0x4dcb   :  { %v12244_v47 = vpop.f32.mrf.mxu1 }
0x4dcc   :  { %v10069_v50 = vadd.f32 %v10056_v44, %v9855_v13 }
0x4dcd   :  { %v10060_v53 = vpop.f32.mrf.mxu1 }
0x4dce   :  { %v10061_v5 = vadd.f32 %v10727_v51, %v10060_v53  ;;  %v10076_v59 = vsel %vm193_vm0, %v10069_v50, 0.0 }
0x4dcf   :  { %10077 = vadd.xlane.f32.xlu1 %v10076_v59  ;;  %v12247_v32 = vpop.f32.mrf.mxu1 }
0x4dd0   :  { %v10070_v55 = vadd.f32 %v10061_v5, %v9856_v35 }
0x4dd1   :  { %v10065_v57 = vpop.f32.mrf.mxu1 }
0x4dd2   :  { %v10066_v62 = vadd.f32 %v10727_v51, %v10065_v57  ;;  %v10079_v4 = vsel %vm193_vm0, %v10070_v55, 0.0 }
0x4dd3   :  { %10080 = vadd.xlane.f32.xlu0 %v10079_v4  ;;  %v12250_v61 = vpop.f32.mrf.mxu1 }
0x4dd4   :  { %v10071_v30 = vadd.f32 %v10066_v62, %v9857_v34 }
0x4dd6   :  { %v10082_v24 = vsel %vm4903_vm9, %v10071_v30, 0.0 }
0x4dd7   :  { %10083 = vadd.xlane.f32.xlu1 %v10082_v24 }
0x4e58   :  { %v10078_v63 = vpop.xlane.xlu1 %10077 }
0x4e59   :  { %v10085_v16 = vmul.f32 0.03125, %v10078_v63 }
0x4e5b   :  { %v10088_v45 = vsub.f32 %v10069_v50, %v10085_v16 }
0x4e5c   :  { %v10081_v6 = vpop.xlane.xlu0 %10080 }
0x4e5d   :  { %v10086_v3 = vmul.f32 0.03125, %v10081_v6  ;;  %v10091_v42 = vmul.f32 %v10088_v45, %v10088_v45 }
0x4e5f   :  { %v10089_v60 = vsub.f32 %v10070_v55, %v10086_v3  ;;  %v10094_v2 = vsel %vm193_vm0, %v10091_v42, 0.0 }
0x4e60   :  { %10095 = vadd.xlane.f32.xlu0 %v10094_v2  ;;  %v10084_v58 = vpop.xlane.xlu1 %10083 }
0x4e61   :  { %v10087_v28 = vmul.f32 0.03125, %v10084_v58  ;;  %v10092_v46 = vmul.f32 %v10089_v60, %v10089_v60 }
0x4e63   :  { %v10090_v0 = vsub.f32 %v10071_v30, %v10087_v28  ;;  %v10097_v7 = vsel %vm193_vm0, %v10092_v46, 0.0 }
0x4e64   :  { %10098 = vadd.xlane.f32.xlu1 %v10097_v7 }
0x4e65   :  { %v10093_v37 = vmul.f32 %v10090_v0, %v10090_v0 }
0x4e67   :  { %v10100_v48 = vsel %vm4903_vm9, %v10093_v37, 0.0 }
0x4e68   :  { %10101 = vadd.xlane.f32.xlu0 %v10100_v48 }
0x4ee9   :  { %v10096_v23 = vpop.xlane.xlu0 %10095 }
0x4eea   :  { %v10103_v21 = vmul.f32 0.03125, %v10096_v23 }
0x4eec   :  { %v10106_v29 = vadd.f32 1e-05, %v10103_v21 }
0x4eed   :  { %v10099_v9 = vpop.xlane.xlu1 %10098 }
0x4eee   :  { %12625 = vrsqrt.f32 %v10106_v29  ;;  %v10104_v13 = vmul.f32 0.03125, %v10099_v9 }
0x4ef0   :  { %v10107_v26 = vadd.f32 1e-05, %v10104_v13 }
0x4ef1   :  { %v10102_v12 = vpop.xlane.xlu0 %10101 }
0x4ef2   :  { %12627 = vrsqrt.f32 %v10107_v26  ;;  %v10105_v52 = vmul.f32 0.03125, %v10102_v12 }
0x4ef4   :  { %v10108_v33 = vadd.f32 1e-05, %v10105_v52 }
0x4ef6   :  { %12629 = vrsqrt.f32 %v10108_v33 }
0x4efb   :  { %v12626_v35 = vpop.eup %12625 }
0x4efc   :  { %v10112_v34 = vmul.f32 %v12626_v35, %v10088_v45 }
0x4efe   :  { %v10121_v36 = vmul.f32 %v10733_v43, %v10112_v34 }
0x4eff   :  { %v12628_v18 = vpop.eup %12627 }
0x4f00   :  { %v10130_v27 = vadd.f32 %v10734_v1, %v10121_v36  ;;  %v10113_v49 = vmul.f32 %v12628_v18, %v10089_v60 }
0x4f02   :  { %12260 = vmatmul.mubr.msk.f32.vlgmr.msra.gmra.mxu0 %vm193_vm0, %v10130_v27  ;;  %v10122_v11 = vmul.f32 %v10733_v43, %v10113_v49 }
0x4f03   :  { %v12630_v8 = vpop.eup %12629  ;;  %12262 = vmatprep.mubr.msk.f32.mxu0 %vm12678_vm4, %v12675_v15 }
0x4f04   :  { %v10114_v56 = vmul.f32 %v12630_v8, %v10090_v0  ;;  %v10131_v39 = vadd.f32 %v10734_v1, %v10122_v11 }
0x4f06   :  { %12263 = vmatmul.mubr.msk.f32.gmra.mxu0 %vm193_vm0, %v10131_v39  ;;  %v10123_v14 = vmul.f32 %v10733_v43, %v10114_v56 }
0x4f07   :  { %12265 = vmatprep.mubr.msk.f32.mxu0 %vm12678_vm4, %v12675_v15 }
0x4f08   :  { %v10132_v25 = vadd.f32 %v10734_v1, %v10123_v14 }
0x4f0a   :  { %12266 = vmatmul.mubr.msk.f32.gmra.mxu0 %vm193_vm0, %v10132_v25 }
0x4fc2   :  { %v10219_v31 = vpop.f32.mrf.mxu0 }
0x4fc3   :  { %v10220_v38 = vadd.f32 %v10735_v41, %v10219_v31 }
0x4fc4   :  { %v12261_v19 = vpop.f32.mrf.mxu0 }
0x4fc5   :  { %10233 = vmax.xlane.f32.xlu0 %v10220_v38 }
0x4fc6   :  { %v10224_v40 = vpop.f32.mrf.mxu0 }
0x4fc7   :  { %v10225_v50 = vadd.f32 %v10735_v41, %v10224_v40 }
0x4fc8   :  { %v12264_v51 = vpop.f32.mrf.mxu0 }
0x4fca   :  { %v10229_v22 = vpop.f32.mrf.mxu0 }
0x4fcb   :  { %v10230_v44 = vadd.f32 %v10735_v41, %v10229_v22 }
0x4fcc   :  { %v12267_v47 = vpop.f32.mrf.mxu0 }
0x4fcd   :  { %v10237_v15 = vsel %vm3356_vm5, %v10230_v44, -inf }
0x4fce   :  { %10238 = vmax.xlane.f32.xlu1 %v10237_v15 }
0x4fd2   :  { %10235 = vmax.xlane.f32.xlu1 %v10225_v50 }
0x504e   :  { %v10234_v53 = vpop.xlane.xlu0 %10233 }
0x504f   :  { %v10240_v5 = vsub.f32 %v10220_v38, %v10234_v53 }
0x5051   :  { %v10243_v59 = vmul.f32 1.442695, %v10240_v5 }
0x5053   :  { %12631 = vpow2.f32 %v10243_v59 }
0x5057   :  { %v10239_v32 = vpop.xlane.xlu1 %10238 }
0x5058   :  { %v10242_v55 = vsub.f32 %v10230_v44, %v10239_v32 }
0x505a   :  { %v10247_v57 = vmul.f32 1.442695, %v10242_v55 }
0x505b   :  { %v10236_v62 = vpop.xlane.xlu1 %10235 }
0x505c   :  { %12633 = vpow2.f32 %v10247_v57  ;;  %v10241_v4 = vsub.f32 %v10225_v50, %v10236_v62 }
0x505e   :  { %v10245_v61 = vmul.f32 1.442695, %v10241_v4 }
0x5060   :  { %v12632_v30 = vpop.eup %12631  ;;  %12635 = vpow2.f32 %v10245_v61 }
0x5061   :  { %10249 = vadd.xlane.f32.xlu0 %v12632_v30 }
0x5069   :  { %v12634_v24 = vpop.eup %12633 }
0x506a   :  { %v10253_v63 = vsel %vm3356_vm5, %v12634_v24, 0.0 }
0x506b   :  { %10254 = vadd.xlane.f32.xlu0 %v10253_v63 }
0x506d   :  { %v12636_v16 = vpop.eup %12635 }
0x506e   :  { %10251 = vadd.xlane.f32.xlu1 %v12636_v16 }
0x50ea   :  { %v10250_v45 = vpop.xlane.xlu0 %10249 }
0x50eb   :  { %12637 = vlog2.f32 %v10250_v45 }
0x50f4   :  { %v10255_v6 = vpop.xlane.xlu0 %10254 }
0x50f5   :  { %12639 = vlog2.f32 %v10255_v6 }
0x50f7   :  { %v10252_v3 = vpop.xlane.xlu1 %10251 }
0x50f8   :  { %v12638_v42 = vpop.eup %12637  ;;  %12641 = vlog2.f32 %v10252_v3 }
0x50f9   :  { %v10257_v60 = vmul.f32 0.6931472, %v12638_v42 }
0x50fb   :  { %v10262_v2 = vadd.f32 %v10257_v60, %v10234_v53 }
0x50fd   :  { %v10265_v58 = vsub.f32 %v10220_v38, %v10262_v2 }
0x50ff   :  { %10268 = vst [vmem:[%s10317_s4] sm:$0xff] %v10265_v58 }
0x5102   :  { %v12640_v28 = vpop.eup %12639 }
0x5103   :  { %v10261_v46 = vmul.f32 0.6931472, %v12640_v28 }
0x5105   :  { %v12642_v0 = vpop.eup %12641  ;;  %v10264_v7 = vadd.f32 %v10261_v46, %v10239_v32 }
0x5106   :  { %v10259_v37 = vmul.f32 0.6931472, %v12642_v0 }
0x5107   :  { %v10267_v48 = vsub.f32 %v10230_v44, %v10264_v7 }
0x5108   :  { %v10263_v54 = vadd.f32 %v10259_v37, %v10236_v62 }
0x5109   :  { %10270 = vst [vmem:[%s10317_s4 + $0x10] sm:$0x3] %v10267_v48 }
0x510a   :  { %v10266_v20 = vsub.f32 %v10225_v50, %v10263_v54 }
0x510c   :  { %10269 = vst [vmem:[%s10317_s4 + $0x8] sm:$0xff] %v10266_v20 }

</bundles_post_ra>
